<compile_context>
chip_gen: v7x
topology: tpu7x:2x2x1
jax: 0.10.0
libtpu: 0.0.40
codegen_flags: <defaults>
</compile_context>

<pallas_src>
import functools

import jax
import jax.numpy as jnp
from jax.experimental import pallas as pl
from jax.experimental.pallas import tpu as pltpu


def _round_up(x, m):
    return ((x + m - 1) // m) * m


def _theta_schedule(theta0, beta, theta_min, T):
    """Trace-time theta schedule.  Returns (thetas, n_head) such that
    thetas[n_head:] are all exactly == theta_min (the constant tail)."""
    thetas = []
    th = float(theta0)
    for _ in range(T):
        thetas.append(th)
        th = max(beta * th, theta_min)
    n_tail = 0
    for t in reversed(thetas):
        if t == theta_min:
            n_tail += 1
        else:
            break
    n_head = T - n_tail
    # The constant-theta tail relies on the invariant score+b == min(score,-a),
    # which only holds after at least one iteration has run in "head" form.
    if T > 0 and n_head == 0:
        n_head = 1
    return tuple(thetas), n_head


def _normalizer_kernel(*refs, temperature, theta_min, thetas, n_head, p, has_mask):
    if has_mask:
        score_ref, mask_ref, out_ref = refs
    else:
        score_ref, out_ref = refs

    T = len(thetas)
    inv_theta_min = jnp.float32(1.0 / theta_min)

    score = score_ref[...].astype(jnp.float32) * jnp.float32(temperature)
    if has_mask:
        # Compare in the mask's native dtype; no full-tile f32 conversion.
        score = jnp.where(mask_ref[...] == 0, jnp.float32(-jnp.inf), score)

    if T == 0:  # a == b == 0  ->  gamma = exp(score / theta_min)
        out_ref[...] = jnp.exp(score * inv_theta_min).astype(out_ref.dtype)
        return

    # k = p * (#finite entries per row), exactly as in the PyTorch reference.
    # (abs(x) < inf is False for NaN and +/-inf -> equivalent to isfinite.)
    finite = jnp.abs(score) < jnp.float32(jnp.inf)
    k = jnp.sum(finite.astype(jnp.float32), axis=-1, keepdims=True) * jnp.float32(p)
    log_k = jnp.log(k)                 # (TB, 1); -inf for fully-masked rows
    eps = jnp.float32(1e-20)

    # Shift-invariant row-max subtraction: `a` absorbs the shift exactly
    # (up to the 1e-20 epsilon), so results match the reference while every
    # full-tile exponent stays <= 0 (no overflow, no inf*0 NaN path).
    m = jnp.max(score, axis=-1, keepdims=True)
    m = jnp.where(m == -jnp.inf, jnp.float32(0.0), m)   # fully-masked rows
    score = score - m

    a = jnp.zeros((score.shape[0], 1), jnp.float32)
    sb = score                         # == score + b, with b == 0 initially

    # --- head: theta still annealing -> one full-tile exp per iteration. ---
    for it in range(n_head):
        th = thetas[it]
        s = jnp.sum(jnp.exp(sb * jnp.float32(1.0 / th)), axis=-1, keepdims=True)
        a = jnp.float32(th) * (log_k - jnp.log(s + eps))
        sb = jnp.minimum(score, -a)    # == score - relu(score + a) == score + b

    # --- tail: theta == theta_min (constant).  Hoist E = exp(score/theta_min);
    # exp((score+b)/theta_min) == min(E, exp(-a/theta_min)) by monotonicity, so
    # each tail iteration is VALU/XLU only plus a (TB,1)-sized exp/log. ---
    E = jnp.exp(score * inv_theta_min)          # score <= 0  ->  E <= 1
    for it in range(n_head, T):
        s = jnp.sum(jnp.minimum(E, jnp.exp(-a * inv_theta_min)),
                    axis=-1, keepdims=True)
        a = jnp.float32(thetas[it]) * (log_k - jnp.log(s + eps))

    # gamma = exp((score + a + b)/theta_min) with b = -relu(score + a)
    #       = exp(min(score + a, 0)/theta_min).
    # Exponent <= 0 -> never overflows; masked entries give exp(-inf) = 0,
    # matching the reference exactly.
    gamma = jnp.exp(jnp.minimum(score + a, jnp.float32(0.0)) * inv_theta_min)
    out_ref[...] = gamma.astype(out_ref.dtype)


def _vmem_limit_bytes():
    """Per-generation scoped-VMEM limit: half the physical VMEM, capped at 64 MiB
    (=> 64 MiB on v5e/v6e's 128 MiB parts, 32 MiB on v7x's 64 MiB per-TC)."""
    try:
        info = pltpu.get_tpu_info()
        vmem_cap = int(getattr(info, "vmem_capacity_bytes", 0)) or (64 << 20)
    except Exception:
        vmem_cap = 64 << 20            # assume the smallest (v7x per-TensorCore)
    return max(16 << 20, min(vmem_cap // 2, 64 << 20))


def _pick_block_batch(bsz, seq, mask_itemsize, vmem_limit):
    seq_lanes = _round_up(seq, 128)    # lane padding of the VMEM tile
    # Live VMEM per batch row per grid step: double-buffered score/mask/out
    # blocks plus ~6 full-tile f32 intermediates inside the kernel body.
    bytes_per_row = seq_lanes * (2 * 4 + 2 * mask_itemsize + 2 * 4 + 6 * 4)
    tb = int((vmem_limit * 3 // 4) // max(bytes_per_row, 1))
    tb = max(32, min((tb // 32) * 32, 2048))
    # Keep >=4 (or >=2) grid steps so v7x's two TensorCores both get work and
    # the DMA pipeline has iterations to overlap.
    if bsz >= 128:
        tb = min(tb, max(32, _round_up(-(-bsz // 4), 32)))
    elif bsz >= 64:
        tb = min(tb, max(32, _round_up(-(-bsz // 2), 32)))
    return tb


def normalizer(score, mask=None, *, temperature=1.0, theta=0.3, theta0=4.0,
               T=20, beta=0.7, p=0.5, block_batch=None):
    """Pallas wrapper for Normalizer.forward(score, mask) (p-is-not-None path)."""
    if p is None:
        raise NotImplementedError("p=None path references the non-existent "
                                  "`self.k2` in the PyTorch module")
    score = jnp.asarray(score)
    if score.ndim != 2:
        raise ValueError("score must be (batch, seq)")
    bsz, seq = score.shape
    out_dtype = score.dtype if jnp.issubdtype(score.dtype, jnp.floating) \
        else jnp.float32

    has_mask = mask is not None
    if has_mask:
        mask = jnp.asarray(mask)
        if mask.dtype == jnp.bool_:
            mask = mask.astype(jnp.int8)   # avoid i1 VMEM loads; 1 B/elem
        mask_itemsize = mask.dtype.itemsize
    else:
        mask_itemsize = 0

    vmem_limit = _vmem_limit_bytes()

    # ---- batch tile -------------------------------------------------------
    if block_batch is not None:
        tb = int(block_batch)
    else:
        tb = _pick_block_batch(bsz, seq, mask_itemsize, vmem_limit)
    if bsz >= 32:
        tb = max(32, min((tb // 32) * 32, (bsz // 32) * 32))
    else:
        tb = bsz                          # full-dim block for tiny batches
    grid = (pl.cdiv(bsz, tb),)            # ragged last block; OOB rows dropped

    thetas, n_head = _theta_schedule(theta0, beta, theta, T)
    kernel = functools.partial(
        _normalizer_kernel,
        temperature=float(temperature),
        theta_min=float(theta),
        thetas=thetas,
        n_head=n_head,
        p=float(p),
        has_mask=has_mask,
    )

    in_specs = [pl.BlockSpec((tb, seq), lambda i: (i, 0))]
    operands = [score]
    if has_mask:
        in_specs.append(pl.BlockSpec((tb, seq), lambda i: (i, 0)))
        operands.append(mask)

    elems = bsz * seq
    cost = pl.CostEstimate(
        flops=int(elems * (3 * T + 12)),
        transcendentals=int(elems * (n_head + 2)),
        bytes_accessed=int(elems * (4 + mask_itemsize + 4)),
    )

    out = pl.pallas_call(
        kernel,
        out_shape=jax.ShapeDtypeStruct((bsz, seq), out_dtype),
        grid=grid,
        in_specs=in_specs,
        out_specs=pl.BlockSpec((tb, seq), lambda i: (i, 0)),
        compiler_params=pltpu.CompilerParams(
            dimension_semantics=("parallel",),   # rows independent; v7x 2 TCs
            vmem_limit_bytes=int(vmem_limit),
        ),
        cost_estimate=cost,
    )(*operands)
    return out


def _normalizer_ref(score, mask, *, temperature=1.0, theta=0.3, theta0=4.0,
                    T=20, beta=0.7, p=0.5):
    """Pure-JAX reference mirroring the PyTorch forward (p-is-not-None path)."""
    score = score.astype(jnp.float32) * temperature
    if mask is not None:
        score = jnp.where(mask == 0, -jnp.inf, score)
    bsz, _ = score.shape
    k = jnp.sum(jnp.isfinite(score).astype(jnp.float32),
                axis=-1, keepdims=True) * p
    a = jnp.zeros((bsz, 1), jnp.float32)
    b = jnp.zeros_like(score)
    th = float(theta0)
    for _ in range(T):
        s = jnp.sum(jnp.exp((score + b) / th), axis=-1, keepdims=True)
        a = th * jnp.log(k / (s + 1e-20))
        b = -jnp.maximum(score + a, 0.0)
        th = max(beta * th, theta)
    return jnp.exp((score + a + b) / theta)


if __name__ == "__main__":
    key = jax.random.PRNGKey(0)
    k_score, k_mask = jax.random.split(key)

    bsz, seq = 200, 300   # small; deliberately NOT multiples of (32, 128)
    score = jax.random.normal(k_score, (bsz, seq), dtype=jnp.float32)
    # deterministic mask with ~10% zeroed-out positions (int32, used as-is)
    mask = (jax.random.uniform(k_mask, (bsz, seq)) > 0.1).astype(jnp.int32)

    out = normalizer(score, mask, temperature=1.0, theta=0.3, theta0=4.0,
                     T=20, beta=0.7, p=0.5)
    out = jax.block_until_ready(out)
    ref = _normalizer_ref(score, mask, temperature=1.0, theta=0.3, theta0=4.0,
                          T=20, beta=0.7, p=0.5)
    assert out.shape == (bsz, seq)
    assert bool(jnp.all(jnp.isfinite(out)))
    assert jnp.allclose(out, ref, rtol=1e-4, atol=1e-6)

    # No-mask path (mask=None): single-input kernel variant.
    out2 = jax.block_until_ready(normalizer(score, None))
    ref2 = _normalizer_ref(score, None)
    assert jnp.allclose(out2, ref2, rtol=1e-4, atol=1e-6)

    print("KERNEL_OK")
</pallas_src>

<mosaic_0001>
module attributes {stable_mosaic.version = 11 : i64} {
  func.func @_normalizer_kernel(%arg0: i32, %arg1: memref<64x300xf32, #tpu.memory_space<vmem>>, %arg2: memref<64x300xi32, #tpu.memory_space<vmem>>, %arg3: memref<64x300xf32, #tpu.memory_space<vmem>>) attributes {dimension_semantics = [#tpu.dimension_semantics<parallel>], iteration_bounds = array<i64: 4>, scalar_prefetch = 0 : i64, scratch_operands = 0 : i64, tpu.core_type = #tpu.core_type<tc>, window_params = [{transform_indices = @transform_0, window_bounds = array<i64: 64, 300>}, {transform_indices = @transform_1, window_bounds = array<i64: 64, 300>}, {transform_indices = @transform_2, window_bounds = array<i64: 64, 300>}]} {
    %c0 = arith.constant 0 : index
    %c0_0 = arith.constant 0 : index
    %0 = vector.load %arg1[%c0, %c0_0] : memref<64x300xf32, #tpu.memory_space<vmem>>, vector<64x300xf32>
    %cst = arith.constant 1.000000e+00 : f32
    %1 = vector.broadcast %cst : f32 to vector<64x300xf32>
    %2 = arith.mulf %0, %1 : vector<64x300xf32>
    %c0_1 = arith.constant 0 : index
    %c0_2 = arith.constant 0 : index
    %3 = vector.load %arg2[%c0_1, %c0_2] : memref<64x300xi32, #tpu.memory_space<vmem>>, vector<64x300xi32>
    %c0_i32 = arith.constant 0 : i32
    %4 = vector.broadcast %c0_i32 : i32 to vector<64x300xi32>
    %5 = arith.cmpi eq, %3, %4 : vector<64x300xi32>
    %cst_3 = arith.constant 0xFF800000 : f32
    %6 = vector.broadcast %cst_3 : f32 to vector<64x300xf32>
    %7 = arith.select %5, %6, %2 : vector<64x300xi1>, vector<64x300xf32>
    %8 = math.absf %7 : vector<64x300xf32>
    %cst_4 = arith.constant 0x7F800000 : f32
    %9 = vector.broadcast %cst_4 : f32 to vector<64x300xf32>
    %10 = arith.cmpf olt, %8, %9 : vector<64x300xf32>
    %11 = arith.extui %10 : vector<64x300xi1> to vector<64x300xi32>
    %12 = arith.sitofp %11 : vector<64x300xi32> to vector<64x300xf32>
    %cst_5 = arith.constant dense<0.000000e+00> : vector<64xf32>
    %13 = vector.multi_reduction <add>, %12, %cst_5 [1] : vector<64x300xf32> to vector<64xf32>
    %14 = vector.shape_cast %13 : vector<64xf32> to vector<64x1xf32>
    %cst_6 = arith.constant 5.000000e-01 : f32
    %15 = vector.broadcast %cst_6 : f32 to vector<64x1xf32>
    %16 = arith.mulf %14, %15 : vector<64x1xf32>
    %17 = math.log %16 : vector<64x1xf32>
    %cst_7 = arith.constant dense<0xFF800000> : vector<64xf32>
    %18 = vector.multi_reduction <maximumf>, %7, %cst_7 [1] : vector<64x300xf32> to vector<64xf32>
    %19 = vector.shape_cast %18 : vector<64xf32> to vector<64x1xf32>
    %cst_8 = arith.constant 0xFF800000 : f32
    %20 = vector.broadcast %cst_8 : f32 to vector<64x1xf32>
    %21 = arith.cmpf oeq, %19, %20 : vector<64x1xf32>
    %cst_9 = arith.constant 0.000000e+00 : f32
    %22 = vector.broadcast %cst_9 : f32 to vector<64x1xf32>
    %23 = arith.select %21, %22, %19 : vector<64x1xi1>, vector<64x1xf32>
    %24 = vector.broadcast %23 : vector<64x1xf32> to vector<64x300xf32>
    %25 = arith.subf %7, %24 : vector<64x300xf32>
    %cst_10 = arith.constant 2.500000e-01 : f32
    %26 = vector.broadcast %cst_10 : f32 to vector<64x300xf32>
    %27 = arith.mulf %25, %26 : vector<64x300xf32>
    %28 = math.exp %27 : vector<64x300xf32>
    %cst_11 = arith.constant dense<0.000000e+00> : vector<64xf32>
    %29 = vector.multi_reduction <add>, %28, %cst_11 [1] : vector<64x300xf32> to vector<64xf32>
    %30 = vector.shape_cast %29 : vector<64xf32> to vector<64x1xf32>
    %cst_12 = arith.constant 9.99999968E-21 : f32
    %31 = vector.broadcast %cst_12 : f32 to vector<64x1xf32>
    %32 = arith.addf %30, %31 : vector<64x1xf32>
    %33 = math.log %32 : vector<64x1xf32>
    %34 = arith.subf %17, %33 : vector<64x1xf32>
    %cst_13 = arith.constant 4.000000e+00 : f32
    %35 = vector.broadcast %cst_13 : f32 to vector<64x1xf32>
    %36 = arith.mulf %35, %34 : vector<64x1xf32>
    %cst_14 = arith.constant 0.000000e+00 : f32
    %37 = vector.broadcast %cst_14 : f32 to vector<64x1xf32>
    %38 = arith.subf %37, %36 : vector<64x1xf32>
    %39 = vector.broadcast %38 : vector<64x1xf32> to vector<64x300xf32>
    %40 = arith.minimumf %25, %39 : vector<64x300xf32>
    %cst_15 = arith.constant 0.357142866 : f32
    %41 = vector.broadcast %cst_15 : f32 to vector<64x300xf32>
    %42 = arith.mulf %40, %41 : vector<64x300xf32>
    %43 = math.exp %42 : vector<64x300xf32>
    %cst_16 = arith.constant dense<0.000000e+00> : vector<64xf32>
    %44 = vector.multi_reduction <add>, %43, %cst_16 [1] : vector<64x300xf32> to vector<64xf32>
    %45 = vector.shape_cast %44 : vector<64xf32> to vector<64x1xf32>
    %cst_17 = arith.constant 9.99999968E-21 : f32
    %46 = vector.broadcast %cst_17 : f32 to vector<64x1xf32>
    %47 = arith.addf %45, %46 : vector<64x1xf32>
    %48 = math.log %47 : vector<64x1xf32>
    %49 = arith.subf %17, %48 : vector<64x1xf32>
    %cst_18 = arith.constant 2.800000e+00 : f32
    %50 = vector.broadcast %cst_18 : f32 to vector<64x1xf32>
    %51 = arith.mulf %50, %49 : vector<64x1xf32>
    %cst_19 = arith.constant 0.000000e+00 : f32
    %52 = vector.broadcast %cst_19 : f32 to vector<64x1xf32>
    %53 = arith.subf %52, %51 : vector<64x1xf32>
    %54 = vector.broadcast %53 : vector<64x1xf32> to vector<64x300xf32>
    %55 = arith.minimumf %25, %54 : vector<64x300xf32>
    %cst_20 = arith.constant 0.510204077 : f32
    %56 = vector.broadcast %cst_20 : f32 to vector<64x300xf32>
    %57 = arith.mulf %55, %56 : vector<64x300xf32>
    %58 = math.exp %57 : vector<64x300xf32>
    %cst_21 = arith.constant dense<0.000000e+00> : vector<64xf32>
    %59 = vector.multi_reduction <add>, %58, %cst_21 [1] : vector<64x300xf32> to vector<64xf32>
    %60 = vector.shape_cast %59 : vector<64xf32> to vector<64x1xf32>
    %cst_22 = arith.constant 9.99999968E-21 : f32
    %61 = vector.broadcast %cst_22 : f32 to vector<64x1xf32>
    %62 = arith.addf %60, %61 : vector<64x1xf32>
    %63 = math.log %62 : vector<64x1xf32>
    %64 = arith.subf %17, %63 : vector<64x1xf32>
    %cst_23 = arith.constant 1.960000e+00 : f32
    %65 = vector.broadcast %cst_23 : f32 to vector<64x1xf32>
    %66 = arith.mulf %65, %64 : vector<64x1xf32>
    %cst_24 = arith.constant 0.000000e+00 : f32
    %67 = vector.broadcast %cst_24 : f32 to vector<64x1xf32>
    %68 = arith.subf %67, %66 : vector<64x1xf32>
    %69 = vector.broadcast %68 : vector<64x1xf32> to vector<64x300xf32>
    %70 = arith.minimumf %25, %69 : vector<64x300xf32>
    %cst_25 = arith.constant 7.288630e-01 : f32
    %71 = vector.broadcast %cst_25 : f32 to vector<64x300xf32>
    %72 = arith.mulf %70, %71 : vector<64x300xf32>
    %73 = math.exp %72 : vector<64x300xf32>
    %cst_26 = arith.constant dense<0.000000e+00> : vector<64xf32>
    %74 = vector.multi_reduction <add>, %73, %cst_26 [1] : vector<64x300xf32> to vector<64xf32>
    %75 = vector.shape_cast %74 : vector<64xf32> to vector<64x1xf32>
    %cst_27 = arith.constant 9.99999968E-21 : f32
    %76 = vector.broadcast %cst_27 : f32 to vector<64x1xf32>
    %77 = arith.addf %75, %76 : vector<64x1xf32>
    %78 = math.log %77 : vector<64x1xf32>
    %79 = arith.subf %17, %78 : vector<64x1xf32>
    %cst_28 = arith.constant 1.372000e+00 : f32
    %80 = vector.broadcast %cst_28 : f32 to vector<64x1xf32>
    %81 = arith.mulf %80, %79 : vector<64x1xf32>
    %cst_29 = arith.constant 0.000000e+00 : f32
    %82 = vector.broadcast %cst_29 : f32 to vector<64x1xf32>
    %83 = arith.subf %82, %81 : vector<64x1xf32>
    %84 = vector.broadcast %83 : vector<64x1xf32> to vector<64x300xf32>
    %85 = arith.minimumf %25, %84 : vector<64x300xf32>
    %cst_30 = arith.constant 1.04123282 : f32
    %86 = vector.broadcast %cst_30 : f32 to vector<64x300xf32>
    %87 = arith.mulf %85, %86 : vector<64x300xf32>
    %88 = math.exp %87 : vector<64x300xf32>
    %cst_31 = arith.constant dense<0.000000e+00> : vector<64xf32>
    %89 = vector.multi_reduction <add>, %88, %cst_31 [1] : vector<64x300xf32> to vector<64xf32>
    %90 = vector.shape_cast %89 : vector<64xf32> to vector<64x1xf32>
    %cst_32 = arith.constant 9.99999968E-21 : f32
    %91 = vector.broadcast %cst_32 : f32 to vector<64x1xf32>
    %92 = arith.addf %90, %91 : vector<64x1xf32>
    %93 = math.log %92 : vector<64x1xf32>
    %94 = arith.subf %17, %93 : vector<64x1xf32>
    %cst_33 = arith.constant 0.960399985 : f32
    %95 = vector.broadcast %cst_33 : f32 to vector<64x1xf32>
    %96 = arith.mulf %95, %94 : vector<64x1xf32>
    %cst_34 = arith.constant 0.000000e+00 : f32
    %97 = vector.broadcast %cst_34 : f32 to vector<64x1xf32>
    %98 = arith.subf %97, %96 : vector<64x1xf32>
    %99 = vector.broadcast %98 : vector<64x1xf32> to vector<64x300xf32>
    %100 = arith.minimumf %25, %99 : vector<64x300xf32>
    %cst_35 = arith.constant 1.48747551 : f32
    %101 = vector.broadcast %cst_35 : f32 to vector<64x300xf32>
    %102 = arith.mulf %100, %101 : vector<64x300xf32>
    %103 = math.exp %102 : vector<64x300xf32>
    %cst_36 = arith.constant dense<0.000000e+00> : vector<64xf32>
    %104 = vector.multi_reduction <add>, %103, %cst_36 [1] : vector<64x300xf32> to vector<64xf32>
    %105 = vector.shape_cast %104 : vector<64xf32> to vector<64x1xf32>
    %cst_37 = arith.constant 9.99999968E-21 : f32
    %106 = vector.broadcast %cst_37 : f32 to vector<64x1xf32>
    %107 = arith.addf %105, %106 : vector<64x1xf32>
    %108 = math.log %107 : vector<64x1xf32>
    %109 = arith.subf %17, %108 : vector<64x1xf32>
    %cst_38 = arith.constant 6.722800e-01 : f32
    %110 = vector.broadcast %cst_38 : f32 to vector<64x1xf32>
    %111 = arith.mulf %110, %109 : vector<64x1xf32>
    %cst_39 = arith.constant 0.000000e+00 : f32
    %112 = vector.broadcast %cst_39 : f32 to vector<64x1xf32>
    %113 = arith.subf %112, %111 : vector<64x1xf32>
    %114 = vector.broadcast %113 : vector<64x1xf32> to vector<64x300xf32>
    %115 = arith.minimumf %25, %114 : vector<64x300xf32>
    %cst_40 = arith.constant 2.12496495 : f32
    %116 = vector.broadcast %cst_40 : f32 to vector<64x300xf32>
    %117 = arith.mulf %115, %116 : vector<64x300xf32>
    %118 = math.exp %117 : vector<64x300xf32>
    %cst_41 = arith.constant dense<0.000000e+00> : vector<64xf32>
    %119 = vector.multi_reduction <add>, %118, %cst_41 [1] : vector<64x300xf32> to vector<64xf32>
    %120 = vector.shape_cast %119 : vector<64xf32> to vector<64x1xf32>
    %cst_42 = arith.constant 9.99999968E-21 : f32
    %121 = vector.broadcast %cst_42 : f32 to vector<64x1xf32>
    %122 = arith.addf %120, %121 : vector<64x1xf32>
    %123 = math.log %122 : vector<64x1xf32>
    %124 = arith.subf %17, %123 : vector<64x1xf32>
    %cst_43 = arith.constant 4.705960e-01 : f32
    %125 = vector.broadcast %cst_43 : f32 to vector<64x1xf32>
    %126 = arith.mulf %125, %124 : vector<64x1xf32>
    %cst_44 = arith.constant 0.000000e+00 : f32
    %127 = vector.broadcast %cst_44 : f32 to vector<64x1xf32>
    %128 = arith.subf %127, %126 : vector<64x1xf32>
    %129 = vector.broadcast %128 : vector<64x1xf32> to vector<64x300xf32>
    %130 = arith.minimumf %25, %129 : vector<64x300xf32>
    %cst_45 = arith.constant 3.03566408 : f32
    %131 = vector.broadcast %cst_45 : f32 to vector<64x300xf32>
    %132 = arith.mulf %130, %131 : vector<64x300xf32>
    %133 = math.exp %132 : vector<64x300xf32>
    %cst_46 = arith.constant dense<0.000000e+00> : vector<64xf32>
    %134 = vector.multi_reduction <add>, %133, %cst_46 [1] : vector<64x300xf32> to vector<64xf32>
    %135 = vector.shape_cast %134 : vector<64xf32> to vector<64x1xf32>
    %cst_47 = arith.constant 9.99999968E-21 : f32
    %136 = vector.broadcast %cst_47 : f32 to vector<64x1xf32>
    %137 = arith.addf %135, %136 : vector<64x1xf32>
    %138 = math.log %137 : vector<64x1xf32>
    %139 = arith.subf %17, %138 : vector<64x1xf32>
    %cst_48 = arith.constant 0.329417199 : f32
    %140 = vector.broadcast %cst_48 : f32 to vector<64x1xf32>
    %141 = arith.mulf %140, %139 : vector<64x1xf32>
    %cst_49 = arith.constant 3.33333325 : f32
    %142 = vector.broadcast %cst_49 : f32 to vector<64x300xf32>
    %143 = arith.mulf %25, %142 : vector<64x300xf32>
    %144 = math.exp %143 : vector<64x300xf32>
    %cst_50 = arith.constant 0.000000e+00 : f32
    %145 = vector.broadcast %cst_50 : f32 to vector<64x1xf32>
    %146 = arith.subf %145, %141 : vector<64x1xf32>
    %cst_51 = arith.constant 3.33333325 : f32
    %147 = vector.broadcast %cst_51 : f32 to vector<64x1xf32>
    %148 = arith.mulf %146, %147 : vector<64x1xf32>
    %149 = math.exp %148 : vector<64x1xf32>
    %150 = vector.broadcast %149 : vector<64x1xf32> to vector<64x300xf32>
    %151 = arith.minimumf %144, %150 : vector<64x300xf32>
    %cst_52 = arith.constant dense<0.000000e+00> : vector<64xf32>
    %152 = vector.multi_reduction <add>, %151, %cst_52 [1] : vector<64x300xf32> to vector<64xf32>
    %153 = vector.shape_cast %152 : vector<64xf32> to vector<64x1xf32>
    %cst_53 = arith.constant 9.99999968E-21 : f32
    %154 = vector.broadcast %cst_53 : f32 to vector<64x1xf32>
    %155 = arith.addf %153, %154 : vector<64x1xf32>
    %156 = math.log %155 : vector<64x1xf32>
    %157 = arith.subf %17, %156 : vector<64x1xf32>
    %cst_54 = arith.constant 3.000000e-01 : f32
    %158 = vector.broadcast %cst_54 : f32 to vector<64x1xf32>
    %159 = arith.mulf %158, %157 : vector<64x1xf32>
    %cst_55 = arith.constant 0.000000e+00 : f32
    %160 = vector.broadcast %cst_55 : f32 to vector<64x1xf32>
    %161 = arith.subf %160, %159 : vector<64x1xf32>
    %cst_56 = arith.constant 3.33333325 : f32
    %162 = vector.broadcast %cst_56 : f32 to vector<64x1xf32>
    %163 = arith.mulf %161, %162 : vector<64x1xf32>
    %164 = math.exp %163 : vector<64x1xf32>
    %165 = vector.broadcast %164 : vector<64x1xf32> to vector<64x300xf32>
    %166 = arith.minimumf %144, %165 : vector<64x300xf32>
    %cst_57 = arith.constant dense<0.000000e+00> : vector<64xf32>
    %167 = vector.multi_reduction <add>, %166, %cst_57 [1] : vector<64x300xf32> to vector<64xf32>
    %168 = vector.shape_cast %167 : vector<64xf32> to vector<64x1xf32>
    %cst_58 = arith.constant 9.99999968E-21 : f32
    %169 = vector.broadcast %cst_58 : f32 to vector<64x1xf32>
    %170 = arith.addf %168, %169 : vector<64x1xf32>
    %171 = math.log %170 : vector<64x1xf32>
    %172 = arith.subf %17, %171 : vector<64x1xf32>
    %cst_59 = arith.constant 3.000000e-01 : f32
    %173 = vector.broadcast %cst_59 : f32 to vector<64x1xf32>
    %174 = arith.mulf %173, %172 : vector<64x1xf32>
    %cst_60 = arith.constant 0.000000e+00 : f32
    %175 = vector.broadcast %cst_60 : f32 to vector<64x1xf32>
    %176 = arith.subf %175, %174 : vector<64x1xf32>
    %cst_61 = arith.constant 3.33333325 : f32
    %177 = vector.broadcast %cst_61 : f32 to vector<64x1xf32>
    %178 = arith.mulf %176, %177 : vector<64x1xf32>
    %179 = math.exp %178 : vector<64x1xf32>
    %180 = vector.broadcast %179 : vector<64x1xf32> to vector<64x300xf32>
    %181 = arith.minimumf %144, %180 : vector<64x300xf32>
    %cst_62 = arith.constant dense<0.000000e+00> : vector<64xf32>
    %182 = vector.multi_reduction <add>, %181, %cst_62 [1] : vector<64x300xf32> to vector<64xf32>
    %183 = vector.shape_cast %182 : vector<64xf32> to vector<64x1xf32>
    %cst_63 = arith.constant 9.99999968E-21 : f32
    %184 = vector.broadcast %cst_63 : f32 to vector<64x1xf32>
    %185 = arith.addf %183, %184 : vector<64x1xf32>
    %186 = math.log %185 : vector<64x1xf32>
    %187 = arith.subf %17, %186 : vector<64x1xf32>
    %cst_64 = arith.constant 3.000000e-01 : f32
    %188 = vector.broadcast %cst_64 : f32 to vector<64x1xf32>
    %189 = arith.mulf %188, %187 : vector<64x1xf32>
    %cst_65 = arith.constant 0.000000e+00 : f32
    %190 = vector.broadcast %cst_65 : f32 to vector<64x1xf32>
    %191 = arith.subf %190, %189 : vector<64x1xf32>
    %cst_66 = arith.constant 3.33333325 : f32
    %192 = vector.broadcast %cst_66 : f32 to vector<64x1xf32>
    %193 = arith.mulf %191, %192 : vector<64x1xf32>
    %194 = math.exp %193 : vector<64x1xf32>
    %195 = vector.broadcast %194 : vector<64x1xf32> to vector<64x300xf32>
    %196 = arith.minimumf %144, %195 : vector<64x300xf32>
    %cst_67 = arith.constant dense<0.000000e+00> : vector<64xf32>
    %197 = vector.multi_reduction <add>, %196, %cst_67 [1] : vector<64x300xf32> to vector<64xf32>
    %198 = vector.shape_cast %197 : vector<64xf32> to vector<64x1xf32>
    %cst_68 = arith.constant 9.99999968E-21 : f32
    %199 = vector.broadcast %cst_68 : f32 to vector<64x1xf32>
    %200 = arith.addf %198, %199 : vector<64x1xf32>
    %201 = math.log %200 : vector<64x1xf32>
    %202 = arith.subf %17, %201 : vector<64x1xf32>
    %cst_69 = arith.constant 3.000000e-01 : f32
    %203 = vector.broadcast %cst_69 : f32 to vector<64x1xf32>
    %204 = arith.mulf %203, %202 : vector<64x1xf32>
    %cst_70 = arith.constant 0.000000e+00 : f32
    %205 = vector.broadcast %cst_70 : f32 to vector<64x1xf32>
    %206 = arith.subf %205, %204 : vector<64x1xf32>
    %cst_71 = arith.constant 3.33333325 : f32
    %207 = vector.broadcast %cst_71 : f32 to vector<64x1xf32>
    %208 = arith.mulf %206, %207 : vector<64x1xf32>
    %209 = math.exp %208 : vector<64x1xf32>
    %210 = vector.broadcast %209 : vector<64x1xf32> to vector<64x300xf32>
    %211 = arith.minimumf %144, %210 : vector<64x300xf32>
    %cst_72 = arith.constant dense<0.000000e+00> : vector<64xf32>
    %212 = vector.multi_reduction <add>, %211, %cst_72 [1] : vector<64x300xf32> to vector<64xf32>
    %213 = vector.shape_cast %212 : vector<64xf32> to vector<64x1xf32>
    %cst_73 = arith.constant 9.99999968E-21 : f32
    %214 = vector.broadcast %cst_73 : f32 to vector<64x1xf32>
    %215 = arith.addf %213, %214 : vector<64x1xf32>
    %216 = math.log %215 : vector<64x1xf32>
    %217 = arith.subf %17, %216 : vector<64x1xf32>
    %cst_74 = arith.constant 3.000000e-01 : f32
    %218 = vector.broadcast %cst_74 : f32 to vector<64x1xf32>
    %219 = arith.mulf %218, %217 : vector<64x1xf32>
    %cst_75 = arith.constant 0.000000e+00 : f32
    %220 = vector.broadcast %cst_75 : f32 to vector<64x1xf32>
    %221 = arith.subf %220, %219 : vector<64x1xf32>
    %cst_76 = arith.constant 3.33333325 : f32
    %222 = vector.broadcast %cst_76 : f32 to vector<64x1xf32>
    %223 = arith.mulf %221, %222 : vector<64x1xf32>
    %224 = math.exp %223 : vector<64x1xf32>
    %225 = vector.broadcast %224 : vector<64x1xf32> to vector<64x300xf32>
    %226 = arith.minimumf %144, %225 : vector<64x300xf32>
    %cst_77 = arith.constant dense<0.000000e+00> : vector<64xf32>
    %227 = vector.multi_reduction <add>, %226, %cst_77 [1] : vector<64x300xf32> to vector<64xf32>
    %228 = vector.shape_cast %227 : vector<64xf32> to vector<64x1xf32>
    %cst_78 = arith.constant 9.99999968E-21 : f32
    %229 = vector.broadcast %cst_78 : f32 to vector<64x1xf32>
    %230 = arith.addf %228, %229 : vector<64x1xf32>
    %231 = math.log %230 : vector<64x1xf32>
    %232 = arith.subf %17, %231 : vector<64x1xf32>
    %cst_79 = arith.constant 3.000000e-01 : f32
    %233 = vector.broadcast %cst_79 : f32 to vector<64x1xf32>
    %234 = arith.mulf %233, %232 : vector<64x1xf32>
    %cst_80 = arith.constant 0.000000e+00 : f32
    %235 = vector.broadcast %cst_80 : f32 to vector<64x1xf32>
    %236 = arith.subf %235, %234 : vector<64x1xf32>
    %cst_81 = arith.constant 3.33333325 : f32
    %237 = vector.broadcast %cst_81 : f32 to vector<64x1xf32>
    %238 = arith.mulf %236, %237 : vector<64x1xf32>
    %239 = math.exp %238 : vector<64x1xf32>
    %240 = vector.broadcast %239 : vector<64x1xf32> to vector<64x300xf32>
    %241 = arith.minimumf %144, %240 : vector<64x300xf32>
    %cst_82 = arith.constant dense<0.000000e+00> : vector<64xf32>
    %242 = vector.multi_reduction <add>, %241, %cst_82 [1] : vector<64x300xf32> to vector<64xf32>
    %243 = vector.shape_cast %242 : vector<64xf32> to vector<64x1xf32>
    %cst_83 = arith.constant 9.99999968E-21 : f32
    %244 = vector.broadcast %cst_83 : f32 to vector<64x1xf32>
    %245 = arith.addf %243, %244 : vector<64x1xf32>
    %246 = math.log %245 : vector<64x1xf32>
    %247 = arith.subf %17, %246 : vector<64x1xf32>
    %cst_84 = arith.constant 3.000000e-01 : f32
    %248 = vector.broadcast %cst_84 : f32 to vector<64x1xf32>
    %249 = arith.mulf %248, %247 : vector<64x1xf32>
    %cst_85 = arith.constant 0.000000e+00 : f32
    %250 = vector.broadcast %cst_85 : f32 to vector<64x1xf32>
    %251 = arith.subf %250, %249 : vector<64x1xf32>
    %cst_86 = arith.constant 3.33333325 : f32
    %252 = vector.broadcast %cst_86 : f32 to vector<64x1xf32>
    %253 = arith.mulf %251, %252 : vector<64x1xf32>
    %254 = math.exp %253 : vector<64x1xf32>
    %255 = vector.broadcast %254 : vector<64x1xf32> to vector<64x300xf32>
    %256 = arith.minimumf %144, %255 : vector<64x300xf32>
    %cst_87 = arith.constant dense<0.000000e+00> : vector<64xf32>
    %257 = vector.multi_reduction <add>, %256, %cst_87 [1] : vector<64x300xf32> to vector<64xf32>
    %258 = vector.shape_cast %257 : vector<64xf32> to vector<64x1xf32>
    %cst_88 = arith.constant 9.99999968E-21 : f32
    %259 = vector.broadcast %cst_88 : f32 to vector<64x1xf32>
    %260 = arith.addf %258, %259 : vector<64x1xf32>
    %261 = math.log %260 : vector<64x1xf32>
    %262 = arith.subf %17, %261 : vector<64x1xf32>
    %cst_89 = arith.constant 3.000000e-01 : f32
    %263 = vector.broadcast %cst_89 : f32 to vector<64x1xf32>
    %264 = arith.mulf %263, %262 : vector<64x1xf32>
    %cst_90 = arith.constant 0.000000e+00 : f32
    %265 = vector.broadcast %cst_90 : f32 to vector<64x1xf32>
    %266 = arith.subf %265, %264 : vector<64x1xf32>
    %cst_91 = arith.constant 3.33333325 : f32
    %267 = vector.broadcast %cst_91 : f32 to vector<64x1xf32>
    %268 = arith.mulf %266, %267 : vector<64x1xf32>
    %269 = math.exp %268 : vector<64x1xf32>
    %270 = vector.broadcast %269 : vector<64x1xf32> to vector<64x300xf32>
    %271 = arith.minimumf %144, %270 : vector<64x300xf32>
    %cst_92 = arith.constant dense<0.000000e+00> : vector<64xf32>
    %272 = vector.multi_reduction <add>, %271, %cst_92 [1] : vector<64x300xf32> to vector<64xf32>
    %273 = vector.shape_cast %272 : vector<64xf32> to vector<64x1xf32>
    %cst_93 = arith.constant 9.99999968E-21 : f32
    %274 = vector.broadcast %cst_93 : f32 to vector<64x1xf32>
    %275 = arith.addf %273, %274 : vector<64x1xf32>
    %276 = math.log %275 : vector<64x1xf32>
    %277 = arith.subf %17, %276 : vector<64x1xf32>
    %cst_94 = arith.constant 3.000000e-01 : f32
    %278 = vector.broadcast %cst_94 : f32 to vector<64x1xf32>
    %279 = arith.mulf %278, %277 : vector<64x1xf32>
    %cst_95 = arith.constant 0.000000e+00 : f32
    %280 = vector.broadcast %cst_95 : f32 to vector<64x1xf32>
    %281 = arith.subf %280, %279 : vector<64x1xf32>
    %cst_96 = arith.constant 3.33333325 : f32
    %282 = vector.broadcast %cst_96 : f32 to vector<64x1xf32>
    %283 = arith.mulf %281, %282 : vector<64x1xf32>
    %284 = math.exp %283 : vector<64x1xf32>
    %285 = vector.broadcast %284 : vector<64x1xf32> to vector<64x300xf32>
    %286 = arith.minimumf %144, %285 : vector<64x300xf32>
    %cst_97 = arith.constant dense<0.000000e+00> : vector<64xf32>
    %287 = vector.multi_reduction <add>, %286, %cst_97 [1] : vector<64x300xf32> to vector<64xf32>
    %288 = vector.shape_cast %287 : vector<64xf32> to vector<64x1xf32>
    %cst_98 = arith.constant 9.99999968E-21 : f32
    %289 = vector.broadcast %cst_98 : f32 to vector<64x1xf32>
    %290 = arith.addf %288, %289 : vector<64x1xf32>
    %291 = math.log %290 : vector<64x1xf32>
    %292 = arith.subf %17, %291 : vector<64x1xf32>
    %cst_99 = arith.constant 3.000000e-01 : f32
    %293 = vector.broadcast %cst_99 : f32 to vector<64x1xf32>
    %294 = arith.mulf %293, %292 : vector<64x1xf32>
    %cst_100 = arith.constant 0.000000e+00 : f32
    %295 = vector.broadcast %cst_100 : f32 to vector<64x1xf32>
    %296 = arith.subf %295, %294 : vector<64x1xf32>
    %cst_101 = arith.constant 3.33333325 : f32
    %297 = vector.broadcast %cst_101 : f32 to vector<64x1xf32>
    %298 = arith.mulf %296, %297 : vector<64x1xf32>
    %299 = math.exp %298 : vector<64x1xf32>
    %300 = vector.broadcast %299 : vector<64x1xf32> to vector<64x300xf32>
    %301 = arith.minimumf %144, %300 : vector<64x300xf32>
    %cst_102 = arith.constant dense<0.000000e+00> : vector<64xf32>
    %302 = vector.multi_reduction <add>, %301, %cst_102 [1] : vector<64x300xf32> to vector<64xf32>
    %303 = vector.shape_cast %302 : vector<64xf32> to vector<64x1xf32>
    %cst_103 = arith.constant 9.99999968E-21 : f32
    %304 = vector.broadcast %cst_103 : f32 to vector<64x1xf32>
    %305 = arith.addf %303, %304 : vector<64x1xf32>
    %306 = math.log %305 : vector<64x1xf32>
    %307 = arith.subf %17, %306 : vector<64x1xf32>
    %cst_104 = arith.constant 3.000000e-01 : f32
    %308 = vector.broadcast %cst_104 : f32 to vector<64x1xf32>
    %309 = arith.mulf %308, %307 : vector<64x1xf32>
    %cst_105 = arith.constant 0.000000e+00 : f32
    %310 = vector.broadcast %cst_105 : f32 to vector<64x1xf32>
    %311 = arith.subf %310, %309 : vector<64x1xf32>
    %cst_106 = arith.constant 3.33333325 : f32
    %312 = vector.broadcast %cst_106 : f32 to vector<64x1xf32>
    %313 = arith.mulf %311, %312 : vector<64x1xf32>
    %314 = math.exp %313 : vector<64x1xf32>
    %315 = vector.broadcast %314 : vector<64x1xf32> to vector<64x300xf32>
    %316 = arith.minimumf %144, %315 : vector<64x300xf32>
    %cst_107 = arith.constant dense<0.000000e+00> : vector<64xf32>
    %317 = vector.multi_reduction <add>, %316, %cst_107 [1] : vector<64x300xf32> to vector<64xf32>
    %318 = vector.shape_cast %317 : vector<64xf32> to vector<64x1xf32>
    %cst_108 = arith.constant 9.99999968E-21 : f32
    %319 = vector.broadcast %cst_108 : f32 to vector<64x1xf32>
    %320 = arith.addf %318, %319 : vector<64x1xf32>
    %321 = math.log %320 : vector<64x1xf32>
    %322 = arith.subf %17, %321 : vector<64x1xf32>
    %cst_109 = arith.constant 3.000000e-01 : f32
    %323 = vector.broadcast %cst_109 : f32 to vector<64x1xf32>
    %324 = arith.mulf %323, %322 : vector<64x1xf32>
    %325 = vector.broadcast %324 : vector<64x1xf32> to vector<64x300xf32>
    %326 = arith.addf %25, %325 : vector<64x300xf32>
    %cst_110 = arith.constant 0.000000e+00 : f32
    %327 = vector.broadcast %cst_110 : f32 to vector<64x300xf32>
    %328 = arith.minimumf %326, %327 : vector<64x300xf32>
    %cst_111 = arith.constant 3.33333325 : f32
    %329 = vector.broadcast %cst_111 : f32 to vector<64x300xf32>
    %330 = arith.mulf %328, %329 : vector<64x300xf32>
    %331 = math.exp %330 : vector<64x300xf32>
    %c0_112 = arith.constant 0 : index
    %c0_113 = arith.constant 0 : index
    %332 = vector.load %arg3[%c0_112, %c0_113] : memref<64x300xf32, #tpu.memory_space<vmem>>, vector<64x300xf32>
    tpu.vector_store %arg3[%c0_112, %c0_113], %331 {strides = array<i32>} : memref<64x300xf32, #tpu.memory_space<vmem>>, vector<64x300xf32>,
    return
  }
  func.func @transform_0(%arg0: i32) -> (i32, i32) {
    %c0_i32 = arith.constant 0 : i32
    %c0_i32_0 = arith.constant 0 : i32
    return %arg0, %c0_i32 : i32, i32
  }
  func.func @transform_1(%arg0: i32) -> (i32, i32) {
    %c0_i32 = arith.constant 0 : i32
    %c0_i32_0 = arith.constant 0 : i32
    return %arg0, %c0_i32 : i32, i32
  }
  func.func @transform_2(%arg0: i32) -> (i32, i32) {
    %c0_i32 = arith.constant 0 : i32
    %c0_i32_0 = arith.constant 0 : i32
    return %arg0, %c0_i32 : i32, i32
  }
}

</mosaic_0001>

<bundles_post_ra>
// kernel: tpu_custom_call.1
= control target key start
LH: loop header
LB: loop body
LE: loop exit
PB: predicated region body
PF: predicated region fallthrough
CT: control target
= control target key end

     0   :  { %7 = vsyncpa [#allocation3], 0  ;;  %s6679_s0 = inlined_call_operand.hbm [shape: f32[200,300], index: 0, kind: input, shape index: {}]   ;;  %s6680_s1 = inlined_call_operand.hbm [shape: s32[200,300], index: 1, kind: input, shape index: {}]   ;;  %s6681_s2 = inlined_call_operand.hbm [shape: f32[200,300], index: 2, kind: output, shape index: {}]  }
   0x1   :  { %9 = vsyncpa [#allocation3 + $0x1], 0 }
   0x2   :  { %10 = vsyncpa [#allocation6], 0 }
   0x3   :  { %12 = vsyncpa [#allocation6 + $0x1], 0 }
   0x4   :  { %13 = vsyncpa [#allocation4], 0 }
   0x5   :  { %15 = vsyncpa [#allocation4 + $0x1], 0  ;;  %s5244_s9 = smov 0   ;;  %s5246_s10 = smov 0  }
   0x6   :  { %s5248_s11 = smov 0   ;;  %s5250_s12 = smov 0  }
   0x7 LB: > { %s5265_s13 = sadd.s32 4294967295, %s5217_s12   ;;  %s3979_s14 = sadd.s32 4294967294, %s5217_s12   ;;  %s5217_s12 = sphi %s5250_s12, %s6733_s12   ;;  %s5213_s11 = sphi %s5248_s11, %s6732_s11   ;;  %s5209_s10 = sphi %s5246_s10, %s6731_s10   ;;  %s5205_s9 = sphi %s5244_s9, %s6730_s9  }
   0x8   : > { %s5269_s15 = sadd.s32 1, %s5217_s12   ;;  %s28_s16 = sadd.s32 1, %s5213_s11 }
   0x9   : > { %s25_s17 = ssub.s32 %s5217_s12, %s5269_s15  ;;  %p35_p0 = scmp.ne.s32.totalorder %s5213_s11, %s5209_s10 }
   0xa   : > { %p26_p1 = scmp.eq.s32.totalorder %s25_s17, 0  ;;  %p36_p2 = scmp.eq.s32.totalorder %s5217_s12, 0 }
   0xb   : > { %p41_p3 = scmp.ne.s32.totalorder %s5209_s10, %s5205_s9  ;;  %p42_p4 = scmp.eq.s32.totalorder %s5265_s13, 0 }
   0xc   : > { %s5281_s18 = scalar_select %p26_p1, %s5213_s11, %s28_s16  }
   0xd   : > { %p5283_p5 = por %p36_p2, %p35_p0  ;;  %p5287_p6 = por %p42_p4, %p41_p3 }
   0xe   : > { %p91_p7 = scmp.eq.s32.totalorder %s5265_s13, 3  ;;  %p97_p8 = scmp.eq.s32.totalorder %s3979_s14, 3 }
   0xf   : > { %p3981_p11 = scmp.ge.s32.totalorder %s5217_s12, 4 }
  0x10   : > { %p5292_p9 = por %p91_p7, %p35_p0  ;;  %p5296_p10 = por %p97_p8, %p41_p3 }
  0x11   : > { %113 = sbr.rel (%p3981_p11) target bundleno = 96 (0x60), region = 16 }
  0x12   : > { %s6698_s21 = scalar_select %p5292_p9, 1, 0 }
  0x13   : > { %s6699_s22 = scalar_select %p5296_p10, 1, 0 }
  0x18   : > { %116 = sbr.rel (!%p5283_p5) target bundleno = 60 (0x3c), region = 20  ;;  %s117_s23 = sand.u32 (%p5283_p5), 1, %s5213_s11  }
  0x19   : > { %s3982_s24 = sshll.u32 (%p5283_p5), %s5217_s12, 3  ;;  %s4030_s25 = smul.u32 (%p5283_p5), 192, %s117_s23 }
  0x1a   : > { %s123_s26 = ssub.s32 (%p5283_p5), 25, %s3982_s24  ;;  %s5308_s29 = scalar_lea.sflag (%p5283_p5), [#allocation3], %s117_s23 }
  0x1b   : > { %p124_p12 = scmp.lt.s32.totalorder (%p5283_p5), %s123_s26, 8  ;;  %s121_s30 = scalar_lea.vmem (%p5283_p5), [#allocation2], %s4030_s25 }
  0x1f   : > { %s6735_s26 = smov (!%p124_p12, %s123_s26), 8 }
  0x20   : > { %s5305_s27 = smul.u32 384, %s6735_s26 }
  0x22   : > { %s129_s28 = ssub.s32 3072, %s5305_s27 }
  0x23   : > { %130 = vsyncadd %s5308_s29, %s129_s28  ;;  %p3985_p13 = scmp.ne.s32.totalorder %s5305_s27, 0  ;;  %s4031_s3 = smul.u32 3072, %s5217_s12 }
  0x24   : > { %s136_s4 = sshll.u32 %s121_s30, 4  ;;  %s5095_s17 = scalar_lea.hbm %s6679_s0, 9600  ;;  %s5318_s4 = int_to_ptr.vmem [resolvable:$true] %s136_s4 }
  0x25   : > { %s5316_s7 = scalar_lea.hbm %s6679_s0, %s4031_s3 }
  0x26   : > { %s5091_s8 = scalar_lea.hbm %s5316_s7, %s5305_s27  ;;  %p5096_p3 = scmp.lt.u32.totalorder %s5316_s7, %s6679_s0 }
  0x27   : > { %p5092_p0 = scmp.ne.s32.totalorder %s5316_s7, %s5091_s8  ;;  %p5097_p4 = scmp.lt.u32.totalorder %s5095_s17, %s5091_s8 }
  0x28   : > { %p5099_p8 = scmp.lt.u32.totalorder %s5091_s8, %s5316_s7 }
  0x29   : > { %p5093_p1 = pnand %p5092_p0, %p3985_p13  ;;  %p5098_p7 = por %p5097_p4, %p5096_p3 }
  0x2b   : > { %p5094_p2 = pneg %p5093_p1  ;;  %p5100_p11 = por %p5099_p8, %p5098_p7 }
  0x2d   : > { %p5101_p12 = pnand %p5100_p11, %p5094_p2 }
  0x2f   : > { %5104 = shalt.err (!%p5101_p12)
}
  0x30   : > { %s5105_s25 = scalar_lea.vmem %s5318_s4, %s5305_s27  ;;  %s5219_s26 = smov [#allocation2]  }
  0x31   : > { %p5106_p0 = scmp.ne.s32.totalorder %s5318_s4, %s5105_s25  ;;  %s5109_s28 = sshll.u32 %s5219_s26, 4  ;;  %s5110_s28 = int_to_ptr.vmem [resolvable:$false] %s5109_s28 }
  0x32   : > { %s5111_s30 = scalar_lea.vmem %s5110_s28, 6144  ;;  %p5112_p9 = scmp.lt.s32.totalorder %s5318_s4, %s5110_s28 }
  0x33   : > { %p5107_p1 = pnand %p5106_p0, %p3985_p13  ;;  %p5113_p3 = scmp.lt.s32.totalorder %s5111_s30, %s5105_s25 }
  0x35   : > { %p5108_p10 = pneg %p5107_p1  ;;  %p5114_p4 = por %p5113_p3, %p5112_p9 }
  0x37   : > { %p5115_p7 = pnand %p5114_p4, %p5108_p10 }
  0x39   : > { %5118 = shalt.err (!%p5115_p7)
}
  0x3a   : > { %s5220_s3 = smov 384   ;;  %s5221_s5 = smov 24  }
  0x3b   : > { %142 = dma.hbm_to_vmem [thread:$0]  (%p3985_p13), %s5316_s7, %s5305_s27, %s5318_s4, %s5308_s29, %s5220_s3, %s5220_s3, %s5221_s5  }
  0x3c PF: > { %145 = sbr.rel (!%p5283_p5) target bundleno = 96 (0x60), region = 24  ;;  %s146_s6 = sand.u32 (%p5283_p5), 1, %s5213_s11  }
  0x3d   : > { %s3989_s8 = sshll.u32 (%p5283_p5), %s5217_s12, 3  ;;  %s4032_s14 = smul.u32 (%p5283_p5), 192, %s146_s6 }
  0x3e   : > { %s152_s16 = ssub.s32 (%p5283_p5), 25, %s3989_s8  ;;  %s5352_s24 = scalar_lea.sflag (%p5283_p5), [#allocation6], %s146_s6 }
  0x3f   : > { %p153_p9 = scmp.lt.s32.totalorder (%p5283_p5), %s152_s16, 8  ;;  %s150_s27 = scalar_lea.vmem (%p5283_p5), [#allocation5], %s4032_s14 }
  0x43   : > { %s6737_s16 = smov (!%p153_p9, %s152_s16), 8 }
  0x44   : > { %s5349_s17 = smul.u32 384, %s6737_s16 }
  0x46   : > { %s158_s23 = ssub.s32 3072, %s5349_s17 }
  0x47   : > { %159 = vsyncadd %s5352_s24, %s158_s23  ;;  %p3992_p5 = scmp.ne.s32.totalorder %s5349_s17, 0  ;;  %s4033_s19 = smul.u32 3072, %s5217_s12 }
  0x48   : > { %s165_s29 = sshll.u32 %s150_s27, 4  ;;  %s5123_s3 = scalar_lea.hbm %s6680_s1, 9600  ;;  %s5362_s29 = int_to_ptr.vmem [resolvable:$true] %s165_s29 }
  0x49   : > { %s5360_s25 = scalar_lea.hbm %s6680_s1, %s4033_s19 }
  0x4a   : > { %s5119_s26 = scalar_lea.hbm %s5360_s25, %s5349_s17  ;;  %p5124_p8 = scmp.lt.u32.totalorder %s5360_s25, %s6680_s1 }
  0x4b   : > { %p5120_p10 = scmp.ne.s32.totalorder %s5360_s25, %s5119_s26  ;;  %p5125_p11 = scmp.lt.u32.totalorder %s5123_s3, %s5119_s26 }
  0x4c   : > { %p5127_p0 = scmp.lt.u32.totalorder %s5119_s26, %s5360_s25 }
  0x4d   : > { %p5121_p13 = pnand %p5120_p10, %p3992_p5  ;;  %p5126_p12 = por %p5125_p11, %p5124_p8 }
  0x4f   : > { %p5122_p2 = pneg %p5121_p13  ;;  %p5128_p1 = por %p5127_p0, %p5126_p12 }
  0x51   : > { %p5129_p3 = pnand %p5128_p1, %p5122_p2 }
  0x53   : > { %5132 = shalt.err (!%p5129_p3)
}
  0x54   : > { %s5133_s8 = scalar_lea.vmem %s5362_s29, %s5349_s17  ;;  %s5222_s14 = smov [#allocation5]  }
  0x55   : > { %p5134_p4 = scmp.ne.s32.totalorder %s5362_s29, %s5133_s8  ;;  %s5137_s16 = sshll.u32 %s5222_s14, 4  ;;  %s5138_s16 = int_to_ptr.vmem [resolvable:$false] %s5137_s16 }
  0x56   : > { %s5139_s23 = scalar_lea.vmem %s5138_s16, 6144  ;;  %p5140_p10 = scmp.lt.s32.totalorder %s5362_s29, %s5138_s16 }
  0x57   : > { %p5135_p7 = pnand %p5134_p4, %p3992_p5  ;;  %p5141_p13 = scmp.lt.s32.totalorder %s5139_s23, %s5133_s8 }
  0x59   : > { %p5136_p9 = pneg %p5135_p7  ;;  %p5142_p8 = por %p5141_p13, %p5140_p10 }
  0x5b   : > { %p5143_p11 = pnand %p5142_p8, %p5136_p9 }
  0x5d   : > { %5146 = shalt.err (!%p5143_p11)
}
  0x5e   : > { %s5223_s27 = smov 384   ;;  %s5224_s19 = smov 24  }
  0x5f   : > { %171 = dma.hbm_to_vmem [thread:$0]  (%p3992_p5), %s5360_s25, %s5349_s17, %s5362_s29, %s5352_s24, %s5223_s27, %s5223_s27, %s5224_s19  }
  0x60 PF: > { %p3996_p2 = scmp.ge.s32.totalorder %s5217_s12, 1  ;;  %p173_p12 = scmp.lt.s32.totalorder %s5217_s12, 5 }
  0x62   : > { %p174_p0 = pnand %p3996_p2, %p173_p12 }
  0x64   : > { %177 = sbr.rel (%p174_p0) target bundleno = 4088 (0xff8), region = 28 }
  0x6b   : > { %s5392_s4 = sand.u32 1, %s5209_s10  }
  0x6c   : > { %s5395_s7 = smul.u32 192, %s5392_s4  ;;  %s180_s26 = scalar_lea.sflag [#allocation3], %s5392_s4 }
  0x6e   : > { %s5399_s28 = scalar_lea.vmem [#allocation2], %s5395_s7 }
  0x6f   : > { %5192 = dma.done.wait (%p5287_p6), %s180_s26, 3072  }
  0x70   : > { %5194 = vsyncadd (%p5287_p6), %s180_s26, 4294964224  ;;  %s189_s17 = scalar_lea.sflag [#allocation6], %s5392_s4  ;;  %s5407_s24 = scalar_lea.vmem [#allocation5], %s5395_s7 }
  0x71   : > { %5196 = dma.done.wait (%p5287_p6), %s189_s17, 3072  }
  0x72   : > { %5198 = vsyncadd (%p5287_p6), %s189_s17, 4294964224  ;;  %v236_v0 = vld [vmem:[%s5399_s28] sm:$0xff]  ;;  %v237_v1 = vld [vmem:[%s5399_s28 + $0x8] sm:$0xff]  ;;  %vm429_vm0 = vcmask 359424   ;;  %s6555_s20 = scalar_lea.vmem [#allocation7], %s5395_s7  ;;  %s3862_s29 = scalar_lea.sflag [#allocation4], %s5392_s4 }
  0x73   : > { %v238_v2 = vld [vmem:[%s5399_s28 + $0x10] sm:$0xff]  ;;  %v260_v3 = vld [vmem:[%s5407_s24] sm:$0xff]  ;;  %v261_v4 = vld [vmem:[%s5407_s24 + $0x8] sm:$0xff]  ;;  %p6728_p6 = scmp.ne.s32.totalorder %s6698_s21, 0 }
  0x74   : > { %v262_v5 = vld [vmem:[%s5407_s24 + $0x10] sm:$0xff]  ;;  %vm284_vm1 = vcmp.eq.s32.totalorder %v260_v3, 0  ;;  %vm285_vm2 = vcmp.eq.s32.totalorder %v261_v4, 0  ;;  %v243_v7 = vld [vmem:[%s5399_s28 + $0x38] sm:$0xff]  ;;  %v244_v8 = vld [vmem:[%s5399_s28 + $0x40] sm:$0xff]  ;;  %s4021_s25 = sshll.u32 (%p6728_p6), %s5265_s13, 3 }
  0x75   : > { %vm286_vm3 = vcmp.eq.s32.totalorder %v262_v5, 0  ;;  %v242_v6 = vld [vmem:[%s5399_s28 + $0x30] sm:$0xff]  ;;  %v5422_v9 = vsel %vm284_vm1, -inf, %v236_v0  ;;  %v5424_v10 = vsel %vm285_vm2, -inf, %v237_v1  ;;  %v267_v13 = vld [vmem:[%s5407_s24 + $0x38] sm:$0xff]  ;;  %v268_v14 = vld [vmem:[%s5407_s24 + $0x40] sm:$0xff] }
  0x76   : > { %v5426_v11 = vsel %vm286_vm3, -inf, %v238_v2  ;;  %v266_v12 = vld [vmem:[%s5407_s24 + $0x30] sm:$0xff]  ;;  %v493_v15 = vmax.f32 %v5422_v9, %v5424_v10  ;;  %vm291_vm5 = vcmp.eq.s32.totalorder %v267_v13, 0  ;;  %v239_v17 = vld [vmem:[%s5399_s28 + $0x18] sm:$0xff]  ;;  %v240_v18 = vld [vmem:[%s5399_s28 + $0x20] sm:$0xff]  ;;  %vm292_vm6 = vcmp.eq.s32.totalorder %v268_v14, 0 }
  0x77   : > { %v494_v16 = vsel %vm429_vm0, %v5426_v11, -inf  ;;  %vm290_vm4 = vcmp.eq.s32.totalorder %v266_v12, 0  ;;  %v241_v19 = vld [vmem:[%s5399_s28 + $0x28] sm:$0xff]  ;;  %v5440_v21 = vsel %vm291_vm5, -inf, %v243_v7  ;;  %v263_v22 = vld [vmem:[%s5407_s24 + $0x18] sm:$0xff]  ;;  %v264_v23 = vld [vmem:[%s5407_s24 + $0x20] sm:$0xff] }
  0x78   : > { %v5438_v20 = vsel %vm290_vm4, -inf, %v242_v6  ;;  %v265_v24 = vld [vmem:[%s5407_s24 + $0x28] sm:$0xff]  ;;  %v495_v25 = vmax.f32 %v493_v15, %v494_v16  ;;  %v5445_v26 = vsel %vm292_vm6, -inf, %v244_v8  ;;  %vm287_vm7 = vcmp.eq.s32.totalorder %v263_v22, 0  ;;  %v246_v29 = vld [vmem:[%s5399_s28 + $0x50] sm:$0xff]  ;;  %v247_v30 = vld [vmem:[%s5399_s28 + $0x58] sm:$0xff] }
  0x79   : > { %v503_v27 = vmax.f32 %v5438_v20, %v5440_v21  ;;  %v245_v28 = vld [vmem:[%s5399_s28 + $0x48] sm:$0xff]  ;;  %v504_v31 = vsel %vm429_vm0, %v5445_v26, -inf  ;;  %vm288_vm8 = vcmp.eq.s32.totalorder %v264_v23, 0  ;;  %vm289_vm9 = vcmp.eq.s32.totalorder %v265_v24, 0  ;;  %v270_v34 = vld [vmem:[%s5407_s24 + $0x50] sm:$0xff]  ;;  %v271_v38 = vld [vmem:[%s5407_s24 + $0x58] sm:$0xff] }
  0x7a   : > { %v5454_v32 = vsel %vm287_vm7, -inf, %v239_v17  ;;  %v269_v33 = vld [vmem:[%s5407_s24 + $0x48] sm:$0xff]  ;;  %496 = vmax.xlane.f32.xlu0 %v495_v25  ;;  %v5458_v36 = vsel %vm288_vm8, -inf, %v240_v18  ;;  %v5460_v37 = vsel %vm289_vm9, -inf, %v241_v19  ;;  %v248_v39 = vld [vmem:[%s5399_s28 + $0x60] sm:$0xff]  ;;  %vm294_vm11 = vcmp.eq.s32.totalorder %v270_v34, 0 }
  0x7b   : > { %v505_v35 = vmax.f32 %v503_v27, %v504_v31  ;;  %vm293_vm10 = vcmp.eq.s32.totalorder %v269_v33, 0  ;;  %v249_v40 = vld [vmem:[%s5399_s28 + $0x68] sm:$0xff]  ;;  %v498_v41 = vmax.f32 %v5454_v32, %v5458_v36  ;;  %v499_v42 = vsel %vm429_vm0, %v5460_v37, -inf  ;;  %v250_v43 = vld [vmem:[%s5399_s28 + $0x70] sm:$0xff]  ;;  %v272_v44 = vld [vmem:[%s5407_s24 + $0x60] sm:$0xff]  ;;  %s3870_s30 = ssub.s32 (%p6728_p6), 25, %s4021_s25 }
  0x7c   : > { %vm295_vm12 = vcmp.eq.s32.totalorder %v271_v38, 0  ;;  %v273_v45 = vld [vmem:[%s5407_s24 + $0x68] sm:$0xff]  ;;  %v5472_v46 = vsel %vm293_vm10, -inf, %v245_v28  ;;  %v5474_v47 = vsel %vm294_vm11, -inf, %v246_v29  ;;  %v274_v49 = vld [vmem:[%s5407_s24 + $0x70] sm:$0xff]  ;;  %vm296_vm13 = vcmp.eq.s32.totalorder %v272_v44, 0 }
  0x7d   : > { %506 = vmax.xlane.f32.xlu1 %v505_v35  ;;  %v5476_v48 = vsel %vm295_vm12, -inf, %v247_v30  ;;  %v251_v50 = vld [vmem:[%s5399_s28 + $0x78] sm:$0xff]  ;;  %v500_v51 = vmax.f32 %v498_v41, %v499_v42  ;;  %v508_v52 = vmax.f32 %v5472_v46, %v5474_v47  ;;  %vm297_vm14 = vcmp.eq.s32.totalorder %v273_v45, 0  ;;  %v252_v54 = vld [vmem:[%s5399_s28 + $0x80] sm:$0xff]  ;;  %v253_v55 = vld [vmem:[%s5399_s28 + $0x88] sm:$0xff]  ;;  %p3871_p5 = scmp.lt.s32.totalorder (%p6728_p6), %s3870_s30, 8 }
  0x7e   : > { %v509_v53 = vsel %vm429_vm0, %v5476_v48, -inf  ;;  %v275_v56 = vld [vmem:[%s5407_s24 + $0x78] sm:$0xff]  ;;  %vm298_vm15 = vcmp.eq.s32.totalorder %v274_v49, 0  ;;  %v5487_v57 = vsel %vm296_vm13, -inf, %v248_v39  ;;  %v5489_v58 = vsel %vm297_vm14, -inf, %v249_v40  ;;  %v276_v59 = vld [vmem:[%s5407_s24 + $0x80] sm:$0xff] }
  0x7f   : > { %v277_v60 = vld [vmem:[%s5407_s24 + $0x88] sm:$0xff]  ;;  %vm299_vm1 = vcmp.eq.s32.totalorder %v275_v56, 0  ;;  %501 = vmax.xlane.f32.xlu0 %v500_v51  ;;  %v510_v61 = vmax.f32 %v508_v52, %v509_v53  ;;  %v5493_v62 = vsel %vm298_vm15, -inf, %v250_v43  ;;  %v513_v63 = vmax.f32 %v5487_v57, %v5489_v58  ;;  %v254_v0 = vld [vmem:[%s5399_s28 + $0x90] sm:$0xff]  ;;  %v255_v1 = vld [vmem:[%s5399_s28 + $0x98] sm:$0xff] }
  0x80   : > { %vm300_vm2 = vcmp.eq.s32.totalorder %v276_v59, 0  ;;  %v256_v2 = vld [vmem:[%s5399_s28 + $0xa0] sm:$0xff]  ;;  %v514_v3 = vsel %vm429_vm0, %v5493_v62, -inf  ;;  %vm301_vm3 = vcmp.eq.s32.totalorder %v277_v60, 0  ;;  %v5502_v4 = vsel %vm299_vm1, -inf, %v251_v50  ;;  %v278_v6 = vld [vmem:[%s5407_s24 + $0x90] sm:$0xff] }
  0x81   : > { %v5504_v5 = vsel %vm300_vm2, -inf, %v252_v54  ;;  %v279_v7 = vld [vmem:[%s5407_s24 + $0x98] sm:$0xff]  ;;  %511 = vmax.xlane.f32.xlu1 %v510_v61  ;;  %v515_v8 = vmax.f32 %v513_v63, %v514_v3  ;;  %v5508_v12 = vsel %vm301_vm3, -inf, %v253_v55  ;;  %v280_v14 = vld [vmem:[%s5407_s24 + $0xa0] sm:$0xff]  ;;  %vm302_vm4 = vcmp.eq.s32.totalorder %v278_v6, 0  ;;  %v257_v15 = vld [vmem:[%s5399_s28 + $0xa8] sm:$0xff] }
  0x82   : > { %v518_v13 = vmax.f32 %v5502_v4, %v5504_v5  ;;  %v258_v16 = vld [vmem:[%s5399_s28 + $0xb0] sm:$0xff]  ;;  %v519_v17 = vsel %vm429_vm0, %v5508_v12, -inf  ;;  %vm303_vm5 = vcmp.eq.s32.totalorder %v279_v7, 0  ;;  %vm304_vm6 = vcmp.eq.s32.totalorder %v280_v14, 0  ;;  %v259_v19 = vld [vmem:[%s5399_s28 + $0xb8] sm:$0xff]  ;;  %v281_v22 = vld [vmem:[%s5407_s24 + $0xa8] sm:$0xff] }
  0x83   : > { %v5517_v18 = vsel %vm302_vm4, -inf, %v254_v0  ;;  %516 = vmax.xlane.f32.xlu0 %v515_v8  ;;  %v5521_v24 = vsel %vm303_vm5, -inf, %v255_v1  ;;  %v5523_v25 = vsel %vm304_vm6, -inf, %v256_v2  ;;  %v282_v27 = vld [vmem:[%s5407_s24 + $0xb0] sm:$0xff]  ;;  %v283_v28 = vld [vmem:[%s5407_s24 + $0xb8] sm:$0xff]  ;;  %vm305_vm7 = vcmp.eq.s32.totalorder %v281_v22, 0 }
  0x84   : > { %v520_v23 = vmax.f32 %v518_v13, %v519_v17  ;;  %v523_v29 = vmax.f32 %v5517_v18, %v5521_v24  ;;  %v524_v30 = vsel %vm429_vm0, %v5523_v25, -inf  ;;  %vm306_vm8 = vcmp.eq.s32.totalorder %v282_v27, 0 }
  0x85   : > { %vm307_vm9 = vcmp.eq.s32.totalorder %v283_v28, 0  ;;  %v5531_v31 = vsel %vm305_vm7, -inf, %v257_v15  ;;  %v5533_v33 = vsel %vm306_vm8, -inf, %v258_v16  ;;  %v332_v41 = vand.u32 2147483647, %v5422_v9 }
  0x86   : > { %521 = vmax.xlane.f32.xlu1 %v520_v23  ;;  %v5535_v34 = vsel %vm307_vm9, -inf, %v259_v19  ;;  %v525_v35 = vmax.f32 %v523_v29, %v524_v30  ;;  %v528_v38 = vmax.f32 %v5531_v31, %v5533_v33  ;;  %v333_v42 = vand.u32 2147483647, %v5424_v10 }
  0x87   : > { %v529_v39 = vsel %vm429_vm0, %v5535_v34, -inf  ;;  %v334_v43 = vand.u32 2147483647, %v5426_v11  ;;  %vm356_vm10 = vcmp.lt.f32.partialorder %v332_v41, inf  ;;  %v5225_v44 = vmov 0.0  }
  0x88   : > { %526 = vmax.xlane.f32.xlu0 %v525_v35  ;;  %v530_v40 = vmax.f32 %v528_v38, %v529_v39  ;;  %vm357_vm11 = vcmp.lt.f32.partialorder %v333_v42, inf  ;;  %v3997_v45 = vsel %vm356_vm10, 1.0, %v5225_v44  ;;  %v335_v54 = vand.u32 2147483647, %v5454_v32 }
  0x89   : > { %vm358_vm12 = vcmp.lt.f32.partialorder %v334_v43, inf  ;;  %v3998_v49 = vsel %vm357_vm11, 1.0, %v5225_v44  ;;  %v336_v55 = vand.u32 2147483647, %v5458_v36  ;;  %v337_v56 = vand.u32 2147483647, %v5460_v37 }
  0x8a   : > { %531 = vmax.xlane.f32.xlu1 %v530_v40  ;;  %v3999_v50 = vsel %vm358_vm12, 1.0, %v5225_v44  ;;  %v428_v51 = vadd.f32 %v3998_v49, %v3997_v45  ;;  %v338_v59 = vand.u32 2147483647, %v5438_v20  ;;  %v339_v60 = vand.u32 2147483647, %v5440_v21 }
  0x8b   : > { %v430_v52 = vsel %vm429_vm0, %v3999_v50, 0.0  ;;  %vm359_vm13 = vcmp.lt.f32.partialorder %v335_v54, inf  ;;  %vm360_vm14 = vcmp.lt.f32.partialorder %v336_v55, inf  ;;  %v340_v61 = vand.u32 2147483647, %v5445_v26 }
  0x8c   : > { %v431_v53 = vadd.f32 %v430_v52, %v428_v51  ;;  %vm361_vm15 = vcmp.lt.f32.partialorder %v337_v56, inf  ;;  %v4000_v63 = vsel %vm359_vm13, 1.0, %v5225_v44  ;;  %v4001_v0 = vsel %vm360_vm14, 1.0, %v5225_v44 }
  0x8d   : > { %vm362_vm1 = vcmp.lt.f32.partialorder %v338_v59, inf  ;;  %v4002_v1 = vsel %vm361_vm15, 1.0, %v5225_v44  ;;  %v434_v2 = vadd.f32 %v4001_v0, %v4000_v63  ;;  %vm363_vm2 = vcmp.lt.f32.partialorder %v339_v60, inf }
  0x8e   : > { %432 = vadd.xlane.f32.xlu0 %v431_v53  ;;  %vm364_vm3 = vcmp.lt.f32.partialorder %v340_v61, inf  ;;  %v435_v3 = vsel %vm429_vm0, %v4002_v1, 0.0  ;;  %v4003_v6 = vsel %vm362_vm1, 1.0, %v5225_v44  ;;  %v4004_v7 = vsel %vm363_vm2, 1.0, %v5225_v44 }
  0x8f   : > { %v4005_v8 = vsel %vm364_vm3, 1.0, %v5225_v44  ;;  %v436_v13 = vadd.f32 %v435_v3, %v434_v2  ;;  %v439_v14 = vadd.f32 %v4004_v7, %v4003_v6  ;;  %v341_v16 = vand.u32 2147483647, %v5472_v46 }
  0x90   : > { %v440_v15 = vsel %vm429_vm0, %v4005_v8, 0.0  ;;  %v342_v17 = vand.u32 2147483647, %v5474_v47  ;;  %v344_v19 = vand.u32 2147483647, %v5487_v57 }
  0x91   : > { %437 = vadd.xlane.f32.xlu1 %v436_v13  ;;  %v441_v22 = vadd.f32 %v440_v15, %v439_v14  ;;  %v343_v23 = vand.u32 2147483647, %v5476_v48  ;;  %v345_v27 = vand.u32 2147483647, %v5489_v58  ;;  %v346_v28 = vand.u32 2147483647, %v5493_v62 }
  0x92   : > { %vm365_vm4 = vcmp.lt.f32.partialorder %v341_v16, inf  ;;  %vm366_vm5 = vcmp.lt.f32.partialorder %v342_v17, inf  ;;  %vm368_vm6 = vcmp.lt.f32.partialorder %v344_v19, inf  ;;  %v347_v43 = vand.u32 2147483647, %v5502_v4 }
  0x93   : > { %442 = vadd.xlane.f32.xlu0 %v441_v22  ;;  %vm367_vm7 = vcmp.lt.f32.partialorder %v343_v23, inf  ;;  %v4006_v29 = vsel %vm365_vm4, 1.0, %v5225_v44  ;;  %v4007_v30 = vsel %vm366_vm5, 1.0, %v5225_v44  ;;  %vm369_vm8 = vcmp.lt.f32.partialorder %v345_v27, inf }
  0x94   : > { %v4008_v35 = vsel %vm367_vm7, 1.0, %v5225_v44  ;;  %v444_v38 = vadd.f32 %v4007_v30, %v4006_v29  ;;  %vm370_vm9 = vcmp.lt.f32.partialorder %v346_v28, inf  ;;  %v4009_v39 = vsel %vm368_vm6, 1.0, %v5225_v44 }
  0x95   : > { %v445_v40 = vsel %vm429_vm0, %v4008_v35, 0.0  ;;  %v4010_v41 = vsel %vm369_vm8, 1.0, %v5225_v44  ;;  %v4011_v42 = vsel %vm370_vm9, 1.0, %v5225_v44  ;;  %v348_v51 = vand.u32 2147483647, %v5504_v5 }
  0x96   : > { %v446_v45 = vadd.f32 %v445_v40, %v444_v38  ;;  %v449_v49 = vadd.f32 %v4010_v41, %v4009_v39  ;;  %v450_v50 = vsel %vm429_vm0, %v4011_v42, 0.0  ;;  %v349_v52 = vand.u32 2147483647, %v5508_v12 }
  0x97   : > { %vm371_vm10 = vcmp.lt.f32.partialorder %v347_v43, inf  ;;  %v350_v53 = vand.u32 2147483647, %v5517_v18  ;;  %vm372_vm11 = vcmp.lt.f32.partialorder %v348_v51, inf  ;;  %v351_v56 = vand.u32 2147483647, %v5521_v24 }
  0x98   : > { %447 = vadd.xlane.f32.xlu1 %v446_v45  ;;  %v451_v54 = vadd.f32 %v450_v50, %v449_v49  ;;  %v4012_v55 = vsel %vm371_vm10, 1.0, %v5225_v44  ;;  %vm373_vm12 = vcmp.lt.f32.partialorder %v349_v52, inf  ;;  %v4013_v59 = vsel %vm372_vm11, 1.0, %v5225_v44 }
  0x99   : > { %v352_v60 = vand.u32 2147483647, %v5523_v25  ;;  %vm374_vm13 = vcmp.lt.f32.partialorder %v350_v53, inf  ;;  %v4014_v61 = vsel %vm373_vm12, 1.0, %v5225_v44  ;;  %v454_v63 = vadd.f32 %v4013_v59, %v4012_v55 }
  0x9a   : > { %452 = vadd.xlane.f32.xlu0 %v451_v54  ;;  %vm375_vm14 = vcmp.lt.f32.partialorder %v351_v56, inf  ;;  %v4015_v0 = vsel %vm374_vm13, 1.0, %v5225_v44  ;;  %v455_v1 = vsel %vm429_vm0, %v4014_v61, 0.0  ;;  %v353_v3 = vand.u32 2147483647, %v5531_v31 }
  0x9b   : > { %vm376_vm15 = vcmp.lt.f32.partialorder %v352_v60, inf  ;;  %v4016_v2 = vsel %vm375_vm14, 1.0, %v5225_v44  ;;  %v456_v6 = vadd.f32 %v455_v1, %v454_v63  ;;  %v354_v13 = vand.u32 2147483647, %v5533_v33 }
  0x9c   : > { %v4017_v7 = vsel %vm376_vm15, 1.0, %v5225_v44  ;;  %v459_v8 = vadd.f32 %v4016_v2, %v4015_v0  ;;  %v355_v15 = vand.u32 2147483647, %v5535_v34  ;;  %vm377_vm1 = vcmp.lt.f32.partialorder %v353_v3, inf }
  0x9d   : > { %v460_v14 = vsel %vm429_vm0, %v4017_v7, 0.0  ;;  %457 = vadd.xlane.f32.xlu1 %v456_v6  ;;  %vm378_vm2 = vcmp.lt.f32.partialorder %v354_v13, inf  ;;  %v4018_v17 = vsel %vm377_vm1, 1.0, %v5225_v44 }
  0x9e   : > { %v461_v16 = vadd.f32 %v460_v14, %v459_v8  ;;  %vm379_vm3 = vcmp.lt.f32.partialorder %v355_v15, inf  ;;  %v4019_v19 = vsel %vm378_vm2, 1.0, %v5225_v44 }
  0x9f   : > { %v4020_v22 = vsel %vm379_vm3, 1.0, %v5225_v44  ;;  %v464_v23 = vadd.f32 %v4019_v19, %v4018_v17 }
  0xa0   : > { %462 = vadd.xlane.f32.xlu0 %v461_v16  ;;  %v465_v27 = vsel %vm429_vm0, %v4020_v22, 0.0 }
  0xa1   : > { %v466_v28 = vadd.f32 %v465_v27, %v464_v23 }
  0xa3   : > { %467 = vadd.xlane.f32.xlu1 %v466_v28 }
 0x107   : > { %v497_v29 = vpop.xlane.xlu0 %496 }
 0x108   : > { %vm533_vm4 = vcmp.eq.f32.partialorder %v497_v29, -inf }
 0x109   : > { %v541_v38 = vsel %vm533_vm4, 0.0, %v497_v29 }
 0x10a   : > { %v507_v30 = vpop.xlane.xlu1 %506  ;;  %v5598_v40 = vsub.f32 %v5422_v9, %v541_v38  ;;  %v5601_v42 = vsub.f32 %v5424_v10, %v541_v38  ;;  %v5604_v43 = vsub.f32 %v5426_v11, %v541_v38 }
 0x10b   : > { %vm535_vm6 = vcmp.eq.f32.partialorder %v507_v30, -inf }
 0x10c   : > { %v502_v35 = vpop.xlane.xlu0 %501  ;;  %v543_v45 = vsel %vm535_vm6, 0.0, %v507_v30  ;;  %v573_v51 = vmul.f32 0.25, %v5598_v40  ;;  %v574_v53 = vmul.f32 0.25, %v5601_v42 }
 0x10d   : > { %vm534_vm5 = vcmp.eq.f32.partialorder %v502_v35, -inf  ;;  %v5618_v11 = vsub.f32 %v5438_v20, %v543_v45  ;;  %v5622_v54 = vsub.f32 %v5440_v21, %v543_v45 }
 0x10e   : > { %v512_v39 = vpop.xlane.xlu1 %511  ;;  %v542_v41 = vsel %vm534_vm5, 0.0, %v502_v35  ;;  %v599_v0 = vmul.f32 1.442695, %v574_v53 }
 0x10f   : > { %vm536_vm7 = vcmp.eq.f32.partialorder %v512_v39, -inf  ;;  %v5607_v49 = vsub.f32 %v5454_v32, %v542_v41  ;;  %v5611_v9 = vsub.f32 %v5458_v36, %v542_v41  ;;  %v5614_v52 = vsub.f32 %v5460_v37, %v542_v41 }
 0x110   : > { %v517_v44 = vpop.xlane.xlu0 %516  ;;  %v544_v10 = vsel %vm536_vm7, 0.0, %v512_v39  ;;  %v575_v32 = vmul.f32 0.25, %v5604_v43  ;;  %v597_v36 = vmul.f32 1.442695, %v573_v51  ;;  %v5626_v37 = vsub.f32 %v5445_v26, %v543_v45 }
 0x111   : > { %vm537_vm8 = vcmp.eq.f32.partialorder %v517_v44, -inf  ;;  %v576_v59 = vmul.f32 0.25, %v5607_v49  ;;  %v5629_v60 = vsub.f32 %v5472_v46, %v544_v10  ;;  %v5632_v20 = vsub.f32 %v5474_v47, %v544_v10 }
 0x112   : > { %v545_v55 = vsel %vm537_vm8, 0.0, %v517_v44  ;;  %v577_v61 = vmul.f32 0.25, %v5611_v9  ;;  %v5636_v63 = vsub.f32 %v5476_v48, %v544_v10  ;;  %v578_v1 = vmul.f32 0.25, %v5614_v52 }
 0x113   : > { %v522_v50 = vpop.xlane.xlu1 %521  ;;  %6700 = vst [vmem:[#allocation11_spill] sm:$0xff] %v5632_v20  ;;  %v5640_v2 = vsub.f32 %v5487_v57, %v545_v55  ;;  %v601_v26 = vmul.f32 1.442695, %v575_v32  ;;  %v579_v46 = vmul.f32 0.25, %v5618_v11  ;;  %v5644_v3 = vsub.f32 %v5489_v58, %v545_v55 }
 0x114   : > { %vm538_vm9 = vcmp.eq.f32.partialorder %v522_v50, -inf  ;;  %6701 = vst [vmem:[#allocation12_spill] sm:$0xff] %v5636_v63  ;;  %4083 = vpow2.f32 %v597_v36  ;;  %v603_v47 = vmul.f32 1.442695, %v576_v59  ;;  %v580_v6 = vmul.f32 0.25, %v5622_v54 }
 0x115   : > { %v527_v56 = vpop.xlane.xlu0 %526  ;;  %v546_v21 = vsel %vm538_vm9, 0.0, %v522_v50  ;;  %6702 = vst [vmem:[#allocation13_spill] sm:$0xff] %v5640_v2  ;;  %6703 = vst [vmem:[#allocation14_spill] sm:$0xff] %v5644_v3  ;;  %v5648_v48 = vsub.f32 %v5493_v62, %v545_v55  ;;  %v605_v57 = vmul.f32 1.442695, %v577_v61  ;;  %v581_v13 = vmul.f32 0.25, %v5626_v37 }
 0x116   : > { %vm539_vm10 = vcmp.eq.f32.partialorder %v527_v56, -inf  ;;  %v5651_v7 = vsub.f32 %v5502_v4, %v546_v21  ;;  %v5655_v14 = vsub.f32 %v5504_v5, %v546_v21  ;;  %4085 = vpow2.f32 %v599_v0 }
 0x117   : > { %6704 = vst [vmem:[#allocation15_spill] sm:$0xff] %v5648_v48  ;;  %v532_v8 = vpop.xlane.xlu1 %531  ;;  %v607_v58 = vmul.f32 1.442695, %v578_v1  ;;  %v582_v15 = vmul.f32 0.25, %v5629_v60  ;;  %v547_v16 = vsel %vm539_vm10, 0.0, %v527_v56  ;;  %4087 = vpow2.f32 %v601_v26 }
 0x118   : > { %6705 = vst [vmem:[#allocation16_spill] sm:$0xff] %v5651_v7  ;;  %6706 = vst [vmem:[#allocation17_spill] sm:$0xff] %v5655_v14  ;;  %v609_v17 = vmul.f32 1.442695, %v579_v46  ;;  %v583_v62 = vmul.f32 0.25, %v5632_v20  ;;  %vm540_vm11 = vcmp.eq.f32.partialorder %v532_v8, -inf  ;;  %4089 = vpow2.f32 %v603_v47 }
 0x119   : > { %v611_v4 = vmul.f32 1.442695, %v580_v6  ;;  %v584_v19 = vmul.f32 0.25, %v5636_v63  ;;  %v5662_v22 = vsub.f32 %v5508_v12, %v546_v21  ;;  %4091 = vpow2.f32 %v605_v57 }
 0x11a   : > { %v613_v5 = vmul.f32 1.442695, %v581_v13  ;;  %v585_v23 = vmul.f32 0.25, %v5640_v2  ;;  %v5666_v27 = vsub.f32 %v5517_v18, %v547_v16  ;;  %4093 = vpow2.f32 %v607_v58 }
 0x11b   : > { %6707 = vst [vmem:[#allocation18_spill] sm:$0xff] %v5662_v22  ;;  %v615_v28 = vmul.f32 1.442695, %v582_v15  ;;  %v586_v29 = vmul.f32 0.25, %v5644_v3  ;;  %v548_v30 = vsel %vm540_vm11, 0.0, %v532_v8  ;;  %4095 = vpow2.f32 %v609_v17 }
 0x11c   : > { %6708 = vst [vmem:[#allocation19_spill] sm:$0xff] %v5666_v27  ;;  %v617_v35 = vmul.f32 1.442695, %v583_v62  ;;  %v587_v38 = vmul.f32 0.25, %v5648_v48  ;;  %v5671_v39 = vsub.f32 %v5521_v24, %v547_v16  ;;  %4097 = vpow2.f32 %v611_v4 }
 0x11d   : > { %v619_v12 = vmul.f32 1.442695, %v584_v19  ;;  %v588_v41 = vmul.f32 0.25, %v5651_v7  ;;  %v5675_v44 = vsub.f32 %v5523_v25, %v547_v16  ;;  %4099 = vpow2.f32 %v613_v5 }
 0x11e   : > { %6709 = vst [vmem:[#allocation20_spill] sm:$0xff] %v5671_v39  ;;  %v621_v18 = vmul.f32 1.442695, %v585_v23  ;;  %v589_v45 = vmul.f32 0.25, %v5655_v14  ;;  %v4084_v50 = vpop.eup %4083  ;;  %v5679_v51 = vsub.f32 %v5531_v31, %v548_v30  ;;  %4101 = vpow2.f32 %v615_v28 }
 0x11f   : > { %6710 = vst [vmem:[#allocation21_spill] sm:$0xff] %v5675_v44  ;;  %v623_v10 = vmul.f32 1.442695, %v586_v29  ;;  %v590_v24 = vmul.f32 0.25, %v5662_v22  ;;  %v5683_v53 = vsub.f32 %v5533_v33, %v548_v30  ;;  %4103 = vpow2.f32 %v617_v35 }
 0x120   : > { %6711 = vst [vmem:[#allocation22_spill] sm:$0xff] %v5679_v51  ;;  %v625_v32 = vmul.f32 1.442695, %v587_v38  ;;  %v591_v25 = vmul.f32 0.25, %v5666_v27  ;;  %v4086_v55 = vpop.eup %4085  ;;  %v5687_v56 = vsub.f32 %v5535_v34, %v548_v30  ;;  %4105 = vpow2.f32 %v619_v12 }
 0x121   : > { %6712 = vst [vmem:[#allocation23_spill] sm:$0xff] %v5683_v53  ;;  %v627_v36 = vmul.f32 1.442695, %v588_v41  ;;  %v592_v31 = vmul.f32 0.25, %v5671_v39  ;;  %v4088_v59 = vpop.eup %4087  ;;  %v645_v61 = vadd.f32 %v4086_v55, %v4084_v50  ;;  %4107 = vpow2.f32 %v621_v18 }
 0x122   : > { %6713 = vst [vmem:[#allocation24_spill] sm:$0xff] %v5687_v56  ;;  %v629_v21 = vmul.f32 1.442695, %v589_v45  ;;  %v593_v0 = vmul.f32 0.25, %v5675_v44  ;;  %v4090_v33 = vpop.eup %4089  ;;  %v646_v1 = vsel %vm429_vm0, %v4088_v59, 0.0  ;;  %4109 = vpow2.f32 %v623_v10 }
 0x123   : > { %v631_v26 = vmul.f32 1.442695, %v590_v24  ;;  %v594_v46 = vmul.f32 0.25, %v5679_v51  ;;  %v4092_v47 = vpop.eup %4091  ;;  %v647_v34 = vadd.f32 %v646_v1, %v645_v61  ;;  %4111 = vpow2.f32 %v625_v32 }
 0x124   : > { %v633_v6 = vmul.f32 1.442695, %v591_v25  ;;  %v595_v8 = vmul.f32 0.25, %v5683_v53  ;;  %v4094_v57 = vpop.eup %4093  ;;  %v650_v13 = vadd.f32 %v4092_v47, %v4090_v33  ;;  %4113 = vpow2.f32 %v627_v36 }
 0x125   : > { %v635_v58 = vmul.f32 1.442695, %v592_v31  ;;  %v596_v15 = vmul.f32 0.25, %v5687_v56  ;;  %v4096_v16 = vpop.eup %4095  ;;  %648 = vadd.xlane.f32.xlu0 %v647_v34  ;;  %v651_v17 = vsel %vm429_vm0, %v4094_v57, 0.0  ;;  %4115 = vpow2.f32 %v629_v21 }
 0x126   : > { %v637_v62 = vmul.f32 1.442695, %v593_v0  ;;  %v4098_v4 = vpop.eup %4097  ;;  %v652_v19 = vadd.f32 %v651_v17, %v650_v13  ;;  %4117 = vpow2.f32 %v631_v26  ;;  %v639_v5 = vmul.f32 1.442695, %v594_v46 }
 0x127   : > { %v4100_v23 = vpop.eup %4099  ;;  %v655_v28 = vadd.f32 %v4098_v4, %v4096_v16  ;;  %4119 = vpow2.f32 %v633_v6  ;;  %v641_v29 = vmul.f32 1.442695, %v595_v8  ;;  %v643_v38 = vmul.f32 1.442695, %v596_v15  ;;  %v438_v4 = vpop.xlane.xlu1 %437 }
 0x128   : > { %v4102_v30 = vpop.eup %4101  ;;  %653 = vadd.xlane.f32.xlu1 %v652_v19  ;;  %v656_v35 = vsel %vm429_vm0, %v4100_v23, 0.0  ;;  %4121 = vpow2.f32 %v635_v58 }
 0x129   : > { %v4104_v12 = vpop.eup %4103  ;;  %v657_v41 = vadd.f32 %v656_v35, %v655_v28  ;;  %4123 = vpow2.f32 %v637_v62  ;;  %v433_v62 = vpop.xlane.xlu0 %432 }
 0x12a   : > { %v4106_v18 = vpop.eup %4105  ;;  %v660_v45 = vadd.f32 %v4104_v12, %v4102_v30  ;;  %4125 = vpow2.f32 %v639_v5  ;;  %v469_v30 = vmul.f32 0.5, %v433_v62 }
 0x12b   : > { %v4108_v50 = vpop.eup %4107  ;;  %658 = vadd.xlane.f32.xlu0 %v657_v41  ;;  %v661_v10 = vsel %vm429_vm0, %v4106_v18, 0.0  ;;  %4127 = vpow2.f32 %v641_v29  ;;  %v448_v5 = vpop.xlane.xlu1 %447 }
 0x12c   : > { %v4110_v24 = vpop.eup %4109  ;;  %v662_v32 = vadd.f32 %v661_v10, %v660_v45  ;;  %4129 = vpow2.f32 %v643_v38  ;;  %v470_v38 = vmul.f32 0.5, %v438_v4 }
 0x12d   : > { %v4112_v25 = vpop.eup %4111  ;;  %v665_v55 = vadd.f32 %v4110_v24, %v4108_v50  ;;  %v443_v19 = vpop.xlane.xlu0 %442  ;;  %4131 = vlog2.f32 %v469_v30  ;;  %v472_v24 = vmul.f32 0.5, %v448_v5 }
 0x12e   : > { %v4114_v36 = vpop.eup %4113  ;;  %663 = vadd.xlane.f32.xlu1 %v662_v32  ;;  %v666_v31 = vsel %vm429_vm0, %v4112_v25, 0.0  ;;  %v471_v18 = vmul.f32 0.5, %v443_v19 }
 0x12f   : > { %v4116_v59 = vpop.eup %4115  ;;  %v667_v61 = vadd.f32 %v666_v31, %v665_v55  ;;  %v458_v28 = vpop.xlane.xlu1 %457 }
 0x130   : > { %v4118_v21 = vpop.eup %4117  ;;  %v670_v0 = vadd.f32 %v4116_v59, %v4114_v36  ;;  %v474_v59 = vmul.f32 0.5, %v458_v28 }
 0x131   : > { %v4120_v33 = vpop.eup %4119  ;;  %668 = vadd.xlane.f32.xlu0 %v667_v61  ;;  %v671_v1 = vsel %vm429_vm0, %v4118_v21, 0.0  ;;  %v453_v23 = vpop.xlane.xlu0 %452 }
 0x132   : > { %v4122_v26 = vpop.eup %4121  ;;  %v672_v46 = vadd.f32 %v671_v1, %v670_v0  ;;  %v473_v55 = vmul.f32 0.5, %v453_v23 }
 0x133   : > { %v4124_v47 = vpop.eup %4123  ;;  %v675_v34 = vadd.f32 %v4122_v26, %v4120_v33  ;;  %v468_v35 = vpop.xlane.xlu1 %467 }
 0x134   : > { %v4126_v6 = vpop.eup %4125  ;;  %673 = vadd.xlane.f32.xlu1 %v672_v46  ;;  %v676_v8 = vsel %vm429_vm0, %v4124_v47, 0.0 }
 0x135   : > { %v4128_v57 = vpop.eup %4127  ;;  %v677_v13 = vadd.f32 %v676_v8, %v675_v34  ;;  %v463_v29 = vpop.xlane.xlu0 %462 }
 0x136   : > { %v4130_v58 = vpop.eup %4129  ;;  %v680_v15 = vadd.f32 %v4128_v57, %v4126_v6  ;;  %v475_v34 = vmul.f32 0.5, %v463_v29 }
 0x137   : > { %678 = vadd.xlane.f32.xlu0 %v677_v13  ;;  %v681_v16 = vsel %vm429_vm0, %v4130_v58, 0.0  ;;  %v4132_v31 = vpop.eup %4131  ;;  %v476_v58 = vmul.f32 0.5, %v468_v35 }
 0x138   : > { %v682_v17 = vadd.f32 %v681_v16, %v680_v15  ;;  %v5702_v1 = vmul.f32 0.6931472, %v4132_v31 }
 0x13a   : > { %683 = vadd.xlane.f32.xlu1 %v682_v17 }
 0x1b2   : > { %v649_v12 = vpop.xlane.xlu0 %648 }
 0x1b3   : > { %v685_v41 = vadd.f32 1e-20, %v649_v12 }
 0x1b5   : > { %4133 = vlog2.f32 %v685_v41  ;;  %v654_v45 = vpop.xlane.xlu1 %653 }
 0x1b6   : > { %4135 = vlog2.f32 %v470_v38  ;;  %v686_v50 = vadd.f32 1e-20, %v654_v45 }
 0x1b8   : > { %4137 = vlog2.f32 %v686_v50  ;;  %v659_v10 = vpop.xlane.xlu0 %658 }
 0x1b9   : > { %4139 = vlog2.f32 %v471_v18  ;;  %v687_v32 = vadd.f32 1e-20, %v659_v10 }
 0x1bb   : > { %4141 = vlog2.f32 %v687_v32  ;;  %v664_v25 = vpop.xlane.xlu1 %663 }
 0x1bc   : > { %v688_v36 = vadd.f32 1e-20, %v664_v25  ;;  %4143 = vlog2.f32 %v472_v24 }
 0x1be   : > { %4145 = vlog2.f32 %v688_v36  ;;  %v669_v61 = vpop.xlane.xlu0 %668 }
 0x1bf   : > { %v4134_v21 = vpop.eup %4133  ;;  %v689_v0 = vadd.f32 1e-20, %v669_v61  ;;  %4147 = vlog2.f32 %v473_v55 }
 0x1c0   : > { %v4136_v33 = vpop.eup %4135  ;;  %v694_v26 = vmul.f32 0.6931472, %v4134_v21 }
 0x1c1   : > { %4149 = vlog2.f32 %v689_v0  ;;  %v674_v46 = vpop.xlane.xlu1 %673  ;;  %v5705_v13 = vmul.f32 0.6931472, %v4136_v33 }
 0x1c2   : > { %v4138_v47 = vpop.eup %4137  ;;  %4151 = vlog2.f32 %v474_v59  ;;  %v709_v6 = vsub.f32 %v5702_v1, %v694_v26  ;;  %v690_v8 = vadd.f32 1e-20, %v674_v46 }
 0x1c3   : > { %v4140_v57 = vpop.eup %4139  ;;  %v696_v15 = vmul.f32 0.6931472, %v4138_v47 }
 0x1c4   : > { %v717_v16 = vmul.f32 4.0, %v709_v6  ;;  %4153 = vlog2.f32 %v690_v8  ;;  %v679_v17 = vpop.xlane.xlu0 %678  ;;  %v5708_v5 = vmul.f32 0.6931472, %v4140_v57 }
 0x1c5   : > { %v4142_v62 = vpop.eup %4141  ;;  %v710_v4 = vsub.f32 %v5705_v13, %v696_v15  ;;  %v691_v19 = vadd.f32 1e-20, %v679_v17  ;;  %4155 = vlog2.f32 %v475_v34 }
 0x1c6   : > { %v725_v23 = vsub.f32 0.0, %v717_v16  ;;  %v698_v28 = vmul.f32 0.6931472, %v4142_v62  ;;  %v4144_v29 = vpop.eup %4143  ;;  %4157 = vlog2.f32 %v476_v58 }
 0x1c7   : > { %v718_v30 = vmul.f32 4.0, %v710_v4  ;;  %v684_v38 = vpop.xlane.xlu1 %683  ;;  %4159 = vlog2.f32 %v691_v19  ;;  %v5714_v25 = vmul.f32 0.6931472, %v4144_v29 }
 0x1c8   : > { %v4146_v12 = vpop.eup %4145  ;;  %v733_v35 = vmin.f32 %v5598_v40, %v725_v23  ;;  %v734_v41 = vmin.f32 %v5601_v42, %v725_v23  ;;  %v735_v18 = vmin.f32 %v5604_v43, %v725_v23  ;;  %v711_v45 = vsub.f32 %v5708_v5, %v698_v28 }
 0x1c9   : > { %v726_v50 = vsub.f32 0.0, %v718_v30  ;;  %v700_v10 = vmul.f32 0.6931472, %v4146_v12  ;;  %v692_v24 = vadd.f32 1e-20, %v684_v38  ;;  %v4148_v32 = vpop.eup %4147 }
 0x1ca   : > { %v757_v55 = vmul.f32 0.35714287, %v733_v35  ;;  %v758_v36 = vmul.f32 0.35714287, %v734_v41  ;;  %v759_v59 = vmul.f32 0.35714287, %v735_v18 }
 0x1cb   : > { %v4150_v31 = vpop.eup %4149  ;;  %v736_v61 = vmin.f32 %v5607_v49, %v726_v50  ;;  %v719_v21 = vmul.f32 4.0, %v711_v45  ;;  %v737_v33 = vmin.f32 %v5611_v9, %v726_v50  ;;  %v712_v26 = vsub.f32 %v5714_v25, %v700_v10 }
 0x1cc   : > { %v4152_v0 = vpop.eup %4151  ;;  %v781_v46 = vmul.f32 1.442695, %v757_v55  ;;  %v783_v47 = vmul.f32 1.442695, %v758_v36  ;;  %v738_v34 = vmin.f32 %v5614_v52, %v726_v50  ;;  %4161 = vlog2.f32 %v692_v24 }
 0x1cd   : > { %v760_v8 = vmul.f32 0.35714287, %v736_v61  ;;  %v727_v57 = vsub.f32 0.0, %v719_v21  ;;  %v720_v58 = vmul.f32 4.0, %v712_v26  ;;  %v702_v15 = vmul.f32 0.6931472, %v4150_v31 }
 0x1ce   : > { %v4154_v6 = vpop.eup %4153  ;;  %v5720_v16 = vmul.f32 0.6931472, %v4148_v32  ;;  %v5722_v17 = vmul.f32 0.6931472, %v4152_v0  ;;  %v785_v62 = vmul.f32 1.442695, %v759_v59  ;;  %4163 = vpow2.f32 %v781_v46 }
 0x1cf   : > { %v4156_v4 = vpop.eup %4155  ;;  %v739_v19 = vmin.f32 %v5618_v11, %v727_v57  ;;  %v740_v23 = vmin.f32 %v5622_v54, %v727_v57  ;;  %v741_v28 = vmin.f32 %v5626_v37, %v727_v57  ;;  %v728_v29 = vsub.f32 0.0, %v720_v58 }
 0x1d0   : > { %v4158_v30 = vpop.eup %4157  ;;  %v761_v38 = vmul.f32 0.35714287, %v737_v33  ;;  %v713_v12 = vsub.f32 %v5720_v16, %v702_v15  ;;  %v704_v35 = vmul.f32 0.6931472, %v4154_v6  ;;  %4165 = vpow2.f32 %v783_v47 }
 0x1d1   : > { %v762_v41 = vmul.f32 0.35714287, %v738_v34  ;;  %v787_v18 = vmul.f32 1.442695, %v760_v8  ;;  %v763_v45 = vmul.f32 0.35714287, %v739_v19  ;;  %v4160_v50 = vpop.eup %4159  ;;  %v742_v24 = vmin.f32 %v5629_v60, %v728_v29 }
 0x1d2   : > { %v764_v10 = vmul.f32 0.35714287, %v740_v23  ;;  %v743_v32 = vmin.f32 %v5632_v20, %v728_v29  ;;  %v721_v55 = vmul.f32 4.0, %v713_v12  ;;  %v5730_v36 = vmul.f32 0.6931472, %v4156_v4 }
 0x1d3   : > { %v5732_v31 = vmul.f32 0.6931472, %v4158_v30  ;;  %v765_v59 = vmul.f32 0.35714287, %v741_v28  ;;  %v714_v61 = vsub.f32 %v5722_v17, %v704_v35  ;;  %v789_v21 = vmul.f32 1.442695, %v761_v38 }
 0x1d4   : > { %v744_v0 = vmin.f32 %v5636_v63, %v728_v29  ;;  %v766_v33 = vmul.f32 0.35714287, %v742_v24  ;;  %4167 = vpow2.f32 %v785_v62  ;;  %v767_v26 = vmul.f32 0.35714287, %v743_v32 }
 0x1d5   : > { %v729_v46 = vsub.f32 0.0, %v721_v55  ;;  %v722_v47 = vmul.f32 4.0, %v714_v61  ;;  %v706_v34 = vmul.f32 0.6931472, %v4160_v50  ;;  %4169 = vpow2.f32 %v787_v18 }
 0x1d6   : > { %v4162_v6 = vpop.eup %4161  ;;  %v791_v8 = vmul.f32 1.442695, %v762_v41  ;;  %v793_v57 = vmul.f32 1.442695, %v763_v45  ;;  %v795_v58 = vmul.f32 1.442695, %v764_v10  ;;  %4171 = vpow2.f32 %v789_v21 }
 0x1d7   : > { %v797_v15 = vmul.f32 1.442695, %v765_v59  ;;  %v745_v4 = vmin.f32 %v5640_v2, %v729_v46  ;;  %v746_v19 = vmin.f32 %v5644_v3, %v729_v46  ;;  %v730_v23 = vsub.f32 0.0, %v722_v47 }
 0x1d8   : > { %v768_v28 = vmul.f32 0.35714287, %v744_v0  ;;  %v799_v30 = vmul.f32 1.442695, %v766_v33  ;;  %v715_v29 = vsub.f32 %v5730_v36, %v706_v34  ;;  %v708_v62 = vmul.f32 0.6931472, %v4162_v6  ;;  %v4164_v50 = vpop.eup %4163 }
 0x1d9   : > { %v801_v38 = vmul.f32 1.442695, %v767_v26  ;;  %v769_v12 = vmul.f32 0.35714287, %v745_v4  ;;  %v770_v35 = vmul.f32 0.35714287, %v746_v19  ;;  %4173 = vpow2.f32 %v793_v57 }
 0x1da   : > { %v748_v41 = vmin.f32 %v5651_v7, %v730_v23  ;;  %v749_v18 = vmin.f32 %v5655_v14, %v730_v23  ;;  %v723_v45 = vmul.f32 4.0, %v715_v29  ;;  %v4166_v10 = vpop.eup %4165  ;;  %4175 = vpow2.f32 %v795_v58 }
 0x1db   : > { %v805_v24 = vmul.f32 1.442695, %v769_v12  ;;  %v807_v32 = vmul.f32 1.442695, %v770_v35  ;;  %v716_v55 = vsub.f32 %v5732_v31, %v708_v62  ;;  %4177 = vpow2.f32 %v799_v30 }
 0x1dc   : > { %v747_v59 = vmin.f32 %v5648_v48, %v729_v46  ;;  %v772_v61 = vmul.f32 0.35714287, %v748_v41  ;;  %v773_v21 = vmul.f32 0.35714287, %v749_v18  ;;  %4179 = vpow2.f32 %v801_v38 }
 0x1dd   : > { %v750_v0 = vmin.f32 %v5662_v22, %v730_v23  ;;  %v731_v33 = vsub.f32 0.0, %v723_v45  ;;  %v724_v26 = vmul.f32 4.0, %v716_v55  ;;  %4181 = vpow2.f32 %v805_v24 }
 0x1de   : > { %v4168_v47 = vpop.eup %4167  ;;  %v811_v34 = vmul.f32 1.442695, %v772_v61  ;;  %v813_v6 = vmul.f32 1.442695, %v773_v21  ;;  %v829_v57 = vadd.f32 %v4166_v10, %v4164_v50  ;;  %4183 = vpow2.f32 %v807_v32 }
 0x1df   : > { %v751_v58 = vmin.f32 %v5666_v27, %v731_v33  ;;  %v752_v4 = vmin.f32 %v5671_v39, %v731_v33  ;;  %v732_v19 = vsub.f32 0.0, %v724_v26  ;;  %v4170_v30 = vpop.eup %4169  ;;  %v803_v46 = vmul.f32 1.442695, %v768_v28 }
 0x1e0   : > { %4185 = vpow2.f32 %v811_v34  ;;  %v753_v29 = vmin.f32 %v5675_v44, %v731_v33  ;;  %v830_v23 = vsel %vm429_vm0, %v4168_v47, 0.0  ;;  %v771_v62 = vmul.f32 0.35714287, %v747_v59  ;;  %v4172_v45 = vpop.eup %4171 }
 0x1e1   : > { %4187 = vpow2.f32 %v813_v6  ;;  %v775_v38 = vmul.f32 0.35714287, %v751_v58  ;;  %v776_v12 = vmul.f32 0.35714287, %v752_v4  ;;  %v754_v35 = vmin.f32 %v5679_v51, %v732_v19 }
 0x1e2   : > { %v755_v50 = vmin.f32 %v5683_v53, %v732_v19  ;;  %v756_v41 = vmin.f32 %v5687_v56, %v732_v19  ;;  %v831_v18 = vadd.f32 %v830_v23, %v829_v57  ;;  %v774_v10 = vmul.f32 0.35714287, %v750_v0 }
 0x1e3   : > { %v817_v24 = vmul.f32 1.442695, %v775_v38  ;;  %v819_v28 = vmul.f32 1.442695, %v776_v12  ;;  %4189 = vpow2.f32 %v791_v8  ;;  %v4174_v32 = vpop.eup %4173  ;;  %v777_v55 = vmul.f32 0.35714287, %v753_v29 }
 0x1e4   : > { %v778_v61 = vmul.f32 0.35714287, %v754_v35  ;;  %v779_v21 = vmul.f32 0.35714287, %v755_v50  ;;  %832 = vadd.xlane.f32.xlu0 %v831_v18  ;;  %4191 = vpow2.f32 %v797_v15  ;;  %v4176_v59 = vpop.eup %4175  ;;  %v780_v33 = vmul.f32 0.35714287, %v756_v41 }
 0x1e5   : > { %4193 = vpow2.f32 %v817_v24  ;;  %v4178_v26 = vpop.eup %4177  ;;  %v809_v47 = vmul.f32 1.442695, %v771_v62  ;;  %v815_v58 = vmul.f32 1.442695, %v774_v10  ;;  %v821_v4 = vmul.f32 1.442695, %v777_v55 }
 0x1e6   : > { %4195 = vpow2.f32 %v819_v28  ;;  %v823_v34 = vmul.f32 1.442695, %v778_v61  ;;  %v825_v6 = vmul.f32 1.442695, %v779_v21  ;;  %v4180_v57 = vpop.eup %4179  ;;  %v827_v19 = vmul.f32 1.442695, %v780_v33 }
 0x1e7   : > { %4197 = vpow2.f32 %v803_v46  ;;  %v4182_v0 = vpop.eup %4181  ;;  %v834_v23 = vadd.f32 %v4172_v45, %v4170_v30  ;;  %v839_v38 = vadd.f32 %v4176_v59, %v4174_v32  ;;  %v844_v18 = vadd.f32 %v4180_v57, %v4178_v26 }
 0x1e8   : > { %4199 = vpow2.f32 %v823_v34  ;;  %v4184_v8 = vpop.eup %4183 }
 0x1e9   : > { %4201 = vpow2.f32 %v825_v6  ;;  %v849_v45 = vadd.f32 %v4184_v8, %v4182_v0 }
 0x1ea   : > { %v4186_v29 = vpop.eup %4185  ;;  %4203 = vpow2.f32 %v809_v47 }
 0x1eb   : > { %v4188_v15 = vpop.eup %4187  ;;  %4205 = vpow2.f32 %v815_v58 }
 0x1ec   : > { %4207 = vpow2.f32 %v821_v4  ;;  %v854_v21 = vadd.f32 %v4188_v15, %v4186_v29 }
 0x1ed   : > { %v4190_v62 = vpop.eup %4189  ;;  %4209 = vpow2.f32 %v827_v19 }
 0x1ee   : > { %v4192_v12 = vpop.eup %4191  ;;  %v835_v35 = vsel %vm429_vm0, %v4190_v62, 0.0 }
 0x1ef   : > { %v4194_v50 = vpop.eup %4193  ;;  %v836_v46 = vadd.f32 %v835_v35, %v834_v23  ;;  %v840_v41 = vsel %vm429_vm0, %v4192_v12, 0.0 }
 0x1f0   : > { %v4196_v10 = vpop.eup %4195  ;;  %v841_v24 = vadd.f32 %v840_v41, %v839_v38 }
 0x1f1   : > { %v4198_v28 = vpop.eup %4197  ;;  %837 = vadd.xlane.f32.xlu1 %v836_v46  ;;  %v859_v33 = vadd.f32 %v4196_v10, %v4194_v50 }
 0x1f2   : > { %v4200_v55 = vpop.eup %4199  ;;  %842 = vadd.xlane.f32.xlu0 %v841_v24  ;;  %v845_v30 = vsel %vm429_vm0, %v4198_v28, 0.0 }
 0x1f3   : > { %v4202_v32 = vpop.eup %4201  ;;  %v846_v61 = vadd.f32 %v845_v30, %v844_v18 }
 0x1f4   : > { %v4204_v59 = vpop.eup %4203  ;;  %v864_v6 = vadd.f32 %v4202_v32, %v4200_v55 }
 0x1f5   : > { %v4206_v47 = vpop.eup %4205  ;;  %847 = vadd.xlane.f32.xlu1 %v846_v61  ;;  %v850_v34 = vsel %vm429_vm0, %v4204_v59, 0.0 }
 0x1f6   : > { %v4208_v26 = vpop.eup %4207  ;;  %v851_v57 = vadd.f32 %v850_v34, %v849_v45  ;;  %v855_v58 = vsel %vm429_vm0, %v4206_v47, 0.0 }
 0x1f7   : > { %v4210_v4 = vpop.eup %4209  ;;  %v856_v19 = vadd.f32 %v855_v58, %v854_v21  ;;  %v860_v23 = vsel %vm429_vm0, %v4208_v26, 0.0 }
 0x1f8   : > { %852 = vadd.xlane.f32.xlu0 %v851_v57  ;;  %v861_v0 = vadd.f32 %v860_v23, %v859_v33  ;;  %v865_v8 = vsel %vm429_vm0, %v4210_v4, 0.0 }
 0x1f9   : > { %857 = vadd.xlane.f32.xlu1 %v856_v19  ;;  %v866_v29 = vadd.f32 %v865_v8, %v864_v6 }
 0x1fc   : > { %862 = vadd.xlane.f32.xlu0 %v861_v0 }
 0x1fd   : > { %867 = vadd.xlane.f32.xlu1 %v866_v29 }
 0x271   : > { %v833_v15 = vpop.xlane.xlu0 %832 }
 0x272   : > { %v869_v38 = vadd.f32 1e-20, %v833_v15 }
 0x274   : > { %4211 = vlog2.f32 %v869_v38 }
 0x27e   : > { %v4212_v62 = vpop.eup %4211  ;;  %v838_v12 = vpop.xlane.xlu1 %837 }
 0x27f   : > { %v878_v35 = vmul.f32 0.6931472, %v4212_v62  ;;  %v870_v50 = vadd.f32 1e-20, %v838_v12  ;;  %v843_v46 = vpop.xlane.xlu0 %842 }
 0x280   : > { %v871_v41 = vadd.f32 1e-20, %v843_v46 }
 0x281   : > { %v893_v18 = vsub.f32 %v5702_v1, %v878_v35  ;;  %4213 = vlog2.f32 %v870_v50 }
 0x282   : > { %4215 = vlog2.f32 %v871_v41  ;;  %v848_v10 = vpop.xlane.xlu1 %847 }
 0x283   : > { %v901_v24 = vmul.f32 2.8, %v893_v18  ;;  %v872_v28 = vadd.f32 1e-20, %v848_v10 }
 0x285   : > { %v909_v55 = vsub.f32 0.0, %v901_v24  ;;  %4217 = vlog2.f32 %v872_v28  ;;  %v853_v30 = vpop.xlane.xlu0 %852 }
 0x286   : > { %v873_v45 = vadd.f32 1e-20, %v853_v30  ;;  %v858_v32 = vpop.xlane.xlu1 %857 }
 0x287   : > { %v917_v61 = vmin.f32 %v5598_v40, %v909_v55  ;;  %v918_v21 = vmin.f32 %v5601_v42, %v909_v55  ;;  %v919_v59 = vmin.f32 %v5604_v43, %v909_v55  ;;  %v874_v33 = vadd.f32 1e-20, %v858_v32 }
 0x288   : > { %4219 = vlog2.f32 %v873_v45 }
 0x289   : > { %v941_v47 = vmul.f32 0.5102041, %v917_v61  ;;  %v942_v34 = vmul.f32 0.5102041, %v918_v21  ;;  %v943_v6 = vmul.f32 0.5102041, %v919_v59  ;;  %v863_v26 = vpop.xlane.xlu0 %862  ;;  %4221 = vlog2.f32 %v874_v33 }
 0x28a   : > { %v875_v57 = vadd.f32 1e-20, %v863_v26  ;;  %v868_v58 = vpop.xlane.xlu1 %867 }
 0x28b   : > { %v4214_v4 = vpop.eup %4213  ;;  %v965_v19 = vmul.f32 1.442695, %v941_v47  ;;  %v967_v23 = vmul.f32 1.442695, %v942_v34  ;;  %v969_v8 = vmul.f32 1.442695, %v943_v6 }
 0x28c   : > { %v4216_v0 = vpop.eup %4215  ;;  %v880_v29 = vmul.f32 0.6931472, %v4214_v4  ;;  %4223 = vlog2.f32 %v875_v57  ;;  %v876_v15 = vadd.f32 1e-20, %v868_v58 }
 0x28d   : > { %4225 = vpow2.f32 %v965_v19  ;;  %v882_v38 = vmul.f32 0.6931472, %v4216_v0 }
 0x28e   : > { %4227 = vpow2.f32 %v967_v23  ;;  %v894_v62 = vsub.f32 %v5705_v13, %v880_v29 }
 0x28f   : > { %v4218_v12 = vpop.eup %4217  ;;  %v895_v35 = vsub.f32 %v5708_v5, %v882_v38  ;;  %4229 = vlog2.f32 %v876_v15 }
 0x290   : > { %v902_v50 = vmul.f32 2.8, %v894_v62  ;;  %v884_v46 = vmul.f32 0.6931472, %v4218_v12  ;;  %4231 = vpow2.f32 %v969_v8 }
 0x291   : > { %v903_v41 = vmul.f32 2.8, %v895_v35 }
 0x292   : > { %v4220_v18 = vpop.eup %4219  ;;  %v910_v10 = vsub.f32 0.0, %v902_v50  ;;  %v896_v24 = vsub.f32 %v5714_v25, %v884_v46 }
 0x293   : > { %v911_v28 = vsub.f32 0.0, %v903_v41  ;;  %v886_v55 = vmul.f32 0.6931472, %v4220_v18  ;;  %v4222_v61 = vpop.eup %4221 }
 0x294   : > { %v920_v30 = vmin.f32 %v5607_v49, %v910_v10  ;;  %v921_v45 = vmin.f32 %v5611_v9, %v910_v10  ;;  %v922_v32 = vmin.f32 %v5614_v52, %v910_v10  ;;  %v904_v47 = vmul.f32 2.8, %v896_v24 }
 0x295   : > { %v923_v21 = vmin.f32 %v5618_v11, %v911_v28  ;;  %v924_v59 = vmin.f32 %v5622_v54, %v911_v28  ;;  %v925_v33 = vmin.f32 %v5626_v37, %v911_v28  ;;  %v897_v58 = vsub.f32 %v5720_v16, %v886_v55 }
 0x296   : > { %v4224_v34 = vpop.eup %4223  ;;  %v944_v6 = vmul.f32 0.5102041, %v920_v30  ;;  %v945_v26 = vmul.f32 0.5102041, %v921_v45  ;;  %v946_v57 = vmul.f32 0.5102041, %v922_v32 }
 0x297   : > { %v4226_v4 = vpop.eup %4225  ;;  %v947_v19 = vmul.f32 0.5102041, %v923_v21  ;;  %v948_v8 = vmul.f32 0.5102041, %v924_v59  ;;  %v949_v62 = vmul.f32 0.5102041, %v925_v33 }
 0x298   : > { %v4228_v23 = vpop.eup %4227  ;;  %v971_v0 = vmul.f32 1.442695, %v944_v6  ;;  %v973_v15 = vmul.f32 1.442695, %v945_v26  ;;  %v975_v38 = vmul.f32 1.442695, %v946_v57 }
 0x299   : > { %v4230_v29 = vpop.eup %4229  ;;  %v912_v35 = vsub.f32 0.0, %v904_v47  ;;  %v905_v50 = vmul.f32 2.8, %v897_v58  ;;  %v888_v46 = vmul.f32 0.6931472, %v4222_v61  ;;  %v1013_v55 = vadd.f32 %v4228_v23, %v4226_v4 }
 0x29a   : > { %v4232_v12 = vpop.eup %4231  ;;  %v977_v41 = vmul.f32 1.442695, %v947_v19  ;;  %v890_v18 = vmul.f32 0.6931472, %v4224_v34  ;;  %v892_v10 = vmul.f32 0.6931472, %v4230_v29  ;;  %4233 = vpow2.f32 %v971_v0 }
 0x29b   : > { %v926_v24 = vmin.f32 %v5629_v60, %v912_v35  ;;  %v927_v28 = vmin.f32 %v5632_v20, %v912_v35  ;;  %4235 = vpow2.f32 %v973_v15  ;;  %v913_v30 = vsub.f32 0.0, %v905_v50 }
 0x29c   : > { %v898_v45 = vsub.f32 %v5722_v17, %v888_v46  ;;  %v1014_v32 = vsel %vm429_vm0, %v4232_v12, 0.0  ;;  %v899_v33 = vsub.f32 %v5730_v36, %v890_v18  ;;  %v900_v61 = vsub.f32 %v5732_v31, %v892_v10 }
 0x29d   : > { %v950_v21 = vmul.f32 0.5102041, %v926_v24  ;;  %v951_v59 = vmul.f32 0.5102041, %v927_v28  ;;  %v979_v47 = vmul.f32 1.442695, %v948_v8  ;;  %v929_v34 = vmin.f32 %v5640_v2, %v913_v30 }
 0x29e   : > { %v930_v6 = vmin.f32 %v5644_v3, %v913_v30  ;;  %v906_v26 = vmul.f32 2.8, %v898_v45  ;;  %v928_v57 = vmin.f32 %v5636_v63, %v912_v35  ;;  %v931_v4 = vmin.f32 %v5648_v48, %v913_v30 }
 0x29f   : > { %v983_v58 = vmul.f32 1.442695, %v950_v21  ;;  %v1015_v19 = vadd.f32 %v1014_v32, %v1013_v55  ;;  %v985_v23 = vmul.f32 1.442695, %v951_v59  ;;  %v953_v0 = vmul.f32 0.5102041, %v929_v34 }
 0x2a0   : > { %v954_v29 = vmul.f32 0.5102041, %v930_v6  ;;  %4237 = vpow2.f32 %v975_v38  ;;  %v914_v15 = vsub.f32 0.0, %v906_v26  ;;  %v907_v12 = vmul.f32 2.8, %v899_v33 }
 0x2a1   : > { %4239 = vpow2.f32 %v977_v41  ;;  %v908_v50 = vmul.f32 2.8, %v900_v61  ;;  %1016 = vadd.xlane.f32.xlu0 %v1015_v19  ;;  %v981_v8 = vmul.f32 1.442695, %v949_v62  ;;  %v989_v46 = vmul.f32 1.442695, %v953_v0 }
 0x2a2   : > { %4241 = vpow2.f32 %v979_v47  ;;  %v952_v18 = vmul.f32 0.5102041, %v928_v57  ;;  %v932_v10 = vmin.f32 %v5651_v7, %v914_v15  ;;  %v933_v35 = vmin.f32 %v5655_v14, %v914_v15 }
 0x2a3   : > { %v915_v24 = vsub.f32 0.0, %v907_v12  ;;  %4243 = vpow2.f32 %v983_v58  ;;  %v955_v28 = vmul.f32 0.5102041, %v931_v4  ;;  %v991_v55 = vmul.f32 1.442695, %v954_v29 }
 0x2a4   : > { %v916_v30 = vsub.f32 0.0, %v908_v50  ;;  %v4234_v45 = vpop.eup %4233  ;;  %4245 = vpow2.f32 %v985_v23  ;;  %v934_v38 = vmin.f32 %v5662_v22, %v914_v15  ;;  %v956_v41 = vmul.f32 0.5102041, %v932_v10 }
 0x2a5   : > { %v957_v32 = vmul.f32 0.5102041, %v933_v35  ;;  %v4236_v21 = vpop.eup %4235  ;;  %4247 = vpow2.f32 %v989_v46  ;;  %v935_v62 = vmin.f32 %v5666_v27, %v915_v24  ;;  %v936_v59 = vmin.f32 %v5671_v39, %v915_v24 }
 0x2a6   : > { %v938_v33 = vmin.f32 %v5679_v51, %v916_v30  ;;  %v995_v61 = vmul.f32 1.442695, %v956_v41  ;;  %v937_v34 = vmin.f32 %v5675_v44, %v915_v24  ;;  %v939_v6 = vmin.f32 %v5683_v53, %v916_v30 }
 0x2a7   : > { %v997_v47 = vmul.f32 1.442695, %v957_v32  ;;  %4249 = vpow2.f32 %v991_v55  ;;  %v959_v26 = vmul.f32 0.5102041, %v935_v62  ;;  %v960_v57 = vmul.f32 0.5102041, %v936_v59 }
 0x2a8   : > { %v940_v58 = vmin.f32 %v5687_v56, %v916_v30  ;;  %4251 = vpow2.f32 %v995_v61  ;;  %v962_v4 = vmul.f32 0.5102041, %v938_v33  ;;  %v963_v19 = vmul.f32 0.5102041, %v939_v6 }
 0x2a9   : > { %v1018_v23 = vadd.f32 %v4236_v21, %v4234_v45  ;;  %v958_v29 = vmul.f32 0.5102041, %v934_v38  ;;  %4253 = vpow2.f32 %v997_v47  ;;  %v1001_v15 = vmul.f32 1.442695, %v959_v26 }
 0x2aa   : > { %v4238_v0 = vpop.eup %4237  ;;  %v1003_v12 = vmul.f32 1.442695, %v960_v57  ;;  %v961_v46 = vmul.f32 0.5102041, %v937_v34  ;;  %v1007_v10 = vmul.f32 1.442695, %v962_v4  ;;  %4255 = vpow2.f32 %v981_v8 }
 0x2ab   : > { %v4240_v50 = vpop.eup %4239  ;;  %v1009_v35 = vmul.f32 1.442695, %v963_v19  ;;  %v987_v55 = vmul.f32 1.442695, %v952_v18  ;;  %4257 = vpow2.f32 %v1001_v15  ;;  %v964_v41 = vmul.f32 0.5102041, %v940_v58 }
 0x2ac   : > { %v4242_v24 = vpop.eup %4241  ;;  %v1019_v30 = vsel %vm429_vm0, %v4238_v0, 0.0  ;;  %v993_v32 = vmul.f32 1.442695, %v955_v28  ;;  %4259 = vpow2.f32 %v1003_v12  ;;  %v999_v21 = vmul.f32 1.442695, %v958_v29 }
 0x2ad   : > { %v1020_v62 = vadd.f32 %v1019_v30, %v1018_v23  ;;  %v4244_v45 = vpop.eup %4243  ;;  %4261 = vpow2.f32 %v1007_v10  ;;  %v1005_v59 = vmul.f32 1.442695, %v961_v46  ;;  %v1011_v61 = vmul.f32 1.442695, %v964_v41 }
 0x2ae   : > { %v4246_v38 = vpop.eup %4245  ;;  %4263 = vpow2.f32 %v1009_v35  ;;  %v1023_v47 = vadd.f32 %v4242_v24, %v4240_v50 }
 0x2af   : > { %1021 = vadd.xlane.f32.xlu1 %v1020_v62  ;;  %v4248_v33 = vpop.eup %4247  ;;  %4265 = vpow2.f32 %v987_v55  ;;  %v1028_v19 = vadd.f32 %v4246_v38, %v4244_v45 }
 0x2b0   : > { %4267 = vpow2.f32 %v993_v32 }
 0x2b1   : > { %v4250_v8 = vpop.eup %4249  ;;  %4269 = vpow2.f32 %v999_v21 }
 0x2b2   : > { %v4252_v18 = vpop.eup %4251  ;;  %4271 = vpow2.f32 %v1005_v59  ;;  %v1033_v0 = vadd.f32 %v4250_v8, %v4248_v33 }
 0x2b3   : > { %v4254_v34 = vpop.eup %4253  ;;  %4273 = vpow2.f32 %v1011_v61 }
 0x2b4   : > { %v4256_v28 = vpop.eup %4255  ;;  %v1038_v15 = vadd.f32 %v4254_v34, %v4252_v18 }
 0x2b5   : > { %v4258_v6 = vpop.eup %4257  ;;  %v1024_v26 = vsel %vm429_vm0, %v4256_v28, 0.0 }
 0x2b6   : > { %v4260_v57 = vpop.eup %4259  ;;  %v1025_v58 = vadd.f32 %v1024_v26, %v1023_v47 }
 0x2b7   : > { %v4262_v4 = vpop.eup %4261  ;;  %v1043_v50 = vadd.f32 %v4260_v57, %v4258_v6 }
 0x2b8   : > { %v4264_v23 = vpop.eup %4263  ;;  %1026 = vadd.xlane.f32.xlu0 %v1025_v58 }
 0x2b9   : > { %v4266_v29 = vpop.eup %4265  ;;  %v1048_v21 = vadd.f32 %v4264_v23, %v4262_v4 }
 0x2ba   : > { %v4268_v12 = vpop.eup %4267  ;;  %v1029_v46 = vsel %vm429_vm0, %v4266_v29, 0.0 }
 0x2bb   : > { %v4270_v10 = vpop.eup %4269  ;;  %v1030_v35 = vadd.f32 %v1029_v46, %v1028_v19  ;;  %v1034_v24 = vsel %vm429_vm0, %v4268_v12, 0.0 }
 0x2bc   : > { %v4272_v55 = vpop.eup %4271  ;;  %v1035_v41 = vadd.f32 %v1034_v24, %v1033_v0  ;;  %v1039_v30 = vsel %vm429_vm0, %v4270_v10, 0.0 }
 0x2bd   : > { %v4274_v32 = vpop.eup %4273  ;;  %1031 = vadd.xlane.f32.xlu1 %v1030_v35  ;;  %v1040_v62 = vadd.f32 %v1039_v30, %v1038_v15  ;;  %v1044_v45 = vsel %vm429_vm0, %v4272_v55, 0.0 }
 0x2be   : > { %1036 = vadd.xlane.f32.xlu0 %v1035_v41  ;;  %v1045_v38 = vadd.f32 %v1044_v45, %v1043_v50  ;;  %v1049_v59 = vsel %vm429_vm0, %v4274_v32, 0.0 }
 0x2bf   : > { %v1050_v33 = vadd.f32 %v1049_v59, %v1048_v21 }
 0x2c1   : > { %1041 = vadd.xlane.f32.xlu1 %v1040_v62 }
 0x2c2   : > { %1046 = vadd.xlane.f32.xlu0 %v1045_v38 }
 0x2c5   : > { %1051 = vadd.xlane.f32.xlu1 %v1050_v33 }
 0x32e   : > { %v1017_v61 = vpop.xlane.xlu0 %1016 }
 0x32f   : > { %v1053_v8 = vadd.f32 1e-20, %v1017_v61 }
 0x331   : > { %4275 = vlog2.f32 %v1053_v8 }
 0x33b   : > { %v4276_v18 = vpop.eup %4275 }
 0x33c   : > { %v1062_v47 = vmul.f32 0.6931472, %v4276_v18  ;;  %v1022_v34 = vpop.xlane.xlu1 %1021 }
 0x33d   : > { %v1054_v28 = vadd.f32 1e-20, %v1022_v34 }
 0x33e   : > { %v1077_v6 = vsub.f32 %v5702_v1, %v1062_v47 }
 0x33f   : > { %4277 = vlog2.f32 %v1054_v28 }
 0x340   : > { %v1085_v26 = vmul.f32 1.96, %v1077_v6 }
 0x342   : > { %v1093_v57 = vsub.f32 0.0, %v1085_v26 }
 0x344   : > { %v1101_v58 = vmin.f32 %v5598_v40, %v1093_v57  ;;  %v1102_v4 = vmin.f32 %v5601_v42, %v1093_v57  ;;  %v1103_v19 = vmin.f32 %v5604_v43, %v1093_v57 }
 0x345   : > { %v1027_v15 = vpop.xlane.xlu0 %1026 }
 0x346   : > { %v1125_v23 = vmul.f32 0.728863, %v1101_v58  ;;  %v1126_v0 = vmul.f32 0.728863, %v1102_v4  ;;  %v1127_v29 = vmul.f32 0.728863, %v1103_v19 }
 0x347   : > { %v1055_v12 = vadd.f32 1e-20, %v1027_v15 }
 0x348   : > { %v1149_v46 = vmul.f32 1.442695, %v1125_v23  ;;  %v1151_v50 = vmul.f32 1.442695, %v1126_v0  ;;  %v1153_v10 = vmul.f32 1.442695, %v1127_v29 }
 0x349   : > { %v4278_v35 = vpop.eup %4277  ;;  %4279 = vlog2.f32 %v1055_v12 }
 0x34a   : > { %4281 = vpow2.f32 %v1149_v46  ;;  %v1064_v24 = vmul.f32 0.6931472, %v4278_v35  ;;  %v1032_v55 = vpop.xlane.xlu1 %1031 }
 0x34b   : > { %4283 = vpow2.f32 %v1151_v50  ;;  %v1056_v30 = vadd.f32 1e-20, %v1032_v55  ;;  %v1037_v32 = vpop.xlane.xlu0 %1036 }
 0x34c   : > { %v1078_v41 = vsub.f32 %v5705_v13, %v1064_v24  ;;  %4285 = vpow2.f32 %v1153_v10  ;;  %v1057_v62 = vadd.f32 1e-20, %v1037_v32 }
 0x34d   : > { %4287 = vlog2.f32 %v1056_v30 }
 0x34e   : > { %v1086_v45 = vmul.f32 1.96, %v1078_v41  ;;  %4289 = vlog2.f32 %v1057_v62  ;;  %v1042_v21 = vpop.xlane.xlu1 %1041 }
 0x34f   : > { %v1058_v59 = vadd.f32 1e-20, %v1042_v21  ;;  %v1047_v33 = vpop.xlane.xlu0 %1046 }
 0x350   : > { %v1094_v38 = vsub.f32 0.0, %v1086_v45  ;;  %v1059_v61 = vadd.f32 1e-20, %v1047_v33 }
 0x351   : > { %4291 = vlog2.f32 %v1058_v59 }
 0x352   : > { %v1104_v8 = vmin.f32 %v5607_v49, %v1094_v38  ;;  %v1105_v18 = vmin.f32 %v5611_v9, %v1094_v38  ;;  %v1106_v47 = vmin.f32 %v5614_v52, %v1094_v38  ;;  %4293 = vlog2.f32 %v1059_v61  ;;  %v1052_v58 = vpop.xlane.xlu1 %1051 }
 0x353   : > { %v4280_v34 = vpop.eup %4279  ;;  %v1060_v46 = vadd.f32 1e-20, %v1052_v58 }
 0x354   : > { %v4282_v28 = vpop.eup %4281  ;;  %v1128_v6 = vmul.f32 0.728863, %v1104_v8  ;;  %v1129_v26 = vmul.f32 0.728863, %v1105_v18  ;;  %v1130_v57 = vmul.f32 0.728863, %v1106_v47 }
 0x355   : > { %v4284_v4 = vpop.eup %4283  ;;  %v1066_v19 = vmul.f32 0.6931472, %v4280_v34 }
 0x356   : > { %v4286_v23 = vpop.eup %4285  ;;  %v1155_v0 = vmul.f32 1.442695, %v1128_v6  ;;  %v1157_v29 = vmul.f32 1.442695, %v1129_v26  ;;  %v1197_v15 = vadd.f32 %v4284_v4, %v4282_v28  ;;  %v1159_v35 = vmul.f32 1.442695, %v1130_v57 }
 0x357   : > { %v1079_v12 = vsub.f32 %v5708_v5, %v1066_v19  ;;  %v1198_v50 = vsel %vm429_vm0, %v4286_v23, 0.0  ;;  %v4288_v10 = vpop.eup %4287 }
 0x358   : > { %v1199_v24 = vadd.f32 %v1198_v50, %v1197_v15  ;;  %v4290_v55 = vpop.eup %4289  ;;  %4295 = vpow2.f32 %v1155_v0  ;;  %v1068_v30 = vmul.f32 0.6931472, %v4288_v10 }
 0x359   : > { %v1087_v41 = vmul.f32 1.96, %v1079_v12  ;;  %4297 = vpow2.f32 %v1157_v29  ;;  %v1070_v32 = vmul.f32 0.6931472, %v4290_v55 }
 0x35a   : > { %1200 = vadd.xlane.f32.xlu0 %v1199_v24  ;;  %v1080_v45 = vsub.f32 %v5714_v25, %v1068_v30  ;;  %4299 = vlog2.f32 %v1060_v46 }
 0x35b   : > { %v1095_v62 = vsub.f32 0.0, %v1087_v41  ;;  %v4292_v21 = vpop.eup %4291  ;;  %v1081_v38 = vsub.f32 %v5720_v16, %v1070_v32  ;;  %4301 = vpow2.f32 %v1159_v35 }
 0x35c   : > { %v4294_v59 = vpop.eup %4293  ;;  %v1088_v18 = vmul.f32 1.96, %v1080_v45  ;;  %v1072_v34 = vmul.f32 0.6931472, %v4292_v21 }
 0x35d   : > { %v1107_v33 = vmin.f32 %v5618_v11, %v1095_v62  ;;  %v1108_v61 = vmin.f32 %v5622_v54, %v1095_v62  ;;  %v1109_v8 = vmin.f32 %v5626_v37, %v1095_v62  ;;  %v1089_v47 = vmul.f32 1.96, %v1081_v38 }
 0x35e   : > { %v1074_v28 = vmul.f32 0.6931472, %v4294_v59  ;;  %v1096_v58 = vsub.f32 0.0, %v1088_v18  ;;  %v1082_v19 = vsub.f32 %v5722_v17, %v1072_v34 }
 0x35f   : > { %v1131_v6 = vmul.f32 0.728863, %v1107_v33  ;;  %v1132_v26 = vmul.f32 0.728863, %v1108_v61  ;;  %v1133_v57 = vmul.f32 0.728863, %v1109_v8 }
 0x360   : > { %v1097_v4 = vsub.f32 0.0, %v1089_v47  ;;  %v1083_v15 = vsub.f32 %v5730_v36, %v1074_v28  ;;  %v1110_v12 = vmin.f32 %v5629_v60, %v1096_v58  ;;  %v1111_v46 = vmin.f32 %v5632_v20, %v1096_v58 }
 0x361   : > { %v1161_v23 = vmul.f32 1.442695, %v1131_v6  ;;  %v1163_v0 = vmul.f32 1.442695, %v1132_v26  ;;  %v1165_v29 = vmul.f32 1.442695, %v1133_v57  ;;  %v1112_v50 = vmin.f32 %v5636_v63, %v1096_v58 }
 0x362   : > { %v1113_v10 = vmin.f32 %v5640_v2, %v1097_v4  ;;  %v4296_v35 = vpop.eup %4295  ;;  %v1114_v24 = vmin.f32 %v5644_v3, %v1097_v4  ;;  %v1115_v55 = vmin.f32 %v5648_v48, %v1097_v4  ;;  %v1090_v41 = vmul.f32 1.96, %v1082_v19 }
 0x363   : > { %4303 = vpow2.f32 %v1161_v23  ;;  %v4298_v30 = vpop.eup %4297  ;;  %v1134_v32 = vmul.f32 0.728863, %v1110_v12  ;;  %v1135_v62 = vmul.f32 0.728863, %v1111_v46  ;;  %v1136_v45 = vmul.f32 0.728863, %v1112_v50 }
 0x364   : > { %4305 = vpow2.f32 %v1163_v0  ;;  %v4300_v21 = vpop.eup %4299  ;;  %v1137_v38 = vmul.f32 0.728863, %v1113_v10  ;;  %v1138_v59 = vmul.f32 0.728863, %v1114_v24  ;;  %v1139_v33 = vmul.f32 0.728863, %v1115_v55 }
 0x365   : > { %v4302_v61 = vpop.eup %4301  ;;  %v1167_v8 = vmul.f32 1.442695, %v1134_v32  ;;  %v1169_v18 = vmul.f32 1.442695, %v1135_v62  ;;  %4307 = vpow2.f32 %v1165_v29  ;;  %v1171_v47 = vmul.f32 1.442695, %v1136_v45 }
 0x366   : > { %v1173_v34 = vmul.f32 1.442695, %v1137_v38  ;;  %v1175_v28 = vmul.f32 1.442695, %v1138_v59  ;;  %v1202_v6 = vadd.f32 %v4298_v30, %v4296_v35  ;;  %v1098_v26 = vsub.f32 0.0, %v1090_v41 }
 0x367   : > { %4309 = vpow2.f32 %v1167_v8  ;;  %v1091_v57 = vmul.f32 1.96, %v1083_v15  ;;  %v1076_v58 = vmul.f32 0.6931472, %v4300_v21  ;;  %v1177_v4 = vmul.f32 1.442695, %v1139_v33 }
 0x368   : > { %4311 = vpow2.f32 %v1169_v18  ;;  %v1203_v19 = vsel %vm429_vm0, %v4302_v61, 0.0  ;;  %v1116_v23 = vmin.f32 %v5651_v7, %v1098_v26  ;;  %v1117_v0 = vmin.f32 %v5655_v14, %v1098_v26 }
 0x369   : > { %4313 = vpow2.f32 %v1173_v34  ;;  %v1118_v12 = vmin.f32 %v5662_v22, %v1098_v26  ;;  %v1099_v29 = vsub.f32 0.0, %v1091_v57  ;;  %v1084_v46 = vsub.f32 %v5732_v31, %v1076_v58 }
 0x36a   : > { %4315 = vpow2.f32 %v1175_v28  ;;  %v1204_v50 = vadd.f32 %v1203_v19, %v1202_v6  ;;  %v1140_v10 = vmul.f32 0.728863, %v1116_v23  ;;  %v1141_v35 = vmul.f32 0.728863, %v1117_v0 }
 0x36b   : > { %v1142_v15 = vmul.f32 0.728863, %v1118_v12  ;;  %4317 = vpow2.f32 %v1171_v47  ;;  %v1119_v55 = vmin.f32 %v5666_v27, %v1099_v29  ;;  %v1120_v41 = vmin.f32 %v5671_v39, %v1099_v29 }
 0x36c   : > { %v1121_v30 = vmin.f32 %v5675_v44, %v1099_v29  ;;  %v1092_v32 = vmul.f32 1.96, %v1084_v46  ;;  %1205 = vadd.xlane.f32.xlu1 %v1204_v50  ;;  %v1179_v45 = vmul.f32 1.442695, %v1140_v10  ;;  %v1181_v21 = vmul.f32 1.442695, %v1141_v35 }
 0x36d   : > { %v4304_v24 = vpop.eup %4303  ;;  %4319 = vpow2.f32 %v1177_v4  ;;  %v1143_v38 = vmul.f32 0.728863, %v1119_v55  ;;  %v1144_v59 = vmul.f32 0.728863, %v1120_v41  ;;  %v1183_v47 = vmul.f32 1.442695, %v1142_v15 }
 0x36e   : > { %v4306_v62 = vpop.eup %4305  ;;  %v1145_v33 = vmul.f32 0.728863, %v1121_v30  ;;  %4321 = vpow2.f32 %v1179_v45  ;;  %v1100_v18 = vsub.f32 0.0, %v1092_v32 }
 0x36f   : > { %v1207_v61 = vadd.f32 %v4306_v62, %v4304_v24  ;;  %v4308_v8 = vpop.eup %4307  ;;  %4323 = vpow2.f32 %v1181_v21  ;;  %v1185_v34 = vmul.f32 1.442695, %v1143_v38  ;;  %v1187_v28 = vmul.f32 1.442695, %v1144_v59 }
 0x370   : > { %v1122_v26 = vmin.f32 %v5679_v51, %v1100_v18  ;;  %v1123_v57 = vmin.f32 %v5683_v53, %v1100_v18  ;;  %v1124_v58 = vmin.f32 %v5687_v56, %v1100_v18  ;;  %v1208_v4 = vsel %vm429_vm0, %v4308_v8, 0.0 }
 0x371   : > { %v4310_v6 = vpop.eup %4309  ;;  %4325 = vpow2.f32 %v1185_v34  ;;  %v1189_v23 = vmul.f32 1.442695, %v1145_v33  ;;  %v1209_v0 = vadd.f32 %v1208_v4, %v1207_v61 }
 0x372   : > { %v4312_v19 = vpop.eup %4311  ;;  %4327 = vpow2.f32 %v1187_v28  ;;  %v1146_v29 = vmul.f32 0.728863, %v1122_v26  ;;  %v1147_v46 = vmul.f32 0.728863, %v1123_v57  ;;  %v1148_v50 = vmul.f32 0.728863, %v1124_v58 }
 0x373   : > { %v4314_v12 = vpop.eup %4313  ;;  %1210 = vadd.xlane.f32.xlu0 %v1209_v0  ;;  %v1212_v35 = vadd.f32 %v4312_v19, %v4310_v6  ;;  %4329 = vpow2.f32 %v1183_v47 }
 0x374   : > { %v4316_v10 = vpop.eup %4315  ;;  %v1191_v24 = vmul.f32 1.442695, %v1146_v29  ;;  %v1193_v55 = vmul.f32 1.442695, %v1147_v46  ;;  %v1195_v41 = vmul.f32 1.442695, %v1148_v50  ;;  %4331 = vpow2.f32 %v1189_v23 }
 0x375   : > { %v4318_v15 = vpop.eup %4317  ;;  %v1217_v30 = vadd.f32 %v4316_v10, %v4314_v12 }
 0x376   : > { %v1213_v32 = vsel %vm429_vm0, %v4318_v15, 0.0  ;;  %4333 = vpow2.f32 %v1191_v24 }
 0x377   : > { %v4320_v62 = vpop.eup %4319  ;;  %v1214_v45 = vadd.f32 %v1213_v32, %v1212_v35  ;;  %4335 = vpow2.f32 %v1193_v55 }
 0x378   : > { %v1218_v21 = vsel %vm429_vm0, %v4320_v62, 0.0  ;;  %v4322_v38 = vpop.eup %4321  ;;  %4337 = vpow2.f32 %v1195_v41 }
 0x379   : > { %1215 = vadd.xlane.f32.xlu1 %v1214_v45  ;;  %v1219_v59 = vadd.f32 %v1218_v21, %v1217_v30  ;;  %v4324_v33 = vpop.eup %4323 }
 0x37a   : > { %v1222_v8 = vadd.f32 %v4324_v33, %v4322_v38 }
 0x37b   : > { %1220 = vadd.xlane.f32.xlu0 %v1219_v59  ;;  %v4326_v61 = vpop.eup %4325 }
 0x37c   : > { %v4328_v18 = vpop.eup %4327 }
 0x37d   : > { %v4330_v47 = vpop.eup %4329  ;;  %v1227_v34 = vadd.f32 %v4328_v18, %v4326_v61 }
 0x37e   : > { %v1223_v28 = vsel %vm429_vm0, %v4330_v47, 0.0  ;;  %v4332_v6 = vpop.eup %4331 }
 0x37f   : > { %v1224_v26 = vadd.f32 %v1223_v28, %v1222_v8  ;;  %v1228_v58 = vsel %vm429_vm0, %v4332_v6, 0.0 }
 0x380   : > { %v4334_v57 = vpop.eup %4333  ;;  %v1229_v19 = vadd.f32 %v1228_v58, %v1227_v34 }
 0x381   : > { %v4336_v4 = vpop.eup %4335  ;;  %1225 = vadd.xlane.f32.xlu1 %v1224_v26 }
 0x382   : > { %v4338_v23 = vpop.eup %4337  ;;  %v1232_v0 = vadd.f32 %v4336_v4, %v4334_v57  ;;  %1230 = vadd.xlane.f32.xlu0 %v1229_v19 }
 0x383   : > { %v1233_v12 = vsel %vm429_vm0, %v4338_v23, 0.0 }
 0x384   : > { %v1234_v29 = vadd.f32 %v1233_v12, %v1232_v0 }
 0x386   : > { %1235 = vadd.xlane.f32.xlu1 %v1234_v29 }
 0x3e7   : > { %v1201_v46 = vpop.xlane.xlu0 %1200 }
 0x3e8   : > { %v1237_v50 = vadd.f32 1e-20, %v1201_v46 }
 0x3ea   : > { %4339 = vlog2.f32 %v1237_v50 }
 0x3f4   : > { %v4340_v10 = vpop.eup %4339 }
 0x3f5   : > { %v1246_v35 = vmul.f32 0.6931472, %v4340_v10 }
 0x3f7   : > { %v1261_v15 = vsub.f32 %v5702_v1, %v1246_v35 }
 0x3f9   : > { %v1269_v24 = vmul.f32 1.372, %v1261_v15  ;;  %v1206_v55 = vpop.xlane.xlu1 %1205 }
 0x3fa   : > { %v1238_v30 = vadd.f32 1e-20, %v1206_v55 }
 0x3fb   : > { %v1277_v41 = vsub.f32 0.0, %v1269_v24 }
 0x3fc   : > { %4341 = vlog2.f32 %v1238_v30 }
 0x3fd   : > { %v1285_v32 = vmin.f32 %v5598_v40, %v1277_v41  ;;  %v1286_v62 = vmin.f32 %v5601_v42, %v1277_v41  ;;  %v1287_v45 = vmin.f32 %v5604_v43, %v1277_v41 }
 0x3ff   : > { %v1309_v21 = vmul.f32 1.0412328, %v1285_v32  ;;  %v1310_v38 = vmul.f32 1.0412328, %v1286_v62  ;;  %v1311_v59 = vmul.f32 1.0412328, %v1287_v45 }
 0x400   : > { %v1211_v18 = vpop.xlane.xlu0 %1210 }
 0x401   : > { %v1333_v33 = vmul.f32 1.442695, %v1309_v21  ;;  %v1335_v61 = vmul.f32 1.442695, %v1310_v38  ;;  %v1337_v8 = vmul.f32 1.442695, %v1311_v59 }
 0x402   : > { %v1239_v47 = vadd.f32 1e-20, %v1211_v18 }
 0x403   : > { %4343 = vpow2.f32 %v1333_v33 }
 0x404   : > { %4345 = vpow2.f32 %v1335_v61 }
 0x405   : > { %4347 = vlog2.f32 %v1239_v47 }
 0x406   : > { %4349 = vpow2.f32 %v1337_v8  ;;  %v4342_v34 = vpop.eup %4341  ;;  %v1216_v28 = vpop.xlane.xlu1 %1215 }
 0x407   : > { %v1248_v6 = vmul.f32 0.6931472, %v4342_v34  ;;  %v1240_v26 = vadd.f32 1e-20, %v1216_v28 }
 0x408   : > { %v1221_v57 = vpop.xlane.xlu0 %1220 }
 0x409   : > { %v1262_v58 = vsub.f32 %v5705_v13, %v1248_v6  ;;  %4351 = vlog2.f32 %v1240_v26  ;;  %v1241_v4 = vadd.f32 1e-20, %v1221_v57 }
 0x40b   : > { %v1270_v19 = vmul.f32 1.372, %v1262_v58  ;;  %4353 = vlog2.f32 %v1241_v4 }
 0x40d   : > { %v4344_v23 = vpop.eup %4343  ;;  %v1278_v12 = vsub.f32 0.0, %v1270_v19 }
 0x40e   : > { %v4346_v0 = vpop.eup %4345  ;;  %v1226_v55 = vpop.xlane.xlu1 %1225 }
 0x40f   : > { %v4348_v29 = vpop.eup %4347  ;;  %v1381_v46 = vadd.f32 %v4346_v0, %v4344_v23  ;;  %v1288_v10 = vmin.f32 %v5607_v49, %v1278_v12  ;;  %v1289_v35 = vmin.f32 %v5611_v9, %v1278_v12  ;;  %v1290_v15 = vmin.f32 %v5614_v52, %v1278_v12  ;;  %v1231_v38 = vpop.xlane.xlu0 %1230 }
 0x410   : > { %v4350_v50 = vpop.eup %4349  ;;  %v1250_v24 = vmul.f32 0.6931472, %v4348_v29  ;;  %v1242_v41 = vadd.f32 1e-20, %v1226_v55  ;;  %v1243_v59 = vadd.f32 1e-20, %v1231_v38 }
 0x411   : > { %v1382_v30 = vsel %vm429_vm0, %v4350_v50, 0.0  ;;  %v1312_v32 = vmul.f32 1.0412328, %v1288_v10  ;;  %v1313_v62 = vmul.f32 1.0412328, %v1289_v35 }
 0x412   : > { %v1314_v45 = vmul.f32 1.0412328, %v1290_v15  ;;  %v1263_v21 = vsub.f32 %v5708_v5, %v1250_v24  ;;  %4355 = vlog2.f32 %v1242_v41  ;;  %v1383_v33 = vadd.f32 %v1382_v30, %v1381_v46 }
 0x413   : > { %v4352_v61 = vpop.eup %4351  ;;  %v1339_v8 = vmul.f32 1.442695, %v1312_v32  ;;  %v1341_v18 = vmul.f32 1.442695, %v1313_v62  ;;  %4357 = vlog2.f32 %v1243_v59  ;;  %v1236_v28 = vpop.xlane.xlu1 %1235 }
 0x414   : > { %v1271_v47 = vmul.f32 1.372, %v1263_v21  ;;  %v1252_v34 = vmul.f32 0.6931472, %v4352_v61  ;;  %1384 = vadd.xlane.f32.xlu0 %v1383_v33  ;;  %v1343_v26 = vmul.f32 1.442695, %v1314_v45 }
 0x415   : > { %v4354_v6 = vpop.eup %4353  ;;  %4359 = vpow2.f32 %v1339_v8  ;;  %v1244_v57 = vadd.f32 1e-20, %v1236_v28 }
 0x416   : > { %4361 = vpow2.f32 %v1341_v18  ;;  %v1279_v58 = vsub.f32 0.0, %v1271_v47  ;;  %v1264_v4 = vsub.f32 %v5714_v25, %v1252_v34  ;;  %v1254_v19 = vmul.f32 0.6931472, %v4354_v6 }
 0x417   : > { %4363 = vlog2.f32 %v1244_v57 }
 0x418   : > { %v1291_v23 = vmin.f32 %v5618_v11, %v1279_v58  ;;  %v1292_v0 = vmin.f32 %v5622_v54, %v1279_v58  ;;  %v1293_v12 = vmin.f32 %v5626_v37, %v1279_v58  ;;  %v1272_v29 = vmul.f32 1.372, %v1264_v4 }
 0x419   : > { %v1265_v46 = vsub.f32 %v5720_v16, %v1254_v19  ;;  %4365 = vpow2.f32 %v1343_v26 }
 0x41a   : > { %v1315_v50 = vmul.f32 1.0412328, %v1291_v23  ;;  %v1316_v10 = vmul.f32 1.0412328, %v1292_v0  ;;  %v1317_v35 = vmul.f32 1.0412328, %v1293_v12 }
 0x41b   : > { %v1280_v15 = vsub.f32 0.0, %v1272_v29  ;;  %v1273_v24 = vmul.f32 1.372, %v1265_v46 }
 0x41c   : > { %v4356_v55 = vpop.eup %4355  ;;  %v1345_v41 = vmul.f32 1.442695, %v1315_v50  ;;  %v1347_v30 = vmul.f32 1.442695, %v1316_v10  ;;  %v1349_v59 = vmul.f32 1.442695, %v1317_v35 }
 0x41d   : > { %v1294_v32 = vmin.f32 %v5629_v60, %v1280_v15  ;;  %v1295_v62 = vmin.f32 %v5632_v20, %v1280_v15  ;;  %v1296_v45 = vmin.f32 %v5636_v63, %v1280_v15  ;;  %v1281_v21 = vsub.f32 0.0, %v1273_v24  ;;  %v4358_v38 = vpop.eup %4357 }
 0x41e   : > { %4367 = vpow2.f32 %v1345_v41  ;;  %v1256_v33 = vmul.f32 0.6931472, %v4356_v55  ;;  %v1258_v35 = vmul.f32 0.6931472, %v4358_v38 }
 0x41f   : > { %v4360_v61 = vpop.eup %4359  ;;  %4369 = vpow2.f32 %v1347_v30  ;;  %v1318_v8 = vmul.f32 1.0412328, %v1294_v32  ;;  %v1319_v18 = vmul.f32 1.0412328, %v1295_v62  ;;  %v1320_v47 = vmul.f32 1.0412328, %v1296_v45 }
 0x420   : > { %v4362_v34 = vpop.eup %4361  ;;  %v1297_v28 = vmin.f32 %v5640_v2, %v1281_v21  ;;  %v1298_v6 = vmin.f32 %v5644_v3, %v1281_v21  ;;  %v1299_v26 = vmin.f32 %v5648_v48, %v1281_v21  ;;  %v1266_v57 = vsub.f32 %v5722_v17, %v1256_v33 }
 0x421   : > { %v4364_v58 = vpop.eup %4363  ;;  %v1351_v4 = vmul.f32 1.442695, %v1318_v8  ;;  %v1353_v19 = vmul.f32 1.442695, %v1319_v18  ;;  %v1355_v23 = vmul.f32 1.442695, %v1320_v47  ;;  %v1386_v0 = vadd.f32 %v4362_v34, %v4360_v61 }
 0x422   : > { %v1321_v12 = vmul.f32 1.0412328, %v1297_v28  ;;  %v1322_v29 = vmul.f32 1.0412328, %v1298_v6  ;;  %v1323_v46 = vmul.f32 1.0412328, %v1299_v26  ;;  %4371 = vpow2.f32 %v1349_v59 }
 0x423   : > { %v4366_v50 = vpop.eup %4365  ;;  %4373 = vpow2.f32 %v1351_v4  ;;  %v1274_v10 = vmul.f32 1.372, %v1266_v57  ;;  %v1260_v15 = vmul.f32 0.6931472, %v4364_v58  ;;  %v1267_v32 = vsub.f32 %v5730_v36, %v1258_v35 }
 0x424   : > { %4375 = vpow2.f32 %v1353_v19  ;;  %v1357_v24 = vmul.f32 1.442695, %v1321_v12  ;;  %v1359_v55 = vmul.f32 1.442695, %v1322_v29  ;;  %v1361_v41 = vmul.f32 1.442695, %v1323_v46 }
 0x425   : > { %v1282_v30 = vsub.f32 0.0, %v1274_v10  ;;  %v1268_v62 = vsub.f32 %v5732_v31, %v1260_v15  ;;  %v1387_v45 = vsel %vm429_vm0, %v4366_v50, 0.0  ;;  %v1275_v8 = vmul.f32 1.372, %v1267_v32 }
 0x426   : > { %4377 = vpow2.f32 %v1357_v24  ;;  %v1388_v21 = vadd.f32 %v1387_v45, %v1386_v0 }
 0x427   : > { %4379 = vpow2.f32 %v1359_v55  ;;  %v1300_v59 = vmin.f32 %v5651_v7, %v1282_v30  ;;  %v1301_v33 = vmin.f32 %v5655_v14, %v1282_v30  ;;  %v1302_v38 = vmin.f32 %v5662_v22, %v1282_v30 }
 0x428   : > { %v4368_v61 = vpop.eup %4367  ;;  %v1276_v18 = vmul.f32 1.372, %v1268_v62  ;;  %1389 = vadd.xlane.f32.xlu1 %v1388_v21  ;;  %4381 = vpow2.f32 %v1355_v23  ;;  %v1283_v26 = vsub.f32 0.0, %v1275_v8 }
 0x429   : > { %v4370_v47 = vpop.eup %4369  ;;  %v1324_v34 = vmul.f32 1.0412328, %v1300_v59  ;;  %v1325_v28 = vmul.f32 1.0412328, %v1301_v33  ;;  %v1326_v6 = vmul.f32 1.0412328, %v1302_v38  ;;  %4383 = vpow2.f32 %v1361_v41 }
 0x42a   : > { %v1284_v57 = vsub.f32 0.0, %v1276_v18  ;;  %v1391_v0 = vadd.f32 %v4370_v47, %v4368_v61  ;;  %v1303_v29 = vmin.f32 %v5666_v27, %v1283_v26  ;;  %v1304_v46 = vmin.f32 %v5671_v39, %v1283_v26 }
 0x42b   : > { %v1363_v58 = vmul.f32 1.442695, %v1324_v34  ;;  %v1365_v4 = vmul.f32 1.442695, %v1325_v28  ;;  %v1367_v19 = vmul.f32 1.442695, %v1326_v6  ;;  %v1305_v50 = vmin.f32 %v5675_v44, %v1283_v26 }
 0x42c   : > { %v4372_v12 = vpop.eup %4371  ;;  %v1306_v23 = vmin.f32 %v5679_v51, %v1284_v57  ;;  %v1307_v35 = vmin.f32 %v5683_v53, %v1284_v57  ;;  %v1308_v15 = vmin.f32 %v5687_v56, %v1284_v57  ;;  %v1327_v41 = vmul.f32 1.0412328, %v1303_v29 }
 0x42d   : > { %v4374_v10 = vpop.eup %4373  ;;  %4385 = vpow2.f32 %v1363_v58  ;;  %v1392_v24 = vsel %vm429_vm0, %v4372_v12, 0.0  ;;  %v1328_v30 = vmul.f32 1.0412328, %v1304_v46  ;;  %v1329_v32 = vmul.f32 1.0412328, %v1305_v50 }
 0x42e   : > { %v4376_v55 = vpop.eup %4375  ;;  %4387 = vpow2.f32 %v1365_v4  ;;  %v1330_v62 = vmul.f32 1.0412328, %v1306_v23  ;;  %v1331_v45 = vmul.f32 1.0412328, %v1307_v35  ;;  %v1332_v21 = vmul.f32 1.0412328, %v1308_v15 }
 0x42f   : > { %v1393_v59 = vadd.f32 %v1392_v24, %v1391_v0  ;;  %v1369_v38 = vmul.f32 1.442695, %v1327_v41  ;;  %v1371_v61 = vmul.f32 1.442695, %v1328_v30  ;;  %v1396_v8 = vadd.f32 %v4376_v55, %v4374_v10 }
 0x430   : > { %v4378_v33 = vpop.eup %4377  ;;  %v1375_v47 = vmul.f32 1.442695, %v1330_v62  ;;  %v1377_v34 = vmul.f32 1.442695, %v1331_v45  ;;  %4389 = vpow2.f32 %v1367_v19  ;;  %v1373_v6 = vmul.f32 1.442695, %v1329_v32 }
 0x431   : > { %v4380_v18 = vpop.eup %4379  ;;  %1394 = vadd.xlane.f32.xlu0 %v1393_v59  ;;  %4391 = vpow2.f32 %v1369_v38  ;;  %v1379_v58 = vmul.f32 1.442695, %v1332_v21 }
 0x432   : > { %v4382_v28 = vpop.eup %4381  ;;  %v1401_v26 = vadd.f32 %v4380_v18, %v4378_v33  ;;  %4393 = vpow2.f32 %v1371_v61 }
 0x433   : > { %v4384_v57 = vpop.eup %4383  ;;  %v1397_v4 = vsel %vm429_vm0, %v4382_v28, 0.0  ;;  %4395 = vpow2.f32 %v1375_v47 }
 0x434   : > { %v1398_v0 = vadd.f32 %v1397_v4, %v1396_v8  ;;  %v1402_v12 = vsel %vm429_vm0, %v4384_v57, 0.0  ;;  %4397 = vpow2.f32 %v1377_v34 }
 0x435   : > { %v1403_v29 = vadd.f32 %v1402_v12, %v1401_v26  ;;  %4399 = vpow2.f32 %v1373_v6 }
 0x436   : > { %1399 = vadd.xlane.f32.xlu1 %v1398_v0  ;;  %4401 = vpow2.f32 %v1379_v58 }
 0x437   : > { %v4386_v46 = vpop.eup %4385  ;;  %1404 = vadd.xlane.f32.xlu0 %v1403_v29 }
 0x438   : > { %v4388_v19 = vpop.eup %4387 }
 0x439   : > { %v1406_v50 = vadd.f32 %v4388_v19, %v4386_v46 }
 0x43a   : > { %v4390_v23 = vpop.eup %4389 }
 0x43b   : > { %v4392_v10 = vpop.eup %4391  ;;  %v1407_v35 = vsel %vm429_vm0, %v4390_v23, 0.0 }
 0x43c   : > { %v4394_v15 = vpop.eup %4393  ;;  %v1408_v24 = vadd.f32 %v1407_v35, %v1406_v50 }
 0x43d   : > { %v4396_v55 = vpop.eup %4395  ;;  %v1411_v41 = vadd.f32 %v4394_v15, %v4392_v10 }
 0x43e   : > { %v4398_v30 = vpop.eup %4397  ;;  %1409 = vadd.xlane.f32.xlu1 %v1408_v24 }
 0x43f   : > { %v4400_v32 = vpop.eup %4399  ;;  %v1416_v62 = vadd.f32 %v4398_v30, %v4396_v55 }
 0x440   : > { %v4402_v45 = vpop.eup %4401  ;;  %v1412_v21 = vsel %vm429_vm0, %v4400_v32, 0.0 }
 0x441   : > { %v1413_v59 = vadd.f32 %v1412_v21, %v1411_v41  ;;  %v1417_v33 = vsel %vm429_vm0, %v4402_v45, 0.0 }
 0x442   : > { %v1418_v38 = vadd.f32 %v1417_v33, %v1416_v62 }
 0x443   : > { %1414 = vadd.xlane.f32.xlu0 %v1413_v59 }
 0x444   : > { %1419 = vadd.xlane.f32.xlu1 %v1418_v38 }
 0x4a1   : > { %v1385_v61 = vpop.xlane.xlu0 %1384 }
 0x4a2   : > { %v1421_v8 = vadd.f32 1e-20, %v1385_v61 }
 0x4a4   : > { %4403 = vlog2.f32 %v1421_v8 }
 0x4ae   : > { %v4404_v18 = vpop.eup %4403 }
 0x4af   : > { %v1430_v47 = vmul.f32 0.6931472, %v4404_v18 }
 0x4b1   : > { %v1445_v34 = vsub.f32 %v5702_v1, %v1430_v47 }
 0x4b3   : > { %v1453_v28 = vmul.f32 0.9604, %v1445_v34 }
 0x4b5   : > { %v1461_v6 = vsub.f32 0.0, %v1453_v28  ;;  %v1390_v26 = vpop.xlane.xlu1 %1389 }
 0x4b6   : > { %v1422_v57 = vadd.f32 1e-20, %v1390_v26 }
 0x4b7   : > { %v1469_v58 = vmin.f32 %v5598_v40, %v1461_v6  ;;  %v1470_v4 = vmin.f32 %v5601_v42, %v1461_v6  ;;  %v1471_v0 = vmin.f32 %v5604_v43, %v1461_v6 }
 0x4b8   : > { %4405 = vlog2.f32 %v1422_v57 }
 0x4b9   : > { %v1493_v12 = vmul.f32 1.4874755, %v1469_v58  ;;  %v1494_v29 = vmul.f32 1.4874755, %v1470_v4  ;;  %v1495_v46 = vmul.f32 1.4874755, %v1471_v0 }
 0x4bb   : > { %v1517_v19 = vmul.f32 1.442695, %v1493_v12  ;;  %v1519_v50 = vmul.f32 1.442695, %v1494_v29  ;;  %v1521_v23 = vmul.f32 1.442695, %v1495_v46 }
 0x4bd   : > { %4407 = vpow2.f32 %v1517_v19 }
 0x4be   : > { %4409 = vpow2.f32 %v1519_v50  ;;  %v1395_v10 = vpop.xlane.xlu0 %1394 }
 0x4bf   : > { %v1423_v35 = vadd.f32 1e-20, %v1395_v10  ;;  %4411 = vpow2.f32 %v1521_v23 }
 0x4c1   : > { %4413 = vlog2.f32 %v1423_v35 }
 0x4c2   : > { %v4406_v15 = vpop.eup %4405 }
 0x4c3   : > { %v1432_v24 = vmul.f32 0.6931472, %v4406_v15  ;;  %v1400_v55 = vpop.xlane.xlu1 %1399 }
 0x4c4   : > { %v1424_v41 = vadd.f32 1e-20, %v1400_v55  ;;  %v1405_v30 = vpop.xlane.xlu0 %1404 }
 0x4c5   : > { %v1446_v32 = vsub.f32 %v5705_v13, %v1432_v24  ;;  %v1425_v62 = vadd.f32 1e-20, %v1405_v30 }
 0x4c6   : > { %4415 = vlog2.f32 %v1424_v41 }
 0x4c7   : > { %v4408_v45 = vpop.eup %4407  ;;  %v1454_v21 = vmul.f32 0.9604, %v1446_v32  ;;  %4417 = vlog2.f32 %v1425_v62 }
 0x4c8   : > { %v4410_v59 = vpop.eup %4409 }
 0x4c9   : > { %v4412_v33 = vpop.eup %4411  ;;  %v1462_v38 = vsub.f32 0.0, %v1454_v21  ;;  %v1565_v61 = vadd.f32 %v4410_v59, %v4408_v45 }
 0x4ca   : > { %v1566_v8 = vsel %vm429_vm0, %v4412_v33, 0.0 }
 0x4cb   : > { %v4414_v18 = vpop.eup %4413  ;;  %v1472_v47 = vmin.f32 %v5607_v49, %v1462_v38  ;;  %v1473_v34 = vmin.f32 %v5611_v9, %v1462_v38  ;;  %v1474_v28 = vmin.f32 %v5614_v52, %v1462_v38  ;;  %v1567_v6 = vadd.f32 %v1566_v8, %v1565_v61  ;;  %v1410_v57 = vpop.xlane.xlu1 %1409 }
 0x4cc   : > { %v1434_v26 = vmul.f32 0.6931472, %v4414_v18  ;;  %v1426_v29 = vadd.f32 1e-20, %v1410_v57 }
 0x4cd   : > { %v1496_v58 = vmul.f32 1.4874755, %v1472_v47  ;;  %v1497_v4 = vmul.f32 1.4874755, %v1473_v34  ;;  %v1498_v0 = vmul.f32 1.4874755, %v1474_v28  ;;  %1568 = vadd.xlane.f32.xlu0 %v1567_v6 }
 0x4ce   : > { %v1447_v12 = vsub.f32 %v5708_v5, %v1434_v26  ;;  %4419 = vlog2.f32 %v1426_v29 }
 0x4cf   : > { %v1523_v46 = vmul.f32 1.442695, %v1496_v58  ;;  %v1525_v19 = vmul.f32 1.442695, %v1497_v4  ;;  %v1527_v50 = vmul.f32 1.442695, %v1498_v0 }
 0x4d0   : > { %v4416_v23 = vpop.eup %4415  ;;  %v1455_v10 = vmul.f32 0.9604, %v1447_v12  ;;  %v1415_v24 = vpop.xlane.xlu0 %1414 }
 0x4d1   : > { %v4418_v35 = vpop.eup %4417  ;;  %4421 = vpow2.f32 %v1523_v46  ;;  %v1436_v15 = vmul.f32 0.6931472, %v4416_v23  ;;  %v1427_v30 = vadd.f32 1e-20, %v1415_v24  ;;  %v1420_v32 = vpop.xlane.xlu1 %1419 }
 0x4d2   : > { %4423 = vpow2.f32 %v1525_v19  ;;  %v1463_v55 = vsub.f32 0.0, %v1455_v10  ;;  %v1438_v41 = vmul.f32 0.6931472, %v4418_v35  ;;  %v1428_v45 = vadd.f32 1e-20, %v1420_v32 }
 0x4d3   : > { %v1448_v62 = vsub.f32 %v5714_v25, %v1436_v15  ;;  %4425 = vpow2.f32 %v1527_v50 }
 0x4d4   : > { %v1475_v21 = vmin.f32 %v5618_v11, %v1463_v55  ;;  %v1476_v59 = vmin.f32 %v5622_v54, %v1463_v55  ;;  %v1449_v33 = vsub.f32 %v5720_v16, %v1438_v41  ;;  %4427 = vlog2.f32 %v1427_v30 }
 0x4d5   : > { %v1456_v38 = vmul.f32 0.9604, %v1448_v62  ;;  %4429 = vlog2.f32 %v1428_v45  ;;  %v1477_v18 = vmin.f32 %v5626_v37, %v1463_v55 }
 0x4d6   : > { %v1499_v61 = vmul.f32 1.4874755, %v1475_v21  ;;  %v1500_v8 = vmul.f32 1.4874755, %v1476_v59  ;;  %v1457_v34 = vmul.f32 0.9604, %v1449_v33 }
 0x4d7   : > { %v1464_v47 = vsub.f32 0.0, %v1456_v38  ;;  %v1501_v29 = vmul.f32 1.4874755, %v1477_v18 }
 0x4d8   : > { %v1529_v28 = vmul.f32 1.442695, %v1499_v61  ;;  %v1531_v6 = vmul.f32 1.442695, %v1500_v8  ;;  %v1465_v4 = vsub.f32 0.0, %v1457_v34  ;;  %v4420_v0 = vpop.eup %4419 }
 0x4d9   : > { %v1478_v26 = vmin.f32 %v5629_v60, %v1464_v47  ;;  %v1479_v57 = vmin.f32 %v5632_v20, %v1464_v47  ;;  %v1480_v58 = vmin.f32 %v5636_v63, %v1464_v47  ;;  %v1440_v15 = vmul.f32 0.6931472, %v4420_v0 }
 0x4da   : > { %4431 = vpow2.f32 %v1529_v28  ;;  %v1481_v23 = vmin.f32 %v5640_v2, %v1465_v4  ;;  %v1482_v10 = vmin.f32 %v5644_v3, %v1465_v4  ;;  %v1483_v35 = vmin.f32 %v5648_v48, %v1465_v4 }
 0x4db   : > { %v4422_v12 = vpop.eup %4421  ;;  %4433 = vpow2.f32 %v1531_v6  ;;  %v1502_v46 = vmul.f32 1.4874755, %v1478_v26  ;;  %v1503_v19 = vmul.f32 1.4874755, %v1479_v57  ;;  %v1504_v55 = vmul.f32 1.4874755, %v1480_v58 }
 0x4dc   : > { %v4424_v50 = vpop.eup %4423  ;;  %v1505_v62 = vmul.f32 1.4874755, %v1481_v23  ;;  %v1506_v45 = vmul.f32 1.4874755, %v1482_v10  ;;  %v1507_v21 = vmul.f32 1.4874755, %v1483_v35  ;;  %v1450_v59 = vsub.f32 %v5722_v17, %v1440_v15 }
 0x4dd   : > { %v4426_v24 = vpop.eup %4425  ;;  %v1535_v41 = vmul.f32 1.442695, %v1502_v46  ;;  %v1537_v30 = vmul.f32 1.442695, %v1503_v19  ;;  %v1570_v32 = vadd.f32 %v4424_v50, %v4422_v12  ;;  %v1533_v8 = vmul.f32 1.442695, %v1501_v29 }
 0x4de   : > { %v4428_v33 = vpop.eup %4427  ;;  %v1571_v38 = vsel %vm429_vm0, %v4426_v24, 0.0  ;;  %v1541_v18 = vmul.f32 1.442695, %v1505_v62  ;;  %v1543_v47 = vmul.f32 1.442695, %v1506_v45 }
 0x4df   : > { %4435 = vpow2.f32 %v1535_v41  ;;  %v4430_v61 = vpop.eup %4429  ;;  %v1458_v34 = vmul.f32 0.9604, %v1450_v59  ;;  %v1442_v28 = vmul.f32 0.6931472, %v4428_v33  ;;  %v1572_v26 = vadd.f32 %v1571_v38, %v1570_v32 }
 0x4e0   : > { %4437 = vpow2.f32 %v1537_v30  ;;  %v1444_v6 = vmul.f32 0.6931472, %v4430_v61  ;;  %v1539_v57 = vmul.f32 1.442695, %v1504_v55  ;;  %v1545_v58 = vmul.f32 1.442695, %v1507_v21 }
 0x4e1   : > { %4439 = vpow2.f32 %v1541_v18  ;;  %v1466_v4 = vsub.f32 0.0, %v1458_v34  ;;  %v1451_v0 = vsub.f32 %v5730_v36, %v1442_v28  ;;  %1573 = vadd.xlane.f32.xlu1 %v1572_v26 }
 0x4e2   : > { %4441 = vpow2.f32 %v1543_v47  ;;  %v1452_v12 = vsub.f32 %v5732_v31, %v1444_v6 }
 0x4e3   : > { %4443 = vpow2.f32 %v1533_v8  ;;  %v1484_v19 = vmin.f32 %v5651_v7, %v1466_v4  ;;  %v1485_v50 = vmin.f32 %v5655_v14, %v1466_v4  ;;  %v1486_v23 = vmin.f32 %v5662_v22, %v1466_v4 }
 0x4e4   : > { %v4432_v46 = vpop.eup %4431  ;;  %v1459_v10 = vmul.f32 0.9604, %v1451_v0  ;;  %v1460_v35 = vmul.f32 0.9604, %v1452_v12  ;;  %4445 = vpow2.f32 %v1539_v57 }
 0x4e5   : > { %v4434_v29 = vpop.eup %4433  ;;  %v1508_v15 = vmul.f32 1.4874755, %v1484_v19  ;;  %v1509_v24 = vmul.f32 1.4874755, %v1485_v50  ;;  %v1510_v55 = vmul.f32 1.4874755, %v1486_v23  ;;  %4447 = vpow2.f32 %v1545_v58 }
 0x4e6   : > { %v1467_v41 = vsub.f32 0.0, %v1459_v10  ;;  %v1468_v30 = vsub.f32 0.0, %v1460_v35  ;;  %v1575_v34 = vadd.f32 %v4434_v29, %v4432_v46 }
 0x4e7   : > { %v1547_v62 = vmul.f32 1.442695, %v1508_v15  ;;  %v1549_v45 = vmul.f32 1.442695, %v1509_v24  ;;  %v1551_v21 = vmul.f32 1.442695, %v1510_v55 }
 0x4e8   : > { %v1487_v33 = vmin.f32 %v5666_v27, %v1467_v41  ;;  %v1488_v38 = vmin.f32 %v5671_v39, %v1467_v41  ;;  %v1489_v61 = vmin.f32 %v5675_v44, %v1467_v41  ;;  %v1490_v8 = vmin.f32 %v5679_v51, %v1468_v30 }
 0x4e9   : > { %v4436_v32 = vpop.eup %4435  ;;  %4449 = vpow2.f32 %v1547_v62  ;;  %v1491_v18 = vmin.f32 %v5683_v53, %v1468_v30  ;;  %v1492_v47 = vmin.f32 %v5687_v56, %v1468_v30 }
 0x4ea   : > { %v4438_v59 = vpop.eup %4437  ;;  %4451 = vpow2.f32 %v1549_v45  ;;  %v1511_v6 = vmul.f32 1.4874755, %v1487_v33  ;;  %v1512_v26 = vmul.f32 1.4874755, %v1488_v38  ;;  %v1513_v57 = vmul.f32 1.4874755, %v1489_v61 }
 0x4eb   : > { %v4440_v28 = vpop.eup %4439  ;;  %v1514_v4 = vmul.f32 1.4874755, %v1490_v8  ;;  %v1515_v0 = vmul.f32 1.4874755, %v1491_v18  ;;  %v1516_v12 = vmul.f32 1.4874755, %v1492_v47  ;;  %4453 = vpow2.f32 %v1551_v21 }
 0x4ec   : > { %v4442_v58 = vpop.eup %4441  ;;  %v1553_v50 = vmul.f32 1.442695, %v1511_v6  ;;  %v1555_v23 = vmul.f32 1.442695, %v1512_v26  ;;  %v1580_v10 = vadd.f32 %v4438_v59, %v4436_v32  ;;  %v1557_v46 = vmul.f32 1.442695, %v1513_v57 }
 0x4ed   : > { %v4444_v19 = vpop.eup %4443  ;;  %v1559_v35 = vmul.f32 1.442695, %v1514_v4  ;;  %v1561_v15 = vmul.f32 1.442695, %v1515_v0  ;;  %v1585_v24 = vadd.f32 %v4442_v58, %v4440_v28  ;;  %v1563_v30 = vmul.f32 1.442695, %v1516_v12 }
 0x4ee   : > { %v4446_v55 = vpop.eup %4445  ;;  %4455 = vpow2.f32 %v1553_v50  ;;  %v1576_v29 = vsel %vm429_vm0, %v4444_v19, 0.0 }
 0x4ef   : > { %v4448_v41 = vpop.eup %4447  ;;  %4457 = vpow2.f32 %v1555_v23  ;;  %v1577_v62 = vadd.f32 %v1576_v29, %v1575_v34  ;;  %v1581_v45 = vsel %vm429_vm0, %v4446_v55, 0.0 }
 0x4f0   : > { %4459 = vpow2.f32 %v1559_v35  ;;  %v1582_v21 = vadd.f32 %v1581_v45, %v1580_v10  ;;  %v1586_v33 = vsel %vm429_vm0, %v4448_v41, 0.0 }
 0x4f1   : > { %4461 = vpow2.f32 %v1561_v15  ;;  %1578 = vadd.xlane.f32.xlu0 %v1577_v62  ;;  %v1587_v32 = vadd.f32 %v1586_v33, %v1585_v24 }
 0x4f2   : > { %1583 = vadd.xlane.f32.xlu1 %v1582_v21  ;;  %4463 = vpow2.f32 %v1557_v46 }
 0x4f3   : > { %v4450_v59 = vpop.eup %4449  ;;  %4465 = vpow2.f32 %v1563_v30 }
 0x4f4   : > { %v4452_v38 = vpop.eup %4451 }
 0x4f5   : > { %v4454_v61 = vpop.eup %4453  ;;  %1588 = vadd.xlane.f32.xlu0 %v1587_v32  ;;  %v1590_v8 = vadd.f32 %v4452_v38, %v4450_v59 }
 0x4f6   : > { %v1591_v18 = vsel %vm429_vm0, %v4454_v61, 0.0 }
 0x4f7   : > { %v1592_v47 = vadd.f32 %v1591_v18, %v1590_v8 }
 0x4f8   : > { %v4456_v34 = vpop.eup %4455 }
 0x4f9   : > { %v4458_v28 = vpop.eup %4457  ;;  %1593 = vadd.xlane.f32.xlu1 %v1592_v47 }
 0x4fa   : > { %v4460_v6 = vpop.eup %4459  ;;  %v1595_v26 = vadd.f32 %v4458_v28, %v4456_v34 }
 0x4fb   : > { %v4462_v57 = vpop.eup %4461 }
 0x4fc   : > { %v4464_v58 = vpop.eup %4463  ;;  %v1600_v4 = vadd.f32 %v4462_v57, %v4460_v6 }
 0x4fd   : > { %v4466_v0 = vpop.eup %4465  ;;  %v1596_v12 = vsel %vm429_vm0, %v4464_v58, 0.0 }
 0x4fe   : > { %v1597_v19 = vadd.f32 %v1596_v12, %v1595_v26  ;;  %v1601_v50 = vsel %vm429_vm0, %v4466_v0, 0.0 }
 0x4ff   : > { %v1602_v23 = vadd.f32 %v1601_v50, %v1600_v4 }
 0x500   : > { %1598 = vadd.xlane.f32.xlu0 %v1597_v19 }
 0x501   : > { %1603 = vadd.xlane.f32.xlu1 %v1602_v23 }
 0x55a   : > { %v1569_v10 = vpop.xlane.xlu0 %1568 }
 0x55b   : > { %v1605_v35 = vadd.f32 1e-20, %v1569_v10 }
 0x55d   : > { %4467 = vlog2.f32 %v1605_v35 }
 0x567   : > { %v4468_v15 = vpop.eup %4467 }
 0x568   : > { %v1614_v24 = vmul.f32 0.6931472, %v4468_v15 }
 0x56a   : > { %v1629_v55 = vsub.f32 %v5702_v1, %v1614_v24 }
 0x56c   : > { %v1637_v46 = vmul.f32 0.67228, %v1629_v55 }
 0x56e   : > { %v1645_v29 = vsub.f32 0.0, %v1637_v46  ;;  %v1574_v45 = vpop.xlane.xlu1 %1573 }
 0x56f   : > { %v1606_v21 = vadd.f32 1e-20, %v1574_v45 }
 0x570   : > { %v1653_v41 = vmin.f32 %v5598_v40, %v1645_v29  ;;  %v1654_v30 = vmin.f32 %v5601_v42, %v1645_v29  ;;  %v1655_v62 = vmin.f32 %v5604_v43, %v1645_v29 }
 0x571   : > { %4469 = vlog2.f32 %v1606_v21 }
 0x572   : > { %v1677_v33 = vmul.f32 2.124965, %v1653_v41  ;;  %v1678_v32 = vmul.f32 2.124965, %v1654_v30  ;;  %v1679_v59 = vmul.f32 2.124965, %v1655_v62 }
 0x574   : > { %v1701_v38 = vmul.f32 1.442695, %v1677_v33  ;;  %v1703_v61 = vmul.f32 1.442695, %v1678_v32  ;;  %v1705_v8 = vmul.f32 1.442695, %v1679_v59 }
 0x576   : > { %4471 = vpow2.f32 %v1701_v38 }
 0x577   : > { %4473 = vpow2.f32 %v1703_v61 }
 0x578   : > { %4475 = vpow2.f32 %v1705_v8 }
 0x57b   : > { %v4470_v18 = vpop.eup %4469 }
 0x57c   : > { %v1616_v47 = vmul.f32 0.6931472, %v4470_v18 }
 0x57e   : > { %v1630_v28 = vsub.f32 %v5705_v13, %v1616_v47  ;;  %v1579_v6 = vpop.xlane.xlu0 %1578 }
 0x57f   : > { %v1607_v57 = vadd.f32 1e-20, %v1579_v6  ;;  %v1584_v58 = vpop.xlane.xlu1 %1583 }
 0x580   : > { %v4472_v34 = vpop.eup %4471  ;;  %v1638_v0 = vmul.f32 0.67228, %v1630_v28  ;;  %v1608_v12 = vadd.f32 1e-20, %v1584_v58 }
 0x581   : > { %v4474_v26 = vpop.eup %4473  ;;  %4477 = vlog2.f32 %v1607_v57 }
 0x582   : > { %v4476_v4 = vpop.eup %4475  ;;  %v1749_v19 = vadd.f32 %v4474_v26, %v4472_v34  ;;  %v1646_v23 = vsub.f32 0.0, %v1638_v0  ;;  %4479 = vlog2.f32 %v1608_v12  ;;  %v1589_v10 = vpop.xlane.xlu0 %1588 }
 0x583   : > { %v1750_v50 = vsel %vm429_vm0, %v4476_v4, 0.0  ;;  %v1609_v15 = vadd.f32 1e-20, %v1589_v10 }
 0x584   : > { %v1751_v35 = vadd.f32 %v1750_v50, %v1749_v19  ;;  %v1656_v24 = vmin.f32 %v5607_v49, %v1646_v23  ;;  %v1657_v55 = vmin.f32 %v5611_v9, %v1646_v23  ;;  %v1658_v46 = vmin.f32 %v5614_v52, %v1646_v23 }
 0x585   : > { %4481 = vlog2.f32 %v1609_v15 }
 0x586   : > { %1752 = vadd.xlane.f32.xlu0 %v1751_v35  ;;  %v1680_v29 = vmul.f32 2.124965, %v1656_v24  ;;  %v1681_v41 = vmul.f32 2.124965, %v1657_v55  ;;  %v1682_v30 = vmul.f32 2.124965, %v1658_v46  ;;  %v1594_v62 = vpop.xlane.xlu1 %1593 }
 0x587   : > { %v1610_v45 = vadd.f32 1e-20, %v1594_v62 }
 0x588   : > { %v1707_v21 = vmul.f32 1.442695, %v1680_v29  ;;  %v1709_v33 = vmul.f32 1.442695, %v1681_v41  ;;  %v1711_v32 = vmul.f32 1.442695, %v1682_v30 }
 0x589   : > { %4483 = vlog2.f32 %v1610_v45 }
 0x58a   : > { %4485 = vpow2.f32 %v1707_v21 }
 0x58b   : > { %v4478_v59 = vpop.eup %4477  ;;  %4487 = vpow2.f32 %v1709_v33 }
 0x58c   : > { %v4480_v38 = vpop.eup %4479  ;;  %v1618_v61 = vmul.f32 0.6931472, %v4478_v59  ;;  %4489 = vpow2.f32 %v1711_v32 }
 0x58d   : > { %v1620_v8 = vmul.f32 0.6931472, %v4480_v38  ;;  %v1599_v18 = vpop.xlane.xlu0 %1598 }
 0x58e   : > { %v1631_v47 = vsub.f32 %v5708_v5, %v1618_v61  ;;  %v1611_v34 = vadd.f32 1e-20, %v1599_v18  ;;  %v1604_v28 = vpop.xlane.xlu1 %1603 }
 0x58f   : > { %v4482_v6 = vpop.eup %4481  ;;  %v1632_v26 = vsub.f32 %v5714_v25, %v1620_v8  ;;  %v1612_v57 = vadd.f32 1e-20, %v1604_v28 }
 0x590   : > { %v1639_v58 = vmul.f32 0.67228, %v1631_v47  ;;  %v1622_v4 = vmul.f32 0.6931472, %v4482_v6  ;;  %4491 = vlog2.f32 %v1611_v34 }
 0x591   : > { %v1640_v0 = vmul.f32 0.67228, %v1632_v26  ;;  %4493 = vlog2.f32 %v1612_v57 }
 0x592   : > { %v1647_v12 = vsub.f32 0.0, %v1639_v58  ;;  %v1633_v19 = vsub.f32 %v5720_v16, %v1622_v4 }
 0x593   : > { %v4484_v50 = vpop.eup %4483  ;;  %v1648_v23 = vsub.f32 0.0, %v1640_v0 }
 0x594   : > { %v4486_v10 = vpop.eup %4485  ;;  %v1659_v35 = vmin.f32 %v5618_v11, %v1647_v12  ;;  %v1660_v15 = vmin.f32 %v5622_v54, %v1647_v12  ;;  %v1661_v24 = vmin.f32 %v5626_v37, %v1647_v12  ;;  %v1641_v55 = vmul.f32 0.67228, %v1633_v19 }
 0x595   : > { %v4488_v46 = vpop.eup %4487  ;;  %v1662_v29 = vmin.f32 %v5629_v60, %v1648_v23  ;;  %v1663_v41 = vmin.f32 %v5632_v20, %v1648_v23  ;;  %v1664_v30 = vmin.f32 %v5636_v63, %v1648_v23  ;;  %v1624_v62 = vmul.f32 0.6931472, %v4484_v50 }
 0x596   : > { %v1683_v45 = vmul.f32 2.124965, %v1659_v35  ;;  %v1684_v21 = vmul.f32 2.124965, %v1660_v15  ;;  %v1685_v33 = vmul.f32 2.124965, %v1661_v24  ;;  %v1754_v32 = vadd.f32 %v4488_v46, %v4486_v10  ;;  %v4490_v59 = vpop.eup %4489 }
 0x597   : > { %v1686_v38 = vmul.f32 2.124965, %v1662_v29  ;;  %v1687_v61 = vmul.f32 2.124965, %v1663_v41  ;;  %v1688_v8 = vmul.f32 2.124965, %v1664_v30  ;;  %v1634_v18 = vsub.f32 %v5722_v17, %v1624_v62 }
 0x598   : > { %v1713_v47 = vmul.f32 1.442695, %v1683_v45  ;;  %v1715_v34 = vmul.f32 1.442695, %v1684_v21  ;;  %v1717_v28 = vmul.f32 1.442695, %v1685_v33 }
 0x599   : > { %v1719_v6 = vmul.f32 1.442695, %v1686_v38  ;;  %v1721_v26 = vmul.f32 1.442695, %v1687_v61  ;;  %v1649_v58 = vsub.f32 0.0, %v1641_v55  ;;  %v1755_v0 = vsel %vm429_vm0, %v4490_v59, 0.0 }
 0x59a   : > { %v4492_v57 = vpop.eup %4491  ;;  %4495 = vpow2.f32 %v1713_v47  ;;  %v1642_v4 = vmul.f32 0.67228, %v1634_v18  ;;  %v1723_v19 = vmul.f32 1.442695, %v1688_v8  ;;  %v1756_v23 = vadd.f32 %v1755_v0, %v1754_v32 }
 0x59b   : > { %v4494_v12 = vpop.eup %4493  ;;  %4497 = vpow2.f32 %v1715_v34  ;;  %v1626_v50 = vmul.f32 0.6931472, %v4492_v57  ;;  %v1665_v10 = vmin.f32 %v5640_v2, %v1649_v58  ;;  %v1666_v35 = vmin.f32 %v5644_v3, %v1649_v58 }
 0x59c   : > { %4499 = vpow2.f32 %v1719_v6  ;;  %v1667_v15 = vmin.f32 %v5648_v48, %v1649_v58  ;;  %v1650_v24 = vsub.f32 0.0, %v1642_v4  ;;  %v1628_v55 = vmul.f32 0.6931472, %v4494_v12  ;;  %1757 = vadd.xlane.f32.xlu1 %v1756_v23 }
 0x59d   : > { %4501 = vpow2.f32 %v1721_v26  ;;  %v1635_v46 = vsub.f32 %v5730_v36, %v1626_v50  ;;  %v1689_v29 = vmul.f32 2.124965, %v1665_v10  ;;  %v1690_v41 = vmul.f32 2.124965, %v1666_v35 }
 0x59e   : > { %4503 = vpow2.f32 %v1717_v28  ;;  %v1668_v30 = vmin.f32 %v5651_v7, %v1650_v24  ;;  %v1669_v62 = vmin.f32 %v5655_v14, %v1650_v24  ;;  %v1670_v45 = vmin.f32 %v5662_v22, %v1650_v24 }
 0x59f   : > { %v1643_v21 = vmul.f32 0.67228, %v1635_v46  ;;  %v1725_v33 = vmul.f32 1.442695, %v1689_v29  ;;  %v1727_v32 = vmul.f32 1.442695, %v1690_v41  ;;  %v1636_v59 = vsub.f32 %v5732_v31, %v1628_v55 }
 0x5a0   : > { %v1691_v38 = vmul.f32 2.124965, %v1667_v15  ;;  %v1692_v61 = vmul.f32 2.124965, %v1668_v30  ;;  %v1693_v8 = vmul.f32 2.124965, %v1669_v62  ;;  %4505 = vpow2.f32 %v1723_v19 }
 0x5a1   : > { %4507 = vpow2.f32 %v1725_v33  ;;  %v1694_v18 = vmul.f32 2.124965, %v1670_v45  ;;  %v1651_v47 = vsub.f32 0.0, %v1643_v21  ;;  %v1644_v34 = vmul.f32 0.67228, %v1636_v59 }
 0x5a2   : > { %4509 = vpow2.f32 %v1727_v32  ;;  %v1731_v28 = vmul.f32 1.442695, %v1692_v61  ;;  %v1733_v6 = vmul.f32 1.442695, %v1693_v8  ;;  %v1729_v50 = vmul.f32 1.442695, %v1691_v38 }
 0x5a3   : > { %v1671_v57 = vmin.f32 %v5666_v27, %v1651_v47  ;;  %v1672_v58 = vmin.f32 %v5671_v39, %v1651_v47  ;;  %v1673_v4 = vmin.f32 %v5675_v44, %v1651_v47  ;;  %v1652_v0 = vsub.f32 0.0, %v1644_v34 }
 0x5a4   : > { %v4496_v26 = vpop.eup %4495  ;;  %4511 = vpow2.f32 %v1731_v28  ;;  %v1735_v19 = vmul.f32 1.442695, %v1694_v18 }
 0x5a5   : > { %v4498_v12 = vpop.eup %4497  ;;  %4513 = vpow2.f32 %v1733_v6  ;;  %v1695_v10 = vmul.f32 2.124965, %v1671_v57  ;;  %v1696_v35 = vmul.f32 2.124965, %v1672_v58  ;;  %v1697_v24 = vmul.f32 2.124965, %v1673_v4 }
 0x5a6   : > { %v4500_v23 = vpop.eup %4499  ;;  %v1674_v46 = vmin.f32 %v5679_v51, %v1652_v0  ;;  %v1675_v55 = vmin.f32 %v5683_v53, %v1652_v0  ;;  %v1676_v29 = vmin.f32 %v5687_v56, %v1652_v0  ;;  %v1759_v45 = vadd.f32 %v4498_v12, %v4496_v26 }
 0x5a7   : > { %v4502_v15 = vpop.eup %4501  ;;  %v1737_v30 = vmul.f32 1.442695, %v1695_v10  ;;  %v1739_v62 = vmul.f32 1.442695, %v1696_v35  ;;  %4515 = vpow2.f32 %v1729_v50  ;;  %v1741_v8 = vmul.f32 1.442695, %v1697_v24 }
 0x5a8   : > { %v4504_v41 = vpop.eup %4503  ;;  %v1764_v21 = vadd.f32 %v4502_v15, %v4500_v23  ;;  %v1698_v33 = vmul.f32 2.124965, %v1674_v46  ;;  %v1699_v32 = vmul.f32 2.124965, %v1675_v55  ;;  %v1700_v59 = vmul.f32 2.124965, %v1676_v29 }
 0x5a9   : > { %4517 = vpow2.f32 %v1737_v30  ;;  %v1760_v38 = vsel %vm429_vm0, %v4504_v41, 0.0 }
 0x5aa   : > { %v4506_v61 = vpop.eup %4505  ;;  %4519 = vpow2.f32 %v1739_v62  ;;  %v1743_v18 = vmul.f32 1.442695, %v1698_v33  ;;  %v1745_v47 = vmul.f32 1.442695, %v1699_v32  ;;  %v1747_v28 = vmul.f32 1.442695, %v1700_v59 }
 0x5ab   : > { %v4508_v34 = vpop.eup %4507  ;;  %v1761_v6 = vadd.f32 %v1760_v38, %v1759_v45  ;;  %v1765_v57 = vsel %vm429_vm0, %v4506_v61, 0.0  ;;  %4521 = vpow2.f32 %v1735_v19 }
 0x5ac   : > { %v4510_v26 = vpop.eup %4509  ;;  %4523 = vpow2.f32 %v1743_v18  ;;  %v1766_v58 = vadd.f32 %v1765_v57, %v1764_v21 }
 0x5ad   : > { %4525 = vpow2.f32 %v1745_v47  ;;  %1762 = vadd.xlane.f32.xlu0 %v1761_v6  ;;  %v1769_v12 = vadd.f32 %v4510_v26, %v4508_v34 }
 0x5ae   : > { %v4512_v4 = vpop.eup %4511  ;;  %1767 = vadd.xlane.f32.xlu1 %v1766_v58  ;;  %4527 = vpow2.f32 %v1741_v8 }
 0x5af   : > { %v4514_v0 = vpop.eup %4513  ;;  %4529 = vpow2.f32 %v1747_v28 }
 0x5b0   : > { %v1774_v35 = vadd.f32 %v4514_v0, %v4512_v4 }
 0x5b1   : > { %v4516_v50 = vpop.eup %4515 }
 0x5b2   : > { %v1770_v10 = vsel %vm429_vm0, %v4516_v50, 0.0 }
 0x5b3   : > { %v4518_v23 = vpop.eup %4517  ;;  %v1771_v24 = vadd.f32 %v1770_v10, %v1769_v12 }
 0x5b4   : > { %v4520_v15 = vpop.eup %4519 }
 0x5b5   : > { %v4522_v46 = vpop.eup %4521  ;;  %1772 = vadd.xlane.f32.xlu0 %v1771_v24  ;;  %v1779_v29 = vadd.f32 %v4520_v15, %v4518_v23 }
 0x5b6   : > { %v4524_v19 = vpop.eup %4523  ;;  %v1775_v55 = vsel %vm429_vm0, %v4522_v46, 0.0 }
 0x5b7   : > { %v4526_v41 = vpop.eup %4525  ;;  %v1776_v30 = vadd.f32 %v1775_v55, %v1774_v35 }
 0x5b8   : > { %v4528_v62 = vpop.eup %4527  ;;  %v1784_v45 = vadd.f32 %v4526_v41, %v4524_v19 }
 0x5b9   : > { %v4530_v21 = vpop.eup %4529  ;;  %1777 = vadd.xlane.f32.xlu1 %v1776_v30  ;;  %v1780_v33 = vsel %vm429_vm0, %v4528_v62, 0.0 }
 0x5ba   : > { %v1781_v32 = vadd.f32 %v1780_v33, %v1779_v29  ;;  %v1785_v59 = vsel %vm429_vm0, %v4530_v21, 0.0 }
 0x5bb   : > { %v1786_v38 = vadd.f32 %v1785_v59, %v1784_v45 }
 0x5bc   : > { %1782 = vadd.xlane.f32.xlu0 %v1781_v32 }
 0x5bd   : > { %1787 = vadd.xlane.f32.xlu1 %v1786_v38 }
 0x613   : > { %v1753_v61 = vpop.xlane.xlu0 %1752 }
 0x614   : > { %v1789_v8 = vadd.f32 1e-20, %v1753_v61 }
 0x616   : > { %4531 = vlog2.f32 %v1789_v8 }
 0x620   : > { %v4532_v18 = vpop.eup %4531 }
 0x621   : > { %v1798_v47 = vmul.f32 0.6931472, %v4532_v18 }
 0x623   : > { %v1813_v34 = vsub.f32 %v5702_v1, %v1798_v47 }
 0x625   : > { %v1821_v28 = vmul.f32 0.470596, %v1813_v34 }
 0x627   : > { %v1829_v6 = vsub.f32 0.0, %v1821_v28 }
 0x629   : > { %v1837_v57 = vmin.f32 %v5598_v40, %v1829_v6  ;;  %v1838_v26 = vmin.f32 %v5601_v42, %v1829_v6  ;;  %v1839_v58 = vmin.f32 %v5604_v43, %v1829_v6  ;;  %v1758_v50 = vpop.xlane.xlu1 %1757 }
 0x62a   : > { %v1790_v15 = vadd.f32 1e-20, %v1758_v50 }
 0x62b   : > { %v1861_v4 = vmul.f32 3.035664, %v1837_v57  ;;  %v1862_v0 = vmul.f32 3.035664, %v1838_v26  ;;  %v1863_v12 = vmul.f32 3.035664, %v1839_v58 }
 0x62d   : > { %v1885_v23 = vmul.f32 1.442695, %v1861_v4  ;;  %v1887_v10 = vmul.f32 1.442695, %v1862_v0  ;;  %v1889_v35 = vmul.f32 1.442695, %v1863_v12 }
 0x62f   : > { %4533 = vpow2.f32 %v1885_v23 }
 0x630   : > { %4535 = vpow2.f32 %v1887_v10 }
 0x631   : > { %4537 = vlog2.f32 %v1790_v15 }
 0x632   : > { %4539 = vpow2.f32 %v1889_v35 }
 0x639   : > { %v4534_v24 = vpop.eup %4533 }
 0x63a   : > { %v4536_v46 = vpop.eup %4535  ;;  %v1763_v30 = vpop.xlane.xlu0 %1762 }
 0x63b   : > { %v4538_v19 = vpop.eup %4537  ;;  %v1933_v55 = vadd.f32 %v4536_v46, %v4534_v24  ;;  %v1791_v21 = vadd.f32 1e-20, %v1763_v30  ;;  %v1768_v33 = vpop.xlane.xlu1 %1767 }
 0x63c   : > { %v4540_v29 = vpop.eup %4539  ;;  %v1800_v41 = vmul.f32 0.6931472, %v4538_v19  ;;  %v1792_v59 = vadd.f32 1e-20, %v1768_v33 }
 0x63d   : > { %v1934_v62 = vsel %vm429_vm0, %v4540_v29, 0.0  ;;  %4541 = vlog2.f32 %v1791_v21 }
 0x63e   : > { %v1814_v45 = vsub.f32 %v5705_v13, %v1800_v41  ;;  %v1935_v32 = vadd.f32 %v1934_v62, %v1933_v55  ;;  %4543 = vlog2.f32 %v1792_v59 }
 0x640   : > { %v1822_v38 = vmul.f32 0.470596, %v1814_v45  ;;  %1936 = vadd.xlane.f32.xlu0 %v1935_v32 }
 0x642   : > { %v1830_v61 = vsub.f32 0.0, %v1822_v38  ;;  %v1773_v57 = vpop.xlane.xlu0 %1772 }
 0x643   : > { %v1793_v26 = vadd.f32 1e-20, %v1773_v57 }
 0x644   : > { %v1840_v8 = vmin.f32 %v5607_v49, %v1830_v61  ;;  %v1841_v18 = vmin.f32 %v5611_v9, %v1830_v61  ;;  %v1842_v47 = vmin.f32 %v5614_v52, %v1830_v61 }
 0x645   : > { %4545 = vlog2.f32 %v1793_v26 }
 0x646   : > { %v1864_v34 = vmul.f32 3.035664, %v1840_v8  ;;  %v1865_v28 = vmul.f32 3.035664, %v1841_v18  ;;  %v1866_v6 = vmul.f32 3.035664, %v1842_v47  ;;  %v1778_v12 = vpop.xlane.xlu1 %1777 }
 0x647   : > { %v4542_v50 = vpop.eup %4541  ;;  %v1794_v23 = vadd.f32 1e-20, %v1778_v12 }
 0x648   : > { %v1891_v58 = vmul.f32 1.442695, %v1864_v34  ;;  %v1893_v4 = vmul.f32 1.442695, %v1865_v28  ;;  %v1895_v0 = vmul.f32 1.442695, %v1866_v6  ;;  %v4544_v10 = vpop.eup %4543 }
 0x649   : > { %v1802_v35 = vmul.f32 0.6931472, %v4542_v50  ;;  %v1804_v15 = vmul.f32 0.6931472, %v4544_v10  ;;  %v1783_v24 = vpop.xlane.xlu0 %1782 }
 0x64a   : > { %4547 = vpow2.f32 %v1891_v58  ;;  %v1795_v19 = vadd.f32 1e-20, %v1783_v24  ;;  %v1788_v55 = vpop.xlane.xlu1 %1787 }
 0x64b   : > { %4549 = vpow2.f32 %v1893_v4  ;;  %v1815_v46 = vsub.f32 %v5708_v5, %v1802_v35  ;;  %v1816_v29 = vsub.f32 %v5714_v25, %v1804_v15  ;;  %v1796_v41 = vadd.f32 1e-20, %v1788_v55 }
 0x64c   : > { %4551 = vlog2.f32 %v1794_v23 }
 0x64d   : > { %4553 = vpow2.f32 %v1895_v0  ;;  %v1823_v30 = vmul.f32 0.470596, %v1815_v46  ;;  %v1824_v62 = vmul.f32 0.470596, %v1816_v29 }
 0x64e   : > { %4555 = vlog2.f32 %v1795_v19 }
 0x64f   : > { %4557 = vlog2.f32 %v1796_v41  ;;  %v1831_v45 = vsub.f32 0.0, %v1823_v30  ;;  %v1832_v21 = vsub.f32 0.0, %v1824_v62  ;;  %v4546_v33 = vpop.eup %4545 }
 0x650   : > { %v1806_v34 = vmul.f32 0.6931472, %v4546_v33 }
 0x651   : > { %v1843_v32 = vmin.f32 %v5618_v11, %v1831_v45  ;;  %v1844_v59 = vmin.f32 %v5622_v54, %v1831_v45  ;;  %v1845_v38 = vmin.f32 %v5626_v37, %v1831_v45  ;;  %v1846_v8 = vmin.f32 %v5629_v60, %v1832_v21 }
 0x652   : > { %v1847_v18 = vmin.f32 %v5632_v20, %v1832_v21  ;;  %v1848_v47 = vmin.f32 %v5636_v63, %v1832_v21  ;;  %v1817_v50 = vsub.f32 %v5720_v16, %v1806_v34 }
 0x653   : > { %v1867_v6 = vmul.f32 3.035664, %v1843_v32  ;;  %v1868_v57 = vmul.f32 3.035664, %v1844_v59  ;;  %v1869_v26 = vmul.f32 3.035664, %v1845_v38 }
 0x654   : > { %v4548_v61 = vpop.eup %4547  ;;  %v1870_v4 = vmul.f32 3.035664, %v1846_v8  ;;  %v1871_v0 = vmul.f32 3.035664, %v1847_v18  ;;  %v1872_v12 = vmul.f32 3.035664, %v1848_v47 }
 0x655   : > { %v4550_v28 = vpop.eup %4549  ;;  %v1897_v10 = vmul.f32 1.442695, %v1867_v6  ;;  %v1899_v35 = vmul.f32 1.442695, %v1868_v57  ;;  %v1901_v24 = vmul.f32 1.442695, %v1869_v26 }
 0x656   : > { %v4552_v58 = vpop.eup %4551  ;;  %v1938_v15 = vadd.f32 %v4550_v28, %v4548_v61  ;;  %v1903_v46 = vmul.f32 1.442695, %v1870_v4  ;;  %v1905_v19 = vmul.f32 1.442695, %v1871_v0  ;;  %v1825_v29 = vmul.f32 0.470596, %v1817_v50 }
 0x657   : > { %v4554_v23 = vpop.eup %4553  ;;  %4559 = vpow2.f32 %v1897_v10  ;;  %v1808_v41 = vmul.f32 0.6931472, %v4552_v58  ;;  %v1907_v45 = vmul.f32 1.442695, %v1872_v12 }
 0x658   : > { %v4556_v55 = vpop.eup %4555  ;;  %v1939_v30 = vsel %vm429_vm0, %v4554_v23, 0.0  ;;  %4561 = vpow2.f32 %v1899_v35  ;;  %v1833_v32 = vsub.f32 0.0, %v1825_v29 }
 0x659   : > { %v4558_v62 = vpop.eup %4557  ;;  %v1810_v21 = vmul.f32 0.6931472, %v4556_v55  ;;  %v1940_v33 = vadd.f32 %v1939_v30, %v1938_v15  ;;  %4563 = vpow2.f32 %v1903_v46  ;;  %v1818_v59 = vsub.f32 %v5722_v17, %v1808_v41 }
 0x65a   : > { %v1812_v38 = vmul.f32 0.6931472, %v4558_v62  ;;  %4565 = vpow2.f32 %v1905_v19  ;;  %v1849_v8 = vmin.f32 %v5640_v2, %v1833_v32  ;;  %v1850_v18 = vmin.f32 %v5644_v3, %v1833_v32 }
 0x65b   : > { %v1819_v61 = vsub.f32 %v5730_v36, %v1810_v21  ;;  %1941 = vadd.xlane.f32.xlu1 %v1940_v33  ;;  %v1851_v47 = vmin.f32 %v5648_v48, %v1833_v32  ;;  %v1826_v34 = vmul.f32 0.470596, %v1818_v59  ;;  %4567 = vpow2.f32 %v1901_v24 }
 0x65c   : > { %v1820_v6 = vsub.f32 %v5732_v31, %v1812_v38  ;;  %v1873_v57 = vmul.f32 3.035664, %v1849_v8  ;;  %v1874_v26 = vmul.f32 3.035664, %v1850_v18  ;;  %4569 = vpow2.f32 %v1907_v45 }
 0x65d   : > { %v1827_v28 = vmul.f32 0.470596, %v1819_v61  ;;  %v1875_v58 = vmul.f32 3.035664, %v1851_v47  ;;  %v1834_v4 = vsub.f32 0.0, %v1826_v34 }
 0x65e   : > { %v1828_v12 = vmul.f32 0.470596, %v1820_v6  ;;  %v1909_v50 = vmul.f32 1.442695, %v1873_v57  ;;  %v1911_v23 = vmul.f32 1.442695, %v1874_v26 }
 0x65f   : > { %v1835_v0 = vsub.f32 0.0, %v1827_v28  ;;  %v1852_v10 = vmin.f32 %v5651_v7, %v1834_v4  ;;  %v1853_v35 = vmin.f32 %v5655_v14, %v1834_v4  ;;  %v1854_v15 = vmin.f32 %v5662_v22, %v1834_v4 }
 0x660   : > { %v1836_v29 = vsub.f32 0.0, %v1828_v12  ;;  %4571 = vpow2.f32 %v1909_v50  ;;  %v1913_v30 = vmul.f32 1.442695, %v1875_v58 }
 0x661   : > { %v1855_v46 = vmin.f32 %v5666_v27, %v1835_v0  ;;  %v4560_v19 = vpop.eup %4559  ;;  %v1856_v24 = vmin.f32 %v5671_v39, %v1835_v0  ;;  %v1857_v55 = vmin.f32 %v5675_v44, %v1835_v0  ;;  %v1876_v62 = vmul.f32 3.035664, %v1852_v10 }
 0x662   : > { %v4562_v41 = vpop.eup %4561  ;;  %v1877_v45 = vmul.f32 3.035664, %v1853_v35  ;;  %4573 = vpow2.f32 %v1911_v23  ;;  %v1858_v59 = vmin.f32 %v5679_v51, %v1836_v29  ;;  %v1878_v61 = vmul.f32 3.035664, %v1854_v15 }
 0x663   : > { %v4564_v21 = vpop.eup %4563  ;;  %v1879_v33 = vmul.f32 3.035664, %v1855_v46  ;;  %v1880_v32 = vmul.f32 3.035664, %v1856_v24  ;;  %v1915_v8 = vmul.f32 1.442695, %v1876_v62  ;;  %v1859_v47 = vmin.f32 %v5683_v53, %v1836_v29 }
 0x664   : > { %v4566_v38 = vpop.eup %4565  ;;  %v1917_v18 = vmul.f32 1.442695, %v1877_v45  ;;  %v1881_v34 = vmul.f32 3.035664, %v1857_v55  ;;  %v1860_v57 = vmin.f32 %v5687_v56, %v1836_v29  ;;  %v1882_v58 = vmul.f32 3.035664, %v1858_v59 }
 0x665   : > { %v1921_v28 = vmul.f32 1.442695, %v1879_v33  ;;  %v1923_v6 = vmul.f32 1.442695, %v1880_v32  ;;  %v4568_v26 = vpop.eup %4567  ;;  %4575 = vpow2.f32 %v1915_v8  ;;  %v1883_v4 = vmul.f32 3.035664, %v1859_v47 }
 0x666   : > { %v1943_v0 = vadd.f32 %v4562_v41, %v4560_v19  ;;  %v4570_v12 = vpop.eup %4569  ;;  %4577 = vpow2.f32 %v1917_v18  ;;  %v1884_v50 = vmul.f32 3.035664, %v1860_v57  ;;  %v1944_v23 = vsel %vm429_vm0, %v4568_v26, 0.0 }
 0x667   : > { %v1948_v10 = vadd.f32 %v4566_v38, %v4564_v21  ;;  %4579 = vpow2.f32 %v1921_v28  ;;  %v1927_v35 = vmul.f32 1.442695, %v1882_v58  ;;  %v1929_v15 = vmul.f32 1.442695, %v1883_v4 }
 0x668   : > { %v1945_v46 = vadd.f32 %v1944_v23, %v1943_v0  ;;  %v1919_v24 = vmul.f32 1.442695, %v1878_v61  ;;  %4581 = vpow2.f32 %v1923_v6  ;;  %v1949_v55 = vsel %vm429_vm0, %v4570_v12, 0.0 }
 0x669   : > { %v1925_v29 = vmul.f32 1.442695, %v1881_v34  ;;  %4583 = vpow2.f32 %v1927_v35  ;;  %v1950_v62 = vadd.f32 %v1949_v55, %v1948_v10  ;;  %v1931_v19 = vmul.f32 1.442695, %v1884_v50 }
 0x66a   : > { %1946 = vadd.xlane.f32.xlu0 %v1945_v46  ;;  %4585 = vpow2.f32 %v1929_v15  ;;  %v4572_v41 = vpop.eup %4571  ;;  %v2013_v55 = vmul.f32 3.3333333, %v5598_v40 }
 0x66b   : > { %1951 = vadd.xlane.f32.xlu1 %v1950_v62  ;;  %4587 = vpow2.f32 %v1913_v30 }
 0x66c   : > { %v4574_v45 = vpop.eup %4573  ;;  %4589 = vpow2.f32 %v1919_v24 }
 0x66d   : > { %4591 = vpow2.f32 %v1925_v29  ;;  %v1953_v61 = vadd.f32 %v4574_v45, %v4572_v41  ;;  %v2014_v29 = vmul.f32 3.3333333, %v5601_v42  ;;  %v2037_v45 = vmul.f32 1.442695, %v2013_v55 }
 0x66e   : > { %4593 = vpow2.f32 %v1931_v19  ;;  %v2015_v19 = vmul.f32 3.3333333, %v5604_v43 }
 0x66f   : > { %v4576_v21 = vpop.eup %4575 }
 0x670   : > { %v4578_v33 = vpop.eup %4577 }
 0x671   : > { %v4580_v32 = vpop.eup %4579  ;;  %v1958_v18 = vadd.f32 %v4578_v33, %v4576_v21  ;;  %v2039_v21 = vmul.f32 1.442695, %v2014_v29 }
 0x672   : > { %v4582_v59 = vpop.eup %4581 }
 0x673   : > { %v4584_v38 = vpop.eup %4583  ;;  %v1963_v34 = vadd.f32 %v4582_v59, %v4580_v32  ;;  %v2041_v32 = vmul.f32 1.442695, %v2015_v19 }
 0x674   : > { %v4586_v8 = vpop.eup %4585 }
 0x675   : > { %v4588_v47 = vpop.eup %4587  ;;  %v1968_v57 = vadd.f32 %v4586_v8, %v4584_v38 }
 0x676   : > { %v4590_v28 = vpop.eup %4589  ;;  %v1954_v6 = vsel %vm429_vm0, %v4588_v47, 0.0 }
 0x677   : > { %v4592_v26 = vpop.eup %4591  ;;  %v1955_v30 = vadd.f32 %v1954_v6, %v1953_v61  ;;  %v1959_v58 = vsel %vm429_vm0, %v4590_v28, 0.0 }
 0x678   : > { %v4594_v4 = vpop.eup %4593  ;;  %v1960_v0 = vadd.f32 %v1959_v58, %v1958_v18  ;;  %v1964_v12 = vsel %vm429_vm0, %v4592_v26, 0.0 }
 0x679   : > { %1956 = vadd.xlane.f32.xlu0 %v1955_v30  ;;  %v1965_v50 = vadd.f32 %v1964_v12, %v1963_v34  ;;  %v1969_v23 = vsel %vm429_vm0, %v4594_v4, 0.0 }
 0x67a   : > { %1961 = vadd.xlane.f32.xlu1 %v1960_v0  ;;  %v1970_v10 = vadd.f32 %v1969_v23, %v1968_v57  ;;  %v2017_v23 = vmul.f32 3.3333333, %v5611_v9 }
 0x67c   : > { %v2045_v19 = vmul.f32 1.442695, %v2017_v23 }
 0x67d   : > { %1966 = vadd.xlane.f32.xlu0 %v1965_v50  ;;  %v2016_v50 = vmul.f32 3.3333333, %v5607_v49 }
 0x67e   : > { %1971 = vadd.xlane.f32.xlu1 %v1970_v10 }
 0x67f   : > { %v2043_v29 = vmul.f32 1.442695, %v2016_v50 }
 0x6cd   : > { %v1937_v35 = vpop.xlane.xlu0 %1936 }
 0x6ce   : > { %v1973_v15 = vadd.f32 1e-20, %v1937_v35 }
 0x6d0   : > { %4595 = vlog2.f32 %v1973_v15  ;;  %v2018_v15 = vmul.f32 3.3333333, %v5614_v52 }
 0x6d1   : > { %4597 = vpow2.f32 %v2037_v45 }
 0x6d2   : > { %4599 = vpow2.f32 %v2039_v21  ;;  %v2047_v45 = vmul.f32 1.442695, %v2018_v15 }
 0x6d3   : > { %4601 = vpow2.f32 %v2041_v32  ;;  %v2020_v32 = vmul.f32 3.3333333, %v5622_v54 }
 0x6da   : > { %v4596_v46 = vpop.eup %4595 }
 0x6db   : > { %v1982_v24 = vmul.f32 0.6931472, %v4596_v46  ;;  %v6002_v18 = vpop.eup %4597 }
 0x6dc   : > { %v6004_v47 = vpop.eup %4599 }
 0x6dd   : > { %v1997_v62 = vsub.f32 %v5702_v1, %v1982_v24  ;;  %v6006_v34 = vpop.eup %4601 }
 0x6df   : > { %v2005_v41 = vmul.f32 0.3294172, %v1997_v62 }
 0x6e1   : > { %v2085_v33 = vsub.f32 0.0, %v2005_v41 }
 0x6e3   : > { %v2093_v59 = vmul.f32 3.3333333, %v2085_v33  ;;  %v2019_v33 = vmul.f32 3.3333333, %v5618_v11 }
 0x6e5   : > { %v2101_v38 = vmul.f32 1.442695, %v2093_v59 }
 0x6e7   : > { %4603 = vpow2.f32 %v2101_v38  ;;  %v2021_v38 = vmul.f32 3.3333333, %v5626_v37 }
 0x6e8   : > { %v1942_v61 = vpop.xlane.xlu1 %1941 }
 0x6e9   : > { %v1974_v8 = vadd.f32 1e-20, %v1942_v61  ;;  %v2022_v61 = vmul.f32 3.3333333, %v5629_v60 }
 0x6eb   : > { %4605 = vlog2.f32 %v1974_v8  ;;  %v2049_v8 = vmul.f32 1.442695, %v2019_v33  ;;  %v2027_v33 = vmul.f32 3.3333333, %v5648_v48 }
 0x6f1   : > { %v4604_v28 = vpop.eup %4603 }
 0x6f2   : > { %v2117_v6 = vmin.f32 %v6002_v18, %v4604_v28  ;;  %v2118_v57 = vmin.f32 %v6004_v47, %v4604_v28  ;;  %v2119_v26 = vmin.f32 %v6006_v34, %v4604_v28  ;;  %v2051_v28 = vmul.f32 1.442695, %v2020_v32 }
 0x6f4   : > { %v2141_v30 = vadd.f32 %v2118_v57, %v2117_v6  ;;  %v2142_v58 = vsel %vm429_vm0, %v2119_v26, 0.0  ;;  %v2053_v57 = vmul.f32 1.442695, %v2021_v38  ;;  %v2023_v26 = vmul.f32 3.3333333, %v5632_v20 }
 0x6f5   : > { %v4606_v4 = vpop.eup %4605 }
 0x6f6   : > { %v2143_v0 = vadd.f32 %v2142_v58, %v2141_v30  ;;  %v1984_v12 = vmul.f32 0.6931472, %v4606_v4  ;;  %v2024_v30 = vmul.f32 3.3333333, %v5636_v63  ;;  %v2055_v58 = vmul.f32 1.442695, %v2022_v61 }
 0x6f7   : > { %v1947_v35 = vpop.xlane.xlu0 %1946 }
 0x6f8   : > { %2144 = vadd.xlane.f32.xlu0 %v2143_v0  ;;  %v1998_v10 = vsub.f32 %v5705_v13, %v1984_v12  ;;  %v1975_v46 = vadd.f32 1e-20, %v1947_v35  ;;  %v1952_v55 = vpop.xlane.xlu1 %1951  ;;  %v2057_v35 = vmul.f32 1.442695, %v2023_v26  ;;  %v2059_v15 = vmul.f32 1.442695, %v2024_v30 }
 0x6f9   : > { %v1976_v62 = vadd.f32 1e-20, %v1952_v55 }
 0x6fa   : > { %v2006_v24 = vmul.f32 0.3294172, %v1998_v10  ;;  %4607 = vlog2.f32 %v1975_v46 }
 0x6fb   : > { %4609 = vlog2.f32 %v1976_v62 }
 0x6fc   : > { %v2086_v41 = vsub.f32 0.0, %v2006_v24  ;;  %4611 = vpow2.f32 %v2043_v29 }
 0x6fd   : > { %4613 = vpow2.f32 %v2045_v19 }
 0x6fe   : > { %v2094_v21 = vmul.f32 3.3333333, %v2086_v41  ;;  %4615 = vpow2.f32 %v2047_v45  ;;  %v2025_v45 = vmul.f32 3.3333333, %v5640_v2 }
 0x700   : > { %v2103_v59 = vmul.f32 1.442695, %v2094_v21  ;;  %v2026_v21 = vmul.f32 3.3333333, %v5644_v3 }
 0x702   : > { %4617 = vpow2.f32 %v2103_v59  ;;  %v2028_v59 = vmul.f32 3.3333333, %v5651_v7 }
 0x703   : > { %4619 = vpow2.f32 %v2049_v8 }
 0x704   : > { %v4608_v6 = vpop.eup %4607  ;;  %4621 = vpow2.f32 %v2051_v28 }
 0x705   : > { %v1986_v4 = vmul.f32 0.6931472, %v4608_v6  ;;  %v4610_v0 = vpop.eup %4609  ;;  %4623 = vpow2.f32 %v2053_v57 }
 0x706   : > { %v1988_v50 = vmul.f32 0.6931472, %v4610_v0  ;;  %v1957_v23 = vpop.xlane.xlu0 %1956  ;;  %v6023_v10 = vpop.eup %4611  ;;  %4625 = vpow2.f32 %v2055_v58 }
 0x707   : > { %v1999_v12 = vsub.f32 %v5708_v5, %v1986_v4  ;;  %v1977_v46 = vadd.f32 1e-20, %v1957_v23  ;;  %v1962_v24 = vpop.xlane.xlu1 %1961  ;;  %v6025_v55 = vpop.eup %4613 }
 0x708   : > { %v2000_v62 = vsub.f32 %v5714_v25, %v1988_v50  ;;  %v1978_v19 = vadd.f32 1e-20, %v1962_v24  ;;  %v6028_v41 = vpop.eup %4615 }
 0x709   : > { %v2007_v29 = vmul.f32 0.3294172, %v1999_v12  ;;  %4627 = vlog2.f32 %v1977_v46  ;;  %v2061_v12 = vmul.f32 1.442695, %v2025_v45  ;;  %v2029_v46 = vmul.f32 3.3333333, %v5655_v14 }
 0x70a   : > { %v2008_v61 = vmul.f32 0.3294172, %v2000_v62  ;;  %4629 = vlog2.f32 %v1978_v19  ;;  %v1967_v8 = vpop.xlane.xlu0 %1966  ;;  %v2063_v19 = vmul.f32 1.442695, %v2026_v21  ;;  %v2031_v45 = vmul.f32 3.3333333, %v5666_v27 }
 0x70b   : > { %v2087_v38 = vsub.f32 0.0, %v2007_v29  ;;  %v1979_v28 = vadd.f32 1e-20, %v1967_v8  ;;  %v1972_v6 = vpop.xlane.xlu1 %1971  ;;  %4631 = vpow2.f32 %v2057_v35  ;;  %v2033_v21 = vmul.f32 3.3333333, %v5675_v44 }
 0x70c   : > { %v4618_v32 = vpop.eup %4617  ;;  %v2088_v4 = vsub.f32 0.0, %v2008_v61  ;;  %v1980_v0 = vadd.f32 1e-20, %v1972_v6  ;;  %v2065_v61 = vmul.f32 1.442695, %v2027_v33 }
 0x70d   : > { %v2120_v57 = vmin.f32 %v6023_v10, %v4618_v32  ;;  %v2121_v26 = vmin.f32 %v6025_v55, %v4618_v32  ;;  %v2122_v30 = vmin.f32 %v6028_v41, %v4618_v32  ;;  %v2095_v58 = vmul.f32 3.3333333, %v2087_v38  ;;  %v6039_v62 = vpop.eup %4619 }
 0x70e   : > { %4633 = vlog2.f32 %v1979_v28  ;;  %v2096_v29 = vmul.f32 3.3333333, %v2088_v4  ;;  %v2030_v32 = vmul.f32 3.3333333, %v5662_v22  ;;  %v6042_v38 = vpop.eup %4621  ;;  %v2067_v6 = vmul.f32 1.442695, %v2028_v59 }
 0x70f   : > { %v2146_v50 = vadd.f32 %v2121_v26, %v2120_v57  ;;  %v2147_v23 = vsel %vm429_vm0, %v2122_v30, 0.0  ;;  %v2105_v24 = vmul.f32 1.442695, %v2095_v58  ;;  %4635 = vlog2.f32 %v1980_v0  ;;  %v6045_v28 = vpop.eup %4623 }
 0x710   : > { %4637 = vpow2.f32 %v2059_v15  ;;  %v2107_v8 = vmul.f32 1.442695, %v2096_v29  ;;  %v2032_v57 = vmul.f32 3.3333333, %v5671_v39  ;;  %v6048_v26 = vpop.eup %4625  ;;  %v2069_v15 = vmul.f32 1.442695, %v2029_v46 }
 0x711   : > { %v2148_v35 = vadd.f32 %v2147_v23, %v2146_v50  ;;  %4639 = vpow2.f32 %v2105_v24  ;;  %v2071_v33 = vmul.f32 1.442695, %v2030_v32  ;;  %v2073_v4 = vmul.f32 1.442695, %v2031_v45 }
 0x712   : > { %4641 = vpow2.f32 %v2061_v12  ;;  %v2034_v0 = vmul.f32 3.3333333, %v5679_v51  ;;  %v2075_v59 = vmul.f32 1.442695, %v2032_v57  ;;  %v2035_v12 = vmul.f32 3.3333333, %v5683_v53 }
 0x713   : > { %2149 = vadd.xlane.f32.xlu1 %v2148_v35  ;;  %4643 = vpow2.f32 %v2107_v8  ;;  %v4628_v30 = vpop.eup %4627  ;;  %v2077_v46 = vmul.f32 1.442695, %v2033_v21  ;;  %v2036_v29 = vmul.f32 3.3333333, %v5687_v56 }
 0x714   : > { %4645 = vpow2.f32 %v2063_v19  ;;  %v4630_v58 = vpop.eup %4629  ;;  %v1990_v50 = vmul.f32 0.6931472, %v4628_v30  ;;  %v2079_v45 = vmul.f32 1.442695, %v2034_v0  ;;  %v2081_v30 = vmul.f32 1.442695, %v2035_v12 }
 0x715   : > { %4647 = vpow2.f32 %v2065_v61  ;;  %v1992_v23 = vmul.f32 0.6931472, %v4630_v58  ;;  %v6053_v24 = vpop.eup %4631  ;;  %v2083_v56 = vmul.f32 1.442695, %v2036_v29 }
 0x716   : > { %4649 = vpow2.f32 %v2067_v6  ;;  %v2001_v19 = vsub.f32 %v5720_v16, %v1990_v50 }
 0x717   : > { %4651 = vpow2.f32 %v2069_v15  ;;  %v2002_v35 = vsub.f32 %v5722_v17, %v1992_v23 }
 0x718   : > { %v4634_v32 = vpop.eup %4633  ;;  %4653 = vpow2.f32 %v2071_v33  ;;  %v2009_v8 = vmul.f32 0.3294172, %v2001_v19 }
 0x719   : > { %v4636_v61 = vpop.eup %4635  ;;  %4655 = vpow2.f32 %v2073_v4  ;;  %v1994_v6 = vmul.f32 0.6931472, %v4634_v32  ;;  %v2010_v58 = vmul.f32 0.3294172, %v2002_v35 }
 0x71a   : > { %v6058_v57 = vpop.eup %4637  ;;  %4657 = vpow2.f32 %v2075_v59  ;;  %v1996_v15 = vmul.f32 0.6931472, %v4636_v61  ;;  %v2089_v53 = vsub.f32 0.0, %v2009_v8 }
 0x71b   : > { %v4640_v21 = vpop.eup %4639  ;;  %4659 = vpow2.f32 %v2077_v46  ;;  %v2003_v50 = vsub.f32 %v5730_v36, %v1994_v6  ;;  %v2090_v23 = vsub.f32 0.0, %v2010_v58 }
 0x71c   : > { %v6061_v33 = vpop.eup %4641  ;;  %v2004_v4 = vsub.f32 %v5732_v31, %v1996_v15  ;;  %v2123_v0 = vmin.f32 %v6039_v62, %v4640_v21  ;;  %v2124_v19 = vmin.f32 %v6042_v38, %v4640_v21  ;;  %4661 = vpow2.f32 %v2079_v45 }
 0x71d   : > { %v4644_v32 = vpop.eup %4643  ;;  %v2097_v59 = vmul.f32 3.3333333, %v2089_v53  ;;  %v2011_v12 = vmul.f32 0.3294172, %v2003_v50  ;;  %v2125_v35 = vmin.f32 %v6045_v28, %v4640_v21  ;;  %v2098_v29 = vmul.f32 3.3333333, %v2090_v23 }
 0x71e   : > { %v6067_v46 = vpop.eup %4645  ;;  %v2012_v61 = vmul.f32 0.3294172, %v2004_v4  ;;  %v2151_v8 = vadd.f32 %v2124_v19, %v2123_v0  ;;  %v2126_v6 = vmin.f32 %v6048_v26, %v4644_v32  ;;  %v2127_v39 = vmin.f32 %v6053_v24, %v4644_v32 }
 0x71f   : > { %v6070_v58 = vpop.eup %4647  ;;  %v2109_v15 = vmul.f32 1.442695, %v2097_v59  ;;  %v2091_v51 = vsub.f32 0.0, %v2011_v12  ;;  %v2152_v44 = vsel %vm429_vm0, %v2125_v35, 0.0  ;;  %v2111_v53 = vmul.f32 1.442695, %v2098_v29 }
 0x720   : > { %v6074_v45 = vpop.eup %4649  ;;  %v2092_v50 = vsub.f32 0.0, %v2012_v61  ;;  %v2153_v21 = vadd.f32 %v2152_v44, %v2151_v8  ;;  %v2128_v27 = vmin.f32 %v6058_v57, %v4644_v32  ;;  %v2156_v0 = vadd.f32 %v2127_v39, %v2126_v6 }
 0x721   : > { %v6077_v23 = vpop.eup %4651  ;;  %4663 = vpow2.f32 %v2109_v15  ;;  %v2099_v4 = vmul.f32 3.3333333, %v2091_v51 }
 0x722   : > { %v6079_v19 = vpop.eup %4653  ;;  %4665 = vpow2.f32 %v2111_v53  ;;  %v2100_v59 = vmul.f32 3.3333333, %v2092_v50  ;;  %2154 = vadd.xlane.f32.xlu0 %v2153_v21  ;;  %v2157_v12 = vsel %vm429_vm0, %v2128_v27, 0.0 }
 0x723   : > { %v6082_v35 = vpop.eup %4655  ;;  %4667 = vpow2.f32 %v2081_v30  ;;  %v2113_v29 = vmul.f32 1.442695, %v2099_v4  ;;  %v2158_v61 = vadd.f32 %v2157_v12, %v2156_v0 }
 0x724   : > { %v6084_v44 = vpop.eup %4657  ;;  %4669 = vpow2.f32 %v2083_v56  ;;  %v2115_v32 = vmul.f32 1.442695, %v2100_v59 }
 0x725   : > { %v6086_v8 = vpop.eup %4659  ;;  %4671 = vpow2.f32 %v2113_v29  ;;  %2159 = vadd.xlane.f32.xlu1 %v2158_v61 }
 0x726   : > { %4673 = vpow2.f32 %v2115_v32  ;;  %v6088_v39 = vpop.eup %4661 }
 0x72b   : > { %v4664_v51 = vpop.eup %4663 }
 0x72c   : > { %v4666_v6 = vpop.eup %4665  ;;  %v2129_v27 = vmin.f32 %v6061_v33, %v4664_v51  ;;  %v2130_v15 = vmin.f32 %v6067_v46, %v4664_v51  ;;  %v2131_v30 = vmin.f32 %v6070_v58, %v4664_v51 }
 0x72d   : > { %v6093_v53 = vpop.eup %4667  ;;  %v2132_v56 = vmin.f32 %v6074_v45, %v4666_v6  ;;  %v2133_v50 = vmin.f32 %v6077_v23, %v4666_v6  ;;  %v2134_v21 = vmin.f32 %v6079_v19, %v4666_v6 }
 0x72e   : > { %v6098_v4 = vpop.eup %4669  ;;  %v2161_v0 = vadd.f32 %v2130_v15, %v2129_v27  ;;  %v2162_v59 = vsel %vm429_vm0, %v2131_v30, 0.0 }
 0x72f   : > { %v4672_v12 = vpop.eup %4671  ;;  %v2166_v29 = vadd.f32 %v2133_v50, %v2132_v56  ;;  %v2167_v61 = vsel %vm429_vm0, %v2134_v21, 0.0 }
 0x730   : > { %v4674_v32 = vpop.eup %4673  ;;  %v2163_v22 = vadd.f32 %v2162_v59, %v2161_v0  ;;  %v2135_v51 = vmin.f32 %v6082_v35, %v4672_v12  ;;  %v2136_v14 = vmin.f32 %v6084_v44, %v4672_v12  ;;  %v2137_v7 = vmin.f32 %v6086_v8, %v4672_v12 }
 0x731   : > { %v2168_v48 = vadd.f32 %v2167_v61, %v2166_v29  ;;  %v2138_v6 = vmin.f32 %v6088_v39, %v4674_v32  ;;  %v2139_v3 = vmin.f32 %v6093_v53, %v4674_v32  ;;  %v2140_v27 = vmin.f32 %v6098_v4, %v4674_v32 }
 0x732   : > { %2164 = vadd.xlane.f32.xlu0 %v2163_v22  ;;  %v2171_v15 = vadd.f32 %v2136_v14, %v2135_v51  ;;  %v2172_v30 = vsel %vm429_vm0, %v2137_v7, 0.0 }
 0x733   : > { %2169 = vadd.xlane.f32.xlu1 %v2168_v48  ;;  %v2176_v56 = vadd.f32 %v2139_v3, %v2138_v6  ;;  %v2177_v50 = vsel %vm429_vm0, %v2140_v27, 0.0 }
 0x734   : > { %v2173_v21 = vadd.f32 %v2172_v30, %v2171_v15 }
 0x735   : > { %v2178_v0 = vadd.f32 %v2177_v50, %v2176_v56 }
 0x736   : > { %2174 = vadd.xlane.f32.xlu0 %v2173_v21 }
 0x737   : > { %2179 = vadd.xlane.f32.xlu1 %v2178_v0 }
 0x785   : > { %v2145_v59 = vpop.xlane.xlu0 %2144 }
 0x786   : > { %v2181_v12 = vadd.f32 1e-20, %v2145_v59 }
 0x788   : > { %4675 = vlog2.f32 %v2181_v12 }
 0x792   : > { %v4676_v29 = vpop.eup %4675 }
 0x793   : > { %v2190_v61 = vmul.f32 0.6931472, %v4676_v29 }
 0x795   : > { %v2205_v2 = vsub.f32 %v5702_v1, %v2190_v61 }
 0x797   : > { %v2213_v32 = vmul.f32 0.3, %v2205_v2 }
 0x799   : > { %v2221_v22 = vsub.f32 0.0, %v2213_v32 }
 0x79b   : > { %v2229_v14 = vmul.f32 3.3333333, %v2221_v22 }
 0x79d   : > { %v2237_v51 = vmul.f32 1.442695, %v2229_v14 }
 0x79f   : > { %4677 = vpow2.f32 %v2237_v51 }
 0x7a0   : > { %v2150_v48 = vpop.xlane.xlu1 %2149 }
 0x7a1   : > { %v2182_v3 = vadd.f32 1e-20, %v2150_v48 }
 0x7a3   : > { %4679 = vlog2.f32 %v2182_v3 }
 0x7a9   : > { %v4678_v7 = vpop.eup %4677 }
 0x7aa   : > { %v2253_v6 = vmin.f32 %v6002_v18, %v4678_v7  ;;  %v2254_v27 = vmin.f32 %v6004_v47, %v4678_v7  ;;  %v2255_v15 = vmin.f32 %v6006_v34, %v4678_v7 }
 0x7ac   : > { %v2277_v30 = vadd.f32 %v2254_v27, %v2253_v6  ;;  %v2278_v56 = vsel %vm429_vm0, %v2255_v15, 0.0 }
 0x7ad   : > { %v4680_v50 = vpop.eup %4679 }
 0x7ae   : > { %v2279_v21 = vadd.f32 %v2278_v56, %v2277_v30  ;;  %v2192_v2 = vmul.f32 0.6931472, %v4680_v50 }
 0x7af   : > { %v2155_v59 = vpop.xlane.xlu0 %2154 }
 0x7b0   : > { %2280 = vadd.xlane.f32.xlu0 %v2279_v21  ;;  %v2206_v0 = vsub.f32 %v5705_v13, %v2192_v2  ;;  %v2183_v12 = vadd.f32 1e-20, %v2155_v59 }
 0x7b2   : > { %v2214_v29 = vmul.f32 0.3, %v2206_v0  ;;  %4681 = vlog2.f32 %v2183_v12  ;;  %v2160_v61 = vpop.xlane.xlu1 %2159 }
 0x7b3   : > { %v2184_v22 = vadd.f32 1e-20, %v2160_v61 }
 0x7b4   : > { %v2222_v32 = vsub.f32 0.0, %v2214_v29 }
 0x7b5   : > { %4683 = vlog2.f32 %v2184_v22 }
 0x7b6   : > { %v2230_v14 = vmul.f32 3.3333333, %v2222_v32 }
 0x7b8   : > { %v2239_v51 = vmul.f32 1.442695, %v2230_v14 }
 0x7ba   : > { %4685 = vpow2.f32 %v2239_v51 }
 0x7bc   : > { %v4682_v48 = vpop.eup %4681 }
 0x7bd   : > { %v2194_v3 = vmul.f32 0.6931472, %v4682_v48 }
 0x7bf   : > { %v4684_v7 = vpop.eup %4683  ;;  %v2207_v6 = vsub.f32 %v5708_v5, %v2194_v3  ;;  %v2165_v27 = vpop.xlane.xlu0 %2164 }
 0x7c0   : > { %v2196_v15 = vmul.f32 0.6931472, %v4684_v7  ;;  %v2185_v30 = vadd.f32 1e-20, %v2165_v27  ;;  %v2170_v56 = vpop.xlane.xlu1 %2169 }
 0x7c1   : > { %v2215_v50 = vmul.f32 0.3, %v2207_v6  ;;  %v2186_v21 = vadd.f32 1e-20, %v2170_v56 }
 0x7c2   : > { %v2208_v2 = vsub.f32 %v5714_v25, %v2196_v15  ;;  %4687 = vlog2.f32 %v2185_v30 }
 0x7c3   : > { %v2223_v59 = vsub.f32 0.0, %v2215_v50  ;;  %4689 = vlog2.f32 %v2186_v21  ;;  %v2175_v12 = vpop.xlane.xlu0 %2174 }
 0x7c4   : > { %v4686_v0 = vpop.eup %4685  ;;  %v2216_v29 = vmul.f32 0.3, %v2208_v2  ;;  %v2187_v61 = vadd.f32 1e-20, %v2175_v12  ;;  %v2180_v32 = vpop.xlane.xlu1 %2179 }
 0x7c5   : > { %v2256_v22 = vmin.f32 %v6023_v10, %v4686_v0  ;;  %v2257_v14 = vmin.f32 %v6025_v55, %v4686_v0  ;;  %v2231_v51 = vmul.f32 3.3333333, %v2223_v59  ;;  %v2188_v48 = vadd.f32 1e-20, %v2180_v32 }
 0x7c6   : > { %v2258_v3 = vmin.f32 %v6028_v41, %v4686_v0  ;;  %v2224_v7 = vsub.f32 0.0, %v2216_v29  ;;  %4691 = vlog2.f32 %v2187_v61 }
 0x7c7   : > { %v2282_v6 = vadd.f32 %v2257_v14, %v2256_v22  ;;  %v2241_v27 = vmul.f32 1.442695, %v2231_v51  ;;  %4693 = vlog2.f32 %v2188_v48 }
 0x7c8   : > { %v2283_v15 = vsel %vm429_vm0, %v2258_v3, 0.0  ;;  %v2232_v30 = vmul.f32 3.3333333, %v2224_v7 }
 0x7c9   : > { %v2284_v56 = vadd.f32 %v2283_v15, %v2282_v6  ;;  %4695 = vpow2.f32 %v2241_v27 }
 0x7ca   : > { %v2243_v50 = vmul.f32 1.442695, %v2232_v30 }
 0x7cb   : > { %2285 = vadd.xlane.f32.xlu1 %v2284_v56 }
 0x7cc   : > { %v4688_v21 = vpop.eup %4687  ;;  %4697 = vpow2.f32 %v2243_v50 }
 0x7cd   : > { %v4690_v2 = vpop.eup %4689  ;;  %v2198_v12 = vmul.f32 0.6931472, %v4688_v21 }
 0x7ce   : > { %v2200_v59 = vmul.f32 0.6931472, %v4690_v2 }
 0x7cf   : > { %v2209_v32 = vsub.f32 %v5720_v16, %v2198_v12 }
 0x7d0   : > { %v4692_v0 = vpop.eup %4691  ;;  %v2210_v29 = vsub.f32 %v5722_v17, %v2200_v59 }
 0x7d1   : > { %v4694_v61 = vpop.eup %4693  ;;  %v2217_v22 = vmul.f32 0.3, %v2209_v32  ;;  %v2202_v14 = vmul.f32 0.6931472, %v4692_v0 }
 0x7d2   : > { %v2218_v51 = vmul.f32 0.3, %v2210_v29  ;;  %v2204_v48 = vmul.f32 0.6931472, %v4694_v61 }
 0x7d3   : > { %v4696_v3 = vpop.eup %4695  ;;  %v2225_v7 = vsub.f32 0.0, %v2217_v22  ;;  %v2211_v6 = vsub.f32 %v5730_v36, %v2202_v14 }
 0x7d4   : > { %v2226_v27 = vsub.f32 0.0, %v2218_v51  ;;  %v2212_v15 = vsub.f32 %v5732_v31, %v2204_v48  ;;  %v2259_v30 = vmin.f32 %v6039_v62, %v4696_v3  ;;  %v2260_v56 = vmin.f32 %v6042_v38, %v4696_v3 }
 0x7d5   : > { %v2233_v50 = vmul.f32 3.3333333, %v2225_v7  ;;  %v2219_v21 = vmul.f32 0.3, %v2211_v6  ;;  %v2261_v2 = vmin.f32 %v6045_v28, %v4696_v3 }
 0x7d6   : > { %v4698_v12 = vpop.eup %4697  ;;  %v2234_v59 = vmul.f32 3.3333333, %v2226_v27  ;;  %v2220_v32 = vmul.f32 0.3, %v2212_v15  ;;  %v2287_v0 = vadd.f32 %v2260_v56, %v2259_v30 }
 0x7d7   : > { %v2245_v29 = vmul.f32 1.442695, %v2233_v50  ;;  %v2227_v61 = vsub.f32 0.0, %v2219_v21  ;;  %v2288_v22 = vsel %vm429_vm0, %v2261_v2, 0.0  ;;  %v2262_v14 = vmin.f32 %v6048_v26, %v4698_v12 }
 0x7d8   : > { %v2247_v51 = vmul.f32 1.442695, %v2234_v59  ;;  %v2228_v48 = vsub.f32 0.0, %v2220_v32  ;;  %v2289_v63 = vadd.f32 %v2288_v22, %v2287_v0  ;;  %v2263_v20 = vmin.f32 %v6053_v24, %v4698_v12 }
 0x7d9   : > { %4699 = vpow2.f32 %v2245_v29  ;;  %v2235_v7 = vmul.f32 3.3333333, %v2227_v61  ;;  %v2264_v6 = vmin.f32 %v6058_v57, %v4698_v12 }
 0x7da   : > { %4701 = vpow2.f32 %v2247_v51  ;;  %v2236_v3 = vmul.f32 3.3333333, %v2228_v48  ;;  %2290 = vadd.xlane.f32.xlu0 %v2289_v63  ;;  %v2292_v27 = vadd.f32 %v2263_v20, %v2262_v14 }
 0x7db   : > { %v2249_v15 = vmul.f32 1.442695, %v2235_v7  ;;  %v2293_v30 = vsel %vm429_vm0, %v2264_v6, 0.0 }
 0x7dc   : > { %v2251_v56 = vmul.f32 1.442695, %v2236_v3  ;;  %v2294_v50 = vadd.f32 %v2293_v30, %v2292_v27 }
 0x7dd   : > { %4703 = vpow2.f32 %v2249_v15 }
 0x7de   : > { %4705 = vpow2.f32 %v2251_v56  ;;  %2295 = vadd.xlane.f32.xlu1 %v2294_v50 }
 0x7e3   : > { %v4700_v21 = vpop.eup %4699 }
 0x7e4   : > { %v4702_v2 = vpop.eup %4701  ;;  %v2265_v59 = vmin.f32 %v6061_v33, %v4700_v21  ;;  %v2266_v32 = vmin.f32 %v6067_v46, %v4700_v21  ;;  %v2267_v12 = vmin.f32 %v6070_v58, %v4700_v21 }
 0x7e5   : > { %v2268_v0 = vmin.f32 %v6074_v45, %v4702_v2  ;;  %v2269_v20 = vmin.f32 %v6077_v23, %v4702_v2  ;;  %v2270_v63 = vmin.f32 %v6079_v19, %v4702_v2 }
 0x7e6   : > { %v2297_v29 = vadd.f32 %v2266_v32, %v2265_v59  ;;  %v2298_v61 = vsel %vm429_vm0, %v2267_v12, 0.0 }
 0x7e7   : > { %v4704_v22 = vpop.eup %4703  ;;  %v2302_v14 = vadd.f32 %v2269_v20, %v2268_v0  ;;  %v2303_v51 = vsel %vm429_vm0, %v2270_v63, 0.0 }
 0x7e8   : > { %v4706_v48 = vpop.eup %4705  ;;  %v2299_v7 = vadd.f32 %v2298_v61, %v2297_v29  ;;  %v2271_v6 = vmin.f32 %v6082_v35, %v4704_v22  ;;  %v2272_v3 = vmin.f32 %v6084_v44, %v4704_v22  ;;  %v2273_v27 = vmin.f32 %v6086_v8, %v4704_v22 }
 0x7e9   : > { %v2304_v15 = vadd.f32 %v2303_v51, %v2302_v14  ;;  %v2274_v30 = vmin.f32 %v6088_v39, %v4706_v48  ;;  %v2275_v56 = vmin.f32 %v6093_v53, %v4706_v48  ;;  %v2276_v50 = vmin.f32 %v6098_v4, %v4706_v48 }
 0x7ea   : > { %2300 = vadd.xlane.f32.xlu0 %v2299_v7  ;;  %v2307_v21 = vadd.f32 %v2272_v3, %v2271_v6  ;;  %v2308_v2 = vsel %vm429_vm0, %v2273_v27, 0.0 }
 0x7eb   : > { %2305 = vadd.xlane.f32.xlu1 %v2304_v15  ;;  %v2312_v59 = vadd.f32 %v2275_v56, %v2274_v30  ;;  %v2313_v32 = vsel %vm429_vm0, %v2276_v50, 0.0 }
 0x7ec   : > { %v2309_v12 = vadd.f32 %v2308_v2, %v2307_v21 }
 0x7ed   : > { %v2314_v0 = vadd.f32 %v2313_v32, %v2312_v59 }
 0x7ee   : > { %2310 = vadd.xlane.f32.xlu0 %v2309_v12 }
 0x7ef   : > { %2315 = vadd.xlane.f32.xlu1 %v2314_v0 }
 0x83d   : > { %v2281_v20 = vpop.xlane.xlu0 %2280 }
 0x83e   : > { %v2317_v63 = vadd.f32 1e-20, %v2281_v20 }
 0x840   : > { %4707 = vlog2.f32 %v2317_v63 }
 0x84a   : > { %v4708_v29 = vpop.eup %4707 }
 0x84b   : > { %v2326_v61 = vmul.f32 0.6931472, %v4708_v29 }
 0x84d   : > { %v2341_v22 = vsub.f32 %v5702_v1, %v2326_v61 }
 0x84f   : > { %v2349_v14 = vmul.f32 0.3, %v2341_v22 }
 0x851   : > { %v2357_v51 = vsub.f32 0.0, %v2349_v14 }
 0x853   : > { %v2365_v48 = vmul.f32 3.3333333, %v2357_v51 }
 0x855   : > { %v2373_v7 = vmul.f32 1.442695, %v2365_v48 }
 0x857   : > { %4709 = vpow2.f32 %v2373_v7 }
 0x858   : > { %v2286_v6 = vpop.xlane.xlu1 %2285 }
 0x859   : > { %v2318_v3 = vadd.f32 1e-20, %v2286_v6 }
 0x85b   : > { %4711 = vlog2.f32 %v2318_v3 }
 0x861   : > { %v4710_v27 = vpop.eup %4709 }
 0x862   : > { %v2389_v15 = vmin.f32 %v6002_v18, %v4710_v27  ;;  %v2390_v30 = vmin.f32 %v6004_v47, %v4710_v27  ;;  %v2391_v56 = vmin.f32 %v6006_v34, %v4710_v27 }
 0x864   : > { %v2413_v50 = vadd.f32 %v2390_v30, %v2389_v15  ;;  %v2414_v21 = vsel %vm429_vm0, %v2391_v56, 0.0 }
 0x865   : > { %v4712_v2 = vpop.eup %4711 }
 0x866   : > { %v2415_v59 = vadd.f32 %v2414_v21, %v2413_v50  ;;  %v2328_v32 = vmul.f32 0.6931472, %v4712_v2 }
 0x867   : > { %v2291_v0 = vpop.xlane.xlu0 %2290 }
 0x868   : > { %2416 = vadd.xlane.f32.xlu0 %v2415_v59  ;;  %v2342_v12 = vsub.f32 %v5705_v13, %v2328_v32  ;;  %v2319_v20 = vadd.f32 1e-20, %v2291_v0 }
 0x86a   : > { %v2350_v63 = vmul.f32 0.3, %v2342_v12  ;;  %4713 = vlog2.f32 %v2319_v20 }
 0x86b   : > { %v2296_v61 = vpop.xlane.xlu1 %2295 }
 0x86c   : > { %v2358_v29 = vsub.f32 0.0, %v2350_v63  ;;  %v2320_v22 = vadd.f32 1e-20, %v2296_v61 }
 0x86e   : > { %v2366_v14 = vmul.f32 3.3333333, %v2358_v29  ;;  %4715 = vlog2.f32 %v2320_v22 }
 0x870   : > { %v2375_v51 = vmul.f32 1.442695, %v2366_v14 }
 0x872   : > { %4717 = vpow2.f32 %v2375_v51 }
 0x874   : > { %v4714_v48 = vpop.eup %4713 }
 0x875   : > { %v2330_v7 = vmul.f32 0.6931472, %v4714_v48 }
 0x877   : > { %v2343_v6 = vsub.f32 %v5708_v5, %v2330_v7  ;;  %v2301_v3 = vpop.xlane.xlu0 %2300 }
 0x878   : > { %v4716_v27 = vpop.eup %4715  ;;  %v2321_v15 = vadd.f32 1e-20, %v2301_v3  ;;  %v2306_v30 = vpop.xlane.xlu1 %2305 }
 0x879   : > { %v2351_v56 = vmul.f32 0.3, %v2343_v6  ;;  %v2332_v50 = vmul.f32 0.6931472, %v4716_v27  ;;  %v2322_v21 = vadd.f32 1e-20, %v2306_v30 }
 0x87a   : > { %4719 = vlog2.f32 %v2321_v15 }
 0x87b   : > { %v2359_v59 = vsub.f32 0.0, %v2351_v56  ;;  %v2344_v32 = vsub.f32 %v5714_v25, %v2332_v50  ;;  %4721 = vlog2.f32 %v2322_v21  ;;  %v2311_v12 = vpop.xlane.xlu0 %2310 }
 0x87c   : > { %v4718_v2 = vpop.eup %4717  ;;  %v2323_v0 = vadd.f32 1e-20, %v2311_v12  ;;  %v2316_v20 = vpop.xlane.xlu1 %2315 }
 0x87d   : > { %v2392_v63 = vmin.f32 %v6023_v10, %v4718_v2  ;;  %v2393_v29 = vmin.f32 %v6025_v55, %v4718_v2  ;;  %v2394_v61 = vmin.f32 %v6028_v41, %v4718_v2  ;;  %v2367_v22 = vmul.f32 3.3333333, %v2359_v59 }
 0x87e   : > { %v2352_v14 = vmul.f32 0.3, %v2344_v32  ;;  %v2324_v51 = vadd.f32 1e-20, %v2316_v20  ;;  %4723 = vlog2.f32 %v2323_v0 }
 0x87f   : > { %v2418_v48 = vadd.f32 %v2393_v29, %v2392_v63  ;;  %v2419_v7 = vsel %vm429_vm0, %v2394_v61, 0.0  ;;  %v2377_v6 = vmul.f32 1.442695, %v2367_v22 }
 0x880   : > { %v2360_v3 = vsub.f32 0.0, %v2352_v14  ;;  %4725 = vlog2.f32 %v2324_v51 }
 0x881   : > { %v2420_v27 = vadd.f32 %v2419_v7, %v2418_v48  ;;  %4727 = vpow2.f32 %v2377_v6 }
 0x882   : > { %v2368_v15 = vmul.f32 3.3333333, %v2360_v3 }
 0x883   : > { %2421 = vadd.xlane.f32.xlu1 %v2420_v27 }
 0x884   : > { %v2379_v30 = vmul.f32 1.442695, %v2368_v15  ;;  %v4720_v56 = vpop.eup %4719 }
 0x885   : > { %v4722_v50 = vpop.eup %4721  ;;  %v2334_v21 = vmul.f32 0.6931472, %v4720_v56 }
 0x886   : > { %4729 = vpow2.f32 %v2379_v30  ;;  %v2336_v2 = vmul.f32 0.6931472, %v4722_v50 }
 0x887   : > { %v2345_v59 = vsub.f32 %v5720_v16, %v2334_v21 }
 0x888   : > { %v4724_v32 = vpop.eup %4723  ;;  %v2346_v12 = vsub.f32 %v5722_v17, %v2336_v2 }
 0x889   : > { %v2353_v20 = vmul.f32 0.3, %v2345_v59  ;;  %v2338_v63 = vmul.f32 0.6931472, %v4724_v32 }
 0x88a   : > { %v4726_v0 = vpop.eup %4725  ;;  %v2354_v29 = vmul.f32 0.3, %v2346_v12 }
 0x88b   : > { %v2340_v61 = vmul.f32 0.6931472, %v4726_v0  ;;  %v4728_v22 = vpop.eup %4727  ;;  %v2361_v14 = vsub.f32 0.0, %v2353_v20  ;;  %v2347_v51 = vsub.f32 %v5730_v36, %v2338_v63 }
 0x88c   : > { %v2362_v48 = vsub.f32 0.0, %v2354_v29  ;;  %v2395_v6 = vmin.f32 %v6039_v62, %v4728_v22  ;;  %v2396_v3 = vmin.f32 %v6042_v38, %v4728_v22  ;;  %v2397_v30 = vmin.f32 %v6045_v28, %v4728_v22 }
 0x88d   : > { %v2348_v7 = vsub.f32 %v5732_v31, %v2340_v61  ;;  %v2369_v27 = vmul.f32 3.3333333, %v2361_v14  ;;  %v2355_v15 = vmul.f32 0.3, %v2347_v51 }
 0x88e   : > { %v2370_v56 = vmul.f32 3.3333333, %v2362_v48  ;;  %v2423_v21 = vadd.f32 %v2396_v3, %v2395_v6  ;;  %v2424_v12 = vsel %vm429_vm0, %v2397_v30, 0.0 }
 0x88f   : > { %v2356_v50 = vmul.f32 0.3, %v2348_v7  ;;  %v2381_v59 = vmul.f32 1.442695, %v2369_v27  ;;  %v2363_v32 = vsub.f32 0.0, %v2355_v15 }
 0x890   : > { %v4730_v2 = vpop.eup %4729  ;;  %v2383_v0 = vmul.f32 1.442695, %v2370_v56  ;;  %v2425_v63 = vadd.f32 %v2424_v12, %v2423_v21 }
 0x891   : > { %v2364_v20 = vsub.f32 0.0, %v2356_v50  ;;  %v2398_v29 = vmin.f32 %v6048_v26, %v4730_v2  ;;  %4731 = vpow2.f32 %v2381_v59  ;;  %v2371_v61 = vmul.f32 3.3333333, %v2363_v32 }
 0x892   : > { %v2399_v14 = vmin.f32 %v6053_v24, %v4730_v2  ;;  %v2400_v51 = vmin.f32 %v6058_v57, %v4730_v2  ;;  %4733 = vpow2.f32 %v2383_v0  ;;  %2426 = vadd.xlane.f32.xlu0 %v2425_v63 }
 0x893   : > { %v2372_v22 = vmul.f32 3.3333333, %v2364_v20  ;;  %v2385_v48 = vmul.f32 1.442695, %v2371_v61 }
 0x894   : > { %v2428_v7 = vadd.f32 %v2399_v14, %v2398_v29  ;;  %v2429_v6 = vsel %vm429_vm0, %v2400_v51, 0.0 }
 0x895   : > { %v2387_v3 = vmul.f32 1.442695, %v2372_v22  ;;  %4735 = vpow2.f32 %v2385_v48 }
 0x896   : > { %v2430_v27 = vadd.f32 %v2429_v6, %v2428_v7 }
 0x897   : > { %4737 = vpow2.f32 %v2387_v3 }
 0x898   : > { %2431 = vadd.xlane.f32.xlu1 %v2430_v27 }
 0x89b   : > { %v4732_v15 = vpop.eup %4731 }
 0x89c   : > { %v4734_v30 = vpop.eup %4733  ;;  %v2401_v56 = vmin.f32 %v6061_v33, %v4732_v15  ;;  %v2402_v50 = vmin.f32 %v6067_v46, %v4732_v15  ;;  %v2403_v21 = vmin.f32 %v6070_v58, %v4732_v15 }
 0x89d   : > { %v2404_v2 = vmin.f32 %v6074_v45, %v4734_v30  ;;  %v2405_v59 = vmin.f32 %v6077_v23, %v4734_v30  ;;  %v2406_v32 = vmin.f32 %v6079_v19, %v4734_v30 }
 0x89e   : > { %v2433_v12 = vadd.f32 %v2402_v50, %v2401_v56  ;;  %v2434_v0 = vsel %vm429_vm0, %v2403_v21, 0.0 }
 0x89f   : > { %v4736_v20 = vpop.eup %4735  ;;  %v2438_v63 = vadd.f32 %v2405_v59, %v2404_v2  ;;  %v2439_v29 = vsel %vm429_vm0, %v2406_v32, 0.0 }
 0x8a0   : > { %v2435_v14 = vadd.f32 %v2434_v0, %v2433_v12  ;;  %v2407_v51 = vmin.f32 %v6082_v35, %v4736_v20  ;;  %v2408_v22 = vmin.f32 %v6084_v44, %v4736_v20  ;;  %v2409_v48 = vmin.f32 %v6086_v8, %v4736_v20 }
 0x8a1   : > { %v4738_v61 = vpop.eup %4737  ;;  %v2440_v7 = vadd.f32 %v2439_v29, %v2438_v63 }
 0x8a2   : > { %v2410_v6 = vmin.f32 %v6088_v39, %v4738_v61  ;;  %v2411_v3 = vmin.f32 %v6093_v53, %v4738_v61  ;;  %v2412_v27 = vmin.f32 %v6098_v4, %v4738_v61  ;;  %2436 = vadd.xlane.f32.xlu0 %v2435_v14  ;;  %v2443_v15 = vadd.f32 %v2408_v22, %v2407_v51 }
 0x8a3   : > { %v2444_v30 = vsel %vm429_vm0, %v2409_v48, 0.0  ;;  %2441 = vadd.xlane.f32.xlu1 %v2440_v7 }
 0x8a4   : > { %v2448_v56 = vadd.f32 %v2411_v3, %v2410_v6  ;;  %v2449_v50 = vsel %vm429_vm0, %v2412_v27, 0.0  ;;  %v2445_v21 = vadd.f32 %v2444_v30, %v2443_v15 }
 0x8a6   : > { %v2450_v2 = vadd.f32 %v2449_v50, %v2448_v56  ;;  %2446 = vadd.xlane.f32.xlu0 %v2445_v21 }
 0x8a8   : > { %2451 = vadd.xlane.f32.xlu1 %v2450_v2 }
 0x8f5   : > { %v2417_v59 = vpop.xlane.xlu0 %2416 }
 0x8f6   : > { %v2453_v32 = vadd.f32 1e-20, %v2417_v59 }
 0x8f8   : > { %4739 = vlog2.f32 %v2453_v32 }
 0x902   : > { %v4740_v12 = vpop.eup %4739 }
 0x903   : > { %v2462_v0 = vmul.f32 0.6931472, %v4740_v12 }
 0x905   : > { %v2477_v20 = vsub.f32 %v5702_v1, %v2462_v0 }
 0x907   : > { %v2485_v63 = vmul.f32 0.3, %v2477_v20 }
 0x909   : > { %v2493_v29 = vsub.f32 0.0, %v2485_v63 }
 0x90b   : > { %v2501_v61 = vmul.f32 3.3333333, %v2493_v29 }
 0x90d   : > { %v2509_v14 = vmul.f32 1.442695, %v2501_v61 }
 0x90f   : > { %4741 = vpow2.f32 %v2509_v14 }
 0x910   : > { %v2422_v51 = vpop.xlane.xlu1 %2421 }
 0x911   : > { %v2454_v22 = vadd.f32 1e-20, %v2422_v51 }
 0x913   : > { %4743 = vlog2.f32 %v2454_v22 }
 0x919   : > { %v4742_v48 = vpop.eup %4741 }
 0x91a   : > { %v2525_v7 = vmin.f32 %v6002_v18, %v4742_v48  ;;  %v2526_v6 = vmin.f32 %v6004_v47, %v4742_v48  ;;  %v2527_v3 = vmin.f32 %v6006_v34, %v4742_v48 }
 0x91c   : > { %v2549_v27 = vadd.f32 %v2526_v6, %v2525_v7  ;;  %v2550_v15 = vsel %vm429_vm0, %v2527_v3, 0.0 }
 0x91d   : > { %v4744_v30 = vpop.eup %4743 }
 0x91e   : > { %v2551_v56 = vadd.f32 %v2550_v15, %v2549_v27  ;;  %v2464_v50 = vmul.f32 0.6931472, %v4744_v30 }
 0x91f   : > { %v2427_v2 = vpop.xlane.xlu0 %2426 }
 0x920   : > { %2552 = vadd.xlane.f32.xlu0 %v2551_v56  ;;  %v2478_v21 = vsub.f32 %v5705_v13, %v2464_v50  ;;  %v2455_v59 = vadd.f32 1e-20, %v2427_v2 }
 0x922   : > { %v2486_v32 = vmul.f32 0.3, %v2478_v21  ;;  %4745 = vlog2.f32 %v2455_v59 }
 0x924   : > { %v2494_v12 = vsub.f32 0.0, %v2486_v32 }
 0x925   : > { %v2432_v0 = vpop.xlane.xlu1 %2431 }
 0x926   : > { %v2502_v20 = vmul.f32 3.3333333, %v2494_v12  ;;  %v2456_v63 = vadd.f32 1e-20, %v2432_v0 }
 0x928   : > { %v2511_v29 = vmul.f32 1.442695, %v2502_v20  ;;  %4747 = vlog2.f32 %v2456_v63 }
 0x92a   : > { %4749 = vpow2.f32 %v2511_v29 }
 0x92c   : > { %v4746_v61 = vpop.eup %4745 }
 0x92d   : > { %v2466_v14 = vmul.f32 0.6931472, %v4746_v61 }
 0x92f   : > { %v2479_v51 = vsub.f32 %v5708_v5, %v2466_v14  ;;  %v2437_v22 = vpop.xlane.xlu0 %2436 }
 0x930   : > { %v2457_v48 = vadd.f32 1e-20, %v2437_v22  ;;  %v2442_v7 = vpop.xlane.xlu1 %2441 }
 0x931   : > { %v2487_v3 = vmul.f32 0.3, %v2479_v51  ;;  %v2458_v27 = vadd.f32 1e-20, %v2442_v7 }
 0x932   : > { %v4748_v6 = vpop.eup %4747  ;;  %4751 = vlog2.f32 %v2457_v48 }
 0x933   : > { %v2468_v15 = vmul.f32 0.6931472, %v4748_v6  ;;  %v2495_v56 = vsub.f32 0.0, %v2487_v3  ;;  %4753 = vlog2.f32 %v2458_v27  ;;  %v2447_v50 = vpop.xlane.xlu0 %2446 }
 0x934   : > { %v4750_v30 = vpop.eup %4749  ;;  %v2459_v2 = vadd.f32 1e-20, %v2447_v50 }
 0x935   : > { %v2480_v21 = vsub.f32 %v5714_v25, %v2468_v15  ;;  %v2452_v59 = vpop.xlane.xlu1 %2451  ;;  %v2528_v32 = vmin.f32 %v6023_v10, %v4750_v30  ;;  %v2529_v12 = vmin.f32 %v6025_v55, %v4750_v30  ;;  %v2503_v0 = vmul.f32 3.3333333, %v2495_v56 }
 0x936   : > { %v2460_v20 = vadd.f32 1e-20, %v2452_v59  ;;  %v2530_v63 = vmin.f32 %v6028_v41, %v4750_v30  ;;  %4755 = vlog2.f32 %v2459_v2 }
 0x937   : > { %v2488_v29 = vmul.f32 0.3, %v2480_v21  ;;  %v2554_v61 = vadd.f32 %v2529_v12, %v2528_v32  ;;  %v2513_v14 = vmul.f32 1.442695, %v2503_v0 }
 0x938   : > { %4757 = vlog2.f32 %v2460_v20  ;;  %v2555_v51 = vsel %vm429_vm0, %v2530_v63, 0.0 }
 0x939   : > { %v2496_v22 = vsub.f32 0.0, %v2488_v29  ;;  %v2556_v48 = vadd.f32 %v2555_v51, %v2554_v61  ;;  %4759 = vpow2.f32 %v2513_v14 }
 0x93b   : > { %v2504_v7 = vmul.f32 3.3333333, %v2496_v22  ;;  %2557 = vadd.xlane.f32.xlu1 %v2556_v48 }
 0x93c   : > { %v4752_v6 = vpop.eup %4751 }
 0x93d   : > { %v2515_v3 = vmul.f32 1.442695, %v2504_v7  ;;  %v4754_v27 = vpop.eup %4753  ;;  %v2470_v15 = vmul.f32 0.6931472, %v4752_v6 }
 0x93e   : > { %v2472_v56 = vmul.f32 0.6931472, %v4754_v27 }
 0x93f   : > { %4761 = vpow2.f32 %v2515_v3  ;;  %v2481_v30 = vsub.f32 %v5720_v16, %v2470_v15 }
 0x940   : > { %v4756_v50 = vpop.eup %4755  ;;  %v2482_v21 = vsub.f32 %v5722_v17, %v2472_v56 }
 0x941   : > { %v2489_v59 = vmul.f32 0.3, %v2481_v30  ;;  %v2474_v32 = vmul.f32 0.6931472, %v4756_v50 }
 0x942   : > { %v4758_v2 = vpop.eup %4757  ;;  %v2490_v12 = vmul.f32 0.3, %v2482_v21 }
 0x943   : > { %v2476_v0 = vmul.f32 0.6931472, %v4758_v2  ;;  %v4760_v20 = vpop.eup %4759  ;;  %v2497_v63 = vsub.f32 0.0, %v2489_v59  ;;  %v2483_v29 = vsub.f32 %v5730_v36, %v2474_v32 }
 0x944   : > { %v2498_v61 = vsub.f32 0.0, %v2490_v12  ;;  %v2531_v51 = vmin.f32 %v6039_v62, %v4760_v20  ;;  %v2532_v22 = vmin.f32 %v6042_v38, %v4760_v20  ;;  %v2533_v6 = vmin.f32 %v6045_v28, %v4760_v20 }
 0x945   : > { %v2484_v14 = vsub.f32 %v5732_v31, %v2476_v0  ;;  %v2505_v48 = vmul.f32 3.3333333, %v2497_v63  ;;  %v2491_v7 = vmul.f32 0.3, %v2483_v29 }
 0x946   : > { %v2506_v3 = vmul.f32 3.3333333, %v2498_v61  ;;  %v2559_v15 = vadd.f32 %v2532_v22, %v2531_v51  ;;  %v2560_v50 = vsel %vm429_vm0, %v2533_v6, 0.0 }
 0x947   : > { %v2492_v27 = vmul.f32 0.3, %v2484_v14  ;;  %v2517_v56 = vmul.f32 1.442695, %v2505_v48  ;;  %v2499_v30 = vsub.f32 0.0, %v2491_v7 }
 0x948   : > { %v2519_v2 = vmul.f32 1.442695, %v2506_v3  ;;  %v2561_v32 = vadd.f32 %v2560_v50, %v2559_v15 }
 0x949   : > { %v4762_v21 = vpop.eup %4761  ;;  %v2500_v59 = vsub.f32 0.0, %v2492_v27  ;;  %4763 = vpow2.f32 %v2517_v56  ;;  %v2507_v12 = vmul.f32 3.3333333, %v2499_v30 }
 0x94a   : > { %v2534_v0 = vmin.f32 %v6048_v26, %v4762_v21  ;;  %v2535_v63 = vmin.f32 %v6053_v24, %v4762_v21  ;;  %4765 = vpow2.f32 %v2519_v2  ;;  %2562 = vadd.xlane.f32.xlu0 %v2561_v32  ;;  %v2536_v20 = vmin.f32 %v6058_v57, %v4762_v21 }
 0x94b   : > { %v2508_v29 = vmul.f32 3.3333333, %v2500_v59  ;;  %v2521_v61 = vmul.f32 1.442695, %v2507_v12 }
 0x94c   : > { %v2564_v14 = vadd.f32 %v2535_v63, %v2534_v0  ;;  %v2565_v22 = vsel %vm429_vm0, %v2536_v20, 0.0 }
 0x94d   : > { %v2523_v51 = vmul.f32 1.442695, %v2508_v29  ;;  %4767 = vpow2.f32 %v2521_v61 }
 0x94e   : > { %v2566_v48 = vadd.f32 %v2565_v22, %v2564_v14 }
 0x94f   : > { %4769 = vpow2.f32 %v2523_v51 }
 0x950   : > { %2567 = vadd.xlane.f32.xlu1 %v2566_v48 }
 0x953   : > { %v4764_v7 = vpop.eup %4763 }
 0x954   : > { %v4766_v6 = vpop.eup %4765  ;;  %v2537_v3 = vmin.f32 %v6061_v33, %v4764_v7  ;;  %v2538_v27 = vmin.f32 %v6067_v46, %v4764_v7  ;;  %v2539_v15 = vmin.f32 %v6070_v58, %v4764_v7 }
 0x955   : > { %v2540_v56 = vmin.f32 %v6074_v45, %v4766_v6  ;;  %v2541_v30 = vmin.f32 %v6077_v23, %v4766_v6  ;;  %v2542_v50 = vmin.f32 %v6079_v19, %v4766_v6 }
 0x956   : > { %v2569_v21 = vadd.f32 %v2538_v27, %v2537_v3  ;;  %v2570_v2 = vsel %vm429_vm0, %v2539_v15, 0.0 }
 0x957   : > { %v4768_v59 = vpop.eup %4767  ;;  %v2574_v32 = vadd.f32 %v2541_v30, %v2540_v56  ;;  %v2575_v12 = vsel %vm429_vm0, %v2542_v50, 0.0 }
 0x958   : > { %v2571_v63 = vadd.f32 %v2570_v2, %v2569_v21  ;;  %v2543_v29 = vmin.f32 %v6082_v35, %v4768_v59  ;;  %v2544_v20 = vmin.f32 %v6084_v44, %v4768_v59  ;;  %v2545_v61 = vmin.f32 %v6086_v8, %v4768_v59 }
 0x959   : > { %v4770_v0 = vpop.eup %4769  ;;  %v2576_v14 = vadd.f32 %v2575_v12, %v2574_v32 }
 0x95a   : > { %v2546_v51 = vmin.f32 %v6088_v39, %v4770_v0  ;;  %v2547_v22 = vmin.f32 %v6093_v53, %v4770_v0  ;;  %v2548_v48 = vmin.f32 %v6098_v4, %v4770_v0  ;;  %2572 = vadd.xlane.f32.xlu0 %v2571_v63  ;;  %v2579_v7 = vadd.f32 %v2544_v20, %v2543_v29 }
 0x95b   : > { %v2580_v6 = vsel %vm429_vm0, %v2545_v61, 0.0  ;;  %2577 = vadd.xlane.f32.xlu1 %v2576_v14 }
 0x95c   : > { %v2584_v3 = vadd.f32 %v2547_v22, %v2546_v51  ;;  %v2585_v27 = vsel %vm429_vm0, %v2548_v48, 0.0  ;;  %v2581_v15 = vadd.f32 %v2580_v6, %v2579_v7 }
 0x95e   : > { %v2586_v56 = vadd.f32 %v2585_v27, %v2584_v3  ;;  %2582 = vadd.xlane.f32.xlu0 %v2581_v15 }
 0x960   : > { %2587 = vadd.xlane.f32.xlu1 %v2586_v56 }
 0x9ad   : > { %v2553_v30 = vpop.xlane.xlu0 %2552 }
 0x9ae   : > { %v2589_v50 = vadd.f32 1e-20, %v2553_v30 }
 0x9b0   : > { %4771 = vlog2.f32 %v2589_v50 }
 0x9ba   : > { %v4772_v21 = vpop.eup %4771 }
 0x9bb   : > { %v2598_v2 = vmul.f32 0.6931472, %v4772_v21 }
 0x9bd   : > { %v2613_v59 = vsub.f32 %v5702_v1, %v2598_v2 }
 0x9bf   : > { %v2621_v32 = vmul.f32 0.3, %v2613_v59 }
 0x9c1   : > { %v2629_v12 = vsub.f32 0.0, %v2621_v32 }
 0x9c3   : > { %v2637_v0 = vmul.f32 3.3333333, %v2629_v12 }
 0x9c5   : > { %v2645_v63 = vmul.f32 1.442695, %v2637_v0 }
 0x9c7   : > { %4773 = vpow2.f32 %v2645_v63 }
 0x9c8   : > { %v2558_v29 = vpop.xlane.xlu1 %2557 }
 0x9c9   : > { %v2590_v20 = vadd.f32 1e-20, %v2558_v29 }
 0x9cb   : > { %4775 = vlog2.f32 %v2590_v20 }
 0x9d1   : > { %v4774_v61 = vpop.eup %4773 }
 0x9d2   : > { %v2661_v14 = vmin.f32 %v6002_v18, %v4774_v61  ;;  %v2662_v51 = vmin.f32 %v6004_v47, %v4774_v61  ;;  %v2663_v22 = vmin.f32 %v6006_v34, %v4774_v61 }
 0x9d4   : > { %v2685_v48 = vadd.f32 %v2662_v51, %v2661_v14  ;;  %v2686_v7 = vsel %vm429_vm0, %v2663_v22, 0.0 }
 0x9d5   : > { %v4776_v6 = vpop.eup %4775 }
 0x9d6   : > { %v2687_v3 = vadd.f32 %v2686_v7, %v2685_v48  ;;  %v2600_v27 = vmul.f32 0.6931472, %v4776_v6 }
 0x9d7   : > { %v2563_v56 = vpop.xlane.xlu0 %2562 }
 0x9d8   : > { %2688 = vadd.xlane.f32.xlu0 %v2687_v3  ;;  %v2614_v15 = vsub.f32 %v5705_v13, %v2600_v27  ;;  %v2591_v30 = vadd.f32 1e-20, %v2563_v56 }
 0x9da   : > { %v2622_v50 = vmul.f32 0.3, %v2614_v15  ;;  %4777 = vlog2.f32 %v2591_v30 }
 0x9dc   : > { %v2630_v21 = vsub.f32 0.0, %v2622_v50 }
 0x9dd   : > { %v2568_v2 = vpop.xlane.xlu1 %2567 }
 0x9de   : > { %v2638_v59 = vmul.f32 3.3333333, %v2630_v21  ;;  %v2592_v32 = vadd.f32 1e-20, %v2568_v2 }
 0x9e0   : > { %v2647_v12 = vmul.f32 1.442695, %v2638_v59  ;;  %4779 = vlog2.f32 %v2592_v32 }
 0x9e2   : > { %4781 = vpow2.f32 %v2647_v12 }
 0x9e4   : > { %v4778_v0 = vpop.eup %4777 }
 0x9e5   : > { %v2602_v63 = vmul.f32 0.6931472, %v4778_v0 }
 0x9e7   : > { %v2615_v29 = vsub.f32 %v5708_v5, %v2602_v63  ;;  %v2573_v20 = vpop.xlane.xlu0 %2572 }
 0x9e8   : > { %v2593_v61 = vadd.f32 1e-20, %v2573_v20  ;;  %v2578_v14 = vpop.xlane.xlu1 %2577 }
 0x9e9   : > { %v2623_v22 = vmul.f32 0.3, %v2615_v29  ;;  %v2594_v48 = vadd.f32 1e-20, %v2578_v14 }
 0x9ea   : > { %v4780_v51 = vpop.eup %4779  ;;  %4783 = vlog2.f32 %v2593_v61 }
 0x9eb   : > { %v2604_v7 = vmul.f32 0.6931472, %v4780_v51  ;;  %v2631_v3 = vsub.f32 0.0, %v2623_v22  ;;  %4785 = vlog2.f32 %v2594_v48  ;;  %v2583_v27 = vpop.xlane.xlu0 %2582 }
 0x9ec   : > { %v4782_v6 = vpop.eup %4781  ;;  %v2595_v56 = vadd.f32 1e-20, %v2583_v27 }
 0x9ed   : > { %v2616_v15 = vsub.f32 %v5714_v25, %v2604_v7  ;;  %v2588_v30 = vpop.xlane.xlu1 %2587  ;;  %v2664_v50 = vmin.f32 %v6023_v10, %v4782_v6  ;;  %v2665_v21 = vmin.f32 %v6025_v55, %v4782_v6  ;;  %v2639_v2 = vmul.f32 3.3333333, %v2631_v3 }
 0x9ee   : > { %v2596_v59 = vadd.f32 1e-20, %v2588_v30  ;;  %v2666_v32 = vmin.f32 %v6028_v41, %v4782_v6  ;;  %4787 = vlog2.f32 %v2595_v56 }
 0x9ef   : > { %v2624_v12 = vmul.f32 0.3, %v2616_v15  ;;  %v2690_v0 = vadd.f32 %v2665_v21, %v2664_v50  ;;  %v2649_v63 = vmul.f32 1.442695, %v2639_v2 }
 0x9f0   : > { %4789 = vlog2.f32 %v2596_v59  ;;  %v2691_v29 = vsel %vm429_vm0, %v2666_v32, 0.0 }
 0x9f1   : > { %v2632_v20 = vsub.f32 0.0, %v2624_v12  ;;  %v2692_v61 = vadd.f32 %v2691_v29, %v2690_v0  ;;  %4791 = vpow2.f32 %v2649_v63 }
 0x9f3   : > { %v2640_v14 = vmul.f32 3.3333333, %v2632_v20  ;;  %2693 = vadd.xlane.f32.xlu1 %v2692_v61 }
 0x9f4   : > { %v4784_v51 = vpop.eup %4783 }
 0x9f5   : > { %v2651_v22 = vmul.f32 1.442695, %v2640_v14  ;;  %v4786_v48 = vpop.eup %4785  ;;  %v2606_v7 = vmul.f32 0.6931472, %v4784_v51 }
 0x9f6   : > { %v2608_v3 = vmul.f32 0.6931472, %v4786_v48 }
 0x9f7   : > { %4793 = vpow2.f32 %v2651_v22  ;;  %v2617_v6 = vsub.f32 %v5720_v16, %v2606_v7 }
 0x9f8   : > { %v4788_v27 = vpop.eup %4787  ;;  %v2618_v15 = vsub.f32 %v5722_v17, %v2608_v3 }
 0x9f9   : > { %v2625_v30 = vmul.f32 0.3, %v2617_v6  ;;  %v2610_v50 = vmul.f32 0.6931472, %v4788_v27 }
 0x9fa   : > { %v4790_v56 = vpop.eup %4789  ;;  %v2626_v21 = vmul.f32 0.3, %v2618_v15 }
 0x9fb   : > { %v2612_v2 = vmul.f32 0.6931472, %v4790_v56  ;;  %v4792_v59 = vpop.eup %4791  ;;  %v2633_v32 = vsub.f32 0.0, %v2625_v30  ;;  %v2619_v12 = vsub.f32 %v5730_v36, %v2610_v50 }
 0x9fc   : > { %v2634_v0 = vsub.f32 0.0, %v2626_v21  ;;  %v2667_v29 = vmin.f32 %v6039_v62, %v4792_v59  ;;  %v2668_v20 = vmin.f32 %v6042_v38, %v4792_v59  ;;  %v2669_v51 = vmin.f32 %v6045_v28, %v4792_v59 }
 0x9fd   : > { %v2620_v63 = vsub.f32 %v5732_v31, %v2612_v2  ;;  %v2641_v61 = vmul.f32 3.3333333, %v2633_v32  ;;  %v2627_v14 = vmul.f32 0.3, %v2619_v12 }
 0x9fe   : > { %v2642_v22 = vmul.f32 3.3333333, %v2634_v0  ;;  %v2695_v7 = vadd.f32 %v2668_v20, %v2667_v29  ;;  %v2696_v27 = vsel %vm429_vm0, %v2669_v51, 0.0 }
 0x9ff   : > { %v2628_v48 = vmul.f32 0.3, %v2620_v63  ;;  %v2653_v3 = vmul.f32 1.442695, %v2641_v61  ;;  %v2635_v6 = vsub.f32 0.0, %v2627_v14 }
 0xa00   : > { %v2655_v56 = vmul.f32 1.442695, %v2642_v22  ;;  %v2697_v50 = vadd.f32 %v2696_v27, %v2695_v7 }
 0xa01   : > { %v4794_v15 = vpop.eup %4793  ;;  %v2636_v30 = vsub.f32 0.0, %v2628_v48  ;;  %4795 = vpow2.f32 %v2653_v3  ;;  %v2643_v21 = vmul.f32 3.3333333, %v2635_v6 }
 0xa02   : > { %v2670_v2 = vmin.f32 %v6048_v26, %v4794_v15  ;;  %v2671_v32 = vmin.f32 %v6053_v24, %v4794_v15  ;;  %4797 = vpow2.f32 %v2655_v56  ;;  %2698 = vadd.xlane.f32.xlu0 %v2697_v50  ;;  %v2672_v59 = vmin.f32 %v6058_v57, %v4794_v15 }
 0xa03   : > { %v2644_v12 = vmul.f32 3.3333333, %v2636_v30  ;;  %v2657_v0 = vmul.f32 1.442695, %v2643_v21 }
 0xa04   : > { %v2700_v63 = vadd.f32 %v2671_v32, %v2670_v2  ;;  %v2701_v20 = vsel %vm429_vm0, %v2672_v59, 0.0 }
 0xa05   : > { %v2659_v29 = vmul.f32 1.442695, %v2644_v12  ;;  %4799 = vpow2.f32 %v2657_v0 }
 0xa06   : > { %v2702_v61 = vadd.f32 %v2701_v20, %v2700_v63 }
 0xa07   : > { %4801 = vpow2.f32 %v2659_v29 }
 0xa08   : > { %2703 = vadd.xlane.f32.xlu1 %v2702_v61 }
 0xa0b   : > { %v4796_v14 = vpop.eup %4795 }
 0xa0c   : > { %v4798_v51 = vpop.eup %4797  ;;  %v2673_v22 = vmin.f32 %v6061_v33, %v4796_v14  ;;  %v2674_v48 = vmin.f32 %v6067_v46, %v4796_v14  ;;  %v2675_v7 = vmin.f32 %v6070_v58, %v4796_v14 }
 0xa0d   : > { %v2676_v3 = vmin.f32 %v6074_v45, %v4798_v51  ;;  %v2677_v6 = vmin.f32 %v6077_v23, %v4798_v51  ;;  %v2678_v27 = vmin.f32 %v6079_v19, %v4798_v51 }
 0xa0e   : > { %v2705_v15 = vadd.f32 %v2674_v48, %v2673_v22  ;;  %v2706_v56 = vsel %vm429_vm0, %v2675_v7, 0.0 }
 0xa0f   : > { %v4800_v30 = vpop.eup %4799  ;;  %v2710_v50 = vadd.f32 %v2677_v6, %v2676_v3  ;;  %v2711_v21 = vsel %vm429_vm0, %v2678_v27, 0.0 }
 0xa10   : > { %v2707_v32 = vadd.f32 %v2706_v56, %v2705_v15  ;;  %v2679_v12 = vmin.f32 %v6082_v35, %v4800_v30  ;;  %v2680_v59 = vmin.f32 %v6084_v44, %v4800_v30  ;;  %v2681_v0 = vmin.f32 %v6086_v8, %v4800_v30 }
 0xa11   : > { %v4802_v2 = vpop.eup %4801  ;;  %v2712_v63 = vadd.f32 %v2711_v21, %v2710_v50 }
 0xa12   : > { %v2682_v29 = vmin.f32 %v6088_v39, %v4802_v2  ;;  %v2683_v20 = vmin.f32 %v6093_v53, %v4802_v2  ;;  %v2684_v61 = vmin.f32 %v6098_v4, %v4802_v2  ;;  %2708 = vadd.xlane.f32.xlu0 %v2707_v32  ;;  %v2715_v14 = vadd.f32 %v2680_v59, %v2679_v12 }
 0xa13   : > { %v2716_v51 = vsel %vm429_vm0, %v2681_v0, 0.0  ;;  %2713 = vadd.xlane.f32.xlu1 %v2712_v63 }
 0xa14   : > { %v2720_v22 = vadd.f32 %v2683_v20, %v2682_v29  ;;  %v2721_v48 = vsel %vm429_vm0, %v2684_v61, 0.0  ;;  %v2717_v7 = vadd.f32 %v2716_v51, %v2715_v14 }
 0xa16   : > { %v2722_v3 = vadd.f32 %v2721_v48, %v2720_v22  ;;  %2718 = vadd.xlane.f32.xlu0 %v2717_v7 }
 0xa18   : > { %2723 = vadd.xlane.f32.xlu1 %v2722_v3 }
 0xa65   : > { %v2689_v6 = vpop.xlane.xlu0 %2688 }
 0xa66   : > { %v2725_v27 = vadd.f32 1e-20, %v2689_v6 }
 0xa68   : > { %4803 = vlog2.f32 %v2725_v27 }
 0xa72   : > { %v4804_v15 = vpop.eup %4803 }
 0xa73   : > { %v2734_v56 = vmul.f32 0.6931472, %v4804_v15 }
 0xa75   : > { %v2749_v30 = vsub.f32 %v5702_v1, %v2734_v56 }
 0xa77   : > { %v2757_v50 = vmul.f32 0.3, %v2749_v30 }
 0xa79   : > { %v2765_v21 = vsub.f32 0.0, %v2757_v50 }
 0xa7b   : > { %v2773_v2 = vmul.f32 3.3333333, %v2765_v21 }
 0xa7d   : > { %v2781_v32 = vmul.f32 1.442695, %v2773_v2 }
 0xa7f   : > { %4805 = vpow2.f32 %v2781_v32 }
 0xa80   : > { %v2694_v12 = vpop.xlane.xlu1 %2693 }
 0xa81   : > { %v2726_v59 = vadd.f32 1e-20, %v2694_v12 }
 0xa83   : > { %4807 = vlog2.f32 %v2726_v59 }
 0xa89   : > { %v4806_v0 = vpop.eup %4805 }
 0xa8a   : > { %v2797_v63 = vmin.f32 %v6002_v18, %v4806_v0  ;;  %v2798_v29 = vmin.f32 %v6004_v47, %v4806_v0  ;;  %v2799_v20 = vmin.f32 %v6006_v34, %v4806_v0 }
 0xa8c   : > { %v2821_v61 = vadd.f32 %v2798_v29, %v2797_v63  ;;  %v2822_v14 = vsel %vm429_vm0, %v2799_v20, 0.0 }
 0xa8d   : > { %v4808_v51 = vpop.eup %4807 }
 0xa8e   : > { %v2823_v22 = vadd.f32 %v2822_v14, %v2821_v61  ;;  %v2736_v48 = vmul.f32 0.6931472, %v4808_v51 }
 0xa8f   : > { %v2699_v3 = vpop.xlane.xlu0 %2698 }
 0xa90   : > { %2824 = vadd.xlane.f32.xlu0 %v2823_v22  ;;  %v2750_v7 = vsub.f32 %v5705_v13, %v2736_v48  ;;  %v2727_v6 = vadd.f32 1e-20, %v2699_v3 }
 0xa92   : > { %v2758_v27 = vmul.f32 0.3, %v2750_v7  ;;  %4809 = vlog2.f32 %v2727_v6 }
 0xa94   : > { %v2766_v15 = vsub.f32 0.0, %v2758_v27 }
 0xa95   : > { %v2704_v56 = vpop.xlane.xlu1 %2703 }
 0xa96   : > { %v2774_v30 = vmul.f32 3.3333333, %v2766_v15  ;;  %v2728_v50 = vadd.f32 1e-20, %v2704_v56 }
 0xa98   : > { %v2783_v21 = vmul.f32 1.442695, %v2774_v30  ;;  %4811 = vlog2.f32 %v2728_v50 }
 0xa9a   : > { %4813 = vpow2.f32 %v2783_v21 }
 0xa9c   : > { %v4810_v2 = vpop.eup %4809 }
 0xa9d   : > { %v2738_v32 = vmul.f32 0.6931472, %v4810_v2 }
 0xa9f   : > { %v2751_v12 = vsub.f32 %v5708_v5, %v2738_v32  ;;  %v2709_v59 = vpop.xlane.xlu0 %2708 }
 0xaa0   : > { %v2729_v0 = vadd.f32 1e-20, %v2709_v59  ;;  %v2714_v63 = vpop.xlane.xlu1 %2713 }
 0xaa1   : > { %v2759_v20 = vmul.f32 0.3, %v2751_v12  ;;  %v2730_v61 = vadd.f32 1e-20, %v2714_v63 }
 0xaa2   : > { %v4812_v29 = vpop.eup %4811  ;;  %4815 = vlog2.f32 %v2729_v0 }
 0xaa3   : > { %v2740_v14 = vmul.f32 0.6931472, %v4812_v29  ;;  %v2767_v22 = vsub.f32 0.0, %v2759_v20  ;;  %4817 = vlog2.f32 %v2730_v61  ;;  %v2719_v48 = vpop.xlane.xlu0 %2718 }
 0xaa4   : > { %v4814_v51 = vpop.eup %4813  ;;  %v2731_v3 = vadd.f32 1e-20, %v2719_v48 }
 0xaa5   : > { %v2752_v7 = vsub.f32 %v5714_v25, %v2740_v14  ;;  %v2724_v6 = vpop.xlane.xlu1 %2723  ;;  %v2800_v27 = vmin.f32 %v6023_v10, %v4814_v51  ;;  %v2801_v15 = vmin.f32 %v6025_v55, %v4814_v51  ;;  %v2775_v56 = vmul.f32 3.3333333, %v2767_v22 }
 0xaa6   : > { %v2732_v30 = vadd.f32 1e-20, %v2724_v6  ;;  %v2802_v50 = vmin.f32 %v6028_v41, %v4814_v51  ;;  %4819 = vlog2.f32 %v2731_v3 }
 0xaa7   : > { %v2760_v21 = vmul.f32 0.3, %v2752_v7  ;;  %v2826_v2 = vadd.f32 %v2801_v15, %v2800_v27  ;;  %v2785_v32 = vmul.f32 1.442695, %v2775_v56 }
 0xaa8   : > { %4821 = vlog2.f32 %v2732_v30  ;;  %v2827_v12 = vsel %vm429_vm0, %v2802_v50, 0.0 }
 0xaa9   : > { %v2768_v59 = vsub.f32 0.0, %v2760_v21  ;;  %v2828_v0 = vadd.f32 %v2827_v12, %v2826_v2  ;;  %4823 = vpow2.f32 %v2785_v32 }
 0xaab   : > { %v2776_v63 = vmul.f32 3.3333333, %v2768_v59  ;;  %2829 = vadd.xlane.f32.xlu1 %v2828_v0 }
 0xaac   : > { %v4816_v29 = vpop.eup %4815 }
 0xaad   : > { %v2787_v20 = vmul.f32 1.442695, %v2776_v63  ;;  %v4818_v61 = vpop.eup %4817  ;;  %v2742_v14 = vmul.f32 0.6931472, %v4816_v29 }
 0xaae   : > { %v2744_v22 = vmul.f32 0.6931472, %v4818_v61 }
 0xaaf   : > { %4825 = vpow2.f32 %v2787_v20  ;;  %v2753_v51 = vsub.f32 %v5720_v16, %v2742_v14 }
 0xab0   : > { %v4820_v48 = vpop.eup %4819  ;;  %v2754_v7 = vsub.f32 %v5722_v17, %v2744_v22 }
 0xab1   : > { %v2761_v6 = vmul.f32 0.3, %v2753_v51  ;;  %v2746_v27 = vmul.f32 0.6931472, %v4820_v48 }
 0xab2   : > { %v4822_v3 = vpop.eup %4821  ;;  %v2762_v15 = vmul.f32 0.3, %v2754_v7 }
 0xab3   : > { %v2748_v56 = vmul.f32 0.6931472, %v4822_v3  ;;  %v4824_v30 = vpop.eup %4823  ;;  %v2769_v50 = vsub.f32 0.0, %v2761_v6  ;;  %v2755_v21 = vsub.f32 %v5730_v36, %v2746_v27 }
 0xab4   : > { %v2770_v2 = vsub.f32 0.0, %v2762_v15  ;;  %v2803_v12 = vmin.f32 %v6039_v62, %v4824_v30  ;;  %v2804_v59 = vmin.f32 %v6042_v38, %v4824_v30  ;;  %v2805_v29 = vmin.f32 %v6045_v28, %v4824_v30 }
 0xab5   : > { %v2756_v32 = vsub.f32 %v5732_v31, %v2748_v56  ;;  %v2777_v0 = vmul.f32 3.3333333, %v2769_v50  ;;  %v2763_v63 = vmul.f32 0.3, %v2755_v21 }
 0xab6   : > { %v2778_v20 = vmul.f32 3.3333333, %v2770_v2  ;;  %v2831_v14 = vadd.f32 %v2804_v59, %v2803_v12  ;;  %v2832_v48 = vsel %vm429_vm0, %v2805_v29, 0.0 }
 0xab7   : > { %v2764_v61 = vmul.f32 0.3, %v2756_v32  ;;  %v2789_v22 = vmul.f32 1.442695, %v2777_v0  ;;  %v2771_v51 = vsub.f32 0.0, %v2763_v63 }
 0xab8   : > { %v2791_v3 = vmul.f32 1.442695, %v2778_v20  ;;  %v2833_v27 = vadd.f32 %v2832_v48, %v2831_v14 }
 0xab9   : > { %v4826_v7 = vpop.eup %4825  ;;  %v2772_v6 = vsub.f32 0.0, %v2764_v61  ;;  %4827 = vpow2.f32 %v2789_v22  ;;  %v2779_v15 = vmul.f32 3.3333333, %v2771_v51 }
 0xaba   : > { %v2806_v56 = vmin.f32 %v6048_v26, %v4826_v7  ;;  %v2807_v50 = vmin.f32 %v6053_v24, %v4826_v7  ;;  %4829 = vpow2.f32 %v2791_v3  ;;  %2834 = vadd.xlane.f32.xlu0 %v2833_v27  ;;  %v2808_v30 = vmin.f32 %v6058_v57, %v4826_v7 }
 0xabb   : > { %v2780_v21 = vmul.f32 3.3333333, %v2772_v6  ;;  %v2793_v2 = vmul.f32 1.442695, %v2779_v15 }
 0xabc   : > { %v2836_v32 = vadd.f32 %v2807_v50, %v2806_v56  ;;  %v2837_v59 = vsel %vm429_vm0, %v2808_v30, 0.0 }
 0xabd   : > { %v2795_v12 = vmul.f32 1.442695, %v2780_v21  ;;  %4831 = vpow2.f32 %v2793_v2 }
 0xabe   : > { %v2838_v0 = vadd.f32 %v2837_v59, %v2836_v32 }
 0xabf   : > { %4833 = vpow2.f32 %v2795_v12 }
 0xac0   : > { %2839 = vadd.xlane.f32.xlu1 %v2838_v0 }
 0xac3   : > { %v4828_v63 = vpop.eup %4827 }
 0xac4   : > { %v4830_v29 = vpop.eup %4829  ;;  %v2809_v20 = vmin.f32 %v6061_v33, %v4828_v63  ;;  %v2810_v61 = vmin.f32 %v6067_v46, %v4828_v63  ;;  %v2811_v14 = vmin.f32 %v6070_v58, %v4828_v63 }
 0xac5   : > { %v2812_v22 = vmin.f32 %v6074_v45, %v4830_v29  ;;  %v2813_v51 = vmin.f32 %v6077_v23, %v4830_v29  ;;  %v2814_v48 = vmin.f32 %v6079_v19, %v4830_v29 }
 0xac6   : > { %v2841_v7 = vadd.f32 %v2810_v61, %v2809_v20  ;;  %v2842_v3 = vsel %vm429_vm0, %v2811_v14, 0.0 }
 0xac7   : > { %v4832_v6 = vpop.eup %4831  ;;  %v2846_v27 = vadd.f32 %v2813_v51, %v2812_v22  ;;  %v2847_v15 = vsel %vm429_vm0, %v2814_v48, 0.0 }
 0xac8   : > { %v2843_v50 = vadd.f32 %v2842_v3, %v2841_v7  ;;  %v2815_v21 = vmin.f32 %v6082_v35, %v4832_v6  ;;  %v2816_v30 = vmin.f32 %v6084_v44, %v4832_v6  ;;  %v2817_v2 = vmin.f32 %v6086_v8, %v4832_v6 }
 0xac9   : > { %v4834_v56 = vpop.eup %4833  ;;  %v2848_v32 = vadd.f32 %v2847_v15, %v2846_v27 }
 0xaca   : > { %v2818_v12 = vmin.f32 %v6088_v39, %v4834_v56  ;;  %v2819_v59 = vmin.f32 %v6093_v53, %v4834_v56  ;;  %v2820_v0 = vmin.f32 %v6098_v4, %v4834_v56  ;;  %2844 = vadd.xlane.f32.xlu0 %v2843_v50  ;;  %v2851_v63 = vadd.f32 %v2816_v30, %v2815_v21 }
 0xacb   : > { %v2852_v29 = vsel %vm429_vm0, %v2817_v2, 0.0  ;;  %2849 = vadd.xlane.f32.xlu1 %v2848_v32 }
 0xacc   : > { %v2856_v20 = vadd.f32 %v2819_v59, %v2818_v12  ;;  %v2857_v61 = vsel %vm429_vm0, %v2820_v0, 0.0  ;;  %v2853_v14 = vadd.f32 %v2852_v29, %v2851_v63 }
 0xace   : > { %v2858_v22 = vadd.f32 %v2857_v61, %v2856_v20  ;;  %2854 = vadd.xlane.f32.xlu0 %v2853_v14 }
 0xad0   : > { %2859 = vadd.xlane.f32.xlu1 %v2858_v22 }
 0xb1d   : > { %v2825_v51 = vpop.xlane.xlu0 %2824 }
 0xb1e   : > { %v2861_v48 = vadd.f32 1e-20, %v2825_v51 }
 0xb20   : > { %4835 = vlog2.f32 %v2861_v48 }
 0xb2a   : > { %v4836_v7 = vpop.eup %4835 }
 0xb2b   : > { %v2870_v3 = vmul.f32 0.6931472, %v4836_v7 }
 0xb2d   : > { %v2885_v6 = vsub.f32 %v5702_v1, %v2870_v3 }
 0xb2f   : > { %v2893_v27 = vmul.f32 0.3, %v2885_v6 }
 0xb31   : > { %v2901_v15 = vsub.f32 0.0, %v2893_v27 }
 0xb33   : > { %v2909_v56 = vmul.f32 3.3333333, %v2901_v15 }
 0xb35   : > { %v2917_v50 = vmul.f32 1.442695, %v2909_v56 }
 0xb37   : > { %4837 = vpow2.f32 %v2917_v50 }
 0xb38   : > { %v2830_v21 = vpop.xlane.xlu1 %2829 }
 0xb39   : > { %v2862_v30 = vadd.f32 1e-20, %v2830_v21 }
 0xb3b   : > { %4839 = vlog2.f32 %v2862_v30 }
 0xb41   : > { %v4838_v2 = vpop.eup %4837 }
 0xb42   : > { %v2933_v32 = vmin.f32 %v6002_v18, %v4838_v2  ;;  %v2934_v12 = vmin.f32 %v6004_v47, %v4838_v2  ;;  %v2935_v59 = vmin.f32 %v6006_v34, %v4838_v2 }
 0xb44   : > { %v2957_v0 = vadd.f32 %v2934_v12, %v2933_v32  ;;  %v2958_v63 = vsel %vm429_vm0, %v2935_v59, 0.0 }
 0xb45   : > { %v4840_v29 = vpop.eup %4839 }
 0xb46   : > { %v2959_v20 = vadd.f32 %v2958_v63, %v2957_v0  ;;  %v2872_v61 = vmul.f32 0.6931472, %v4840_v29 }
 0xb47   : > { %v2835_v22 = vpop.xlane.xlu0 %2834 }
 0xb48   : > { %2960 = vadd.xlane.f32.xlu0 %v2959_v20  ;;  %v2886_v14 = vsub.f32 %v5705_v13, %v2872_v61  ;;  %v2863_v51 = vadd.f32 1e-20, %v2835_v22 }
 0xb4a   : > { %v2894_v48 = vmul.f32 0.3, %v2886_v14  ;;  %4841 = vlog2.f32 %v2863_v51 }
 0xb4c   : > { %v2902_v7 = vsub.f32 0.0, %v2894_v48 }
 0xb4d   : > { %v2840_v3 = vpop.xlane.xlu1 %2839 }
 0xb4e   : > { %v2910_v6 = vmul.f32 3.3333333, %v2902_v7  ;;  %v2864_v27 = vadd.f32 1e-20, %v2840_v3 }
 0xb50   : > { %v2919_v15 = vmul.f32 1.442695, %v2910_v6  ;;  %4843 = vlog2.f32 %v2864_v27 }
 0xb52   : > { %4845 = vpow2.f32 %v2919_v15 }
 0xb54   : > { %v4842_v56 = vpop.eup %4841 }
 0xb55   : > { %v2874_v50 = vmul.f32 0.6931472, %v4842_v56 }
 0xb57   : > { %v2887_v21 = vsub.f32 %v5708_v5, %v2874_v50  ;;  %v2845_v30 = vpop.xlane.xlu0 %2844 }
 0xb58   : > { %v2865_v2 = vadd.f32 1e-20, %v2845_v30  ;;  %v2850_v32 = vpop.xlane.xlu1 %2849 }
 0xb59   : > { %v2895_v59 = vmul.f32 0.3, %v2887_v21  ;;  %v2866_v0 = vadd.f32 1e-20, %v2850_v32 }
 0xb5a   : > { %v4844_v12 = vpop.eup %4843  ;;  %4847 = vlog2.f32 %v2865_v2 }
 0xb5b   : > { %v2876_v63 = vmul.f32 0.6931472, %v4844_v12  ;;  %v2903_v20 = vsub.f32 0.0, %v2895_v59  ;;  %4849 = vlog2.f32 %v2866_v0  ;;  %v2855_v61 = vpop.xlane.xlu0 %2854 }
 0xb5c   : > { %v4846_v29 = vpop.eup %4845  ;;  %v2867_v22 = vadd.f32 1e-20, %v2855_v61 }
 0xb5d   : > { %v2888_v14 = vsub.f32 %v5714_v25, %v2876_v63  ;;  %v2860_v51 = vpop.xlane.xlu1 %2859  ;;  %v2936_v48 = vmin.f32 %v6023_v10, %v4846_v29  ;;  %v2937_v7 = vmin.f32 %v6025_v55, %v4846_v29  ;;  %v2911_v3 = vmul.f32 3.3333333, %v2903_v20 }
 0xb5e   : > { %v2868_v6 = vadd.f32 1e-20, %v2860_v51  ;;  %v2938_v27 = vmin.f32 %v6028_v41, %v4846_v29  ;;  %4851 = vlog2.f32 %v2867_v22 }
 0xb5f   : > { %v2896_v15 = vmul.f32 0.3, %v2888_v14  ;;  %v2962_v56 = vadd.f32 %v2937_v7, %v2936_v48  ;;  %v2921_v50 = vmul.f32 1.442695, %v2911_v3 }
 0xb60   : > { %4853 = vlog2.f32 %v2868_v6  ;;  %v2963_v21 = vsel %vm429_vm0, %v2938_v27, 0.0 }
 0xb61   : > { %v2904_v30 = vsub.f32 0.0, %v2896_v15  ;;  %v2964_v2 = vadd.f32 %v2963_v21, %v2962_v56  ;;  %4855 = vpow2.f32 %v2921_v50 }
 0xb63   : > { %v2912_v32 = vmul.f32 3.3333333, %v2904_v30  ;;  %2965 = vadd.xlane.f32.xlu1 %v2964_v2 }
 0xb64   : > { %v4848_v12 = vpop.eup %4847 }
 0xb65   : > { %v2923_v59 = vmul.f32 1.442695, %v2912_v32  ;;  %v4850_v0 = vpop.eup %4849  ;;  %v2878_v63 = vmul.f32 0.6931472, %v4848_v12 }
 0xb66   : > { %v2880_v20 = vmul.f32 0.6931472, %v4850_v0 }
 0xb67   : > { %4857 = vpow2.f32 %v2923_v59  ;;  %v2889_v29 = vsub.f32 %v5720_v16, %v2878_v63 }
 0xb68   : > { %v4852_v61 = vpop.eup %4851  ;;  %v2890_v14 = vsub.f32 %v5722_v17, %v2880_v20 }
 0xb69   : > { %v2897_v51 = vmul.f32 0.3, %v2889_v29  ;;  %v2882_v48 = vmul.f32 0.6931472, %v4852_v61 }
 0xb6a   : > { %v4854_v22 = vpop.eup %4853  ;;  %v2898_v7 = vmul.f32 0.3, %v2890_v14 }
 0xb6b   : > { %v2884_v3 = vmul.f32 0.6931472, %v4854_v22  ;;  %v4856_v6 = vpop.eup %4855  ;;  %v2905_v27 = vsub.f32 0.0, %v2897_v51  ;;  %v2891_v15 = vsub.f32 %v5730_v36, %v2882_v48 }
 0xb6c   : > { %v2906_v56 = vsub.f32 0.0, %v2898_v7  ;;  %v2939_v21 = vmin.f32 %v6039_v62, %v4856_v6  ;;  %v2940_v30 = vmin.f32 %v6042_v38, %v4856_v6  ;;  %v2941_v12 = vmin.f32 %v6045_v28, %v4856_v6 }
 0xb6d   : > { %v2892_v50 = vsub.f32 %v5732_v31, %v2884_v3  ;;  %v2913_v2 = vmul.f32 3.3333333, %v2905_v27  ;;  %v2899_v32 = vmul.f32 0.3, %v2891_v15 }
 0xb6e   : > { %v2914_v59 = vmul.f32 3.3333333, %v2906_v56  ;;  %v2967_v63 = vadd.f32 %v2940_v30, %v2939_v21  ;;  %v2968_v61 = vsel %vm429_vm0, %v2941_v12, 0.0 }
 0xb6f   : > { %v2900_v0 = vmul.f32 0.3, %v2892_v50  ;;  %v2925_v20 = vmul.f32 1.442695, %v2913_v2  ;;  %v2907_v29 = vsub.f32 0.0, %v2899_v32 }
 0xb70   : > { %v2927_v22 = vmul.f32 1.442695, %v2914_v59  ;;  %v2969_v48 = vadd.f32 %v2968_v61, %v2967_v63 }
 0xb71   : > { %v4858_v14 = vpop.eup %4857  ;;  %v2908_v51 = vsub.f32 0.0, %v2900_v0  ;;  %4859 = vpow2.f32 %v2925_v20  ;;  %v2915_v7 = vmul.f32 3.3333333, %v2907_v29 }
 0xb72   : > { %v2942_v3 = vmin.f32 %v6048_v26, %v4858_v14  ;;  %v2943_v27 = vmin.f32 %v6053_v24, %v4858_v14  ;;  %4861 = vpow2.f32 %v2927_v22  ;;  %2970 = vadd.xlane.f32.xlu0 %v2969_v48  ;;  %v2944_v6 = vmin.f32 %v6058_v57, %v4858_v14 }
 0xb73   : > { %v2916_v15 = vmul.f32 3.3333333, %v2908_v51  ;;  %v2929_v56 = vmul.f32 1.442695, %v2915_v7 }
 0xb74   : > { %v2972_v50 = vadd.f32 %v2943_v27, %v2942_v3  ;;  %v2973_v30 = vsel %vm429_vm0, %v2944_v6, 0.0 }
 0xb75   : > { %v2931_v21 = vmul.f32 1.442695, %v2916_v15  ;;  %4863 = vpow2.f32 %v2929_v56 }
 0xb76   : > { %v2974_v2 = vadd.f32 %v2973_v30, %v2972_v50 }
 0xb77   : > { %4865 = vpow2.f32 %v2931_v21 }
 0xb78   : > { %2975 = vadd.xlane.f32.xlu1 %v2974_v2 }
 0xb7b   : > { %v4860_v32 = vpop.eup %4859 }
 0xb7c   : > { %v4862_v12 = vpop.eup %4861  ;;  %v2945_v59 = vmin.f32 %v6061_v33, %v4860_v32  ;;  %v2946_v0 = vmin.f32 %v6067_v46, %v4860_v32  ;;  %v2947_v63 = vmin.f32 %v6070_v58, %v4860_v32 }
 0xb7d   : > { %v2948_v20 = vmin.f32 %v6074_v45, %v4862_v12  ;;  %v2949_v29 = vmin.f32 %v6077_v23, %v4862_v12  ;;  %v2950_v61 = vmin.f32 %v6079_v19, %v4862_v12 }
 0xb7e   : > { %v2977_v14 = vadd.f32 %v2946_v0, %v2945_v59  ;;  %v2978_v22 = vsel %vm429_vm0, %v2947_v63, 0.0 }
 0xb7f   : > { %v4864_v51 = vpop.eup %4863  ;;  %v2982_v48 = vadd.f32 %v2949_v29, %v2948_v20  ;;  %v2983_v7 = vsel %vm429_vm0, %v2950_v61, 0.0 }
 0xb80   : > { %v2979_v27 = vadd.f32 %v2978_v22, %v2977_v14  ;;  %v2951_v15 = vmin.f32 %v6082_v35, %v4864_v51  ;;  %v2952_v6 = vmin.f32 %v6084_v44, %v4864_v51  ;;  %v2953_v56 = vmin.f32 %v6086_v8, %v4864_v51 }
 0xb81   : > { %v4866_v3 = vpop.eup %4865  ;;  %v2984_v50 = vadd.f32 %v2983_v7, %v2982_v48 }
 0xb82   : > { %v2954_v21 = vmin.f32 %v6088_v39, %v4866_v3  ;;  %v2955_v30 = vmin.f32 %v6093_v53, %v4866_v3  ;;  %v2956_v2 = vmin.f32 %v6098_v4, %v4866_v3  ;;  %2980 = vadd.xlane.f32.xlu0 %v2979_v27  ;;  %v2987_v32 = vadd.f32 %v2952_v6, %v2951_v15 }
 0xb83   : > { %v2988_v12 = vsel %vm429_vm0, %v2953_v56, 0.0  ;;  %2985 = vadd.xlane.f32.xlu1 %v2984_v50 }
 0xb84   : > { %v2992_v59 = vadd.f32 %v2955_v30, %v2954_v21  ;;  %v2993_v0 = vsel %vm429_vm0, %v2956_v2, 0.0  ;;  %v2989_v63 = vadd.f32 %v2988_v12, %v2987_v32 }
 0xb86   : > { %v2994_v20 = vadd.f32 %v2993_v0, %v2992_v59  ;;  %2990 = vadd.xlane.f32.xlu0 %v2989_v63 }
 0xb88   : > { %2995 = vadd.xlane.f32.xlu1 %v2994_v20 }
 0xbd5   : > { %v2961_v29 = vpop.xlane.xlu0 %2960 }
 0xbd6   : > { %v2997_v61 = vadd.f32 1e-20, %v2961_v29 }
 0xbd8   : > { %4867 = vlog2.f32 %v2997_v61 }
 0xbe2   : > { %v4868_v14 = vpop.eup %4867 }
 0xbe3   : > { %v3006_v22 = vmul.f32 0.6931472, %v4868_v14 }
 0xbe5   : > { %v3021_v51 = vsub.f32 %v5702_v1, %v3006_v22 }
 0xbe7   : > { %v3029_v48 = vmul.f32 0.3, %v3021_v51 }
 0xbe9   : > { %v3037_v7 = vsub.f32 0.0, %v3029_v48 }
 0xbeb   : > { %v3045_v3 = vmul.f32 3.3333333, %v3037_v7 }
 0xbed   : > { %v3053_v27 = vmul.f32 1.442695, %v3045_v3 }
 0xbef   : > { %4869 = vpow2.f32 %v3053_v27 }
 0xbf0   : > { %v2966_v15 = vpop.xlane.xlu1 %2965 }
 0xbf1   : > { %v2998_v6 = vadd.f32 1e-20, %v2966_v15 }
 0xbf3   : > { %4871 = vlog2.f32 %v2998_v6 }
 0xbf9   : > { %v4870_v56 = vpop.eup %4869 }
 0xbfa   : > { %v3069_v50 = vmin.f32 %v6002_v18, %v4870_v56  ;;  %v3070_v21 = vmin.f32 %v6004_v47, %v4870_v56  ;;  %v3071_v30 = vmin.f32 %v6006_v34, %v4870_v56 }
 0xbfc   : > { %v3093_v2 = vadd.f32 %v3070_v21, %v3069_v50  ;;  %v3094_v32 = vsel %vm429_vm0, %v3071_v30, 0.0 }
 0xbfd   : > { %v4872_v12 = vpop.eup %4871 }
 0xbfe   : > { %v3095_v59 = vadd.f32 %v3094_v32, %v3093_v2  ;;  %v3008_v0 = vmul.f32 0.6931472, %v4872_v12 }
 0xbff   : > { %v2971_v20 = vpop.xlane.xlu0 %2970 }
 0xc00   : > { %3096 = vadd.xlane.f32.xlu0 %v3095_v59  ;;  %v3022_v63 = vsub.f32 %v5705_v13, %v3008_v0  ;;  %v2999_v29 = vadd.f32 1e-20, %v2971_v20 }
 0xc02   : > { %v3030_v61 = vmul.f32 0.3, %v3022_v63  ;;  %4873 = vlog2.f32 %v2999_v29 }
 0xc04   : > { %v3038_v14 = vsub.f32 0.0, %v3030_v61 }
 0xc05   : > { %v2976_v22 = vpop.xlane.xlu1 %2975 }
 0xc06   : > { %v3046_v51 = vmul.f32 3.3333333, %v3038_v14  ;;  %v3000_v48 = vadd.f32 1e-20, %v2976_v22 }
 0xc08   : > { %v3055_v7 = vmul.f32 1.442695, %v3046_v51  ;;  %4875 = vlog2.f32 %v3000_v48 }
 0xc0a   : > { %4877 = vpow2.f32 %v3055_v7 }
 0xc0c   : > { %v4874_v3 = vpop.eup %4873 }
 0xc0d   : > { %v3010_v27 = vmul.f32 0.6931472, %v4874_v3 }
 0xc0f   : > { %v3023_v15 = vsub.f32 %v5708_v5, %v3010_v27  ;;  %v2981_v6 = vpop.xlane.xlu0 %2980 }
 0xc10   : > { %v3001_v56 = vadd.f32 1e-20, %v2981_v6  ;;  %v2986_v50 = vpop.xlane.xlu1 %2985 }
 0xc11   : > { %v3031_v30 = vmul.f32 0.3, %v3023_v15  ;;  %v3002_v2 = vadd.f32 1e-20, %v2986_v50 }
 0xc12   : > { %v4876_v21 = vpop.eup %4875  ;;  %4879 = vlog2.f32 %v3001_v56 }
 0xc13   : > { %v3012_v32 = vmul.f32 0.6931472, %v4876_v21  ;;  %v3039_v59 = vsub.f32 0.0, %v3031_v30  ;;  %4881 = vlog2.f32 %v3002_v2  ;;  %v2991_v0 = vpop.xlane.xlu0 %2990 }
 0xc14   : > { %v4878_v12 = vpop.eup %4877  ;;  %v3003_v20 = vadd.f32 1e-20, %v2991_v0 }
 0xc15   : > { %v3024_v63 = vsub.f32 %v5714_v25, %v3012_v32  ;;  %v2996_v29 = vpop.xlane.xlu1 %2995  ;;  %v3072_v61 = vmin.f32 %v6023_v10, %v4878_v12  ;;  %v3073_v14 = vmin.f32 %v6025_v55, %v4878_v12  ;;  %v3047_v22 = vmul.f32 3.3333333, %v3039_v59 }
 0xc16   : > { %v3004_v51 = vadd.f32 1e-20, %v2996_v29  ;;  %v3074_v48 = vmin.f32 %v6028_v41, %v4878_v12  ;;  %4883 = vlog2.f32 %v3003_v20 }
 0xc17   : > { %v3032_v7 = vmul.f32 0.3, %v3024_v63  ;;  %v3098_v3 = vadd.f32 %v3073_v14, %v3072_v61  ;;  %v3057_v27 = vmul.f32 1.442695, %v3047_v22 }
 0xc18   : > { %4885 = vlog2.f32 %v3004_v51  ;;  %v3099_v15 = vsel %vm429_vm0, %v3074_v48, 0.0 }
 0xc19   : > { %v3040_v6 = vsub.f32 0.0, %v3032_v7  ;;  %v3100_v56 = vadd.f32 %v3099_v15, %v3098_v3  ;;  %4887 = vpow2.f32 %v3057_v27 }
 0xc1b   : > { %v3048_v50 = vmul.f32 3.3333333, %v3040_v6  ;;  %3101 = vadd.xlane.f32.xlu1 %v3100_v56 }
 0xc1c   : > { %v4880_v21 = vpop.eup %4879 }
 0xc1d   : > { %v3059_v30 = vmul.f32 1.442695, %v3048_v50  ;;  %v4882_v2 = vpop.eup %4881  ;;  %v3014_v32 = vmul.f32 0.6931472, %v4880_v21 }
 0xc1e   : > { %v3016_v59 = vmul.f32 0.6931472, %v4882_v2 }
 0xc1f   : > { %4889 = vpow2.f32 %v3059_v30  ;;  %v3025_v12 = vsub.f32 %v5720_v16, %v3014_v32 }
 0xc20   : > { %v4884_v0 = vpop.eup %4883  ;;  %v3026_v63 = vsub.f32 %v5722_v17, %v3016_v59 }
 0xc21   : > { %v3033_v29 = vmul.f32 0.3, %v3025_v12  ;;  %v3018_v61 = vmul.f32 0.6931472, %v4884_v0 }
 0xc22   : > { %v4886_v20 = vpop.eup %4885  ;;  %v3034_v14 = vmul.f32 0.3, %v3026_v63 }
 0xc23   : > { %v3020_v22 = vmul.f32 0.6931472, %v4886_v20  ;;  %v4888_v51 = vpop.eup %4887  ;;  %v3041_v48 = vsub.f32 0.0, %v3033_v29  ;;  %v3027_v7 = vsub.f32 %v5730_v36, %v3018_v61 }
 0xc24   : > { %v3042_v3 = vsub.f32 0.0, %v3034_v14  ;;  %v3075_v15 = vmin.f32 %v6039_v62, %v4888_v51  ;;  %v3076_v6 = vmin.f32 %v6042_v38, %v4888_v51  ;;  %v3077_v21 = vmin.f32 %v6045_v28, %v4888_v51 }
 0xc25   : > { %v3028_v27 = vsub.f32 %v5732_v31, %v3020_v22  ;;  %v3049_v56 = vmul.f32 3.3333333, %v3041_v48  ;;  %v3035_v50 = vmul.f32 0.3, %v3027_v7 }
 0xc26   : > { %v3050_v30 = vmul.f32 3.3333333, %v3042_v3  ;;  %v3103_v32 = vadd.f32 %v3076_v6, %v3075_v15  ;;  %v3104_v0 = vsel %vm429_vm0, %v3077_v21, 0.0 }
 0xc27   : > { %v3036_v2 = vmul.f32 0.3, %v3028_v27  ;;  %v3061_v59 = vmul.f32 1.442695, %v3049_v56  ;;  %v3043_v12 = vsub.f32 0.0, %v3035_v50 }
 0xc28   : > { %v3063_v20 = vmul.f32 1.442695, %v3050_v30  ;;  %v3105_v61 = vadd.f32 %v3104_v0, %v3103_v32 }
 0xc29   : > { %v4890_v63 = vpop.eup %4889  ;;  %v3044_v29 = vsub.f32 0.0, %v3036_v2  ;;  %4891 = vpow2.f32 %v3061_v59  ;;  %v3051_v14 = vmul.f32 3.3333333, %v3043_v12 }
 0xc2a   : > { %v3078_v22 = vmin.f32 %v6048_v26, %v4890_v63  ;;  %v3079_v48 = vmin.f32 %v6053_v24, %v4890_v63  ;;  %4893 = vpow2.f32 %v3063_v20  ;;  %3106 = vadd.xlane.f32.xlu0 %v3105_v61  ;;  %v3080_v51 = vmin.f32 %v6058_v57, %v4890_v63 }
 0xc2b   : > { %v3052_v7 = vmul.f32 3.3333333, %v3044_v29  ;;  %v3065_v3 = vmul.f32 1.442695, %v3051_v14 }
 0xc2c   : > { %v3108_v27 = vadd.f32 %v3079_v48, %v3078_v22  ;;  %v3109_v6 = vsel %vm429_vm0, %v3080_v51, 0.0 }
 0xc2d   : > { %v3067_v15 = vmul.f32 1.442695, %v3052_v7  ;;  %4895 = vpow2.f32 %v3065_v3 }
 0xc2e   : > { %v3110_v56 = vadd.f32 %v3109_v6, %v3108_v27 }
 0xc2f   : > { %4897 = vpow2.f32 %v3067_v15 }
 0xc30   : > { %3111 = vadd.xlane.f32.xlu1 %v3110_v56 }
 0xc33   : > { %v4892_v50 = vpop.eup %4891 }
 0xc34   : > { %v4894_v21 = vpop.eup %4893  ;;  %v3081_v30 = vmin.f32 %v6061_v33, %v4892_v50  ;;  %v3082_v2 = vmin.f32 %v6067_v46, %v4892_v50  ;;  %v3083_v32 = vmin.f32 %v6070_v58, %v4892_v50 }
 0xc35   : > { %v3084_v59 = vmin.f32 %v6074_v45, %v4894_v21  ;;  %v3085_v12 = vmin.f32 %v6077_v23, %v4894_v21  ;;  %v3086_v0 = vmin.f32 %v6079_v19, %v4894_v21 }
 0xc36   : > { %v3113_v63 = vadd.f32 %v3082_v2, %v3081_v30  ;;  %v3114_v20 = vsel %vm429_vm0, %v3083_v32, 0.0 }
 0xc37   : > { %v4896_v29 = vpop.eup %4895  ;;  %v3118_v61 = vadd.f32 %v3085_v12, %v3084_v59  ;;  %v3119_v14 = vsel %vm429_vm0, %v3086_v0, 0.0 }
 0xc38   : > { %v3115_v48 = vadd.f32 %v3114_v20, %v3113_v63  ;;  %v3087_v7 = vmin.f32 %v6082_v35, %v4896_v29  ;;  %v3088_v51 = vmin.f32 %v6084_v44, %v4896_v29  ;;  %v3089_v3 = vmin.f32 %v6086_v8, %v4896_v29 }
 0xc39   : > { %v4898_v22 = vpop.eup %4897  ;;  %v3120_v27 = vadd.f32 %v3119_v14, %v3118_v61 }
 0xc3a   : > { %v3090_v15 = vmin.f32 %v6088_v39, %v4898_v22  ;;  %v3091_v6 = vmin.f32 %v6093_v53, %v4898_v22  ;;  %v3092_v56 = vmin.f32 %v6098_v4, %v4898_v22  ;;  %3116 = vadd.xlane.f32.xlu0 %v3115_v48  ;;  %v3123_v50 = vadd.f32 %v3088_v51, %v3087_v7 }
 0xc3b   : > { %v3124_v21 = vsel %vm429_vm0, %v3089_v3, 0.0  ;;  %3121 = vadd.xlane.f32.xlu1 %v3120_v27 }
 0xc3c   : > { %v3128_v30 = vadd.f32 %v3091_v6, %v3090_v15  ;;  %v3129_v2 = vsel %vm429_vm0, %v3092_v56, 0.0  ;;  %v3125_v32 = vadd.f32 %v3124_v21, %v3123_v50 }
 0xc3e   : > { %v3130_v59 = vadd.f32 %v3129_v2, %v3128_v30  ;;  %3126 = vadd.xlane.f32.xlu0 %v3125_v32 }
 0xc40   : > { %3131 = vadd.xlane.f32.xlu1 %v3130_v59 }
 0xc8d   : > { %v3097_v12 = vpop.xlane.xlu0 %3096 }
 0xc8e   : > { %v3133_v0 = vadd.f32 1e-20, %v3097_v12 }
 0xc90   : > { %4899 = vlog2.f32 %v3133_v0 }
 0xc9a   : > { %v4900_v63 = vpop.eup %4899 }
 0xc9b   : > { %v3142_v20 = vmul.f32 0.6931472, %v4900_v63 }
 0xc9d   : > { %v3157_v29 = vsub.f32 %v5702_v1, %v3142_v20 }
 0xc9f   : > { %v3165_v61 = vmul.f32 0.3, %v3157_v29 }
 0xca1   : > { %v3173_v14 = vsub.f32 0.0, %v3165_v61 }
 0xca3   : > { %v3181_v22 = vmul.f32 3.3333333, %v3173_v14 }
 0xca5   : > { %v3189_v48 = vmul.f32 1.442695, %v3181_v22 }
 0xca7   : > { %4901 = vpow2.f32 %v3189_v48 }
 0xca8   : > { %v3102_v7 = vpop.xlane.xlu1 %3101 }
 0xca9   : > { %v3134_v51 = vadd.f32 1e-20, %v3102_v7 }
 0xcab   : > { %4903 = vlog2.f32 %v3134_v51 }
 0xcb1   : > { %v4902_v3 = vpop.eup %4901 }
 0xcb2   : > { %v3205_v27 = vmin.f32 %v6002_v18, %v4902_v3  ;;  %v3206_v15 = vmin.f32 %v6004_v47, %v4902_v3  ;;  %v3207_v6 = vmin.f32 %v6006_v34, %v4902_v3 }
 0xcb4   : > { %v3229_v56 = vadd.f32 %v3206_v15, %v3205_v27  ;;  %v3230_v50 = vsel %vm429_vm0, %v3207_v6, 0.0 }
 0xcb5   : > { %v4904_v21 = vpop.eup %4903 }
 0xcb6   : > { %v3231_v30 = vadd.f32 %v3230_v50, %v3229_v56  ;;  %v3144_v2 = vmul.f32 0.6931472, %v4904_v21 }
 0xcb7   : > { %v3107_v59 = vpop.xlane.xlu0 %3106 }
 0xcb8   : > { %3232 = vadd.xlane.f32.xlu0 %v3231_v30  ;;  %v3158_v32 = vsub.f32 %v5705_v13, %v3144_v2  ;;  %v3135_v12 = vadd.f32 1e-20, %v3107_v59 }
 0xcba   : > { %v3166_v0 = vmul.f32 0.3, %v3158_v32  ;;  %4905 = vlog2.f32 %v3135_v12 }
 0xcbc   : > { %v3174_v63 = vsub.f32 0.0, %v3166_v0 }
 0xcbd   : > { %v3112_v20 = vpop.xlane.xlu1 %3111 }
 0xcbe   : > { %v3182_v29 = vmul.f32 3.3333333, %v3174_v63  ;;  %v3136_v61 = vadd.f32 1e-20, %v3112_v20 }
 0xcc0   : > { %v3191_v14 = vmul.f32 1.442695, %v3182_v29  ;;  %4907 = vlog2.f32 %v3136_v61 }
 0xcc2   : > { %4909 = vpow2.f32 %v3191_v14 }
 0xcc4   : > { %v4906_v22 = vpop.eup %4905 }
 0xcc5   : > { %v3146_v48 = vmul.f32 0.6931472, %v4906_v22 }
 0xcc7   : > { %v3159_v7 = vsub.f32 %v5708_v5, %v3146_v48  ;;  %v3117_v51 = vpop.xlane.xlu0 %3116 }
 0xcc8   : > { %v3137_v3 = vadd.f32 1e-20, %v3117_v51  ;;  %v3122_v27 = vpop.xlane.xlu1 %3121 }
 0xcc9   : > { %v3167_v6 = vmul.f32 0.3, %v3159_v7  ;;  %v3138_v56 = vadd.f32 1e-20, %v3122_v27 }
 0xcca   : > { %v4908_v15 = vpop.eup %4907  ;;  %4911 = vlog2.f32 %v3137_v3 }
 0xccb   : > { %v3148_v50 = vmul.f32 0.6931472, %v4908_v15  ;;  %v3175_v30 = vsub.f32 0.0, %v3167_v6  ;;  %4913 = vlog2.f32 %v3138_v56  ;;  %v3127_v2 = vpop.xlane.xlu0 %3126 }
 0xccc   : > { %v4910_v21 = vpop.eup %4909  ;;  %v3139_v59 = vadd.f32 1e-20, %v3127_v2 }
 0xccd   : > { %v3160_v32 = vsub.f32 %v5714_v25, %v3148_v50  ;;  %v3132_v12 = vpop.xlane.xlu1 %3131  ;;  %v3208_v0 = vmin.f32 %v6023_v10, %v4910_v21  ;;  %v3209_v63 = vmin.f32 %v6025_v55, %v4910_v21  ;;  %v3183_v20 = vmul.f32 3.3333333, %v3175_v30 }
 0xcce   : > { %v3140_v29 = vadd.f32 1e-20, %v3132_v12  ;;  %v3210_v61 = vmin.f32 %v6028_v41, %v4910_v21  ;;  %4915 = vlog2.f32 %v3139_v59 }
 0xccf   : > { %v3168_v14 = vmul.f32 0.3, %v3160_v32  ;;  %v3234_v22 = vadd.f32 %v3209_v63, %v3208_v0  ;;  %v3193_v48 = vmul.f32 1.442695, %v3183_v20 }
 0xcd0   : > { %4917 = vlog2.f32 %v3140_v29  ;;  %v3235_v7 = vsel %vm429_vm0, %v3210_v61, 0.0 }
 0xcd1   : > { %v3176_v51 = vsub.f32 0.0, %v3168_v14  ;;  %v3236_v3 = vadd.f32 %v3235_v7, %v3234_v22  ;;  %4919 = vpow2.f32 %v3193_v48 }
 0xcd3   : > { %v3184_v27 = vmul.f32 3.3333333, %v3176_v51  ;;  %3237 = vadd.xlane.f32.xlu1 %v3236_v3 }
 0xcd4   : > { %v4912_v15 = vpop.eup %4911 }
 0xcd5   : > { %v3195_v6 = vmul.f32 1.442695, %v3184_v27  ;;  %v4914_v56 = vpop.eup %4913  ;;  %v3150_v50 = vmul.f32 0.6931472, %v4912_v15 }
 0xcd6   : > { %v3152_v30 = vmul.f32 0.6931472, %v4914_v56 }
 0xcd7   : > { %4921 = vpow2.f32 %v3195_v6  ;;  %v3161_v21 = vsub.f32 %v5720_v16, %v3150_v50 }
 0xcd8   : > { %v4916_v2 = vpop.eup %4915  ;;  %v3162_v32 = vsub.f32 %v5722_v17, %v3152_v30 }
 0xcd9   : > { %v3169_v12 = vmul.f32 0.3, %v3161_v21  ;;  %v3154_v0 = vmul.f32 0.6931472, %v4916_v2 }
 0xcda   : > { %v4918_v59 = vpop.eup %4917  ;;  %v3170_v63 = vmul.f32 0.3, %v3162_v32 }
 0xcdb   : > { %v3156_v20 = vmul.f32 0.6931472, %v4918_v59  ;;  %v4920_v29 = vpop.eup %4919  ;;  %v3177_v61 = vsub.f32 0.0, %v3169_v12  ;;  %v3163_v14 = vsub.f32 %v5730_v36, %v3154_v0 }
 0xcdc   : > { %v3178_v22 = vsub.f32 0.0, %v3170_v63  ;;  %v3211_v7 = vmin.f32 %v6039_v62, %v4920_v29  ;;  %v3212_v51 = vmin.f32 %v6042_v38, %v4920_v29  ;;  %v3213_v15 = vmin.f32 %v6045_v28, %v4920_v29 }
 0xcdd   : > { %v3164_v48 = vsub.f32 %v5732_v31, %v3156_v20  ;;  %v3185_v3 = vmul.f32 3.3333333, %v3177_v61  ;;  %v3171_v27 = vmul.f32 0.3, %v3163_v14 }
 0xcde   : > { %v3186_v6 = vmul.f32 3.3333333, %v3178_v22  ;;  %v3239_v50 = vadd.f32 %v3212_v51, %v3211_v7  ;;  %v3240_v2 = vsel %vm429_vm0, %v3213_v15, 0.0 }
 0xcdf   : > { %v3172_v56 = vmul.f32 0.3, %v3164_v48  ;;  %v3197_v30 = vmul.f32 1.442695, %v3185_v3  ;;  %v3179_v21 = vsub.f32 0.0, %v3171_v27 }
 0xce0   : > { %v3199_v59 = vmul.f32 1.442695, %v3186_v6  ;;  %v3241_v0 = vadd.f32 %v3240_v2, %v3239_v50 }
 0xce1   : > { %v4922_v32 = vpop.eup %4921  ;;  %v3180_v12 = vsub.f32 0.0, %v3172_v56  ;;  %4923 = vpow2.f32 %v3197_v30  ;;  %v3187_v63 = vmul.f32 3.3333333, %v3179_v21 }
 0xce2   : > { %v3214_v20 = vmin.f32 %v6048_v26, %v4922_v32  ;;  %v3215_v61 = vmin.f32 %v6053_v24, %v4922_v32  ;;  %4925 = vpow2.f32 %v3199_v59  ;;  %3242 = vadd.xlane.f32.xlu0 %v3241_v0  ;;  %v3216_v29 = vmin.f32 %v6058_v57, %v4922_v32 }
 0xce3   : > { %v3188_v14 = vmul.f32 3.3333333, %v3180_v12  ;;  %v3201_v22 = vmul.f32 1.442695, %v3187_v63 }
 0xce4   : > { %v3244_v48 = vadd.f32 %v3215_v61, %v3214_v20  ;;  %v3245_v51 = vsel %vm429_vm0, %v3216_v29, 0.0 }
 0xce5   : > { %v3203_v7 = vmul.f32 1.442695, %v3188_v14  ;;  %4927 = vpow2.f32 %v3201_v22 }
 0xce6   : > { %v3246_v3 = vadd.f32 %v3245_v51, %v3244_v48 }
 0xce7   : > { %4929 = vpow2.f32 %v3203_v7 }
 0xce8   : > { %3247 = vadd.xlane.f32.xlu1 %v3246_v3 }
 0xceb   : > { %v4924_v27 = vpop.eup %4923 }
 0xcec   : > { %v4926_v15 = vpop.eup %4925  ;;  %v3217_v6 = vmin.f32 %v6061_v33, %v4924_v27  ;;  %v3218_v56 = vmin.f32 %v6067_v46, %v4924_v27  ;;  %v3219_v50 = vmin.f32 %v6070_v58, %v4924_v27 }
 0xced   : > { %v3220_v30 = vmin.f32 %v6074_v45, %v4926_v15  ;;  %v3221_v21 = vmin.f32 %v6077_v23, %v4926_v15  ;;  %v3222_v2 = vmin.f32 %v6079_v19, %v4926_v15 }
 0xcee   : > { %v3249_v32 = vadd.f32 %v3218_v56, %v3217_v6  ;;  %v3250_v59 = vsel %vm429_vm0, %v3219_v50, 0.0 }
 0xcef   : > { %v4928_v12 = vpop.eup %4927  ;;  %v3254_v0 = vadd.f32 %v3221_v21, %v3220_v30  ;;  %v3255_v63 = vsel %vm429_vm0, %v3222_v2, 0.0 }
 0xcf0   : > { %v3251_v61 = vadd.f32 %v3250_v59, %v3249_v32  ;;  %v3223_v14 = vmin.f32 %v6082_v35, %v4928_v12  ;;  %v3224_v29 = vmin.f32 %v6084_v44, %v4928_v12  ;;  %v3225_v22 = vmin.f32 %v6086_v8, %v4928_v12 }
 0xcf1   : > { %v4930_v20 = vpop.eup %4929  ;;  %v3256_v48 = vadd.f32 %v3255_v63, %v3254_v0 }
 0xcf2   : > { %v3226_v7 = vmin.f32 %v6088_v39, %v4930_v20  ;;  %v3227_v51 = vmin.f32 %v6093_v53, %v4930_v20  ;;  %v3228_v3 = vmin.f32 %v6098_v4, %v4930_v20  ;;  %3252 = vadd.xlane.f32.xlu0 %v3251_v61  ;;  %v3259_v27 = vadd.f32 %v3224_v29, %v3223_v14 }
 0xcf3   : > { %v3260_v15 = vsel %vm429_vm0, %v3225_v22, 0.0  ;;  %3257 = vadd.xlane.f32.xlu1 %v3256_v48 }
 0xcf4   : > { %v3264_v6 = vadd.f32 %v3227_v51, %v3226_v7  ;;  %v3265_v56 = vsel %vm429_vm0, %v3228_v3, 0.0  ;;  %v3261_v50 = vadd.f32 %v3260_v15, %v3259_v27 }
 0xcf6   : > { %v3266_v30 = vadd.f32 %v3265_v56, %v3264_v6  ;;  %3262 = vadd.xlane.f32.xlu0 %v3261_v50 }
 0xcf8   : > { %3267 = vadd.xlane.f32.xlu1 %v3266_v30 }
 0xd45   : > { %v3233_v21 = vpop.xlane.xlu0 %3232 }
 0xd46   : > { %v3269_v2 = vadd.f32 1e-20, %v3233_v21 }
 0xd48   : > { %4931 = vlog2.f32 %v3269_v2 }
 0xd52   : > { %v4932_v32 = vpop.eup %4931 }
 0xd53   : > { %v3278_v59 = vmul.f32 0.6931472, %v4932_v32 }
 0xd55   : > { %v3293_v12 = vsub.f32 %v5702_v1, %v3278_v59 }
 0xd57   : > { %v3301_v0 = vmul.f32 0.3, %v3293_v12 }
 0xd59   : > { %v3309_v63 = vsub.f32 0.0, %v3301_v0 }
 0xd5b   : > { %v3317_v20 = vmul.f32 3.3333333, %v3309_v63 }
 0xd5d   : > { %v3325_v61 = vmul.f32 1.442695, %v3317_v20 }
 0xd5f   : > { %4933 = vpow2.f32 %v3325_v61 }
 0xd60   : > { %v3238_v14 = vpop.xlane.xlu1 %3237 }
 0xd61   : > { %v3270_v29 = vadd.f32 1e-20, %v3238_v14 }
 0xd63   : > { %4935 = vlog2.f32 %v3270_v29 }
 0xd69   : > { %v4934_v22 = vpop.eup %4933 }
 0xd6a   : > { %v3341_v48 = vmin.f32 %v6002_v18, %v4934_v22  ;;  %v3342_v7 = vmin.f32 %v6004_v47, %v4934_v22  ;;  %v3343_v51 = vmin.f32 %v6006_v34, %v4934_v22 }
 0xd6c   : > { %v3365_v3 = vadd.f32 %v3342_v7, %v3341_v48  ;;  %v3366_v27 = vsel %vm429_vm0, %v3343_v51, 0.0 }
 0xd6d   : > { %v4936_v15 = vpop.eup %4935 }
 0xd6e   : > { %v3367_v6 = vadd.f32 %v3366_v27, %v3365_v3  ;;  %v3280_v56 = vmul.f32 0.6931472, %v4936_v15 }
 0xd6f   : > { %v3243_v30 = vpop.xlane.xlu0 %3242 }
 0xd70   : > { %3368 = vadd.xlane.f32.xlu0 %v3367_v6  ;;  %v3294_v50 = vsub.f32 %v5705_v13, %v3280_v56  ;;  %v3271_v21 = vadd.f32 1e-20, %v3243_v30 }
 0xd72   : > { %v3302_v2 = vmul.f32 0.3, %v3294_v50  ;;  %4937 = vlog2.f32 %v3271_v21 }
 0xd74   : > { %v3310_v32 = vsub.f32 0.0, %v3302_v2 }
 0xd75   : > { %v3248_v59 = vpop.xlane.xlu1 %3247 }
 0xd76   : > { %v3318_v12 = vmul.f32 3.3333333, %v3310_v32  ;;  %v3272_v0 = vadd.f32 1e-20, %v3248_v59 }
 0xd78   : > { %v3327_v63 = vmul.f32 1.442695, %v3318_v12  ;;  %4939 = vlog2.f32 %v3272_v0 }
 0xd7a   : > { %4941 = vpow2.f32 %v3327_v63 }
 0xd7c   : > { %v4938_v20 = vpop.eup %4937 }
 0xd7d   : > { %v3282_v61 = vmul.f32 0.6931472, %v4938_v20 }
 0xd7f   : > { %v3295_v14 = vsub.f32 %v5708_v5, %v3282_v61  ;;  %v3253_v29 = vpop.xlane.xlu0 %3252 }
 0xd80   : > { %v3273_v22 = vadd.f32 1e-20, %v3253_v29  ;;  %v3258_v48 = vpop.xlane.xlu1 %3257 }
 0xd81   : > { %v3303_v51 = vmul.f32 0.3, %v3295_v14  ;;  %v3274_v3 = vadd.f32 1e-20, %v3258_v48 }
 0xd82   : > { %v4940_v7 = vpop.eup %4939  ;;  %4943 = vlog2.f32 %v3273_v22 }
 0xd83   : > { %v3284_v27 = vmul.f32 0.6931472, %v4940_v7  ;;  %v3311_v6 = vsub.f32 0.0, %v3303_v51  ;;  %4945 = vlog2.f32 %v3274_v3  ;;  %v3263_v56 = vpop.xlane.xlu0 %3262 }
 0xd84   : > { %v4942_v15 = vpop.eup %4941  ;;  %v3275_v30 = vadd.f32 1e-20, %v3263_v56 }
 0xd85   : > { %v3296_v50 = vsub.f32 %v5714_v25, %v3284_v27  ;;  %v3268_v21 = vpop.xlane.xlu1 %3267  ;;  %v3344_v2 = vmin.f32 %v6023_v10, %v4942_v15  ;;  %v3345_v32 = vmin.f32 %v6025_v55, %v4942_v15  ;;  %v3319_v59 = vmul.f32 3.3333333, %v3311_v6 }
 0xd86   : > { %v3276_v12 = vadd.f32 1e-20, %v3268_v21  ;;  %v3346_v0 = vmin.f32 %v6028_v41, %v4942_v15  ;;  %4947 = vlog2.f32 %v3275_v30 }
 0xd87   : > { %v3304_v63 = vmul.f32 0.3, %v3296_v50  ;;  %v3370_v20 = vadd.f32 %v3345_v32, %v3344_v2  ;;  %v3329_v61 = vmul.f32 1.442695, %v3319_v59 }
 0xd88   : > { %4949 = vlog2.f32 %v3276_v12  ;;  %v3371_v14 = vsel %vm429_vm0, %v3346_v0, 0.0 }
 0xd89   : > { %v3312_v29 = vsub.f32 0.0, %v3304_v63  ;;  %v3372_v22 = vadd.f32 %v3371_v14, %v3370_v20  ;;  %4951 = vpow2.f32 %v3329_v61 }
 0xd8b   : > { %v3320_v48 = vmul.f32 3.3333333, %v3312_v29  ;;  %3373 = vadd.xlane.f32.xlu1 %v3372_v22 }
 0xd8c   : > { %v4944_v7 = vpop.eup %4943 }
 0xd8d   : > { %v3331_v51 = vmul.f32 1.442695, %v3320_v48  ;;  %v4946_v3 = vpop.eup %4945  ;;  %v3286_v27 = vmul.f32 0.6931472, %v4944_v7 }
 0xd8e   : > { %v3288_v6 = vmul.f32 0.6931472, %v4946_v3 }
 0xd8f   : > { %4953 = vpow2.f32 %v3331_v51  ;;  %v3297_v15 = vsub.f32 %v5720_v16, %v3286_v27 }
 0xd90   : > { %v4948_v56 = vpop.eup %4947  ;;  %v3298_v50 = vsub.f32 %v5722_v17, %v3288_v6 }
 0xd91   : > { %v3305_v21 = vmul.f32 0.3, %v3297_v15  ;;  %v3290_v2 = vmul.f32 0.6931472, %v4948_v56 }
 0xd92   : > { %v4950_v30 = vpop.eup %4949  ;;  %v3306_v32 = vmul.f32 0.3, %v3298_v50 }
 0xd93   : > { %v3292_v59 = vmul.f32 0.6931472, %v4950_v30  ;;  %v4952_v12 = vpop.eup %4951  ;;  %v3313_v0 = vsub.f32 0.0, %v3305_v21  ;;  %v3299_v63 = vsub.f32 %v5730_v36, %v3290_v2 }
 0xd94   : > { %v3314_v20 = vsub.f32 0.0, %v3306_v32  ;;  %v3347_v14 = vmin.f32 %v6039_v62, %v4952_v12  ;;  %v3348_v29 = vmin.f32 %v6042_v38, %v4952_v12  ;;  %v3349_v7 = vmin.f32 %v6045_v28, %v4952_v12 }
 0xd95   : > { %v3300_v61 = vsub.f32 %v5732_v31, %v3292_v59  ;;  %v3321_v22 = vmul.f32 3.3333333, %v3313_v0  ;;  %v3307_v48 = vmul.f32 0.3, %v3299_v63 }
 0xd96   : > { %v3322_v51 = vmul.f32 3.3333333, %v3314_v20  ;;  %v3375_v27 = vadd.f32 %v3348_v29, %v3347_v14  ;;  %v3376_v56 = vsel %vm429_vm0, %v3349_v7, 0.0 }
 0xd97   : > { %v3308_v3 = vmul.f32 0.3, %v3300_v61  ;;  %v3333_v6 = vmul.f32 1.442695, %v3321_v22  ;;  %v3315_v15 = vsub.f32 0.0, %v3307_v48 }
 0xd98   : > { %v3335_v30 = vmul.f32 1.442695, %v3322_v51  ;;  %v3377_v2 = vadd.f32 %v3376_v56, %v3375_v27 }
 0xd99   : > { %v4954_v50 = vpop.eup %4953  ;;  %v3316_v21 = vsub.f32 0.0, %v3308_v3  ;;  %4955 = vpow2.f32 %v3333_v6  ;;  %v3323_v32 = vmul.f32 3.3333333, %v3315_v15 }
 0xd9a   : > { %v3350_v59 = vmin.f32 %v6048_v26, %v4954_v50  ;;  %v3351_v0 = vmin.f32 %v6053_v24, %v4954_v50  ;;  %4957 = vpow2.f32 %v3335_v30  ;;  %3378 = vadd.xlane.f32.xlu0 %v3377_v2  ;;  %v3352_v12 = vmin.f32 %v6058_v57, %v4954_v50 }
 0xd9b   : > { %v3324_v63 = vmul.f32 3.3333333, %v3316_v21  ;;  %v3337_v20 = vmul.f32 1.442695, %v3323_v32 }
 0xd9c   : > { %v3380_v61 = vadd.f32 %v3351_v0, %v3350_v59  ;;  %v3381_v29 = vsel %vm429_vm0, %v3352_v12, 0.0 }
 0xd9d   : > { %v3339_v14 = vmul.f32 1.442695, %v3324_v63  ;;  %4959 = vpow2.f32 %v3337_v20 }
 0xd9e   : > { %v3382_v22 = vadd.f32 %v3381_v29, %v3380_v61 }
 0xd9f   : > { %4961 = vpow2.f32 %v3339_v14 }
 0xda0   : > { %3383 = vadd.xlane.f32.xlu1 %v3382_v22 }
 0xda3   : > { %v4956_v48 = vpop.eup %4955 }
 0xda4   : > { %v4958_v7 = vpop.eup %4957  ;;  %v3353_v51 = vmin.f32 %v6061_v33, %v4956_v48  ;;  %v3354_v3 = vmin.f32 %v6067_v46, %v4956_v48  ;;  %v3355_v27 = vmin.f32 %v6070_v58, %v4956_v48 }
 0xda5   : > { %v3356_v6 = vmin.f32 %v6074_v45, %v4958_v7  ;;  %v3357_v15 = vmin.f32 %v6077_v23, %v4958_v7  ;;  %v3358_v56 = vmin.f32 %v6079_v19, %v4958_v7 }
 0xda6   : > { %v3385_v50 = vadd.f32 %v3354_v3, %v3353_v51  ;;  %v3386_v30 = vsel %vm429_vm0, %v3355_v27, 0.0 }
 0xda7   : > { %v4960_v21 = vpop.eup %4959  ;;  %v3390_v2 = vadd.f32 %v3357_v15, %v3356_v6  ;;  %v3391_v32 = vsel %vm429_vm0, %v3358_v56, 0.0 }
 0xda8   : > { %v3387_v0 = vadd.f32 %v3386_v30, %v3385_v50  ;;  %v3359_v63 = vmin.f32 %v6082_v35, %v4960_v21  ;;  %v3360_v12 = vmin.f32 %v6084_v44, %v4960_v21  ;;  %v3361_v20 = vmin.f32 %v6086_v8, %v4960_v21 }
 0xda9   : > { %v4962_v59 = vpop.eup %4961  ;;  %v3392_v61 = vadd.f32 %v3391_v32, %v3390_v2 }
 0xdaa   : > { %v3362_v14 = vmin.f32 %v6088_v39, %v4962_v59  ;;  %v3363_v29 = vmin.f32 %v6093_v53, %v4962_v59  ;;  %v3364_v22 = vmin.f32 %v6098_v4, %v4962_v59  ;;  %3388 = vadd.xlane.f32.xlu0 %v3387_v0  ;;  %v3395_v48 = vadd.f32 %v3360_v12, %v3359_v63 }
 0xdab   : > { %v3396_v7 = vsel %vm429_vm0, %v3361_v20, 0.0  ;;  %3393 = vadd.xlane.f32.xlu1 %v3392_v61 }
 0xdac   : > { %v3400_v51 = vadd.f32 %v3363_v29, %v3362_v14  ;;  %v3401_v3 = vsel %vm429_vm0, %v3364_v22, 0.0  ;;  %v3397_v27 = vadd.f32 %v3396_v7, %v3395_v48 }
 0xdae   : > { %v3402_v6 = vadd.f32 %v3401_v3, %v3400_v51  ;;  %3398 = vadd.xlane.f32.xlu0 %v3397_v27 }
 0xdb0   : > { %3403 = vadd.xlane.f32.xlu1 %v3402_v6 }
 0xdfd   : > { %v3369_v15 = vpop.xlane.xlu0 %3368 }
 0xdfe   : > { %v3405_v56 = vadd.f32 1e-20, %v3369_v15 }
 0xe00   : > { %4963 = vlog2.f32 %v3405_v56 }
 0xe0a   : > { %v4964_v50 = vpop.eup %4963 }
 0xe0b   : > { %v3414_v30 = vmul.f32 0.6931472, %v4964_v50 }
 0xe0d   : > { %v3429_v21 = vsub.f32 %v5702_v1, %v3414_v30 }
 0xe0f   : > { %v3437_v2 = vmul.f32 0.3, %v3429_v21 }
 0xe11   : > { %v3445_v32 = vsub.f32 0.0, %v3437_v2 }
 0xe13   : > { %v3453_v59 = vmul.f32 3.3333333, %v3445_v32 }
 0xe15   : > { %v3461_v0 = vmul.f32 1.442695, %v3453_v59 }
 0xe17   : > { %4965 = vpow2.f32 %v3461_v0 }
 0xe18   : > { %v3374_v63 = vpop.xlane.xlu1 %3373 }
 0xe19   : > { %v3406_v12 = vadd.f32 1e-20, %v3374_v63 }
 0xe1b   : > { %4967 = vlog2.f32 %v3406_v12 }
 0xe21   : > { %v4966_v20 = vpop.eup %4965 }
 0xe22   : > { %v3477_v61 = vmin.f32 %v6002_v18, %v4966_v20  ;;  %v3478_v14 = vmin.f32 %v6004_v47, %v4966_v20  ;;  %v3479_v29 = vmin.f32 %v6006_v34, %v4966_v20 }
 0xe24   : > { %v3501_v22 = vadd.f32 %v3478_v14, %v3477_v61  ;;  %v3502_v48 = vsel %vm429_vm0, %v3479_v29, 0.0 }
 0xe25   : > { %v4968_v7 = vpop.eup %4967 }
 0xe26   : > { %v3503_v51 = vadd.f32 %v3502_v48, %v3501_v22  ;;  %v3416_v3 = vmul.f32 0.6931472, %v4968_v7 }
 0xe27   : > { %v3379_v6 = vpop.xlane.xlu0 %3378 }
 0xe28   : > { %3504 = vadd.xlane.f32.xlu0 %v3503_v51  ;;  %v3430_v27 = vsub.f32 %v5705_v13, %v3416_v3  ;;  %v3407_v15 = vadd.f32 1e-20, %v3379_v6 }
 0xe2a   : > { %v3438_v56 = vmul.f32 0.3, %v3430_v27  ;;  %4969 = vlog2.f32 %v3407_v15 }
 0xe2c   : > { %v3446_v50 = vsub.f32 0.0, %v3438_v56 }
 0xe2d   : > { %v3384_v30 = vpop.xlane.xlu1 %3383 }
 0xe2e   : > { %v3454_v21 = vmul.f32 3.3333333, %v3446_v50  ;;  %v3408_v2 = vadd.f32 1e-20, %v3384_v30 }
 0xe30   : > { %v3463_v32 = vmul.f32 1.442695, %v3454_v21  ;;  %4971 = vlog2.f32 %v3408_v2 }
 0xe32   : > { %4973 = vpow2.f32 %v3463_v32 }
 0xe34   : > { %v4970_v59 = vpop.eup %4969 }
 0xe35   : > { %v3418_v0 = vmul.f32 0.6931472, %v4970_v59 }
 0xe37   : > { %v3431_v63 = vsub.f32 %v5708_v5, %v3418_v0  ;;  %v3389_v12 = vpop.xlane.xlu0 %3388 }
 0xe38   : > { %v3409_v20 = vadd.f32 1e-20, %v3389_v12  ;;  %v3394_v61 = vpop.xlane.xlu1 %3393 }
 0xe39   : > { %v3439_v29 = vmul.f32 0.3, %v3431_v63  ;;  %v3410_v22 = vadd.f32 1e-20, %v3394_v61 }
 0xe3a   : > { %v4972_v14 = vpop.eup %4971  ;;  %4975 = vlog2.f32 %v3409_v20 }
 0xe3b   : > { %v3420_v48 = vmul.f32 0.6931472, %v4972_v14  ;;  %v3447_v51 = vsub.f32 0.0, %v3439_v29  ;;  %4977 = vlog2.f32 %v3410_v22  ;;  %v3399_v3 = vpop.xlane.xlu0 %3398 }
 0xe3c   : > { %v4974_v7 = vpop.eup %4973  ;;  %v3411_v6 = vadd.f32 1e-20, %v3399_v3 }
 0xe3d   : > { %v3432_v27 = vsub.f32 %v5714_v25, %v3420_v48  ;;  %v3404_v15 = vpop.xlane.xlu1 %3403  ;;  %v3480_v56 = vmin.f32 %v6023_v10, %v4974_v7  ;;  %v3481_v50 = vmin.f32 %v6025_v55, %v4974_v7  ;;  %v3455_v30 = vmul.f32 3.3333333, %v3447_v51 }
 0xe3e   : > { %v3412_v21 = vadd.f32 1e-20, %v3404_v15  ;;  %v3482_v2 = vmin.f32 %v6028_v41, %v4974_v7  ;;  %4979 = vlog2.f32 %v3411_v6 }
 0xe3f   : > { %v3440_v32 = vmul.f32 0.3, %v3432_v27  ;;  %v3506_v59 = vadd.f32 %v3481_v50, %v3480_v56  ;;  %v3465_v0 = vmul.f32 1.442695, %v3455_v30 }
 0xe40   : > { %4981 = vlog2.f32 %v3412_v21  ;;  %v3507_v63 = vsel %vm429_vm0, %v3482_v2, 0.0 }
 0xe41   : > { %v3448_v12 = vsub.f32 0.0, %v3440_v32  ;;  %v3508_v20 = vadd.f32 %v3507_v63, %v3506_v59  ;;  %4983 = vpow2.f32 %v3465_v0 }
 0xe43   : > { %v3456_v61 = vmul.f32 3.3333333, %v3448_v12  ;;  %3509 = vadd.xlane.f32.xlu1 %v3508_v20 }
 0xe44   : > { %v4976_v14 = vpop.eup %4975 }
 0xe45   : > { %v3467_v29 = vmul.f32 1.442695, %v3456_v61  ;;  %v4978_v22 = vpop.eup %4977  ;;  %v3422_v48 = vmul.f32 0.6931472, %v4976_v14 }
 0xe46   : > { %v3424_v51 = vmul.f32 0.6931472, %v4978_v22 }
 0xe47   : > { %4985 = vpow2.f32 %v3467_v29  ;;  %v3433_v7 = vsub.f32 %v5720_v16, %v3422_v48 }
 0xe48   : > { %v4980_v3 = vpop.eup %4979  ;;  %v3434_v27 = vsub.f32 %v5722_v17, %v3424_v51 }
 0xe49   : > { %v3441_v15 = vmul.f32 0.3, %v3433_v7  ;;  %v3426_v56 = vmul.f32 0.6931472, %v4980_v3 }
 0xe4a   : > { %v4982_v6 = vpop.eup %4981  ;;  %v3442_v50 = vmul.f32 0.3, %v3434_v27 }
 0xe4b   : > { %v3428_v30 = vmul.f32 0.6931472, %v4982_v6  ;;  %v4984_v21 = vpop.eup %4983  ;;  %v3449_v2 = vsub.f32 0.0, %v3441_v15  ;;  %v3435_v32 = vsub.f32 %v5730_v36, %v3426_v56 }
 0xe4c   : > { %v3450_v59 = vsub.f32 0.0, %v3442_v50  ;;  %v3483_v63 = vmin.f32 %v6039_v62, %v4984_v21  ;;  %v3484_v12 = vmin.f32 %v6042_v38, %v4984_v21  ;;  %v3485_v14 = vmin.f32 %v6045_v28, %v4984_v21 }
 0xe4d   : > { %v3436_v0 = vsub.f32 %v5732_v31, %v3428_v30  ;;  %v3457_v20 = vmul.f32 3.3333333, %v3449_v2  ;;  %v3443_v61 = vmul.f32 0.3, %v3435_v32 }
 0xe4e   : > { %v3458_v29 = vmul.f32 3.3333333, %v3450_v59  ;;  %v3511_v48 = vadd.f32 %v3484_v12, %v3483_v63  ;;  %v3512_v3 = vsel %vm429_vm0, %v3485_v14, 0.0 }
 0xe4f   : > { %v3444_v22 = vmul.f32 0.3, %v3436_v0  ;;  %v3469_v51 = vmul.f32 1.442695, %v3457_v20  ;;  %v3451_v7 = vsub.f32 0.0, %v3443_v61 }
 0xe50   : > { %v3471_v6 = vmul.f32 1.442695, %v3458_v29  ;;  %v3513_v56 = vadd.f32 %v3512_v3, %v3511_v48 }
 0xe51   : > { %v4986_v27 = vpop.eup %4985  ;;  %v3452_v15 = vsub.f32 0.0, %v3444_v22  ;;  %4987 = vpow2.f32 %v3469_v51  ;;  %v3459_v50 = vmul.f32 3.3333333, %v3451_v7 }
 0xe52   : > { %v3486_v30 = vmin.f32 %v6048_v26, %v4986_v27  ;;  %v3487_v2 = vmin.f32 %v6053_v24, %v4986_v27  ;;  %4989 = vpow2.f32 %v3471_v6  ;;  %3514 = vadd.xlane.f32.xlu0 %v3513_v56  ;;  %v3488_v21 = vmin.f32 %v6058_v57, %v4986_v27 }
 0xe53   : > { %v3460_v32 = vmul.f32 3.3333333, %v3452_v15  ;;  %v3473_v59 = vmul.f32 1.442695, %v3459_v50 }
 0xe54   : > { %v3516_v0 = vadd.f32 %v3487_v2, %v3486_v30  ;;  %v3517_v12 = vsel %vm429_vm0, %v3488_v21, 0.0 }
 0xe55   : > { %v3475_v63 = vmul.f32 1.442695, %v3460_v32  ;;  %4991 = vpow2.f32 %v3473_v59 }
 0xe56   : > { %v3518_v20 = vadd.f32 %v3517_v12, %v3516_v0 }
 0xe57   : > { %4993 = vpow2.f32 %v3475_v63 }
 0xe58   : > { %3519 = vadd.xlane.f32.xlu1 %v3518_v20 }
 0xe5b   : > { %v4988_v61 = vpop.eup %4987 }
 0xe5c   : > { %v4990_v14 = vpop.eup %4989  ;;  %v3489_v29 = vmin.f32 %v6061_v33, %v4988_v61  ;;  %v3490_v22 = vmin.f32 %v6067_v46, %v4988_v61  ;;  %v3491_v48 = vmin.f32 %v6070_v58, %v4988_v61 }
 0xe5d   : > { %v3492_v51 = vmin.f32 %v6074_v45, %v4990_v14  ;;  %v3493_v7 = vmin.f32 %v6077_v23, %v4990_v14  ;;  %v3494_v3 = vmin.f32 %v6079_v19, %v4990_v14 }
 0xe5e   : > { %v3521_v27 = vadd.f32 %v3490_v22, %v3489_v29  ;;  %v3522_v6 = vsel %vm429_vm0, %v3491_v48, 0.0 }
 0xe5f   : > { %v4992_v15 = vpop.eup %4991  ;;  %v3526_v56 = vadd.f32 %v3493_v7, %v3492_v51  ;;  %v3527_v50 = vsel %vm429_vm0, %v3494_v3, 0.0 }
 0xe60   : > { %v3523_v2 = vadd.f32 %v3522_v6, %v3521_v27  ;;  %v3495_v32 = vmin.f32 %v6082_v35, %v4992_v15  ;;  %v3496_v21 = vmin.f32 %v6084_v44, %v4992_v15  ;;  %v3497_v59 = vmin.f32 %v6086_v8, %v4992_v15 }
 0xe61   : > { %v4994_v30 = vpop.eup %4993  ;;  %v3528_v0 = vadd.f32 %v3527_v50, %v3526_v56 }
 0xe62   : > { %v3498_v63 = vmin.f32 %v6088_v39, %v4994_v30  ;;  %v3499_v12 = vmin.f32 %v6093_v53, %v4994_v30  ;;  %v3500_v20 = vmin.f32 %v6098_v4, %v4994_v30  ;;  %3524 = vadd.xlane.f32.xlu0 %v3523_v2  ;;  %v3531_v61 = vadd.f32 %v3496_v21, %v3495_v32 }
 0xe63   : > { %v3532_v14 = vsel %vm429_vm0, %v3497_v59, 0.0  ;;  %3529 = vadd.xlane.f32.xlu1 %v3528_v0 }
 0xe64   : > { %v3536_v29 = vadd.f32 %v3499_v12, %v3498_v63  ;;  %v3537_v22 = vsel %vm429_vm0, %v3500_v20, 0.0  ;;  %v3533_v48 = vadd.f32 %v3532_v14, %v3531_v61 }
 0xe66   : > { %v3538_v51 = vadd.f32 %v3537_v22, %v3536_v29  ;;  %3534 = vadd.xlane.f32.xlu0 %v3533_v48 }
 0xe68   : > { %3539 = vadd.xlane.f32.xlu1 %v3538_v51 }
 0xeb5   : > { %v3505_v7 = vpop.xlane.xlu0 %3504 }
 0xeb6   : > { %v3541_v3 = vadd.f32 1e-20, %v3505_v7 }
 0xeb8   : > { %4995 = vlog2.f32 %v3541_v3 }
 0xec2   : > { %v4996_v27 = vpop.eup %4995 }
 0xec3   : > { %v3550_v6 = vmul.f32 0.6931472, %v4996_v27 }
 0xec5   : > { %v3565_v15 = vsub.f32 %v5702_v1, %v3550_v6 }
 0xec7   : > { %v3573_v56 = vmul.f32 0.3, %v3565_v15 }
 0xec9   : > { %v3581_v50 = vsub.f32 0.0, %v3573_v56 }
 0xecb   : > { %v3589_v30 = vmul.f32 3.3333333, %v3581_v50 }
 0xecd   : > { %v3597_v2 = vmul.f32 1.442695, %v3589_v30 }
 0xecf   : > { %4997 = vpow2.f32 %v3597_v2 }
 0xed0   : > { %v3510_v32 = vpop.xlane.xlu1 %3509 }
 0xed1   : > { %v3542_v21 = vadd.f32 1e-20, %v3510_v32 }
 0xed3   : > { %4999 = vlog2.f32 %v3542_v21 }
 0xed9   : > { %v4998_v59 = vpop.eup %4997 }
 0xeda   : > { %v3613_v0 = vmin.f32 %v6002_v18, %v4998_v59  ;;  %v3614_v63 = vmin.f32 %v6004_v47, %v4998_v59  ;;  %v3615_v12 = vmin.f32 %v6006_v34, %v4998_v59 }
 0xedc   : > { %v3637_v20 = vadd.f32 %v3614_v63, %v3613_v0  ;;  %v3638_v61 = vsel %vm429_vm0, %v3615_v12, 0.0 }
 0xedd   : > { %v5000_v14 = vpop.eup %4999 }
 0xede   : > { %v3639_v29 = vadd.f32 %v3638_v61, %v3637_v20  ;;  %v3552_v22 = vmul.f32 0.6931472, %v5000_v14 }
 0xedf   : > { %v3515_v51 = vpop.xlane.xlu0 %3514 }
 0xee0   : > { %3640 = vadd.xlane.f32.xlu0 %v3639_v29  ;;  %v3566_v48 = vsub.f32 %v5705_v13, %v3552_v22  ;;  %v3543_v7 = vadd.f32 1e-20, %v3515_v51 }
 0xee2   : > { %v3574_v3 = vmul.f32 0.3, %v3566_v48  ;;  %5001 = vlog2.f32 %v3543_v7 }
 0xee4   : > { %v3582_v27 = vsub.f32 0.0, %v3574_v3 }
 0xee5   : > { %v3520_v6 = vpop.xlane.xlu1 %3519 }
 0xee6   : > { %v3590_v18 = vmul.f32 3.3333333, %v3582_v27  ;;  %v3544_v15 = vadd.f32 1e-20, %v3520_v6 }
 0xee8   : > { %v3599_v47 = vmul.f32 1.442695, %v3590_v18  ;;  %5003 = vlog2.f32 %v3544_v15 }
 0xeea   : > { %5005 = vpow2.f32 %v3599_v47 }
 0xeec   : > { %v5002_v34 = vpop.eup %5001 }
 0xeed   : > { %v3554_v56 = vmul.f32 0.6931472, %v5002_v34 }
 0xeef   : > { %v3567_v50 = vsub.f32 %v5708_v5, %v3554_v56  ;;  %v3525_v30 = vpop.xlane.xlu0 %3524 }
 0xef0   : > { %v3545_v2 = vadd.f32 1e-20, %v3525_v30  ;;  %v3530_v32 = vpop.xlane.xlu1 %3529 }
 0xef1   : > { %v3575_v59 = vmul.f32 0.3, %v3567_v50  ;;  %v3546_v0 = vadd.f32 1e-20, %v3530_v32 }
 0xef2   : > { %v5004_v21 = vpop.eup %5003  ;;  %5007 = vlog2.f32 %v3545_v2 }
 0xef3   : > { %v3556_v63 = vmul.f32 0.6931472, %v5004_v21  ;;  %v3583_v20 = vsub.f32 0.0, %v3575_v59  ;;  %5009 = vlog2.f32 %v3546_v0  ;;  %v3535_v61 = vpop.xlane.xlu0 %3534 }
 0xef4   : > { %v5006_v12 = vpop.eup %5005  ;;  %v3547_v29 = vadd.f32 1e-20, %v3535_v61 }
 0xef5   : > { %v3568_v14 = vsub.f32 %v5714_v25, %v3556_v63  ;;  %v3540_v22 = vpop.xlane.xlu1 %3539  ;;  %v3616_v48 = vmin.f32 %v6023_v10, %v5006_v12  ;;  %v3617_v51 = vmin.f32 %v6025_v55, %v5006_v12  ;;  %v3591_v7 = vmul.f32 3.3333333, %v3583_v20 }
 0xef6   : > { %v3548_v3 = vadd.f32 1e-20, %v3540_v22  ;;  %v3618_v27 = vmin.f32 %v6028_v41, %v5006_v12  ;;  %5011 = vlog2.f32 %v3547_v29 }
 0xef7   : > { %v3576_v6 = vmul.f32 0.3, %v3568_v14  ;;  %v3642_v18 = vadd.f32 %v3617_v51, %v3616_v48  ;;  %v3601_v15 = vmul.f32 1.442695, %v3591_v7 }
 0xef8   : > { %5013 = vlog2.f32 %v3548_v3  ;;  %v3643_v47 = vsel %vm429_vm0, %v3618_v27, 0.0 }
 0xef9   : > { %v3584_v34 = vsub.f32 0.0, %v3576_v6  ;;  %v3644_v56 = vadd.f32 %v3643_v47, %v3642_v18  ;;  %5015 = vpow2.f32 %v3601_v15 }
 0xefb   : > { %v3592_v50 = vmul.f32 3.3333333, %v3584_v34  ;;  %3645 = vadd.xlane.f32.xlu1 %v3644_v56 }
 0xefc   : > { %v5008_v30 = vpop.eup %5007 }
 0xefd   : > { %v3603_v10 = vmul.f32 1.442695, %v3592_v50  ;;  %v5010_v2 = vpop.eup %5009  ;;  %v3558_v55 = vmul.f32 0.6931472, %v5008_v30 }
 0xefe   : > { %v3560_v32 = vmul.f32 0.6931472, %v5010_v2 }
 0xeff   : > { %5017 = vpow2.f32 %v3603_v10  ;;  %v3569_v41 = vsub.f32 %v5720_v16, %v3558_v55 }
 0xf00   : > { %v5012_v21 = vpop.eup %5011  ;;  %v3570_v59 = vsub.f32 %v5722_v17, %v3560_v32 }
 0xf01   : > { %v3577_v63 = vmul.f32 0.3, %v3569_v41  ;;  %v3562_v12 = vmul.f32 0.6931472, %v5012_v21 }
 0xf02   : > { %v5014_v0 = vpop.eup %5013  ;;  %v3578_v20 = vmul.f32 0.3, %v3570_v59 }
 0xf03   : > { %v3564_v61 = vmul.f32 0.6931472, %v5014_v0  ;;  %v5016_v14 = vpop.eup %5015  ;;  %v3585_v29 = vsub.f32 0.0, %v3577_v63  ;;  %v3571_v22 = vsub.f32 %v5730_v36, %v3562_v12 }
 0xf04   : > { %v3586_v48 = vsub.f32 0.0, %v3578_v20  ;;  %v3619_v7 = vmin.f32 %v6039_v62, %v5016_v14  ;;  %v3620_v3 = vmin.f32 %v6042_v38, %v5016_v14  ;;  %v3621_v18 = vmin.f32 %v6045_v28, %v5016_v14 }
 0xf05   : > { %v3572_v51 = vsub.f32 %v5732_v31, %v3564_v61  ;;  %v3593_v27 = vmul.f32 3.3333333, %v3585_v29  ;;  %v3579_v6 = vmul.f32 0.3, %v3571_v22 }
 0xf06   : > { %v3594_v15 = vmul.f32 3.3333333, %v3586_v48  ;;  %v3647_v34 = vadd.f32 %v3620_v3, %v3619_v7  ;;  %v3648_v30 = vsel %vm429_vm0, %v3621_v18, 0.0 }
 0xf07   : > { %v3580_v47 = vmul.f32 0.3, %v3572_v51  ;;  %v3605_v56 = vmul.f32 1.442695, %v3593_v27  ;;  %v3587_v50 = vsub.f32 0.0, %v3579_v6 }
 0xf08   : > { %v3607_v2 = vmul.f32 1.442695, %v3594_v15  ;;  %v3649_v32 = vadd.f32 %v3648_v30, %v3647_v34 }
 0xf09   : > { %v5018_v10 = vpop.eup %5017  ;;  %v3588_v55 = vsub.f32 0.0, %v3580_v47  ;;  %5019 = vpow2.f32 %v3605_v56  ;;  %v3595_v41 = vmul.f32 3.3333333, %v3587_v50 }
 0xf0a   : > { %v3622_v62 = vmin.f32 %v6048_v26, %v5018_v10  ;;  %v3623_v38 = vmin.f32 %v6053_v24, %v5018_v10  ;;  %5021 = vpow2.f32 %v3607_v2  ;;  %3650 = vadd.xlane.f32.xlu0 %v3649_v32  ;;  %v3624_v28 = vmin.f32 %v6058_v57, %v5018_v10 }
 0xf0b   : > { %v3596_v21 = vmul.f32 3.3333333, %v3588_v55  ;;  %v3609_v59 = vmul.f32 1.442695, %v3595_v41 }
 0xf0c   : > { %v3652_v0 = vadd.f32 %v3623_v38, %v3622_v62  ;;  %v3653_v12 = vsel %vm429_vm0, %v3624_v28, 0.0 }
 0xf0d   : > { %v3611_v63 = vmul.f32 1.442695, %v3596_v21  ;;  %5023 = vpow2.f32 %v3609_v59 }
 0xf0e   : > { %v3654_v20 = vadd.f32 %v3653_v12, %v3652_v0 }
 0xf0f   : > { %5025 = vpow2.f32 %v3611_v63 }
 0xf10   : > { %3655 = vadd.xlane.f32.xlu1 %v3654_v20 }
 0xf13   : > { %v5020_v61 = vpop.eup %5019 }
 0xf14   : > { %v5022_v14 = vpop.eup %5021  ;;  %v3625_v26 = vmin.f32 %v6061_v33, %v5020_v61  ;;  %v3626_v24 = vmin.f32 %v6067_v46, %v5020_v61  ;;  %v3627_v29 = vmin.f32 %v6070_v58, %v5020_v61 }
 0xf15   : > { %v3628_v22 = vmin.f32 %v6074_v45, %v5022_v14  ;;  %v3629_v57 = vmin.f32 %v6077_v23, %v5022_v14  ;;  %v3630_v48 = vmin.f32 %v6079_v19, %v5022_v14 }
 0xf16   : > { %v3657_v51 = vadd.f32 %v3626_v24, %v3625_v26  ;;  %v3658_v7 = vsel %vm429_vm0, %v3627_v29, 0.0 }
 0xf17   : > { %v5024_v3 = vpop.eup %5023  ;;  %v3662_v27 = vadd.f32 %v3629_v57, %v3628_v22  ;;  %v3663_v6 = vsel %vm429_vm0, %v3630_v48, 0.0 }
 0xf18   : > { %v3659_v15 = vadd.f32 %v3658_v7, %v3657_v51  ;;  %v3631_v33 = vmin.f32 %v6082_v35, %v5024_v3  ;;  %v3632_v46 = vmin.f32 %v6084_v44, %v5024_v3  ;;  %v3633_v58 = vmin.f32 %v6086_v8, %v5024_v3 }
 0xf19   : > { %v5026_v18 = vpop.eup %5025  ;;  %v3664_v45 = vadd.f32 %v3663_v6, %v3662_v27 }
 0xf1a   : > { %v3634_v23 = vmin.f32 %v6088_v39, %v5026_v18  ;;  %v3635_v19 = vmin.f32 %v6093_v53, %v5026_v18  ;;  %v3636_v47 = vmin.f32 %v6098_v4, %v5026_v18  ;;  %3660 = vadd.xlane.f32.xlu0 %v3659_v15  ;;  %v3667_v34 = vadd.f32 %v3632_v46, %v3631_v33 }
 0xf1b   : > { %v3668_v56 = vsel %vm429_vm0, %v3633_v58, 0.0  ;;  %3665 = vadd.xlane.f32.xlu1 %v3664_v45 }
 0xf1c   : > { %v3672_v50 = vadd.f32 %v3635_v19, %v3634_v23  ;;  %v3673_v30 = vsel %vm429_vm0, %v3636_v47, 0.0  ;;  %v3669_v35 = vadd.f32 %v3668_v56, %v3667_v34 }
 0xf1e   : > { %v3674_v10 = vadd.f32 %v3673_v30, %v3672_v50  ;;  %3670 = vadd.xlane.f32.xlu0 %v3669_v35 }
 0xf20   : > { %3675 = vadd.xlane.f32.xlu1 %v3674_v10 }
 0xf6d   : > { %v3641_v44 = vpop.xlane.xlu0 %3640 }
 0xf6e   : > { %v3677_v8 = vadd.f32 1e-20, %v3641_v44 }
 0xf70   : > { %5027 = vlog2.f32 %v3677_v8 }
 0xf7a   : > { %v5028_v39 = vpop.eup %5027 }
 0xf7b   : > { %v3686_v2 = vmul.f32 0.6931472, %v5028_v39 }
 0xf7d   : > { %v3701_v53 = vsub.f32 %v5702_v1, %v3686_v2 }
 0xf7f   : > { %v3709_v4 = vmul.f32 0.3, %v3701_v53 }
 0xf81   : > { %v3717_v55 = vadd.f32 %v3709_v4, %v5598_v40  ;;  %v3718_v32 = vadd.f32 %v3709_v4, %v5601_v42  ;;  %v3719_v41 = vadd.f32 %v3709_v4, %v5604_v43 }
 0xf83   : > { %v3741_v62 = vmin.f32 %v3717_v55, 0.0  ;;  %v3742_v38 = vmin.f32 %v3718_v32, 0.0  ;;  %v3743_v21 = vmin.f32 %v3719_v41, 0.0 }
 0xf85   : > { %v3765_v28 = vmul.f32 3.3333333, %v3741_v62  ;;  %v3766_v59 = vmul.f32 3.3333333, %v3742_v38  ;;  %v3767_v0 = vmul.f32 3.3333333, %v3743_v21 }
 0xf87   : > { %v3789_v63 = vmul.f32 1.442695, %v3765_v28  ;;  %v3791_v12 = vmul.f32 1.442695, %v3766_v59  ;;  %v3793_v20 = vmul.f32 1.442695, %v3767_v0 }
 0xf88   : > { %v3646_v61 = vpop.xlane.xlu1 %3645  ;;  %v6714_v59 = vld [vmem:[#allocation11_spill] sm:$0xff] }
 0xf89   : > { %5029 = vpow2.f32 %v3789_v63  ;;  %v3678_v1 = vadd.f32 1e-20, %v3646_v61  ;;  %v6715_v63 = vld [vmem:[#allocation12_spill] sm:$0xff] }
 0xf8a   : > { %5031 = vpow2.f32 %v3791_v12 }
 0xf8b   : > { %5033 = vpow2.f32 %v3793_v20 }
 0xf8c   : > { %5035 = vlog2.f32 %v3678_v1 }
 0xf93   : > { %v5030_v40 = vpop.eup %5029 }
 0xf94   : > { %v5032_v42 = vpop.eup %5031  ;;  %3837 = vst [vmem:[%s6555_s20] sm:$0xff] %v5030_v40 }
 0xf95   : > { %v5034_v43 = vpop.eup %5033  ;;  %3838 = vst [vmem:[%s6555_s20 + $0x8] sm:$0xff] %v5032_v42 }
 0xf96   : > { %v5036_v14 = vpop.eup %5035  ;;  %3839 = vst.msk [vmem:[%s6555_s20 + $0x10] sm:$0xff] %vm429_vm0, %v5034_v43 }
 0xf97   : > { %v3688_v26 = vmul.f32 0.6931472, %v5036_v14  ;;  %v3651_v29 = vpop.xlane.xlu0 %3650 }
 0xf98   : > { %v3679_v22 = vadd.f32 1e-20, %v3651_v29 }
 0xf99   : > { %v3702_v24 = vsub.f32 %v5705_v13, %v3688_v26 }
 0xf9a   : > { %5037 = vlog2.f32 %v3679_v22 }
 0xf9b   : > { %v3710_v57 = vmul.f32 0.3, %v3702_v24 }
 0xf9d   : > { %v3720_v48 = vadd.f32 %v3710_v57, %v5607_v49  ;;  %v3721_v51 = vadd.f32 %v3710_v57, %v5611_v9  ;;  %v3722_v7 = vadd.f32 %v3710_v57, %v5614_v52  ;;  %v3656_v3 = vpop.xlane.xlu1 %3655 }
 0xf9e   : > { %v3680_v15 = vadd.f32 1e-20, %v3656_v3 }
 0xf9f   : > { %v3744_v27 = vmin.f32 %v3720_v48, 0.0  ;;  %v3745_v6 = vmin.f32 %v3721_v51, 0.0  ;;  %v3746_v18 = vmin.f32 %v3722_v7, 0.0 }
 0xfa0   : > { %5039 = vlog2.f32 %v3680_v15 }
 0xfa1   : > { %v3768_v33 = vmul.f32 3.3333333, %v3744_v27  ;;  %v3769_v46 = vmul.f32 3.3333333, %v3745_v6  ;;  %v3770_v58 = vmul.f32 3.3333333, %v3746_v18 }
 0xfa3   : > { %v3795_v13 = vmul.f32 1.442695, %v3768_v33  ;;  %v3797_v45 = vmul.f32 1.442695, %v3769_v46  ;;  %v3799_v23 = vmul.f32 1.442695, %v3770_v58 }
 0xfa4   : > { %v5038_v19 = vpop.eup %5037  ;;  %v6716_v58 = vld [vmem:[#allocation13_spill] sm:$0xff] }
 0xfa5   : > { %5041 = vpow2.f32 %v3795_v13  ;;  %v3690_v49 = vmul.f32 0.6931472, %v5038_v19  ;;  %v6718_v19 = vld [vmem:[#allocation15_spill] sm:$0xff] }
 0xfa6   : > { %5043 = vpow2.f32 %v3797_v45  ;;  %v6717_v45 = vld [vmem:[#allocation14_spill] sm:$0xff] }
 0xfa7   : > { %5045 = vpow2.f32 %v3799_v23  ;;  %v3703_v9 = vsub.f32 %v5708_v5, %v3690_v49  ;;  %v3661_v52 = vpop.xlane.xlu0 %3660 }
 0xfa8   : > { %v3681_v47 = vadd.f32 1e-20, %v3661_v52  ;;  %v3666_v34 = vpop.xlane.xlu1 %3665 }
 0xfa9   : > { %v3711_v50 = vmul.f32 0.3, %v3703_v9  ;;  %v3682_v30 = vadd.f32 1e-20, %v3666_v34 }
 0xfaa   : > { %v5040_v56 = vpop.eup %5039  ;;  %5047 = vlog2.f32 %v3681_v47 }
 0xfab   : > { %v3692_v35 = vmul.f32 0.6931472, %v5040_v56  ;;  %v3723_v10 = vadd.f32 %v3711_v50, %v5618_v11  ;;  %v3724_v44 = vadd.f32 %v3711_v50, %v5622_v54  ;;  %v3725_v8 = vadd.f32 %v3711_v50, %v5626_v37  ;;  %v3671_v39 = vpop.xlane.xlu0 %3670  ;;  %v6719_v50 = vld [vmem:[#allocation16_spill] sm:$0xff] }
 0xfac   : > { %5049 = vlog2.f32 %v3682_v30  ;;  %v3683_v2 = vadd.f32 1e-20, %v3671_v39 }
 0xfad   : > { %v3704_v5 = vsub.f32 %v5714_v25, %v3692_v35  ;;  %v3676_v53 = vpop.xlane.xlu1 %3675  ;;  %v3747_v55 = vmin.f32 %v3723_v10, 0.0  ;;  %v3748_v32 = vmin.f32 %v3724_v44, 0.0  ;;  %v3749_v41 = vmin.f32 %v3725_v8, 0.0  ;;  %v6720_v10 = vld [vmem:[#allocation17_spill] sm:$0xff]  ;;  %v6721_v8 = vld [vmem:[#allocation18_spill] sm:$0xff] }
 0xfae   : > { %v3684_v62 = vadd.f32 1e-20, %v3676_v53  ;;  %5051 = vlog2.f32 %v3683_v2 }
 0xfaf   : > { %v5042_v4 = vpop.eup %5041  ;;  %v3712_v11 = vmul.f32 0.3, %v3704_v5  ;;  %v3771_v37 = vmul.f32 3.3333333, %v3747_v55  ;;  %v3772_v21 = vmul.f32 3.3333333, %v3748_v32 }
 0xfb0   : > { %v5044_v38 = vpop.eup %5043  ;;  %3840 = vst [vmem:[%s6555_s20 + $0x18] sm:$0xff] %v5042_v4  ;;  %v3773_v28 = vmul.f32 3.3333333, %v3749_v41  ;;  %5053 = vlog2.f32 %v3684_v62  ;;  %v6722_v62 = vld [vmem:[#allocation19_spill] sm:$0xff] }
 0xfb1   : > { %v5046_v54 = vpop.eup %5045  ;;  %3841 = vst [vmem:[%s6555_s20 + $0x20] sm:$0xff] %v5044_v38  ;;  %v3726_v25 = vadd.f32 %v3712_v11, %v5629_v60  ;;  %v3727_v0 = vadd.f32 %v3712_v11, %v6714_v59  ;;  %v3728_v12 = vadd.f32 %v3712_v11, %v6715_v63  ;;  %v3801_v20 = vmul.f32 1.442695, %v3771_v37 }
 0xfb2   : > { %3842 = vst.msk [vmem:[%s6555_s20 + $0x28] sm:$0xff] %vm429_vm0, %v5046_v54  ;;  %v3803_v61 = vmul.f32 1.442695, %v3772_v21  ;;  %v3805_v1 = vmul.f32 1.442695, %v3773_v28  ;;  %v6723_v21 = vld [vmem:[#allocation20_spill] sm:$0xff] }
 0xfb3   : > { %v3750_v40 = vmin.f32 %v3726_v25, 0.0  ;;  %v3751_v42 = vmin.f32 %v3727_v0, 0.0  ;;  %v3752_v43 = vmin.f32 %v3728_v12, 0.0  ;;  %5055 = vpow2.f32 %v3801_v20  ;;  %v6724_v12 = vld [vmem:[#allocation21_spill] sm:$0xff] }
 0xfb4   : > { %v5048_v14 = vpop.eup %5047  ;;  %5057 = vpow2.f32 %v3803_v61 }
 0xfb5   : > { %v3774_v26 = vmul.f32 3.3333333, %v3750_v40  ;;  %v3775_v24 = vmul.f32 3.3333333, %v3751_v42  ;;  %v3776_v29 = vmul.f32 3.3333333, %v3752_v43  ;;  %5059 = vpow2.f32 %v3805_v1 }
 0xfb6   : > { %v5050_v22 = vpop.eup %5049  ;;  %v3694_v57 = vmul.f32 0.6931472, %v5048_v14  ;;  %v6725_v42 = vld [vmem:[#allocation22_spill] sm:$0xff] }
 0xfb7   : > { %v3807_v60 = vmul.f32 1.442695, %v3774_v26  ;;  %v3809_v48 = vmul.f32 1.442695, %v3775_v24  ;;  %v3811_v51 = vmul.f32 1.442695, %v3776_v29 }
 0xfb8   : > { %v3705_v7 = vsub.f32 %v5720_v16, %v3694_v57  ;;  %v3696_v3 = vmul.f32 0.6931472, %v5050_v22  ;;  %v5052_v27 = vpop.eup %5051 }
 0xfb9   : > { %5061 = vpow2.f32 %v3807_v60  ;;  %v3698_v33 = vmul.f32 0.6931472, %v5052_v27 }
 0xfba   : > { %v5054_v6 = vpop.eup %5053  ;;  %5063 = vpow2.f32 %v3809_v48  ;;  %v3713_v18 = vmul.f32 0.3, %v3705_v7  ;;  %v3706_v15 = vsub.f32 %v5722_v17, %v3696_v3  ;;  %v6726_v48 = vld [vmem:[#allocation23_spill] sm:$0xff]  ;;  %v6727_v7 = vld [vmem:[#allocation24_spill] sm:$0xff] }
 0xfbb   : > { %5065 = vpow2.f32 %v3811_v51  ;;  %v3700_v46 = vmul.f32 0.6931472, %v5054_v6  ;;  %v3707_v9 = vsub.f32 %v5730_v36, %v3698_v33 }
 0xfbc   : > { %v3729_v13 = vadd.f32 %v3713_v18, %v6716_v58  ;;  %v3730_v23 = vadd.f32 %v3713_v18, %v6717_v45  ;;  %v3731_v49 = vadd.f32 %v3713_v18, %v6718_v19  ;;  %v3714_v16 = vmul.f32 0.3, %v3706_v15 }
 0xfbd   : > { %v3708_v52 = vsub.f32 %v5732_v31, %v3700_v46  ;;  %v5056_v47 = vpop.eup %5055  ;;  %v3715_v5 = vmul.f32 0.3, %v3707_v9 }
 0xfbe   : > { %v3753_v34 = vmin.f32 %v3729_v13, 0.0  ;;  %v3754_v17 = vmin.f32 %v3730_v23, 0.0  ;;  %v3755_v56 = vmin.f32 %v3731_v49, 0.0  ;;  %v3732_v30 = vadd.f32 %v3714_v16, %v6719_v50  ;;  %v5058_v35 = vpop.eup %5057  ;;  %3843 = vst [vmem:[%s6555_s20 + $0x30] sm:$0xff] %v5056_v47 }
 0xfbf   : > { %v3733_v44 = vadd.f32 %v3714_v16, %v6720_v10  ;;  %v3734_v39 = vadd.f32 %v3714_v16, %v6721_v8  ;;  %v3716_v2 = vmul.f32 0.3, %v3708_v52  ;;  %v5060_v53 = vpop.eup %5059  ;;  %3844 = vst [vmem:[%s6555_s20 + $0x38] sm:$0xff] %v5058_v35  ;;  %v3735_v38 = vadd.f32 %v3715_v5, %v6722_v62 }
 0xfc0   : > { %v3777_v36 = vmul.f32 3.3333333, %v3753_v34  ;;  %v3778_v4 = vmul.f32 3.3333333, %v3754_v17  ;;  %v3779_v31 = vmul.f32 3.3333333, %v3755_v56  ;;  %v3736_v28 = vadd.f32 %v3715_v5, %v6723_v21 }
 0xfc1   : > { %3845 = vst.msk [vmem:[%s6555_s20 + $0x40] sm:$0xff] %vm429_vm0, %v5060_v53  ;;  %v3756_v55 = vmin.f32 %v3732_v30, 0.0  ;;  %v3757_v32 = vmin.f32 %v3733_v44, 0.0  ;;  %v3758_v41 = vmin.f32 %v3734_v39, 0.0  ;;  %v3737_v20 = vadd.f32 %v3715_v5, %v6724_v12 }
 0xfc2   : > { %v3813_v11 = vmul.f32 1.442695, %v3777_v36  ;;  %v3815_v54 = vmul.f32 1.442695, %v3778_v4  ;;  %v3817_v37 = vmul.f32 1.442695, %v3779_v31  ;;  %v3738_v43 = vadd.f32 %v3716_v2, %v6725_v42 }
 0xfc3   : > { %v5062_v25 = vpop.eup %5061  ;;  %v3780_v59 = vmul.f32 3.3333333, %v3756_v55  ;;  %v3781_v0 = vmul.f32 3.3333333, %v3757_v32  ;;  %v3782_v63 = vmul.f32 3.3333333, %v3758_v41  ;;  %v3739_v51 = vadd.f32 %v3716_v2, %v6726_v48 }
 0xfc4   : > { %v5064_v61 = vpop.eup %5063  ;;  %3846 = vst [vmem:[%s6555_s20 + $0x48] sm:$0xff] %v5062_v25  ;;  %5067 = vpow2.f32 %v3813_v11  ;;  %v3759_v1 = vmin.f32 %v3735_v38, 0.0  ;;  %v3760_v40 = vmin.f32 %v3736_v28, 0.0  ;;  %v3761_v22 = vmin.f32 %v3737_v20, 0.0 }
 0xfc5   : > { %v5066_v14 = vpop.eup %5065  ;;  %3847 = vst [vmem:[%s6555_s20 + $0x50] sm:$0xff] %v5064_v61  ;;  %5069 = vpow2.f32 %v3815_v54  ;;  %v3819_v26 = vmul.f32 1.442695, %v3780_v59  ;;  %v3821_v24 = vmul.f32 1.442695, %v3781_v0  ;;  %v3740_v3 = vadd.f32 %v3716_v2, %v6727_v7 }
 0xfc6   : > { %v3823_v29 = vmul.f32 1.442695, %v3782_v63  ;;  %3848 = vst.msk [vmem:[%s6555_s20 + $0x58] sm:$0xff] %vm429_vm0, %v5066_v14  ;;  %5071 = vpow2.f32 %v3817_v37  ;;  %v3783_v57 = vmul.f32 3.3333333, %v3759_v1  ;;  %v3762_v27 = vmin.f32 %v3738_v43, 0.0 }
 0xfc7   : > { %v3784_v60 = vmul.f32 3.3333333, %v3760_v40  ;;  %5073 = vpow2.f32 %v3819_v26  ;;  %v3785_v6 = vmul.f32 3.3333333, %v3761_v22  ;;  %v3763_v33 = vmin.f32 %v3739_v51, 0.0 }
 0xfc8   : > { %5075 = vpow2.f32 %v3821_v24  ;;  %v3825_v18 = vmul.f32 1.442695, %v3783_v57  ;;  %v3764_v46 = vmin.f32 %v3740_v3, 0.0  ;;  %v3786_v58 = vmul.f32 3.3333333, %v3762_v27 }
 0xfc9   : > { %v3827_v15 = vmul.f32 1.442695, %v3784_v60  ;;  %5077 = vpow2.f32 %v3823_v29  ;;  %v3829_v13 = vmul.f32 1.442695, %v3785_v6  ;;  %v3787_v45 = vmul.f32 3.3333333, %v3763_v33 }
 0xfca   : > { %5079 = vpow2.f32 %v3825_v18  ;;  %v3788_v23 = vmul.f32 3.3333333, %v3764_v46  ;;  %v3831_v19 = vmul.f32 1.442695, %v3786_v58 }
 0xfcb   : > { %5081 = vpow2.f32 %v3827_v15  ;;  %v3833_v49 = vmul.f32 1.442695, %v3787_v45 }
 0xfcc   : > { %5083 = vpow2.f32 %v3829_v13  ;;  %v3835_v16 = vmul.f32 1.442695, %v3788_v23 }
 0xfcd   : > { %5085 = vpow2.f32 %v3831_v19 }
 0xfce   : > { %v5068_v9 = vpop.eup %5067  ;;  %5087 = vpow2.f32 %v3833_v49 }
 0xfcf   : > { %v5070_v52 = vpop.eup %5069  ;;  %3849 = vst [vmem:[%s6555_s20 + $0x60] sm:$0xff] %v5068_v9  ;;  %5089 = vpow2.f32 %v3835_v16 }
 0xfd0   : > { %v5072_v47 = vpop.eup %5071  ;;  %3850 = vst [vmem:[%s6555_s20 + $0x68] sm:$0xff] %v5070_v52 }
 0xfd1   : > { %v5074_v34 = vpop.eup %5073  ;;  %3851 = vst.msk [vmem:[%s6555_s20 + $0x70] sm:$0xff] %vm429_vm0, %v5072_v47 }
 0xfd2   : > { %v5076_v17 = vpop.eup %5075  ;;  %3852 = vst [vmem:[%s6555_s20 + $0x78] sm:$0xff] %v5074_v34 }
 0xfd3   : > { %v5078_v56 = vpop.eup %5077  ;;  %3853 = vst [vmem:[%s6555_s20 + $0x80] sm:$0xff] %v5076_v17 }
 0xfd4   : > { %v5080_v50 = vpop.eup %5079  ;;  %3854 = vst.msk [vmem:[%s6555_s20 + $0x88] sm:$0xff] %vm429_vm0, %v5078_v56  ;;  %3868 = sbr.rel (!%p6728_p6) target bundleno = 4088 (0xff8), region = 40 }
 0xfd5   : > { %v5082_v30 = vpop.eup %5081  ;;  %3855 = vst [vmem:[%s6555_s20 + $0x90] sm:$0xff] %v5080_v50 }
 0xfd6   : > { %v5084_v35 = vpop.eup %5083  ;;  %3856 = vst [vmem:[%s6555_s20 + $0x98] sm:$0xff] %v5082_v30 }
 0xfd7   : > { %v5086_v10 = vpop.eup %5085  ;;  %3857 = vst.msk [vmem:[%s6555_s20 + $0xa0] sm:$0xff] %vm429_vm0, %v5084_v35 }
 0xfd8   : > { %3858 = vst [vmem:[%s6555_s20 + $0xa8] sm:$0xff] %v5086_v10  ;;  %v5088_v44 = vpop.eup %5087 }
 0xfd9   : > { %v5090_v8 = vpop.eup %5089  ;;  %3859 = vst [vmem:[%s6555_s20 + $0xb0] sm:$0xff] %v5088_v44 }
 0xfda   : > { %3860 = vst.msk [vmem:[%s6555_s20 + $0xb8] sm:$0xff] %vm429_vm0, %v5090_v8 }
 0xfdb   : > { %s6739_s30 = smov (!%p3871_p5, %s3870_s30), 8 }
 0xfdc   : > { %s6621_s3 = smul.u32 384, %s6739_s30 }
 0xfde   : > { %s3876_s5 = ssub.s32 3072, %s6621_s3 }
 0xfdf   : > { %3877 = vsyncadd %s3862_s29, %s3876_s5  ;;  %p4024_p1 = scmp.ne.s32.totalorder %s6621_s3, 0  ;;  %s4035_s21 = smul.u32 3072, %s5265_s13 }
 0xfe0   : > { %s3883_s6 = sshll.u32 %s6555_s20, 4  ;;  %s5226_s27 = smov [#allocation7]   ;;  %s6634_s6 = int_to_ptr.vmem [resolvable:$true] %s3883_s6 }
 0xfe1   : > { %s6632_s16 = scalar_lea.hbm %s6681_s2, %s4035_s21  ;;  %s5147_s23 = scalar_lea.vmem %s6634_s6, %s6621_s3 }
 0xfe2   : > { %p5148_p3 = scmp.ne.s32.totalorder %s6634_s6, %s5147_s23  ;;  %s5151_s19 = sshll.u32 %s5226_s27, 4  ;;  %s5152_s19 = int_to_ptr.vmem [resolvable:$false] %s5151_s19 }
 0xfe3   : > { %s5153_s13 = scalar_lea.vmem %s5152_s19, 6144  ;;  %p5154_p9 = scmp.lt.s32.totalorder %s6634_s6, %s5152_s19 }
 0xfe4   : > { %p5149_p4 = pnand %p5148_p3, %p4024_p1  ;;  %p5155_p10 = scmp.lt.s32.totalorder %s5153_s13, %s5147_s23 }
 0xfe6   : > { %p5150_p7 = pneg %p5149_p4  ;;  %p5156_p13 = por %p5155_p10, %p5154_p9 }
 0xfe8   : > { %p5157_p8 = pnand %p5156_p13, %p5150_p7 }
 0xfea   : > { %5160 = shalt.err (!%p5157_p8)
}
 0xfeb   : > { %s5161_s7 = scalar_lea.hbm %s6632_s16, %s6621_s3  ;;  %s5165_s17 = scalar_lea.hbm %s6681_s2, 9600 }
 0xfec   : > { %p5162_p11 = scmp.ne.s32.totalorder %s6632_s16, %s5161_s7  ;;  %p5166_p0 = scmp.lt.u32.totalorder %s6632_s16, %s6681_s2 }
 0xfed   : > { %p5167_p6 = scmp.lt.u32.totalorder %s5165_s17, %s5161_s7  ;;  %p5169_p3 = scmp.lt.u32.totalorder %s5161_s7, %s6632_s16 }
 0xfee   : > { %p5163_p2 = pnand %p5162_p11, %p4024_p1 }
 0xfef   : > { %p5168_p5 = por %p5167_p6, %p5166_p0 }
 0xff0   : > { %p5164_p12 = pneg %p5163_p2 }
 0xff1   : > { %p5170_p4 = por %p5169_p3, %p5168_p5 }
 0xff3   : > { %p5171_p7 = pnand %p5170_p4, %p5164_p12 }
 0xff5   : > { %5174 = shalt.err (!%p5171_p7)
}
 0xff6   : > { %s5227_s25 = smov 384   ;;  %s5228_s30 = smov 24  }
 0xff7   : > { %3889 = dma.vmem_to_hbm [thread:$0]  (%p4024_p1), %s6634_s6, %s6621_s3, %s6632_s16, %s3862_s29, %s5227_s25, %s5227_s25, %s5228_s30  }
 0xff8 PF: > { %p4043_p9 = scmp.ge.s32.totalorder %s5217_s12, 2  ;;  %s3898_s5 = sand.u32 1, %s5205_s9  }
 0xff9   : > { %p6729_p10 = scmp.ne.s32.totalorder %s6699_s22, 0  ;;  %s3899_s21 = scalar_lea.sflag [#allocation4], %s3898_s5 }
 0xffb   : > { %p4040_p13 = pnand %p4043_p9, %p6729_p10 }
 0xffd   : > { %5200 = dma.done.wait (!%p4040_p13), %s3899_s21, 3072  }
 0xffe   : > { %5202 = vsyncadd (!%p4040_p13), %s3899_s21, 4294964224  ;;  %p18_p8 = scmp.ge.s32.totalorder %s5269_s15, 6   ;;  %s6730_s9 = smov %s5209_s10 }
 0xfff   : > { %s6731_s10 = smov %s5213_s11  ;;  %s6732_s11 = smov %s5281_s18 }
0x1000   : > { %s6733_s12 = smov %s5269_s15  ;;  %20 = sbr.rel (!%p18_p8) target bundleno = 7 (0x7), region = 86 }
0x1007   :  { %3904 = vsyncpa [#allocation3], 1 }
0x1008   :  { %3906 = vsyncpa [#allocation3 + $0x1], 1 }
0x1009   :  { %3907 = vsyncpa [#allocation6], 1 }
0x100a   :  { %3909 = vsyncpa [#allocation6 + $0x1], 1 }
0x100b   :  { %3910 = vsyncpa [#allocation4], 1 }
0x100c   :  { %3912 = vsyncpa [#allocation4 + $0x1], 1 }

</bundles_post_ra>
